<compile_context>
chip_gen: v7x
topology: tpu7x:2x2x1
jax: 0.10.0
libtpu: 0.0.40
codegen_flags: <defaults>
</compile_context>

<pallas_src>
import numpy as np
import jax
import jax.numpy as jnp
from jax import lax
from jax.experimental import pallas as pl
from jax.experimental.pallas import tpu as pltpu

# ---- static shapes implied by the module (LayerNorm([64,5,5]) => 9x9 input) ----
H_IN = W_IN = 9          # input spatial
C_IN = 17                # dense=False -> 17 input channels
H1 = W1 = 5              # after conv1 (3x3, stride 2, pad 1)
H2 = W2 = 3              # after conv2 (3x3, stride 2, pad 1) and resample (1x1, stride 4)
C1, C2 = 64, 128
R1 = H1 * W1             # 25 conv1 output positions per sample
R2 = H2 * W2             # 9 conv2 / skip output positions per sample
K1 = 9 * C_IN            # 153 = im2col contraction depth of conv1
K2 = 9 * C1              # 576 = conv2 contraction depth
KF = R2 * C2             # 1152 = flattened feature size fed to the FC heads
N_LATENT = 32            # N
LN_EPS = 1e-5            # PyTorch LayerNorm default eps
EPS_STD = 1e-6

B_TILE_MAX = 128         # samples per grid step (upper bound; batch fills matmul M)
# bf16 matmul operands (f32 accumulation) on the conv path for all of v5e/v6e/v7x;
# set to jnp.float32 for a bit-tighter match against the f32 reference.
MM_DTYPE = jnp.bfloat16


def _round_up(x, m):
    return ((x + m - 1) // m) * m


# ------------------------------- kernel math ----------------------------------
def _silu(x):
    # sigmoid via EUP exp + approx reciprocal (rides otherwise-idle EUP slots).
    return x * pl.reciprocal(1.0 + jnp.exp(-x), approx=True)


def _ln_spatial3(z, w, b):
    """Per-sample LayerNorm of z:(R, bt, C) over axes (0, 2); w/b are (R, 1, C)."""
    cnt = z.shape[0] * z.shape[2]
    s = jnp.sum(jnp.sum(z, axis=2, keepdims=True), axis=0, keepdims=True)
    mu = s * (1.0 / cnt)
    d = z - mu
    ss = jnp.sum(jnp.sum(d * d, axis=2, keepdims=True), axis=0, keepdims=True)
    inv = lax.rsqrt(ss * (1.0 / cnt) + LN_EPS)
    return d * inv * w + b


def _ln_list(slabs, w_ref, b_ref):
    """Per-sample LayerNorm over a list of R slabs of shape (bt, C)."""
    cnt = len(slabs) * slabs[0].shape[-1]
    s = jnp.sum(slabs[0], axis=1, keepdims=True)
    for z in slabs[1:]:
        s = s + jnp.sum(z, axis=1, keepdims=True)
    mu = s * (1.0 / cnt)
    d = [z - mu for z in slabs]
    ss = jnp.sum(d[0] * d[0], axis=1, keepdims=True)
    for t in d[1:]:
        ss = ss + jnp.sum(t * t, axis=1, keepdims=True)
    inv = lax.rsqrt(ss * (1.0 / cnt) + LN_EPS)
    return [d[o] * inv * w_ref[o] + b_ref[o] for o in range(len(slabs))]


def _ln_rows(x, w, b):
    """Per-row LayerNorm over the last axis (FC heads)."""
    mu = jnp.mean(x, axis=-1, keepdims=True)
    d = x - mu
    var = jnp.mean(d * d, axis=-1, keepdims=True)
    return d * lax.rsqrt(var + LN_EPS) * w + b


# ----------------------------- Pallas kernel ---------------------------------
def encoder_kernel(p1_ref, xr_ref, w1_ref, w2_ref, wr_ref, wmv_ref,
                   ln1w_ref, ln1b_ref, ln2w_ref, ln2b_ref, lnrw_ref, lnrb_ref,
                   b1_ref, b2_ref, br_ref, bmv_ref, lnmvw_ref, lnmvb_ref,
                   out_ref):
    f32 = jnp.float32
    bt = p1_ref.shape[0] // R1          # samples in this batch block
    n = out_ref.shape[1] // 2           # N latents

    def mm(a, b):
        return jnp.dot(a, b, preferred_element_type=f32)

    # ---- conv1: one (bt*25, 153) @ (153, 64) matmul (im2col done in wrapper) ----
    z1 = mm(p1_ref[...], w1_ref[...]) + b1_ref[...]              # (25*bt, 64) f32
    z1 = z1.reshape(R1, bt, C1)                                  # bt % 8 == 0 -> free split
    y1 = _silu(_ln_spatial3(z1, ln1w_ref[...], ln1b_ref[...]))   # (25, bt, 64) f32
    y1m = y1.astype(MM_DTYPE)

    # ---- conv2: per-output-position accumulation over the valid 3x3 taps.
    # Zero-padding taps are skipped (no zero FLOPs, no gather matrix); every
    # operand is a static, aligned slice of y1 / w2.
    w2 = w2_ref[...]
    b2 = b2_ref[...]
    z2 = []
    for oh in range(H2):
        for ow in range(W2):
            acc = None
            for kh in range(3):
                for kw in range(3):
                    ih, iw = 2 * oh - 1 + kh, 2 * ow - 1 + kw
                    if 0 <= ih < H1 and 0 <= iw < W1:
                        t = kh * 3 + kw
                        p = mm(y1m[ih * W1 + iw], w2[t * C1:(t + 1) * C1, :])
                        acc = p if acc is None else acc + p
            z2.append(acc + b2)                                   # (bt, 128) f32
    y2 = [_silu(v) for v in _ln_list(z2, ln2w_ref, ln2b_ref)]

    # ---- skip path: 1x1 stride-4 conv + LayerNorm (no SiLU) ----
    zr = (mm(xr_ref[...], wr_ref[...]) + br_ref[...]).reshape(R2, bt, C2)
    r = _ln_list([zr[o] for o in range(R2)], lnrw_ref, lnrb_ref)

    # ---- fused mean/log_var heads: 9 accumulated (bt,128)@(128,2N) f32 matmuls
    # (per-position slices of h avoid a (9,bt,128)->(bt,1152) transpose). ----
    wmv = wmv_ref[...]
    zh = None
    for o in range(R2):
        h_o = y2[o] + r[o]
        p = mm(h_o, wmv[o * C2:(o + 1) * C2, :])
        zh = p if zh is None else zh + p
    zh = zh + bmv_ref[...]                                        # (bt, 2N)
    lnw = lnmvw_ref[...]
    lnb = lnmvb_ref[...]
    m = _silu(_ln_rows(zh[:, :n], lnw[:, :n], lnb[:, :n]))
    v = _silu(_ln_rows(zh[:, n:], lnw[:, n:], lnb[:, n:])) + EPS_STD
    out_ref[:, :n] = m                                            # write halves directly
    out_ref[:, n:] = v


# ------------------------------ wrapper (glue) --------------------------------
def init_params(key, N):
    """Deterministic synthetic parameters in PyTorch shape conventions."""
    ks = jax.random.split(key, 20)
    nrm = lambda k, s, sc=0.1: sc * jax.random.normal(k, s, dtype=jnp.float32)
    return dict(
        conv1_w=nrm(ks[0], (C1, C_IN, 3, 3)), conv1_b=nrm(ks[1], (C1,), 0.05),
        ln1_w=1.0 + nrm(ks[2], (C1, H1, W1)), ln1_b=nrm(ks[3], (C1, H1, W1), 0.05),
        conv2_w=nrm(ks[4], (C2, C1, 3, 3)), conv2_b=nrm(ks[5], (C2,), 0.05),
        ln2_w=1.0 + nrm(ks[6], (C2, H2, W2)), ln2_b=nrm(ks[7], (C2, H2, W2), 0.05),
        res_w=nrm(ks[8], (C2, C_IN, 1, 1)), res_b=nrm(ks[9], (C2,), 0.05),
        lnr_w=1.0 + nrm(ks[10], (C2, H2, W2)), lnr_b=nrm(ks[11], (C2, H2, W2), 0.05),
        fcm_w=nrm(ks[12], (N, C2 * H2 * W2)), fcm_b=nrm(ks[13], (N,), 0.05),
        lnm_w=1.0 + nrm(ks[14], (N,)), lnm_b=nrm(ks[15], (N,), 0.05),
        fcv_w=nrm(ks[16], (N, C2 * H2 * W2)), fcv_b=nrm(ks[17], (N,), 0.05),
        lnv_w=1.0 + nrm(ks[18], (N,)), lnv_b=nrm(ks[19], (N,), 0.05),
    )


def to_kernel_params(pt, N):
    """Permute PyTorch-convention params into the kernel's layouts."""
    f32 = jnp.float32
    # (C,H,W) LayerNorm params -> broadcast-ready (H*W, 1, C)
    t_sp = lambda a, R, C: jnp.transpose(a, (1, 2, 0)).reshape(R, 1, C).astype(f32)

    # conv weights in im2col order: row = (kh*3+kw)*Cin + cin
    w1f = jnp.transpose(pt["conv1_w"], (2, 3, 1, 0)).reshape(K1, C1)
    w2f = jnp.transpose(pt["conv2_w"], (2, 3, 1, 0)).reshape(K2, C2)
    wrf = pt["res_w"].reshape(C2, C_IN).T                          # (17, 128)
    # PyTorch flatten of (B,128,3,3) uses k = c*9 + hw; kernel uses k = hw*128 + c.
    wm = jnp.transpose(pt["fcm_w"].reshape(N, C2, R2), (2, 1, 0)).reshape(KF, N)
    wv = jnp.transpose(pt["fcv_w"].reshape(N, C2, R2), (2, 1, 0)).reshape(KF, N)
    wmv = jnp.concatenate([wm, wv], axis=1)                        # (1152, 2N)

    return dict(
        w1=w1f.astype(MM_DTYPE), w2=w2f.astype(MM_DTYPE), wr=wrf.astype(MM_DTYPE),
        wmv=wmv.astype(f32),                                       # head matmul stays f32
        ln1_w=t_sp(pt["ln1_w"], R1, C1), ln1_b=t_sp(pt["ln1_b"], R1, C1),
        ln2_w=t_sp(pt["ln2_w"], R2, C2), ln2_b=t_sp(pt["ln2_b"], R2, C2),
        lnr_w=t_sp(pt["lnr_w"], R2, C2), lnr_b=t_sp(pt["lnr_b"], R2, C2),
        b1=pt["conv1_b"][None, :].astype(f32),
        b2=pt["conv2_b"][None, :].astype(f32),
        br=pt["res_b"][None, :].astype(f32),
        b_mv=jnp.concatenate([pt["fcm_b"], pt["fcv_b"]])[None, :].astype(f32),
        lnmv_w=jnp.concatenate([pt["lnm_w"], pt["lnv_w"]])[None, :].astype(f32),
        lnmv_b=jnp.concatenate([pt["lnm_b"], pt["lnv_b"]])[None, :].astype(f32),
    )


def _im2col_inputs(x_nchw):
    """Data-independent gathers done in the wrapper; (spatial, batch, K) layout."""
    # TODO(synk): conv1 im2col could move in-kernel to cut HBM bytes ~2.8x on v5e/v6e.
    B = x_nchw.shape[0]
    xp = jnp.pad(x_nchw, ((0, 0), (0, 0), (1, 1), (1, 1)))
    taps = [xp[:, :, kh:kh + 2 * H1:2, kw:kw + 2 * W1:2]           # each (B,17,5,5)
            for kh in range(3) for kw in range(3)]
    p1 = jnp.stack(taps, axis=1)                                   # (B,9,17,5,5)
    p1 = jnp.transpose(p1, (3, 4, 0, 1, 2)).reshape(R1, B, K1)     # (25,B,153)
    xr = jnp.transpose(x_nchw[:, :, ::4, ::4], (2, 3, 0, 1)).reshape(R2, B, C_IN)
    return p1, xr


def _pick_bt(batch, max_bt=B_TILE_MAX):
    full = _round_up(max(batch, 1), 16)        # 16-sublane aligned for bf16 blocks
    if full > max_bt:
        return max_bt
    if full >= 32:
        # keep the grid length >= 2 so v7x's two TensorCores both get work
        return _round_up((batch + 1) // 2, 16)
    return full


def encoder_forward(x_nchw, kp, N, max_bt=B_TILE_MAX):
    B = x_nchw.shape[0]
    bt = _pick_bt(B, max_bt)
    b_pad = _round_up(B, bt)
    nb = b_pad // bt

    p1, xr = _im2col_inputs(x_nchw.astype(jnp.float32))            # (25,B,153), (9,B,17)
    if b_pad != B:
        p1 = jnp.pad(p1, ((0, 0), (0, b_pad - B), (0, 0)))
        xr = jnp.pad(xr, ((0, 0), (0, b_pad - B), (0, 0)))
    # Block-major flatten: each grid step reads one contiguous, aligned 2-D slab
    # (row order within a block is (spatial, sample)); no in-kernel relayout.
    p1 = p1.reshape(R1, nb, bt, K1).transpose(1, 0, 2, 3).reshape(nb * R1 * bt, K1)
    xr = xr.reshape(R2, nb, bt, C_IN).transpose(1, 0, 2, 3).reshape(nb * R2 * bt, C_IN)
    p1 = p1.astype(MM_DTYPE)
    xr = xr.astype(MM_DTYPE)

    def full(a):
        return pl.BlockSpec(a.shape, lambda g, _nd=a.ndim: (0,) * _nd)

    in_specs = [
        pl.BlockSpec((R1 * bt, K1), lambda g: (g, 0)),     # conv1 im2col patches
        pl.BlockSpec((R2 * bt, C_IN), lambda g: (g, 0)),   # skip-path pixels
        full(kp["w1"]), full(kp["w2"]), full(kp["wr"]), full(kp["wmv"]),
        full(kp["ln1_w"]), full(kp["ln1_b"]), full(kp["ln2_w"]), full(kp["ln2_b"]),
        full(kp["lnr_w"]), full(kp["lnr_b"]),
        full(kp["b1"]), full(kp["b2"]), full(kp["br"]),
        full(kp["b_mv"]), full(kp["lnmv_w"]), full(kp["lnmv_b"]),
    ]

    out = pl.pallas_call(
        encoder_kernel,
        grid=(nb,),
        in_specs=in_specs,
        out_specs=pl.BlockSpec((bt, 2 * N), lambda g: (g, 0)),
        out_shape=jax.ShapeDtypeStruct((b_pad, 2 * N), jnp.float32),
        compiler_params=pltpu.CompilerParams(
            dimension_semantics=("parallel",),             # shards batch blocks across TCs
            vmem_limit_bytes=48 * 1024 * 1024),            # explicit budget (v7x-safe)
    )(p1, xr, kp["w1"], kp["w2"], kp["wr"], kp["wmv"],
      kp["ln1_w"], kp["ln1_b"], kp["ln2_w"], kp["ln2_b"],
      kp["lnr_w"], kp["lnr_b"],
      kp["b1"], kp["b2"], kp["br"], kp["b_mv"], kp["lnmv_w"], kp["lnmv_b"])

    return out[:B, :N], out[:B, N:]


# --------------------------- pure-JAX reference --------------------------------
def reference_forward(x, pt, N):
    hp = lax.Precision.HIGHEST

    def conv(z, w, b, stride, pad):
        y = lax.conv_general_dilated(
            z, w, (stride, stride), ((pad, pad), (pad, pad)),
            dimension_numbers=("NCHW", "OIHW", "NCHW"), precision=hp)
        return y + b[None, :, None, None]

    def ln(z, w, b, axes):
        mu = jnp.mean(z, axis=axes, keepdims=True)
        var = jnp.mean((z - mu) ** 2, axis=axes, keepdims=True)
        return (z - mu) / jnp.sqrt(var + LN_EPS) * w + b

    silu = lambda z: z * jax.nn.sigmoid(z)

    r = ln(conv(x, pt["res_w"], pt["res_b"], 4, 0), pt["lnr_w"], pt["lnr_b"], (1, 2, 3))
    h = silu(ln(conv(x, pt["conv1_w"], pt["conv1_b"], 2, 1), pt["ln1_w"], pt["ln1_b"], (1, 2, 3)))
    h = silu(ln(conv(h, pt["conv2_w"], pt["conv2_b"], 2, 1), pt["ln2_w"], pt["ln2_b"], (1, 2, 3)))
    h = h + r
    flat = h.reshape(h.shape[0], -1)
    m = silu(ln(jnp.dot(flat, pt["fcm_w"].T, precision=hp) + pt["fcm_b"],
                pt["lnm_w"], pt["lnm_b"], (1,)))
    v = silu(ln(jnp.dot(flat, pt["fcv_w"].T, precision=hp) + pt["fcv_b"],
                pt["lnv_w"], pt["lnv_b"], (1,))) + EPS_STD
    return m, v


if __name__ == "__main__":
    key = jax.random.PRNGKey(0)
    kx, kparam = jax.random.split(key)
    B, N = 2, N_LATENT

    x = jax.random.normal(kx, (B, C_IN, H_IN, W_IN), dtype=jnp.float32)
    pt = init_params(kparam, N)
    kparams = to_kernel_params(pt, N)

    mean, logvar = encoder_forward(x, kparams, N)
    jax.block_until_ready((mean, logvar))

    ref_m, ref_v = reference_forward(x, pt, N)
    assert mean.shape == (B, N) and logvar.shape == (B, N)
    tol = 2e-3 if MM_DTYPE == jnp.float32 else 5e-2   # bf16 conv operands -> looser check
    np.testing.assert_allclose(np.asarray(mean), np.asarray(ref_m), rtol=tol, atol=tol)
    np.testing.assert_allclose(np.asarray(logvar), np.asarray(ref_v), rtol=tol, atol=tol)
    print("KERNEL_OK")
</pallas_src>

<mosaic_0001>
module attributes {stable_mosaic.version = 11 : i64} {
  func.func @encoder_kernel(%arg0: i32, %arg1: memref<400x153xbf16, #tpu.memory_space<vmem>>, %arg2: memref<144x17xbf16, #tpu.memory_space<vmem>>, %arg3: memref<153x64xbf16, #tpu.memory_space<vmem>>, %arg4: memref<576x128xbf16, #tpu.memory_space<vmem>>, %arg5: memref<17x128xbf16, #tpu.memory_space<vmem>>, %arg6: memref<1152x64xf32, #tpu.memory_space<vmem>>, %arg7: memref<25x1x64xf32, #tpu.memory_space<vmem>>, %arg8: memref<25x1x64xf32, #tpu.memory_space<vmem>>, %arg9: memref<9x1x128xf32, #tpu.memory_space<vmem>>, %arg10: memref<9x1x128xf32, #tpu.memory_space<vmem>>, %arg11: memref<9x1x128xf32, #tpu.memory_space<vmem>>, %arg12: memref<9x1x128xf32, #tpu.memory_space<vmem>>, %arg13: memref<1x64xf32, #tpu.memory_space<vmem>>, %arg14: memref<1x128xf32, #tpu.memory_space<vmem>>, %arg15: memref<1x128xf32, #tpu.memory_space<vmem>>, %arg16: memref<1x64xf32, #tpu.memory_space<vmem>>, %arg17: memref<1x64xf32, #tpu.memory_space<vmem>>, %arg18: memref<1x64xf32, #tpu.memory_space<vmem>>, %arg19: memref<16x64xf32, #tpu.memory_space<vmem>>) attributes {dimension_semantics = [#tpu.dimension_semantics<parallel>], iteration_bounds = array<i64: 1>, scalar_prefetch = 0 : i64, scratch_operands = 0 : i64, tpu.core_type = #tpu.core_type<tc>, window_params = [{transform_indices = @transform_0, window_bounds = array<i64: 400, 153>}, {transform_indices = @transform_1, window_bounds = array<i64: 144, 17>}, {pipeline_mode = #tpu.pipeline_mode<synchronous>, transform_indices = @transform_2, window_bounds = array<i64: 153, 64>}, {pipeline_mode = #tpu.pipeline_mode<synchronous>, transform_indices = @transform_3, window_bounds = array<i64: 576, 128>}, {pipeline_mode = #tpu.pipeline_mode<synchronous>, transform_indices = @transform_4, window_bounds = array<i64: 17, 128>}, {pipeline_mode = #tpu.pipeline_mode<synchronous>, transform_indices = @transform_5, window_bounds = array<i64: 1152, 64>}, {pipeline_mode = #tpu.pipeline_mode<synchronous>, transform_indices = @transform_6, window_bounds = array<i64: 25, 1, 64>}, {pipeline_mode = #tpu.pipeline_mode<synchronous>, transform_indices = @transform_7, window_bounds = array<i64: 25, 1, 64>}, {pipeline_mode = #tpu.pipeline_mode<synchronous>, transform_indices = @transform_8, window_bounds = array<i64: 9, 1, 128>}, {pipeline_mode = #tpu.pipeline_mode<synchronous>, transform_indices = @transform_9, window_bounds = array<i64: 9, 1, 128>}, {pipeline_mode = #tpu.pipeline_mode<synchronous>, transform_indices = @transform_10, window_bounds = array<i64: 9, 1, 128>}, {pipeline_mode = #tpu.pipeline_mode<synchronous>, transform_indices = @transform_11, window_bounds = array<i64: 9, 1, 128>}, {pipeline_mode = #tpu.pipeline_mode<synchronous>, transform_indices = @transform_12, window_bounds = array<i64: 1, 64>}, {pipeline_mode = #tpu.pipeline_mode<synchronous>, transform_indices = @transform_13, window_bounds = array<i64: 1, 128>}, {pipeline_mode = #tpu.pipeline_mode<synchronous>, transform_indices = @transform_14, window_bounds = array<i64: 1, 128>}, {pipeline_mode = #tpu.pipeline_mode<synchronous>, transform_indices = @transform_15, window_bounds = array<i64: 1, 64>}, {pipeline_mode = #tpu.pipeline_mode<synchronous>, transform_indices = @transform_16, window_bounds = array<i64: 1, 64>}, {pipeline_mode = #tpu.pipeline_mode<synchronous>, transform_indices = @transform_17, window_bounds = array<i64: 1, 64>}, {transform_indices = @transform_18, window_bounds = array<i64: 16, 64>}]} {
    %c0 = arith.constant 0 : index
    %c0_0 = arith.constant 0 : index
    %0 = vector.load %arg1[%c0, %c0_0] : memref<400x153xbf16, #tpu.memory_space<vmem>>, vector<400x153xbf16>
    %c0_1 = arith.constant 0 : index
    %c0_2 = arith.constant 0 : index
    %1 = vector.load %arg3[%c0_1, %c0_2] : memref<153x64xbf16, #tpu.memory_space<vmem>>, vector<153x64xbf16>
    %cst = arith.constant dense<0.000000e+00> : vector<400x64xf32>
    %2 = tpu.matmul %0, %1, %cst {dimension_numbers = #tpu.dot_dimension_numbers<[1], [0], [0], [1], [0, 0, 1, 1], [], []>} : vector<400x153xbf16>, vector<153x64xbf16>, vector<400x64xf32> -> vector<400x64xf32>
    %c0_3 = arith.constant 0 : index
    %c0_4 = arith.constant 0 : index
    %3 = vector.load %arg13[%c0_3, %c0_4] : memref<1x64xf32, #tpu.memory_space<vmem>>, vector<1x64xf32>
    %4 = vector.broadcast %3 : vector<1x64xf32> to vector<400x64xf32>
    %5 = arith.addf %2, %4 : vector<400x64xf32>
    %6 = vector.shape_cast %5 : vector<400x64xf32> to vector<25x16x64xf32>
    %c0_5 = arith.constant 0 : index
    %c0_6 = arith.constant 0 : index
    %c0_7 = arith.constant 0 : index
    %7 = vector.load %arg7[%c0_5, %c0_6, %c0_7] : memref<25x1x64xf32, #tpu.memory_space<vmem>>, vector<25x1x64xf32>
    %c0_8 = arith.constant 0 : index
    %c0_9 = arith.constant 0 : index
    %c0_10 = arith.constant 0 : index
    %8 = vector.load %arg8[%c0_8, %c0_9, %c0_10] : memref<25x1x64xf32, #tpu.memory_space<vmem>>, vector<25x1x64xf32>
    %cst_11 = arith.constant dense<0.000000e+00> : vector<25x16xf32>
    %9 = vector.multi_reduction <add>, %6, %cst_11 [2] : vector<25x16x64xf32> to vector<25x16xf32>
    %10 = vector.shape_cast %9 : vector<25x16xf32> to vector<25x16x1xf32>
    %cst_12 = arith.constant dense<0.000000e+00> : vector<16x1xf32>
    %11 = vector.multi_reduction <add>, %10, %cst_12 [0] : vector<25x16x1xf32> to vector<16x1xf32>
    %12 = vector.shape_cast %11 : vector<16x1xf32> to vector<1x16x1xf32>
    %cst_13 = arith.constant 6.250000e-04 : f32
    %13 = vector.broadcast %cst_13 : f32 to vector<1x16x1xf32>
    %14 = arith.mulf %12, %13 : vector<1x16x1xf32>
    %15 = vector.broadcast %14 : vector<1x16x1xf32> to vector<25x16x64xf32>
    %16 = arith.subf %6, %15 : vector<25x16x64xf32>
    %17 = arith.mulf %16, %16 : vector<25x16x64xf32>
    %cst_14 = arith.constant dense<0.000000e+00> : vector<25x16xf32>
    %18 = vector.multi_reduction <add>, %17, %cst_14 [2] : vector<25x16x64xf32> to vector<25x16xf32>
    %19 = vector.shape_cast %18 : vector<25x16xf32> to vector<25x16x1xf32>
    %cst_15 = arith.constant dense<0.000000e+00> : vector<16x1xf32>
    %20 = vector.multi_reduction <add>, %19, %cst_15 [0] : vector<25x16x1xf32> to vector<16x1xf32>
    %21 = vector.shape_cast %20 : vector<16x1xf32> to vector<1x16x1xf32>
    %cst_16 = arith.constant 6.250000e-04 : f32
    %22 = vector.broadcast %cst_16 : f32 to vector<1x16x1xf32>
    %23 = arith.mulf %21, %22 : vector<1x16x1xf32>
    %cst_17 = arith.constant 9.99999974E-6 : f32
    %24 = vector.broadcast %cst_17 : f32 to vector<1x16x1xf32>
    %25 = arith.addf %23, %24 : vector<1x16x1xf32>
    %26 = math.rsqrt %25 : vector<1x16x1xf32>
    %27 = vector.broadcast %26 : vector<1x16x1xf32> to vector<25x16x64xf32>
    %28 = arith.mulf %16, %27 : vector<25x16x64xf32>
    %29 = vector.broadcast %7 : vector<25x1x64xf32> to vector<25x16x64xf32>
    %30 = arith.mulf %28, %29 : vector<25x16x64xf32>
    %31 = vector.broadcast %8 : vector<25x1x64xf32> to vector<25x16x64xf32>
    %32 = arith.addf %30, %31 : vector<25x16x64xf32>
    %cst_18 = arith.constant 0.000000e+00 : f32
    %33 = vector.broadcast %cst_18 : f32 to vector<25x16x64xf32>
    %34 = arith.subf %33, %32 : vector<25x16x64xf32>
    %35 = math.exp %34 : vector<25x16x64xf32>
    %cst_19 = arith.constant 1.000000e+00 : f32
    %36 = vector.broadcast %cst_19 : f32 to vector<25x16x64xf32>
    %37 = arith.addf %36, %35 : vector<25x16x64xf32>
    %38 = tpu.reciprocal %37 {approx = true} : vector<25x16x64xf32> -> vector<25x16x64xf32>
    %39 = arith.mulf %32, %38 : vector<25x16x64xf32>
    %40 = arith.truncf %39 : vector<25x16x64xf32> to vector<25x16x64xbf16>
    %c0_20 = arith.constant 0 : index
    %c0_21 = arith.constant 0 : index
    %41 = vector.load %arg4[%c0_20, %c0_21] : memref<576x128xbf16, #tpu.memory_space<vmem>>, vector<576x128xbf16>
    %c0_22 = arith.constant 0 : index
    %c0_23 = arith.constant 0 : index
    %42 = vector.load %arg14[%c0_22, %c0_23] : memref<1x128xf32, #tpu.memory_space<vmem>>, vector<1x128xf32>
    %43 = vector.extract_strided_slice %40 {offsets = [0, 0, 0], sizes = [1, 16, 64], strides = [1, 1, 1]} : vector<25x16x64xbf16> to vector<1x16x64xbf16>
    %44 = vector.shape_cast %43 : vector<1x16x64xbf16> to vector<16x64xbf16>
    %45 = vector.extract_strided_slice %41 {offsets = [256, 0], sizes = [64, 128], strides = [1, 1]} : vector<576x128xbf16> to vector<64x128xbf16>
    %cst_24 = arith.constant dense<0.000000e+00> : vector<16x128xf32>
    %46 = tpu.matmul %44, %45, %cst_24 {dimension_numbers = #tpu.dot_dimension_numbers<[1], [0], [0], [1], [0, 0, 1, 1], [], []>} : vector<16x64xbf16>, vector<64x128xbf16>, vector<16x128xf32> -> vector<16x128xf32>
    %47 = vector.extract_strided_slice %40 {offsets = [1, 0, 0], sizes = [1, 16, 64], strides = [1, 1, 1]} : vector<25x16x64xbf16> to vector<1x16x64xbf16>
    %48 = vector.shape_cast %47 : vector<1x16x64xbf16> to vector<16x64xbf16>
    %49 = vector.extract_strided_slice %41 {offsets = [320, 0], sizes = [64, 128], strides = [1, 1]} : vector<576x128xbf16> to vector<64x128xbf16>
    %cst_25 = arith.constant dense<0.000000e+00> : vector<16x128xf32>
    %50 = tpu.matmul %48, %49, %cst_25 {dimension_numbers = #tpu.dot_dimension_numbers<[1], [0], [0], [1], [0, 0, 1, 1], [], []>} : vector<16x64xbf16>, vector<64x128xbf16>, vector<16x128xf32> -> vector<16x128xf32>
    %51 = arith.addf %46, %50 : vector<16x128xf32>
    %52 = vector.extract_strided_slice %40 {offsets = [5, 0, 0], sizes = [1, 16, 64], strides = [1, 1, 1]} : vector<25x16x64xbf16> to vector<1x16x64xbf16>
    %53 = vector.shape_cast %52 : vector<1x16x64xbf16> to vector<16x64xbf16>
    %54 = vector.extract_strided_slice %41 {offsets = [448, 0], sizes = [64, 128], strides = [1, 1]} : vector<576x128xbf16> to vector<64x128xbf16>
    %cst_26 = arith.constant dense<0.000000e+00> : vector<16x128xf32>
    %55 = tpu.matmul %53, %54, %cst_26 {dimension_numbers = #tpu.dot_dimension_numbers<[1], [0], [0], [1], [0, 0, 1, 1], [], []>} : vector<16x64xbf16>, vector<64x128xbf16>, vector<16x128xf32> -> vector<16x128xf32>
    %56 = arith.addf %51, %55 : vector<16x128xf32>
    %57 = vector.extract_strided_slice %40 {offsets = [6, 0, 0], sizes = [1, 16, 64], strides = [1, 1, 1]} : vector<25x16x64xbf16> to vector<1x16x64xbf16>
    %58 = vector.shape_cast %57 : vector<1x16x64xbf16> to vector<16x64xbf16>
    %59 = vector.extract_strided_slice %41 {offsets = [512, 0], sizes = [64, 128], strides = [1, 1]} : vector<576x128xbf16> to vector<64x128xbf16>
    %cst_27 = arith.constant dense<0.000000e+00> : vector<16x128xf32>
    %60 = tpu.matmul %58, %59, %cst_27 {dimension_numbers = #tpu.dot_dimension_numbers<[1], [0], [0], [1], [0, 0, 1, 1], [], []>} : vector<16x64xbf16>, vector<64x128xbf16>, vector<16x128xf32> -> vector<16x128xf32>
    %61 = arith.addf %56, %60 : vector<16x128xf32>
    %62 = vector.broadcast %42 : vector<1x128xf32> to vector<16x128xf32>
    %63 = arith.addf %61, %62 : vector<16x128xf32>
    %64 = vector.extract_strided_slice %40 {offsets = [1, 0, 0], sizes = [1, 16, 64], strides = [1, 1, 1]} : vector<25x16x64xbf16> to vector<1x16x64xbf16>
    %65 = vector.shape_cast %64 : vector<1x16x64xbf16> to vector<16x64xbf16>
    %66 = vector.extract_strided_slice %41 {offsets = [192, 0], sizes = [64, 128], strides = [1, 1]} : vector<576x128xbf16> to vector<64x128xbf16>
    %cst_28 = arith.constant dense<0.000000e+00> : vector<16x128xf32>
    %67 = tpu.matmul %65, %66, %cst_28 {dimension_numbers = #tpu.dot_dimension_numbers<[1], [0], [0], [1], [0, 0, 1, 1], [], []>} : vector<16x64xbf16>, vector<64x128xbf16>, vector<16x128xf32> -> vector<16x128xf32>
    %68 = vector.extract_strided_slice %40 {offsets = [2, 0, 0], sizes = [1, 16, 64], strides = [1, 1, 1]} : vector<25x16x64xbf16> to vector<1x16x64xbf16>
    %69 = vector.shape_cast %68 : vector<1x16x64xbf16> to vector<16x64xbf16>
    %70 = vector.extract_strided_slice %41 {offsets = [256, 0], sizes = [64, 128], strides = [1, 1]} : vector<576x128xbf16> to vector<64x128xbf16>
    %cst_29 = arith.constant dense<0.000000e+00> : vector<16x128xf32>
    %71 = tpu.matmul %69, %70, %cst_29 {dimension_numbers = #tpu.dot_dimension_numbers<[1], [0], [0], [1], [0, 0, 1, 1], [], []>} : vector<16x64xbf16>, vector<64x128xbf16>, vector<16x128xf32> -> vector<16x128xf32>
    %72 = arith.addf %67, %71 : vector<16x128xf32>
    %73 = vector.extract_strided_slice %40 {offsets = [3, 0, 0], sizes = [1, 16, 64], strides = [1, 1, 1]} : vector<25x16x64xbf16> to vector<1x16x64xbf16>
    %74 = vector.shape_cast %73 : vector<1x16x64xbf16> to vector<16x64xbf16>
    %75 = vector.extract_strided_slice %41 {offsets = [320, 0], sizes = [64, 128], strides = [1, 1]} : vector<576x128xbf16> to vector<64x128xbf16>
    %cst_30 = arith.constant dense<0.000000e+00> : vector<16x128xf32>
    %76 = tpu.matmul %74, %75, %cst_30 {dimension_numbers = #tpu.dot_dimension_numbers<[1], [0], [0], [1], [0, 0, 1, 1], [], []>} : vector<16x64xbf16>, vector<64x128xbf16>, vector<16x128xf32> -> vector<16x128xf32>
    %77 = arith.addf %72, %76 : vector<16x128xf32>
    %78 = vector.extract_strided_slice %40 {offsets = [6, 0, 0], sizes = [1, 16, 64], strides = [1, 1, 1]} : vector<25x16x64xbf16> to vector<1x16x64xbf16>
    %79 = vector.shape_cast %78 : vector<1x16x64xbf16> to vector<16x64xbf16>
    %80 = vector.extract_strided_slice %41 {offsets = [384, 0], sizes = [64, 128], strides = [1, 1]} : vector<576x128xbf16> to vector<64x128xbf16>
    %cst_31 = arith.constant dense<0.000000e+00> : vector<16x128xf32>
    %81 = tpu.matmul %79, %80, %cst_31 {dimension_numbers = #tpu.dot_dimension_numbers<[1], [0], [0], [1], [0, 0, 1, 1], [], []>} : vector<16x64xbf16>, vector<64x128xbf16>, vector<16x128xf32> -> vector<16x128xf32>
    %82 = arith.addf %77, %81 : vector<16x128xf32>
    %83 = vector.extract_strided_slice %40 {offsets = [7, 0, 0], sizes = [1, 16, 64], strides = [1, 1, 1]} : vector<25x16x64xbf16> to vector<1x16x64xbf16>
    %84 = vector.shape_cast %83 : vector<1x16x64xbf16> to vector<16x64xbf16>
    %85 = vector.extract_strided_slice %41 {offsets = [448, 0], sizes = [64, 128], strides = [1, 1]} : vector<576x128xbf16> to vector<64x128xbf16>
    %cst_32 = arith.constant dense<0.000000e+00> : vector<16x128xf32>
    %86 = tpu.matmul %84, %85, %cst_32 {dimension_numbers = #tpu.dot_dimension_numbers<[1], [0], [0], [1], [0, 0, 1, 1], [], []>} : vector<16x64xbf16>, vector<64x128xbf16>, vector<16x128xf32> -> vector<16x128xf32>
    %87 = arith.addf %82, %86 : vector<16x128xf32>
    %88 = vector.extract_strided_slice %40 {offsets = [8, 0, 0], sizes = [1, 16, 64], strides = [1, 1, 1]} : vector<25x16x64xbf16> to vector<1x16x64xbf16>
    %89 = vector.shape_cast %88 : vector<1x16x64xbf16> to vector<16x64xbf16>
    %90 = vector.extract_strided_slice %41 {offsets = [512, 0], sizes = [64, 128], strides = [1, 1]} : vector<576x128xbf16> to vector<64x128xbf16>
    %cst_33 = arith.constant dense<0.000000e+00> : vector<16x128xf32>
    %91 = tpu.matmul %89, %90, %cst_33 {dimension_numbers = #tpu.dot_dimension_numbers<[1], [0], [0], [1], [0, 0, 1, 1], [], []>} : vector<16x64xbf16>, vector<64x128xbf16>, vector<16x128xf32> -> vector<16x128xf32>
    %92 = arith.addf %87, %91 : vector<16x128xf32>
    %93 = vector.broadcast %42 : vector<1x128xf32> to vector<16x128xf32>
    %94 = arith.addf %92, %93 : vector<16x128xf32>
    %95 = vector.extract_strided_slice %40 {offsets = [3, 0, 0], sizes = [1, 16, 64], strides = [1, 1, 1]} : vector<25x16x64xbf16> to vector<1x16x64xbf16>
    %96 = vector.shape_cast %95 : vector<1x16x64xbf16> to vector<16x64xbf16>
    %97 = vector.extract_strided_slice %41 {offsets = [192, 0], sizes = [64, 128], strides = [1, 1]} : vector<576x128xbf16> to vector<64x128xbf16>
    %cst_34 = arith.constant dense<0.000000e+00> : vector<16x128xf32>
    %98 = tpu.matmul %96, %97, %cst_34 {dimension_numbers = #tpu.dot_dimension_numbers<[1], [0], [0], [1], [0, 0, 1, 1], [], []>} : vector<16x64xbf16>, vector<64x128xbf16>, vector<16x128xf32> -> vector<16x128xf32>
    %99 = vector.extract_strided_slice %40 {offsets = [4, 0, 0], sizes = [1, 16, 64], strides = [1, 1, 1]} : vector<25x16x64xbf16> to vector<1x16x64xbf16>
    %100 = vector.shape_cast %99 : vector<1x16x64xbf16> to vector<16x64xbf16>
    %101 = vector.extract_strided_slice %41 {offsets = [256, 0], sizes = [64, 128], strides = [1, 1]} : vector<576x128xbf16> to vector<64x128xbf16>
    %cst_35 = arith.constant dense<0.000000e+00> : vector<16x128xf32>
    %102 = tpu.matmul %100, %101, %cst_35 {dimension_numbers = #tpu.dot_dimension_numbers<[1], [0], [0], [1], [0, 0, 1, 1], [], []>} : vector<16x64xbf16>, vector<64x128xbf16>, vector<16x128xf32> -> vector<16x128xf32>
    %103 = arith.addf %98, %102 : vector<16x128xf32>
    %104 = vector.extract_strided_slice %40 {offsets = [8, 0, 0], sizes = [1, 16, 64], strides = [1, 1, 1]} : vector<25x16x64xbf16> to vector<1x16x64xbf16>
    %105 = vector.shape_cast %104 : vector<1x16x64xbf16> to vector<16x64xbf16>
    %106 = vector.extract_strided_slice %41 {offsets = [384, 0], sizes = [64, 128], strides = [1, 1]} : vector<576x128xbf16> to vector<64x128xbf16>
    %cst_36 = arith.constant dense<0.000000e+00> : vector<16x128xf32>
    %107 = tpu.matmul %105, %106, %cst_36 {dimension_numbers = #tpu.dot_dimension_numbers<[1], [0], [0], [1], [0, 0, 1, 1], [], []>} : vector<16x64xbf16>, vector<64x128xbf16>, vector<16x128xf32> -> vector<16x128xf32>
    %108 = arith.addf %103, %107 : vector<16x128xf32>
    %109 = vector.extract_strided_slice %40 {offsets = [9, 0, 0], sizes = [1, 16, 64], strides = [1, 1, 1]} : vector<25x16x64xbf16> to vector<1x16x64xbf16>
    %110 = vector.shape_cast %109 : vector<1x16x64xbf16> to vector<16x64xbf16>
    %111 = vector.extract_strided_slice %41 {offsets = [448, 0], sizes = [64, 128], strides = [1, 1]} : vector<576x128xbf16> to vector<64x128xbf16>
    %cst_37 = arith.constant dense<0.000000e+00> : vector<16x128xf32>
    %112 = tpu.matmul %110, %111, %cst_37 {dimension_numbers = #tpu.dot_dimension_numbers<[1], [0], [0], [1], [0, 0, 1, 1], [], []>} : vector<16x64xbf16>, vector<64x128xbf16>, vector<16x128xf32> -> vector<16x128xf32>
    %113 = arith.addf %108, %112 : vector<16x128xf32>
    %114 = vector.broadcast %42 : vector<1x128xf32> to vector<16x128xf32>
    %115 = arith.addf %113, %114 : vector<16x128xf32>
    %116 = vector.extract_strided_slice %40 {offsets = [5, 0, 0], sizes = [1, 16, 64], strides = [1, 1, 1]} : vector<25x16x64xbf16> to vector<1x16x64xbf16>
    %117 = vector.shape_cast %116 : vector<1x16x64xbf16> to vector<16x64xbf16>
    %118 = vector.extract_strided_slice %41 {offsets = [64, 0], sizes = [64, 128], strides = [1, 1]} : vector<576x128xbf16> to vector<64x128xbf16>
    %cst_38 = arith.constant dense<0.000000e+00> : vector<16x128xf32>
    %119 = tpu.matmul %117, %118, %cst_38 {dimension_numbers = #tpu.dot_dimension_numbers<[1], [0], [0], [1], [0, 0, 1, 1], [], []>} : vector<16x64xbf16>, vector<64x128xbf16>, vector<16x128xf32> -> vector<16x128xf32>
    %120 = vector.extract_strided_slice %40 {offsets = [6, 0, 0], sizes = [1, 16, 64], strides = [1, 1, 1]} : vector<25x16x64xbf16> to vector<1x16x64xbf16>
    %121 = vector.shape_cast %120 : vector<1x16x64xbf16> to vector<16x64xbf16>
    %122 = vector.extract_strided_slice %41 {offsets = [128, 0], sizes = [64, 128], strides = [1, 1]} : vector<576x128xbf16> to vector<64x128xbf16>
    %cst_39 = arith.constant dense<0.000000e+00> : vector<16x128xf32>
    %123 = tpu.matmul %121, %122, %cst_39 {dimension_numbers = #tpu.dot_dimension_numbers<[1], [0], [0], [1], [0, 0, 1, 1], [], []>} : vector<16x64xbf16>, vector<64x128xbf16>, vector<16x128xf32> -> vector<16x128xf32>
    %124 = arith.addf %119, %123 : vector<16x128xf32>
    %125 = vector.extract_strided_slice %40 {offsets = [10, 0, 0], sizes = [1, 16, 64], strides = [1, 1, 1]} : vector<25x16x64xbf16> to vector<1x16x64xbf16>
    %126 = vector.shape_cast %125 : vector<1x16x64xbf16> to vector<16x64xbf16>
    %127 = vector.extract_strided_slice %41 {offsets = [256, 0], sizes = [64, 128], strides = [1, 1]} : vector<576x128xbf16> to vector<64x128xbf16>
    %cst_40 = arith.constant dense<0.000000e+00> : vector<16x128xf32>
    %128 = tpu.matmul %126, %127, %cst_40 {dimension_numbers = #tpu.dot_dimension_numbers<[1], [0], [0], [1], [0, 0, 1, 1], [], []>} : vector<16x64xbf16>, vector<64x128xbf16>, vector<16x128xf32> -> vector<16x128xf32>
    %129 = arith.addf %124, %128 : vector<16x128xf32>
    %130 = vector.extract_strided_slice %40 {offsets = [11, 0, 0], sizes = [1, 16, 64], strides = [1, 1, 1]} : vector<25x16x64xbf16> to vector<1x16x64xbf16>
    %131 = vector.shape_cast %130 : vector<1x16x64xbf16> to vector<16x64xbf16>
    %132 = vector.extract_strided_slice %41 {offsets = [320, 0], sizes = [64, 128], strides = [1, 1]} : vector<576x128xbf16> to vector<64x128xbf16>
    %cst_41 = arith.constant dense<0.000000e+00> : vector<16x128xf32>
    %133 = tpu.matmul %131, %132, %cst_41 {dimension_numbers = #tpu.dot_dimension_numbers<[1], [0], [0], [1], [0, 0, 1, 1], [], []>} : vector<16x64xbf16>, vector<64x128xbf16>, vector<16x128xf32> -> vector<16x128xf32>
    %134 = arith.addf %129, %133 : vector<16x128xf32>
    %135 = vector.extract_strided_slice %40 {offsets = [15, 0, 0], sizes = [1, 16, 64], strides = [1, 1, 1]} : vector<25x16x64xbf16> to vector<1x16x64xbf16>
    %136 = vector.shape_cast %135 : vector<1x16x64xbf16> to vector<16x64xbf16>
    %137 = vector.extract_strided_slice %41 {offsets = [448, 0], sizes = [64, 128], strides = [1, 1]} : vector<576x128xbf16> to vector<64x128xbf16>
    %cst_42 = arith.constant dense<0.000000e+00> : vector<16x128xf32>
    %138 = tpu.matmul %136, %137, %cst_42 {dimension_numbers = #tpu.dot_dimension_numbers<[1], [0], [0], [1], [0, 0, 1, 1], [], []>} : vector<16x64xbf16>, vector<64x128xbf16>, vector<16x128xf32> -> vector<16x128xf32>
    %139 = arith.addf %134, %138 : vector<16x128xf32>
    %140 = vector.extract_strided_slice %40 {offsets = [16, 0, 0], sizes = [1, 16, 64], strides = [1, 1, 1]} : vector<25x16x64xbf16> to vector<1x16x64xbf16>
    %141 = vector.shape_cast %140 : vector<1x16x64xbf16> to vector<16x64xbf16>
    %142 = vector.extract_strided_slice %41 {offsets = [512, 0], sizes = [64, 128], strides = [1, 1]} : vector<576x128xbf16> to vector<64x128xbf16>
    %cst_43 = arith.constant dense<0.000000e+00> : vector<16x128xf32>
    %143 = tpu.matmul %141, %142, %cst_43 {dimension_numbers = #tpu.dot_dimension_numbers<[1], [0], [0], [1], [0, 0, 1, 1], [], []>} : vector<16x64xbf16>, vector<64x128xbf16>, vector<16x128xf32> -> vector<16x128xf32>
    %144 = arith.addf %139, %143 : vector<16x128xf32>
    %145 = vector.broadcast %42 : vector<1x128xf32> to vector<16x128xf32>
    %146 = arith.addf %144, %145 : vector<16x128xf32>
    %147 = vector.extract_strided_slice %40 {offsets = [6, 0, 0], sizes = [1, 16, 64], strides = [1, 1, 1]} : vector<25x16x64xbf16> to vector<1x16x64xbf16>
    %148 = vector.shape_cast %147 : vector<1x16x64xbf16> to vector<16x64xbf16>
    %149 = vector.extract_strided_slice %41 {offsets = [0, 0], sizes = [64, 128], strides = [1, 1]} : vector<576x128xbf16> to vector<64x128xbf16>
    %cst_44 = arith.constant dense<0.000000e+00> : vector<16x128xf32>
    %150 = tpu.matmul %148, %149, %cst_44 {dimension_numbers = #tpu.dot_dimension_numbers<[1], [0], [0], [1], [0, 0, 1, 1], [], []>} : vector<16x64xbf16>, vector<64x128xbf16>, vector<16x128xf32> -> vector<16x128xf32>
    %151 = vector.extract_strided_slice %40 {offsets = [7, 0, 0], sizes = [1, 16, 64], strides = [1, 1, 1]} : vector<25x16x64xbf16> to vector<1x16x64xbf16>
    %152 = vector.shape_cast %151 : vector<1x16x64xbf16> to vector<16x64xbf16>
    %153 = vector.extract_strided_slice %41 {offsets = [64, 0], sizes = [64, 128], strides = [1, 1]} : vector<576x128xbf16> to vector<64x128xbf16>
    %cst_45 = arith.constant dense<0.000000e+00> : vector<16x128xf32>
    %154 = tpu.matmul %152, %153, %cst_45 {dimension_numbers = #tpu.dot_dimension_numbers<[1], [0], [0], [1], [0, 0, 1, 1], [], []>} : vector<16x64xbf16>, vector<64x128xbf16>, vector<16x128xf32> -> vector<16x128xf32>
    %155 = arith.addf %150, %154 : vector<16x128xf32>
    %156 = vector.extract_strided_slice %40 {offsets = [8, 0, 0], sizes = [1, 16, 64], strides = [1, 1, 1]} : vector<25x16x64xbf16> to vector<1x16x64xbf16>
    %157 = vector.shape_cast %156 : vector<1x16x64xbf16> to vector<16x64xbf16>
    %158 = vector.extract_strided_slice %41 {offsets = [128, 0], sizes = [64, 128], strides = [1, 1]} : vector<576x128xbf16> to vector<64x128xbf16>
    %cst_46 = arith.constant dense<0.000000e+00> : vector<16x128xf32>
    %159 = tpu.matmul %157, %158, %cst_46 {dimension_numbers = #tpu.dot_dimension_numbers<[1], [0], [0], [1], [0, 0, 1, 1], [], []>} : vector<16x64xbf16>, vector<64x128xbf16>, vector<16x128xf32> -> vector<16x128xf32>
    %160 = arith.addf %155, %159 : vector<16x128xf32>
    %161 = vector.extract_strided_slice %40 {offsets = [11, 0, 0], sizes = [1, 16, 64], strides = [1, 1, 1]} : vector<25x16x64xbf16> to vector<1x16x64xbf16>
    %162 = vector.shape_cast %161 : vector<1x16x64xbf16> to vector<16x64xbf16>
    %163 = vector.extract_strided_slice %41 {offsets = [192, 0], sizes = [64, 128], strides = [1, 1]} : vector<576x128xbf16> to vector<64x128xbf16>
    %cst_47 = arith.constant dense<0.000000e+00> : vector<16x128xf32>
    %164 = tpu.matmul %162, %163, %cst_47 {dimension_numbers = #tpu.dot_dimension_numbers<[1], [0], [0], [1], [0, 0, 1, 1], [], []>} : vector<16x64xbf16>, vector<64x128xbf16>, vector<16x128xf32> -> vector<16x128xf32>
    %165 = arith.addf %160, %164 : vector<16x128xf32>
    %166 = vector.extract_strided_slice %40 {offsets = [12, 0, 0], sizes = [1, 16, 64], strides = [1, 1, 1]} : vector<25x16x64xbf16> to vector<1x16x64xbf16>
    %167 = vector.shape_cast %166 : vector<1x16x64xbf16> to vector<16x64xbf16>
    %168 = vector.extract_strided_slice %41 {offsets = [256, 0], sizes = [64, 128], strides = [1, 1]} : vector<576x128xbf16> to vector<64x128xbf16>
    %cst_48 = arith.constant dense<0.000000e+00> : vector<16x128xf32>
    %169 = tpu.matmul %167, %168, %cst_48 {dimension_numbers = #tpu.dot_dimension_numbers<[1], [0], [0], [1], [0, 0, 1, 1], [], []>} : vector<16x64xbf16>, vector<64x128xbf16>, vector<16x128xf32> -> vector<16x128xf32>
    %170 = arith.addf %165, %169 : vector<16x128xf32>
    %171 = vector.extract_strided_slice %40 {offsets = [13, 0, 0], sizes = [1, 16, 64], strides = [1, 1, 1]} : vector<25x16x64xbf16> to vector<1x16x64xbf16>
    %172 = vector.shape_cast %171 : vector<1x16x64xbf16> to vector<16x64xbf16>
    %173 = vector.extract_strided_slice %41 {offsets = [320, 0], sizes = [64, 128], strides = [1, 1]} : vector<576x128xbf16> to vector<64x128xbf16>
    %cst_49 = arith.constant dense<0.000000e+00> : vector<16x128xf32>
    %174 = tpu.matmul %172, %173, %cst_49 {dimension_numbers = #tpu.dot_dimension_numbers<[1], [0], [0], [1], [0, 0, 1, 1], [], []>} : vector<16x64xbf16>, vector<64x128xbf16>, vector<16x128xf32> -> vector<16x128xf32>
    %175 = arith.addf %170, %174 : vector<16x128xf32>
    %176 = vector.extract_strided_slice %40 {offsets = [16, 0, 0], sizes = [1, 16, 64], strides = [1, 1, 1]} : vector<25x16x64xbf16> to vector<1x16x64xbf16>
    %177 = vector.shape_cast %176 : vector<1x16x64xbf16> to vector<16x64xbf16>
    %178 = vector.extract_strided_slice %41 {offsets = [384, 0], sizes = [64, 128], strides = [1, 1]} : vector<576x128xbf16> to vector<64x128xbf16>
    %cst_50 = arith.constant dense<0.000000e+00> : vector<16x128xf32>
    %179 = tpu.matmul %177, %178, %cst_50 {dimension_numbers = #tpu.dot_dimension_numbers<[1], [0], [0], [1], [0, 0, 1, 1], [], []>} : vector<16x64xbf16>, vector<64x128xbf16>, vector<16x128xf32> -> vector<16x128xf32>
    %180 = arith.addf %175, %179 : vector<16x128xf32>
    %181 = vector.extract_strided_slice %40 {offsets = [17, 0, 0], sizes = [1, 16, 64], strides = [1, 1, 1]} : vector<25x16x64xbf16> to vector<1x16x64xbf16>
    %182 = vector.shape_cast %181 : vector<1x16x64xbf16> to vector<16x64xbf16>
    %183 = vector.extract_strided_slice %41 {offsets = [448, 0], sizes = [64, 128], strides = [1, 1]} : vector<576x128xbf16> to vector<64x128xbf16>
    %cst_51 = arith.constant dense<0.000000e+00> : vector<16x128xf32>
    %184 = tpu.matmul %182, %183, %cst_51 {dimension_numbers = #tpu.dot_dimension_numbers<[1], [0], [0], [1], [0, 0, 1, 1], [], []>} : vector<16x64xbf16>, vector<64x128xbf16>, vector<16x128xf32> -> vector<16x128xf32>
    %185 = arith.addf %180, %184 : vector<16x128xf32>
    %186 = vector.extract_strided_slice %40 {offsets = [18, 0, 0], sizes = [1, 16, 64], strides = [1, 1, 1]} : vector<25x16x64xbf16> to vector<1x16x64xbf16>
    %187 = vector.shape_cast %186 : vector<1x16x64xbf16> to vector<16x64xbf16>
    %188 = vector.extract_strided_slice %41 {offsets = [512, 0], sizes = [64, 128], strides = [1, 1]} : vector<576x128xbf16> to vector<64x128xbf16>
    %cst_52 = arith.constant dense<0.000000e+00> : vector<16x128xf32>
    %189 = tpu.matmul %187, %188, %cst_52 {dimension_numbers = #tpu.dot_dimension_numbers<[1], [0], [0], [1], [0, 0, 1, 1], [], []>} : vector<16x64xbf16>, vector<64x128xbf16>, vector<16x128xf32> -> vector<16x128xf32>
    %190 = arith.addf %185, %189 : vector<16x128xf32>
    %191 = vector.broadcast %42 : vector<1x128xf32> to vector<16x128xf32>
    %192 = arith.addf %190, %191 : vector<16x128xf32>
    %193 = vector.extract_strided_slice %40 {offsets = [8, 0, 0], sizes = [1, 16, 64], strides = [1, 1, 1]} : vector<25x16x64xbf16> to vector<1x16x64xbf16>
    %194 = vector.shape_cast %193 : vector<1x16x64xbf16> to vector<16x64xbf16>
    %195 = vector.extract_strided_slice %41 {offsets = [0, 0], sizes = [64, 128], strides = [1, 1]} : vector<576x128xbf16> to vector<64x128xbf16>
    %cst_53 = arith.constant dense<0.000000e+00> : vector<16x128xf32>
    %196 = tpu.matmul %194, %195, %cst_53 {dimension_numbers = #tpu.dot_dimension_numbers<[1], [0], [0], [1], [0, 0, 1, 1], [], []>} : vector<16x64xbf16>, vector<64x128xbf16>, vector<16x128xf32> -> vector<16x128xf32>
    %197 = vector.extract_strided_slice %40 {offsets = [9, 0, 0], sizes = [1, 16, 64], strides = [1, 1, 1]} : vector<25x16x64xbf16> to vector<1x16x64xbf16>
    %198 = vector.shape_cast %197 : vector<1x16x64xbf16> to vector<16x64xbf16>
    %199 = vector.extract_strided_slice %41 {offsets = [64, 0], sizes = [64, 128], strides = [1, 1]} : vector<576x128xbf16> to vector<64x128xbf16>
    %cst_54 = arith.constant dense<0.000000e+00> : vector<16x128xf32>
    %200 = tpu.matmul %198, %199, %cst_54 {dimension_numbers = #tpu.dot_dimension_numbers<[1], [0], [0], [1], [0, 0, 1, 1], [], []>} : vector<16x64xbf16>, vector<64x128xbf16>, vector<16x128xf32> -> vector<16x128xf32>
    %201 = arith.addf %196, %200 : vector<16x128xf32>
    %202 = vector.extract_strided_slice %40 {offsets = [13, 0, 0], sizes = [1, 16, 64], strides = [1, 1, 1]} : vector<25x16x64xbf16> to vector<1x16x64xbf16>
    %203 = vector.shape_cast %202 : vector<1x16x64xbf16> to vector<16x64xbf16>
    %204 = vector.extract_strided_slice %41 {offsets = [192, 0], sizes = [64, 128], strides = [1, 1]} : vector<576x128xbf16> to vector<64x128xbf16>
    %cst_55 = arith.constant dense<0.000000e+00> : vector<16x128xf32>
    %205 = tpu.matmul %203, %204, %cst_55 {dimension_numbers = #tpu.dot_dimension_numbers<[1], [0], [0], [1], [0, 0, 1, 1], [], []>} : vector<16x64xbf16>, vector<64x128xbf16>, vector<16x128xf32> -> vector<16x128xf32>
    %206 = arith.addf %201, %205 : vector<16x128xf32>
    %207 = vector.extract_strided_slice %40 {offsets = [14, 0, 0], sizes = [1, 16, 64], strides = [1, 1, 1]} : vector<25x16x64xbf16> to vector<1x16x64xbf16>
    %208 = vector.shape_cast %207 : vector<1x16x64xbf16> to vector<16x64xbf16>
    %209 = vector.extract_strided_slice %41 {offsets = [256, 0], sizes = [64, 128], strides = [1, 1]} : vector<576x128xbf16> to vector<64x128xbf16>
    %cst_56 = arith.constant dense<0.000000e+00> : vector<16x128xf32>
    %210 = tpu.matmul %208, %209, %cst_56 {dimension_numbers = #tpu.dot_dimension_numbers<[1], [0], [0], [1], [0, 0, 1, 1], [], []>} : vector<16x64xbf16>, vector<64x128xbf16>, vector<16x128xf32> -> vector<16x128xf32>
    %211 = arith.addf %206, %210 : vector<16x128xf32>
    %212 = vector.extract_strided_slice %40 {offsets = [18, 0, 0], sizes = [1, 16, 64], strides = [1, 1, 1]} : vector<25x16x64xbf16> to vector<1x16x64xbf16>
    %213 = vector.shape_cast %212 : vector<1x16x64xbf16> to vector<16x64xbf16>
    %214 = vector.extract_strided_slice %41 {offsets = [384, 0], sizes = [64, 128], strides = [1, 1]} : vector<576x128xbf16> to vector<64x128xbf16>
    %cst_57 = arith.constant dense<0.000000e+00> : vector<16x128xf32>
    %215 = tpu.matmul %213, %214, %cst_57 {dimension_numbers = #tpu.dot_dimension_numbers<[1], [0], [0], [1], [0, 0, 1, 1], [], []>} : vector<16x64xbf16>, vector<64x128xbf16>, vector<16x128xf32> -> vector<16x128xf32>
    %216 = arith.addf %211, %215 : vector<16x128xf32>
    %217 = vector.extract_strided_slice %40 {offsets = [19, 0, 0], sizes = [1, 16, 64], strides = [1, 1, 1]} : vector<25x16x64xbf16> to vector<1x16x64xbf16>
    %218 = vector.shape_cast %217 : vector<1x16x64xbf16> to vector<16x64xbf16>
    %219 = vector.extract_strided_slice %41 {offsets = [448, 0], sizes = [64, 128], strides = [1, 1]} : vector<576x128xbf16> to vector<64x128xbf16>
    %cst_58 = arith.constant dense<0.000000e+00> : vector<16x128xf32>
    %220 = tpu.matmul %218, %219, %cst_58 {dimension_numbers = #tpu.dot_dimension_numbers<[1], [0], [0], [1], [0, 0, 1, 1], [], []>} : vector<16x64xbf16>, vector<64x128xbf16>, vector<16x128xf32> -> vector<16x128xf32>
    %221 = arith.addf %216, %220 : vector<16x128xf32>
    %222 = vector.broadcast %42 : vector<1x128xf32> to vector<16x128xf32>
    %223 = arith.addf %221, %222 : vector<16x128xf32>
    %224 = vector.extract_strided_slice %40 {offsets = [15, 0, 0], sizes = [1, 16, 64], strides = [1, 1, 1]} : vector<25x16x64xbf16> to vector<1x16x64xbf16>
    %225 = vector.shape_cast %224 : vector<1x16x64xbf16> to vector<16x64xbf16>
    %226 = vector.extract_strided_slice %41 {offsets = [64, 0], sizes = [64, 128], strides = [1, 1]} : vector<576x128xbf16> to vector<64x128xbf16>
    %cst_59 = arith.constant dense<0.000000e+00> : vector<16x128xf32>
    %227 = tpu.matmul %225, %226, %cst_59 {dimension_numbers = #tpu.dot_dimension_numbers<[1], [0], [0], [1], [0, 0, 1, 1], [], []>} : vector<16x64xbf16>, vector<64x128xbf16>, vector<16x128xf32> -> vector<16x128xf32>
    %228 = vector.extract_strided_slice %40 {offsets = [16, 0, 0], sizes = [1, 16, 64], strides = [1, 1, 1]} : vector<25x16x64xbf16> to vector<1x16x64xbf16>
    %229 = vector.shape_cast %228 : vector<1x16x64xbf16> to vector<16x64xbf16>
    %230 = vector.extract_strided_slice %41 {offsets = [128, 0], sizes = [64, 128], strides = [1, 1]} : vector<576x128xbf16> to vector<64x128xbf16>
    %cst_60 = arith.constant dense<0.000000e+00> : vector<16x128xf32>
    %231 = tpu.matmul %229, %230, %cst_60 {dimension_numbers = #tpu.dot_dimension_numbers<[1], [0], [0], [1], [0, 0, 1, 1], [], []>} : vector<16x64xbf16>, vector<64x128xbf16>, vector<16x128xf32> -> vector<16x128xf32>
    %232 = arith.addf %227, %231 : vector<16x128xf32>
    %233 = vector.extract_strided_slice %40 {offsets = [20, 0, 0], sizes = [1, 16, 64], strides = [1, 1, 1]} : vector<25x16x64xbf16> to vector<1x16x64xbf16>
    %234 = vector.shape_cast %233 : vector<1x16x64xbf16> to vector<16x64xbf16>
    %235 = vector.extract_strided_slice %41 {offsets = [256, 0], sizes = [64, 128], strides = [1, 1]} : vector<576x128xbf16> to vector<64x128xbf16>
    %cst_61 = arith.constant dense<0.000000e+00> : vector<16x128xf32>
    %236 = tpu.matmul %234, %235, %cst_61 {dimension_numbers = #tpu.dot_dimension_numbers<[1], [0], [0], [1], [0, 0, 1, 1], [], []>} : vector<16x64xbf16>, vector<64x128xbf16>, vector<16x128xf32> -> vector<16x128xf32>
    %237 = arith.addf %232, %236 : vector<16x128xf32>
    %238 = vector.extract_strided_slice %40 {offsets = [21, 0, 0], sizes = [1, 16, 64], strides = [1, 1, 1]} : vector<25x16x64xbf16> to vector<1x16x64xbf16>
    %239 = vector.shape_cast %238 : vector<1x16x64xbf16> to vector<16x64xbf16>
    %240 = vector.extract_strided_slice %41 {offsets = [320, 0], sizes = [64, 128], strides = [1, 1]} : vector<576x128xbf16> to vector<64x128xbf16>
    %cst_62 = arith.constant dense<0.000000e+00> : vector<16x128xf32>
    %241 = tpu.matmul %239, %240, %cst_62 {dimension_numbers = #tpu.dot_dimension_numbers<[1], [0], [0], [1], [0, 0, 1, 1], [], []>} : vector<16x64xbf16>, vector<64x128xbf16>, vector<16x128xf32> -> vector<16x128xf32>
    %242 = arith.addf %237, %241 : vector<16x128xf32>
    %243 = vector.broadcast %42 : vector<1x128xf32> to vector<16x128xf32>
    %244 = arith.addf %242, %243 : vector<16x128xf32>
    %245 = vector.extract_strided_slice %40 {offsets = [16, 0, 0], sizes = [1, 16, 64], strides = [1, 1, 1]} : vector<25x16x64xbf16> to vector<1x16x64xbf16>
    %246 = vector.shape_cast %245 : vector<1x16x64xbf16> to vector<16x64xbf16>
    %247 = vector.extract_strided_slice %41 {offsets = [0, 0], sizes = [64, 128], strides = [1, 1]} : vector<576x128xbf16> to vector<64x128xbf16>
    %cst_63 = arith.constant dense<0.000000e+00> : vector<16x128xf32>
    %248 = tpu.matmul %246, %247, %cst_63 {dimension_numbers = #tpu.dot_dimension_numbers<[1], [0], [0], [1], [0, 0, 1, 1], [], []>} : vector<16x64xbf16>, vector<64x128xbf16>, vector<16x128xf32> -> vector<16x128xf32>
    %249 = vector.extract_strided_slice %40 {offsets = [17, 0, 0], sizes = [1, 16, 64], strides = [1, 1, 1]} : vector<25x16x64xbf16> to vector<1x16x64xbf16>
    %250 = vector.shape_cast %249 : vector<1x16x64xbf16> to vector<16x64xbf16>
    %251 = vector.extract_strided_slice %41 {offsets = [64, 0], sizes = [64, 128], strides = [1, 1]} : vector<576x128xbf16> to vector<64x128xbf16>
    %cst_64 = arith.constant dense<0.000000e+00> : vector<16x128xf32>
    %252 = tpu.matmul %250, %251, %cst_64 {dimension_numbers = #tpu.dot_dimension_numbers<[1], [0], [0], [1], [0, 0, 1, 1], [], []>} : vector<16x64xbf16>, vector<64x128xbf16>, vector<16x128xf32> -> vector<16x128xf32>
    %253 = arith.addf %248, %252 : vector<16x128xf32>
    %254 = vector.extract_strided_slice %40 {offsets = [18, 0, 0], sizes = [1, 16, 64], strides = [1, 1, 1]} : vector<25x16x64xbf16> to vector<1x16x64xbf16>
    %255 = vector.shape_cast %254 : vector<1x16x64xbf16> to vector<16x64xbf16>
    %256 = vector.extract_strided_slice %41 {offsets = [128, 0], sizes = [64, 128], strides = [1, 1]} : vector<576x128xbf16> to vector<64x128xbf16>
    %cst_65 = arith.constant dense<0.000000e+00> : vector<16x128xf32>
    %257 = tpu.matmul %255, %256, %cst_65 {dimension_numbers = #tpu.dot_dimension_numbers<[1], [0], [0], [1], [0, 0, 1, 1], [], []>} : vector<16x64xbf16>, vector<64x128xbf16>, vector<16x128xf32> -> vector<16x128xf32>
    %258 = arith.addf %253, %257 : vector<16x128xf32>
    %259 = vector.extract_strided_slice %40 {offsets = [21, 0, 0], sizes = [1, 16, 64], strides = [1, 1, 1]} : vector<25x16x64xbf16> to vector<1x16x64xbf16>
    %260 = vector.shape_cast %259 : vector<1x16x64xbf16> to vector<16x64xbf16>
    %261 = vector.extract_strided_slice %41 {offsets = [192, 0], sizes = [64, 128], strides = [1, 1]} : vector<576x128xbf16> to vector<64x128xbf16>
    %cst_66 = arith.constant dense<0.000000e+00> : vector<16x128xf32>
    %262 = tpu.matmul %260, %261, %cst_66 {dimension_numbers = #tpu.dot_dimension_numbers<[1], [0], [0], [1], [0, 0, 1, 1], [], []>} : vector<16x64xbf16>, vector<64x128xbf16>, vector<16x128xf32> -> vector<16x128xf32>
    %263 = arith.addf %258, %262 : vector<16x128xf32>
    %264 = vector.extract_strided_slice %40 {offsets = [22, 0, 0], sizes = [1, 16, 64], strides = [1, 1, 1]} : vector<25x16x64xbf16> to vector<1x16x64xbf16>
    %265 = vector.shape_cast %264 : vector<1x16x64xbf16> to vector<16x64xbf16>
    %266 = vector.extract_strided_slice %41 {offsets = [256, 0], sizes = [64, 128], strides = [1, 1]} : vector<576x128xbf16> to vector<64x128xbf16>
    %cst_67 = arith.constant dense<0.000000e+00> : vector<16x128xf32>
    %267 = tpu.matmul %265, %266, %cst_67 {dimension_numbers = #tpu.dot_dimension_numbers<[1], [0], [0], [1], [0, 0, 1, 1], [], []>} : vector<16x64xbf16>, vector<64x128xbf16>, vector<16x128xf32> -> vector<16x128xf32>
    %268 = arith.addf %263, %267 : vector<16x128xf32>
    %269 = vector.extract_strided_slice %40 {offsets = [23, 0, 0], sizes = [1, 16, 64], strides = [1, 1, 1]} : vector<25x16x64xbf16> to vector<1x16x64xbf16>
    %270 = vector.shape_cast %269 : vector<1x16x64xbf16> to vector<16x64xbf16>
    %271 = vector.extract_strided_slice %41 {offsets = [320, 0], sizes = [64, 128], strides = [1, 1]} : vector<576x128xbf16> to vector<64x128xbf16>
    %cst_68 = arith.constant dense<0.000000e+00> : vector<16x128xf32>
    %272 = tpu.matmul %270, %271, %cst_68 {dimension_numbers = #tpu.dot_dimension_numbers<[1], [0], [0], [1], [0, 0, 1, 1], [], []>} : vector<16x64xbf16>, vector<64x128xbf16>, vector<16x128xf32> -> vector<16x128xf32>
    %273 = arith.addf %268, %272 : vector<16x128xf32>
    %274 = vector.broadcast %42 : vector<1x128xf32> to vector<16x128xf32>
    %275 = arith.addf %273, %274 : vector<16x128xf32>
    %276 = vector.extract_strided_slice %40 {offsets = [18, 0, 0], sizes = [1, 16, 64], strides = [1, 1, 1]} : vector<25x16x64xbf16> to vector<1x16x64xbf16>
    %277 = vector.shape_cast %276 : vector<1x16x64xbf16> to vector<16x64xbf16>
    %278 = vector.extract_strided_slice %41 {offsets = [0, 0], sizes = [64, 128], strides = [1, 1]} : vector<576x128xbf16> to vector<64x128xbf16>
    %cst_69 = arith.constant dense<0.000000e+00> : vector<16x128xf32>
    %279 = tpu.matmul %277, %278, %cst_69 {dimension_numbers = #tpu.dot_dimension_numbers<[1], [0], [0], [1], [0, 0, 1, 1], [], []>} : vector<16x64xbf16>, vector<64x128xbf16>, vector<16x128xf32> -> vector<16x128xf32>
    %280 = vector.extract_strided_slice %40 {offsets = [19, 0, 0], sizes = [1, 16, 64], strides = [1, 1, 1]} : vector<25x16x64xbf16> to vector<1x16x64xbf16>
    %281 = vector.shape_cast %280 : vector<1x16x64xbf16> to vector<16x64xbf16>
    %282 = vector.extract_strided_slice %41 {offsets = [64, 0], sizes = [64, 128], strides = [1, 1]} : vector<576x128xbf16> to vector<64x128xbf16>
    %cst_70 = arith.constant dense<0.000000e+00> : vector<16x128xf32>
    %283 = tpu.matmul %281, %282, %cst_70 {dimension_numbers = #tpu.dot_dimension_numbers<[1], [0], [0], [1], [0, 0, 1, 1], [], []>} : vector<16x64xbf16>, vector<64x128xbf16>, vector<16x128xf32> -> vector<16x128xf32>
    %284 = arith.addf %279, %283 : vector<16x128xf32>
    %285 = vector.extract_strided_slice %40 {offsets = [23, 0, 0], sizes = [1, 16, 64], strides = [1, 1, 1]} : vector<25x16x64xbf16> to vector<1x16x64xbf16>
    %286 = vector.shape_cast %285 : vector<1x16x64xbf16> to vector<16x64xbf16>
    %287 = vector.extract_strided_slice %41 {offsets = [192, 0], sizes = [64, 128], strides = [1, 1]} : vector<576x128xbf16> to vector<64x128xbf16>
    %cst_71 = arith.constant dense<0.000000e+00> : vector<16x128xf32>
    %288 = tpu.matmul %286, %287, %cst_71 {dimension_numbers = #tpu.dot_dimension_numbers<[1], [0], [0], [1], [0, 0, 1, 1], [], []>} : vector<16x64xbf16>, vector<64x128xbf16>, vector<16x128xf32> -> vector<16x128xf32>
    %289 = arith.addf %284, %288 : vector<16x128xf32>
    %290 = vector.extract_strided_slice %40 {offsets = [24, 0, 0], sizes = [1, 16, 64], strides = [1, 1, 1]} : vector<25x16x64xbf16> to vector<1x16x64xbf16>
    %291 = vector.shape_cast %290 : vector<1x16x64xbf16> to vector<16x64xbf16>
    %292 = vector.extract_strided_slice %41 {offsets = [256, 0], sizes = [64, 128], strides = [1, 1]} : vector<576x128xbf16> to vector<64x128xbf16>
    %cst_72 = arith.constant dense<0.000000e+00> : vector<16x128xf32>
    %293 = tpu.matmul %291, %292, %cst_72 {dimension_numbers = #tpu.dot_dimension_numbers<[1], [0], [0], [1], [0, 0, 1, 1], [], []>} : vector<16x64xbf16>, vector<64x128xbf16>, vector<16x128xf32> -> vector<16x128xf32>
    %294 = arith.addf %289, %293 : vector<16x128xf32>
    %295 = vector.broadcast %42 : vector<1x128xf32> to vector<16x128xf32>
    %296 = arith.addf %294, %295 : vector<16x128xf32>
    %cst_73 = arith.constant dense<0.000000e+00> : vector<16xf32>
    %297 = vector.multi_reduction <add>, %63, %cst_73 [1] : vector<16x128xf32> to vector<16xf32>
    %298 = vector.shape_cast %297 : vector<16xf32> to vector<16x1xf32>
    %cst_74 = arith.constant dense<0.000000e+00> : vector<16xf32>
    %299 = vector.multi_reduction <add>, %94, %cst_74 [1] : vector<16x128xf32> to vector<16xf32>
    %300 = vector.shape_cast %299 : vector<16xf32> to vector<16x1xf32>
    %301 = arith.addf %298, %300 : vector<16x1xf32>
    %cst_75 = arith.constant dense<0.000000e+00> : vector<16xf32>
    %302 = vector.multi_reduction <add>, %115, %cst_75 [1] : vector<16x128xf32> to vector<16xf32>
    %303 = vector.shape_cast %302 : vector<16xf32> to vector<16x1xf32>
    %304 = arith.addf %301, %303 : vector<16x1xf32>
    %cst_76 = arith.constant dense<0.000000e+00> : vector<16xf32>
    %305 = vector.multi_reduction <add>, %146, %cst_76 [1] : vector<16x128xf32> to vector<16xf32>
    %306 = vector.shape_cast %305 : vector<16xf32> to vector<16x1xf32>
    %307 = arith.addf %304, %306 : vector<16x1xf32>
    %cst_77 = arith.constant dense<0.000000e+00> : vector<16xf32>
    %308 = vector.multi_reduction <add>, %192, %cst_77 [1] : vector<16x128xf32> to vector<16xf32>
    %309 = vector.shape_cast %308 : vector<16xf32> to vector<16x1xf32>
    %310 = arith.addf %307, %309 : vector<16x1xf32>
    %cst_78 = arith.constant dense<0.000000e+00> : vector<16xf32>
    %311 = vector.multi_reduction <add>, %223, %cst_78 [1] : vector<16x128xf32> to vector<16xf32>
    %312 = vector.shape_cast %311 : vector<16xf32> to vector<16x1xf32>
    %313 = arith.addf %310, %312 : vector<16x1xf32>
    %cst_79 = arith.constant dense<0.000000e+00> : vector<16xf32>
    %314 = vector.multi_reduction <add>, %244, %cst_79 [1] : vector<16x128xf32> to vector<16xf32>
    %315 = vector.shape_cast %314 : vector<16xf32> to vector<16x1xf32>
    %316 = arith.addf %313, %315 : vector<16x1xf32>
    %cst_80 = arith.constant dense<0.000000e+00> : vector<16xf32>
    %317 = vector.multi_reduction <add>, %275, %cst_80 [1] : vector<16x128xf32> to vector<16xf32>
    %318 = vector.shape_cast %317 : vector<16xf32> to vector<16x1xf32>
    %319 = arith.addf %316, %318 : vector<16x1xf32>
    %cst_81 = arith.constant dense<0.000000e+00> : vector<16xf32>
    %320 = vector.multi_reduction <add>, %296, %cst_81 [1] : vector<16x128xf32> to vector<16xf32>
    %321 = vector.shape_cast %320 : vector<16xf32> to vector<16x1xf32>
    %322 = arith.addf %319, %321 : vector<16x1xf32>
    %cst_82 = arith.constant 8.68055562E-4 : f32
    %323 = vector.broadcast %cst_82 : f32 to vector<16x1xf32>
    %324 = arith.mulf %322, %323 : vector<16x1xf32>
    %325 = vector.broadcast %324 : vector<16x1xf32> to vector<16x128xf32>
    %326 = arith.subf %63, %325 : vector<16x128xf32>
    %327 = vector.broadcast %324 : vector<16x1xf32> to vector<16x128xf32>
    %328 = arith.subf %94, %327 : vector<16x128xf32>
    %329 = vector.broadcast %324 : vector<16x1xf32> to vector<16x128xf32>
    %330 = arith.subf %115, %329 : vector<16x128xf32>
    %331 = vector.broadcast %324 : vector<16x1xf32> to vector<16x128xf32>
    %332 = arith.subf %146, %331 : vector<16x128xf32>
    %333 = vector.broadcast %324 : vector<16x1xf32> to vector<16x128xf32>
    %334 = arith.subf %192, %333 : vector<16x128xf32>
    %335 = vector.broadcast %324 : vector<16x1xf32> to vector<16x128xf32>
    %336 = arith.subf %223, %335 : vector<16x128xf32>
    %337 = vector.broadcast %324 : vector<16x1xf32> to vector<16x128xf32>
    %338 = arith.subf %244, %337 : vector<16x128xf32>
    %339 = vector.broadcast %324 : vector<16x1xf32> to vector<16x128xf32>
    %340 = arith.subf %275, %339 : vector<16x128xf32>
    %341 = vector.broadcast %324 : vector<16x1xf32> to vector<16x128xf32>
    %342 = arith.subf %296, %341 : vector<16x128xf32>
    %343 = arith.mulf %326, %326 : vector<16x128xf32>
    %cst_83 = arith.constant dense<0.000000e+00> : vector<16xf32>
    %344 = vector.multi_reduction <add>, %343, %cst_83 [1] : vector<16x128xf32> to vector<16xf32>
    %345 = vector.shape_cast %344 : vector<16xf32> to vector<16x1xf32>
    %346 = arith.mulf %328, %328 : vector<16x128xf32>
    %cst_84 = arith.constant dense<0.000000e+00> : vector<16xf32>
    %347 = vector.multi_reduction <add>, %346, %cst_84 [1] : vector<16x128xf32> to vector<16xf32>
    %348 = vector.shape_cast %347 : vector<16xf32> to vector<16x1xf32>
    %349 = arith.addf %345, %348 : vector<16x1xf32>
    %350 = arith.mulf %330, %330 : vector<16x128xf32>
    %cst_85 = arith.constant dense<0.000000e+00> : vector<16xf32>
    %351 = vector.multi_reduction <add>, %350, %cst_85 [1] : vector<16x128xf32> to vector<16xf32>
    %352 = vector.shape_cast %351 : vector<16xf32> to vector<16x1xf32>
    %353 = arith.addf %349, %352 : vector<16x1xf32>
    %354 = arith.mulf %332, %332 : vector<16x128xf32>
    %cst_86 = arith.constant dense<0.000000e+00> : vector<16xf32>
    %355 = vector.multi_reduction <add>, %354, %cst_86 [1] : vector<16x128xf32> to vector<16xf32>
    %356 = vector.shape_cast %355 : vector<16xf32> to vector<16x1xf32>
    %357 = arith.addf %353, %356 : vector<16x1xf32>
    %358 = arith.mulf %334, %334 : vector<16x128xf32>
    %cst_87 = arith.constant dense<0.000000e+00> : vector<16xf32>
    %359 = vector.multi_reduction <add>, %358, %cst_87 [1] : vector<16x128xf32> to vector<16xf32>
    %360 = vector.shape_cast %359 : vector<16xf32> to vector<16x1xf32>
    %361 = arith.addf %357, %360 : vector<16x1xf32>
    %362 = arith.mulf %336, %336 : vector<16x128xf32>
    %cst_88 = arith.constant dense<0.000000e+00> : vector<16xf32>
    %363 = vector.multi_reduction <add>, %362, %cst_88 [1] : vector<16x128xf32> to vector<16xf32>
    %364 = vector.shape_cast %363 : vector<16xf32> to vector<16x1xf32>
    %365 = arith.addf %361, %364 : vector<16x1xf32>
    %366 = arith.mulf %338, %338 : vector<16x128xf32>
    %cst_89 = arith.constant dense<0.000000e+00> : vector<16xf32>
    %367 = vector.multi_reduction <add>, %366, %cst_89 [1] : vector<16x128xf32> to vector<16xf32>
    %368 = vector.shape_cast %367 : vector<16xf32> to vector<16x1xf32>
    %369 = arith.addf %365, %368 : vector<16x1xf32>
    %370 = arith.mulf %340, %340 : vector<16x128xf32>
    %cst_90 = arith.constant dense<0.000000e+00> : vector<16xf32>
    %371 = vector.multi_reduction <add>, %370, %cst_90 [1] : vector<16x128xf32> to vector<16xf32>
    %372 = vector.shape_cast %371 : vector<16xf32> to vector<16x1xf32>
    %373 = arith.addf %369, %372 : vector<16x1xf32>
    %374 = arith.mulf %342, %342 : vector<16x128xf32>
    %cst_91 = arith.constant dense<0.000000e+00> : vector<16xf32>
    %375 = vector.multi_reduction <add>, %374, %cst_91 [1] : vector<16x128xf32> to vector<16xf32>
    %376 = vector.shape_cast %375 : vector<16xf32> to vector<16x1xf32>
    %377 = arith.addf %373, %376 : vector<16x1xf32>
    %cst_92 = arith.constant 8.68055562E-4 : f32
    %378 = vector.broadcast %cst_92 : f32 to vector<16x1xf32>
    %379 = arith.mulf %377, %378 : vector<16x1xf32>
    %cst_93 = arith.constant 9.99999974E-6 : f32
    %380 = vector.broadcast %cst_93 : f32 to vector<16x1xf32>
    %381 = arith.addf %379, %380 : vector<16x1xf32>
    %382 = math.rsqrt %381 : vector<16x1xf32>
    %383 = vector.broadcast %382 : vector<16x1xf32> to vector<16x128xf32>
    %384 = arith.mulf %326, %383 : vector<16x128xf32>
    %c0_94 = arith.constant 0 : index
    %c0_95 = arith.constant 0 : index
    %c0_96 = arith.constant 0 : index
    %385 = vector.load %arg9[%c0_94, %c0_95, %c0_96] : memref<9x1x128xf32, #tpu.memory_space<vmem>>, vector<1x1x128xf32>
    %386 = vector.shape_cast %385 : vector<1x1x128xf32> to vector<1x128xf32>
    %387 = vector.broadcast %386 : vector<1x128xf32> to vector<16x128xf32>
    %388 = arith.mulf %384, %387 : vector<16x128xf32>
    %c0_97 = arith.constant 0 : index
    %c0_98 = arith.constant 0 : index
    %c0_99 = arith.constant 0 : index
    %389 = vector.load %arg10[%c0_97, %c0_98, %c0_99] : memref<9x1x128xf32, #tpu.memory_space<vmem>>, vector<1x1x128xf32>
    %390 = vector.shape_cast %389 : vector<1x1x128xf32> to vector<1x128xf32>
    %391 = vector.broadcast %390 : vector<1x128xf32> to vector<16x128xf32>
    %392 = arith.addf %388, %391 : vector<16x128xf32>
    %393 = vector.broadcast %382 : vector<16x1xf32> to vector<16x128xf32>
    %394 = arith.mulf %328, %393 : vector<16x128xf32>
    %c1 = arith.constant 1 : index
    %c0_100 = arith.constant 0 : index
    %c0_101 = arith.constant 0 : index
    %395 = vector.load %arg9[%c1, %c0_100, %c0_101] : memref<9x1x128xf32, #tpu.memory_space<vmem>>, vector<1x1x128xf32>
    %396 = vector.shape_cast %395 : vector<1x1x128xf32> to vector<1x128xf32>
    %397 = vector.broadcast %396 : vector<1x128xf32> to vector<16x128xf32>
    %398 = arith.mulf %394, %397 : vector<16x128xf32>
    %c1_102 = arith.constant 1 : index
    %c0_103 = arith.constant 0 : index
    %c0_104 = arith.constant 0 : index
    %399 = vector.load %arg10[%c1_102, %c0_103, %c0_104] : memref<9x1x128xf32, #tpu.memory_space<vmem>>, vector<1x1x128xf32>
    %400 = vector.shape_cast %399 : vector<1x1x128xf32> to vector<1x128xf32>
    %401 = vector.broadcast %400 : vector<1x128xf32> to vector<16x128xf32>
    %402 = arith.addf %398, %401 : vector<16x128xf32>
    %403 = vector.broadcast %382 : vector<16x1xf32> to vector<16x128xf32>
    %404 = arith.mulf %330, %403 : vector<16x128xf32>
    %c2 = arith.constant 2 : index
    %c0_105 = arith.constant 0 : index
    %c0_106 = arith.constant 0 : index
    %405 = vector.load %arg9[%c2, %c0_105, %c0_106] : memref<9x1x128xf32, #tpu.memory_space<vmem>>, vector<1x1x128xf32>
    %406 = vector.shape_cast %405 : vector<1x1x128xf32> to vector<1x128xf32>
    %407 = vector.broadcast %406 : vector<1x128xf32> to vector<16x128xf32>
    %408 = arith.mulf %404, %407 : vector<16x128xf32>
    %c2_107 = arith.constant 2 : index
    %c0_108 = arith.constant 0 : index
    %c0_109 = arith.constant 0 : index
    %409 = vector.load %arg10[%c2_107, %c0_108, %c0_109] : memref<9x1x128xf32, #tpu.memory_space<vmem>>, vector<1x1x128xf32>
    %410 = vector.shape_cast %409 : vector<1x1x128xf32> to vector<1x128xf32>
    %411 = vector.broadcast %410 : vector<1x128xf32> to vector<16x128xf32>
    %412 = arith.addf %408, %411 : vector<16x128xf32>
    %413 = vector.broadcast %382 : vector<16x1xf32> to vector<16x128xf32>
    %414 = arith.mulf %332, %413 : vector<16x128xf32>
    %c3 = arith.constant 3 : index
    %c0_110 = arith.constant 0 : index
    %c0_111 = arith.constant 0 : index
    %415 = vector.load %arg9[%c3, %c0_110, %c0_111] : memref<9x1x128xf32, #tpu.memory_space<vmem>>, vector<1x1x128xf32>
    %416 = vector.shape_cast %415 : vector<1x1x128xf32> to vector<1x128xf32>
    %417 = vector.broadcast %416 : vector<1x128xf32> to vector<16x128xf32>
    %418 = arith.mulf %414, %417 : vector<16x128xf32>
    %c3_112 = arith.constant 3 : index
    %c0_113 = arith.constant 0 : index
    %c0_114 = arith.constant 0 : index
    %419 = vector.load %arg10[%c3_112, %c0_113, %c0_114] : memref<9x1x128xf32, #tpu.memory_space<vmem>>, vector<1x1x128xf32>
    %420 = vector.shape_cast %419 : vector<1x1x128xf32> to vector<1x128xf32>
    %421 = vector.broadcast %420 : vector<1x128xf32> to vector<16x128xf32>
    %422 = arith.addf %418, %421 : vector<16x128xf32>
    %423 = vector.broadcast %382 : vector<16x1xf32> to vector<16x128xf32>
    %424 = arith.mulf %334, %423 : vector<16x128xf32>
    %c4 = arith.constant 4 : index
    %c0_115 = arith.constant 0 : index
    %c0_116 = arith.constant 0 : index
    %425 = vector.load %arg9[%c4, %c0_115, %c0_116] : memref<9x1x128xf32, #tpu.memory_space<vmem>>, vector<1x1x128xf32>
    %426 = vector.shape_cast %425 : vector<1x1x128xf32> to vector<1x128xf32>
    %427 = vector.broadcast %426 : vector<1x128xf32> to vector<16x128xf32>
    %428 = arith.mulf %424, %427 : vector<16x128xf32>
    %c4_117 = arith.constant 4 : index
    %c0_118 = arith.constant 0 : index
    %c0_119 = arith.constant 0 : index
    %429 = vector.load %arg10[%c4_117, %c0_118, %c0_119] : memref<9x1x128xf32, #tpu.memory_space<vmem>>, vector<1x1x128xf32>
    %430 = vector.shape_cast %429 : vector<1x1x128xf32> to vector<1x128xf32>
    %431 = vector.broadcast %430 : vector<1x128xf32> to vector<16x128xf32>
    %432 = arith.addf %428, %431 : vector<16x128xf32>
    %433 = vector.broadcast %382 : vector<16x1xf32> to vector<16x128xf32>
    %434 = arith.mulf %336, %433 : vector<16x128xf32>
    %c5 = arith.constant 5 : index
    %c0_120 = arith.constant 0 : index
    %c0_121 = arith.constant 0 : index
    %435 = vector.load %arg9[%c5, %c0_120, %c0_121] : memref<9x1x128xf32, #tpu.memory_space<vmem>>, vector<1x1x128xf32>
    %436 = vector.shape_cast %435 : vector<1x1x128xf32> to vector<1x128xf32>
    %437 = vector.broadcast %436 : vector<1x128xf32> to vector<16x128xf32>
    %438 = arith.mulf %434, %437 : vector<16x128xf32>
    %c5_122 = arith.constant 5 : index
    %c0_123 = arith.constant 0 : index
    %c0_124 = arith.constant 0 : index
    %439 = vector.load %arg10[%c5_122, %c0_123, %c0_124] : memref<9x1x128xf32, #tpu.memory_space<vmem>>, vector<1x1x128xf32>
    %440 = vector.shape_cast %439 : vector<1x1x128xf32> to vector<1x128xf32>
    %441 = vector.broadcast %440 : vector<1x128xf32> to vector<16x128xf32>
    %442 = arith.addf %438, %441 : vector<16x128xf32>
    %443 = vector.broadcast %382 : vector<16x1xf32> to vector<16x128xf32>
    %444 = arith.mulf %338, %443 : vector<16x128xf32>
    %c6 = arith.constant 6 : index
    %c0_125 = arith.constant 0 : index
    %c0_126 = arith.constant 0 : index
    %445 = vector.load %arg9[%c6, %c0_125, %c0_126] : memref<9x1x128xf32, #tpu.memory_space<vmem>>, vector<1x1x128xf32>
    %446 = vector.shape_cast %445 : vector<1x1x128xf32> to vector<1x128xf32>
    %447 = vector.broadcast %446 : vector<1x128xf32> to vector<16x128xf32>
    %448 = arith.mulf %444, %447 : vector<16x128xf32>
    %c6_127 = arith.constant 6 : index
    %c0_128 = arith.constant 0 : index
    %c0_129 = arith.constant 0 : index
    %449 = vector.load %arg10[%c6_127, %c0_128, %c0_129] : memref<9x1x128xf32, #tpu.memory_space<vmem>>, vector<1x1x128xf32>
    %450 = vector.shape_cast %449 : vector<1x1x128xf32> to vector<1x128xf32>
    %451 = vector.broadcast %450 : vector<1x128xf32> to vector<16x128xf32>
    %452 = arith.addf %448, %451 : vector<16x128xf32>
    %453 = vector.broadcast %382 : vector<16x1xf32> to vector<16x128xf32>
    %454 = arith.mulf %340, %453 : vector<16x128xf32>
    %c7 = arith.constant 7 : index
    %c0_130 = arith.constant 0 : index
    %c0_131 = arith.constant 0 : index
    %455 = vector.load %arg9[%c7, %c0_130, %c0_131] : memref<9x1x128xf32, #tpu.memory_space<vmem>>, vector<1x1x128xf32>
    %456 = vector.shape_cast %455 : vector<1x1x128xf32> to vector<1x128xf32>
    %457 = vector.broadcast %456 : vector<1x128xf32> to vector<16x128xf32>
    %458 = arith.mulf %454, %457 : vector<16x128xf32>
    %c7_132 = arith.constant 7 : index
    %c0_133 = arith.constant 0 : index
    %c0_134 = arith.constant 0 : index
    %459 = vector.load %arg10[%c7_132, %c0_133, %c0_134] : memref<9x1x128xf32, #tpu.memory_space<vmem>>, vector<1x1x128xf32>
    %460 = vector.shape_cast %459 : vector<1x1x128xf32> to vector<1x128xf32>
    %461 = vector.broadcast %460 : vector<1x128xf32> to vector<16x128xf32>
    %462 = arith.addf %458, %461 : vector<16x128xf32>
    %463 = vector.broadcast %382 : vector<16x1xf32> to vector<16x128xf32>
    %464 = arith.mulf %342, %463 : vector<16x128xf32>
    %c8 = arith.constant 8 : index
    %c0_135 = arith.constant 0 : index
    %c0_136 = arith.constant 0 : index
    %465 = vector.load %arg9[%c8, %c0_135, %c0_136] : memref<9x1x128xf32, #tpu.memory_space<vmem>>, vector<1x1x128xf32>
    %466 = vector.shape_cast %465 : vector<1x1x128xf32> to vector<1x128xf32>
    %467 = vector.broadcast %466 : vector<1x128xf32> to vector<16x128xf32>
    %468 = arith.mulf %464, %467 : vector<16x128xf32>
    %c8_137 = arith.constant 8 : index
    %c0_138 = arith.constant 0 : index
    %c0_139 = arith.constant 0 : index
    %469 = vector.load %arg10[%c8_137, %c0_138, %c0_139] : memref<9x1x128xf32, #tpu.memory_space<vmem>>, vector<1x1x128xf32>
    %470 = vector.shape_cast %469 : vector<1x1x128xf32> to vector<1x128xf32>
    %471 = vector.broadcast %470 : vector<1x128xf32> to vector<16x128xf32>
    %472 = arith.addf %468, %471 : vector<16x128xf32>
    %cst_140 = arith.constant 0.000000e+00 : f32
    %473 = vector.broadcast %cst_140 : f32 to vector<16x128xf32>
    %474 = arith.subf %473, %392 : vector<16x128xf32>
    %475 = math.exp %474 : vector<16x128xf32>
    %cst_141 = arith.constant 1.000000e+00 : f32
    %476 = vector.broadcast %cst_141 : f32 to vector<16x128xf32>
    %477 = arith.addf %476, %475 : vector<16x128xf32>
    %478 = tpu.reciprocal %477 {approx = true} : vector<16x128xf32> -> vector<16x128xf32>
    %479 = arith.mulf %392, %478 : vector<16x128xf32>
    %cst_142 = arith.constant 0.000000e+00 : f32
    %480 = vector.broadcast %cst_142 : f32 to vector<16x128xf32>
    %481 = arith.subf %480, %402 : vector<16x128xf32>
    %482 = math.exp %481 : vector<16x128xf32>
    %cst_143 = arith.constant 1.000000e+00 : f32
    %483 = vector.broadcast %cst_143 : f32 to vector<16x128xf32>
    %484 = arith.addf %483, %482 : vector<16x128xf32>
    %485 = tpu.reciprocal %484 {approx = true} : vector<16x128xf32> -> vector<16x128xf32>
    %486 = arith.mulf %402, %485 : vector<16x128xf32>
    %cst_144 = arith.constant 0.000000e+00 : f32
    %487 = vector.broadcast %cst_144 : f32 to vector<16x128xf32>
    %488 = arith.subf %487, %412 : vector<16x128xf32>
    %489 = math.exp %488 : vector<16x128xf32>
    %cst_145 = arith.constant 1.000000e+00 : f32
    %490 = vector.broadcast %cst_145 : f32 to vector<16x128xf32>
    %491 = arith.addf %490, %489 : vector<16x128xf32>
    %492 = tpu.reciprocal %491 {approx = true} : vector<16x128xf32> -> vector<16x128xf32>
    %493 = arith.mulf %412, %492 : vector<16x128xf32>
    %cst_146 = arith.constant 0.000000e+00 : f32
    %494 = vector.broadcast %cst_146 : f32 to vector<16x128xf32>
    %495 = arith.subf %494, %422 : vector<16x128xf32>
    %496 = math.exp %495 : vector<16x128xf32>
    %cst_147 = arith.constant 1.000000e+00 : f32
    %497 = vector.broadcast %cst_147 : f32 to vector<16x128xf32>
    %498 = arith.addf %497, %496 : vector<16x128xf32>
    %499 = tpu.reciprocal %498 {approx = true} : vector<16x128xf32> -> vector<16x128xf32>
    %500 = arith.mulf %422, %499 : vector<16x128xf32>
    %cst_148 = arith.constant 0.000000e+00 : f32
    %501 = vector.broadcast %cst_148 : f32 to vector<16x128xf32>
    %502 = arith.subf %501, %432 : vector<16x128xf32>
    %503 = math.exp %502 : vector<16x128xf32>
    %cst_149 = arith.constant 1.000000e+00 : f32
    %504 = vector.broadcast %cst_149 : f32 to vector<16x128xf32>
    %505 = arith.addf %504, %503 : vector<16x128xf32>
    %506 = tpu.reciprocal %505 {approx = true} : vector<16x128xf32> -> vector<16x128xf32>
    %507 = arith.mulf %432, %506 : vector<16x128xf32>
    %cst_150 = arith.constant 0.000000e+00 : f32
    %508 = vector.broadcast %cst_150 : f32 to vector<16x128xf32>
    %509 = arith.subf %508, %442 : vector<16x128xf32>
    %510 = math.exp %509 : vector<16x128xf32>
    %cst_151 = arith.constant 1.000000e+00 : f32
    %511 = vector.broadcast %cst_151 : f32 to vector<16x128xf32>
    %512 = arith.addf %511, %510 : vector<16x128xf32>
    %513 = tpu.reciprocal %512 {approx = true} : vector<16x128xf32> -> vector<16x128xf32>
    %514 = arith.mulf %442, %513 : vector<16x128xf32>
    %cst_152 = arith.constant 0.000000e+00 : f32
    %515 = vector.broadcast %cst_152 : f32 to vector<16x128xf32>
    %516 = arith.subf %515, %452 : vector<16x128xf32>
    %517 = math.exp %516 : vector<16x128xf32>
    %cst_153 = arith.constant 1.000000e+00 : f32
    %518 = vector.broadcast %cst_153 : f32 to vector<16x128xf32>
    %519 = arith.addf %518, %517 : vector<16x128xf32>
    %520 = tpu.reciprocal %519 {approx = true} : vector<16x128xf32> -> vector<16x128xf32>
    %521 = arith.mulf %452, %520 : vector<16x128xf32>
    %cst_154 = arith.constant 0.000000e+00 : f32
    %522 = vector.broadcast %cst_154 : f32 to vector<16x128xf32>
    %523 = arith.subf %522, %462 : vector<16x128xf32>
    %524 = math.exp %523 : vector<16x128xf32>
    %cst_155 = arith.constant 1.000000e+00 : f32
    %525 = vector.broadcast %cst_155 : f32 to vector<16x128xf32>
    %526 = arith.addf %525, %524 : vector<16x128xf32>
    %527 = tpu.reciprocal %526 {approx = true} : vector<16x128xf32> -> vector<16x128xf32>
    %528 = arith.mulf %462, %527 : vector<16x128xf32>
    %cst_156 = arith.constant 0.000000e+00 : f32
    %529 = vector.broadcast %cst_156 : f32 to vector<16x128xf32>
    %530 = arith.subf %529, %472 : vector<16x128xf32>
    %531 = math.exp %530 : vector<16x128xf32>
    %cst_157 = arith.constant 1.000000e+00 : f32
    %532 = vector.broadcast %cst_157 : f32 to vector<16x128xf32>
    %533 = arith.addf %532, %531 : vector<16x128xf32>
    %534 = tpu.reciprocal %533 {approx = true} : vector<16x128xf32> -> vector<16x128xf32>
    %535 = arith.mulf %472, %534 : vector<16x128xf32>
    %c0_158 = arith.constant 0 : index
    %c0_159 = arith.constant 0 : index
    %536 = vector.load %arg2[%c0_158, %c0_159] : memref<144x17xbf16, #tpu.memory_space<vmem>>, vector<144x17xbf16>
    %c0_160 = arith.constant 0 : index
    %c0_161 = arith.constant 0 : index
    %537 = vector.load %arg5[%c0_160, %c0_161] : memref<17x128xbf16, #tpu.memory_space<vmem>>, vector<17x128xbf16>
    %cst_162 = arith.constant dense<0.000000e+00> : vector<144x128xf32>
    %538 = tpu.matmul %536, %537, %cst_162 {dimension_numbers = #tpu.dot_dimension_numbers<[1], [0], [0], [1], [0, 0, 1, 1], [], []>} : vector<144x17xbf16>, vector<17x128xbf16>, vector<144x128xf32> -> vector<144x128xf32>
    %c0_163 = arith.constant 0 : index
    %c0_164 = arith.constant 0 : index
    %539 = vector.load %arg15[%c0_163, %c0_164] : memref<1x128xf32, #tpu.memory_space<vmem>>, vector<1x128xf32>
    %540 = vector.broadcast %539 : vector<1x128xf32> to vector<144x128xf32>
    %541 = arith.addf %538, %540 : vector<144x128xf32>
    %542 = vector.shape_cast %541 : vector<144x128xf32> to vector<9x16x128xf32>
    %543 = vector.extract_strided_slice %542 {offsets = [0, 0, 0], sizes = [1, 16, 128], strides = [1, 1, 1]} : vector<9x16x128xf32> to vector<1x16x128xf32>
    %544 = vector.shape_cast %543 : vector<1x16x128xf32> to vector<16x128xf32>
    %545 = vector.extract_strided_slice %542 {offsets = [1, 0, 0], sizes = [1, 16, 128], strides = [1, 1, 1]} : vector<9x16x128xf32> to vector<1x16x128xf32>
    %546 = vector.shape_cast %545 : vector<1x16x128xf32> to vector<16x128xf32>
    %547 = vector.extract_strided_slice %542 {offsets = [2, 0, 0], sizes = [1, 16, 128], strides = [1, 1, 1]} : vector<9x16x128xf32> to vector<1x16x128xf32>
    %548 = vector.shape_cast %547 : vector<1x16x128xf32> to vector<16x128xf32>
    %549 = vector.extract_strided_slice %542 {offsets = [3, 0, 0], sizes = [1, 16, 128], strides = [1, 1, 1]} : vector<9x16x128xf32> to vector<1x16x128xf32>
    %550 = vector.shape_cast %549 : vector<1x16x128xf32> to vector<16x128xf32>
    %551 = vector.extract_strided_slice %542 {offsets = [4, 0, 0], sizes = [1, 16, 128], strides = [1, 1, 1]} : vector<9x16x128xf32> to vector<1x16x128xf32>
    %552 = vector.shape_cast %551 : vector<1x16x128xf32> to vector<16x128xf32>
    %553 = vector.extract_strided_slice %542 {offsets = [5, 0, 0], sizes = [1, 16, 128], strides = [1, 1, 1]} : vector<9x16x128xf32> to vector<1x16x128xf32>
    %554 = vector.shape_cast %553 : vector<1x16x128xf32> to vector<16x128xf32>
    %555 = vector.extract_strided_slice %542 {offsets = [6, 0, 0], sizes = [1, 16, 128], strides = [1, 1, 1]} : vector<9x16x128xf32> to vector<1x16x128xf32>
    %556 = vector.shape_cast %555 : vector<1x16x128xf32> to vector<16x128xf32>
    %557 = vector.extract_strided_slice %542 {offsets = [7, 0, 0], sizes = [1, 16, 128], strides = [1, 1, 1]} : vector<9x16x128xf32> to vector<1x16x128xf32>
    %558 = vector.shape_cast %557 : vector<1x16x128xf32> to vector<16x128xf32>
    %559 = vector.extract_strided_slice %542 {offsets = [8, 0, 0], sizes = [1, 16, 128], strides = [1, 1, 1]} : vector<9x16x128xf32> to vector<1x16x128xf32>
    %560 = vector.shape_cast %559 : vector<1x16x128xf32> to vector<16x128xf32>
    %cst_165 = arith.constant dense<0.000000e+00> : vector<16xf32>
    %561 = vector.multi_reduction <add>, %544, %cst_165 [1] : vector<16x128xf32> to vector<16xf32>
    %562 = vector.shape_cast %561 : vector<16xf32> to vector<16x1xf32>
    %cst_166 = arith.constant dense<0.000000e+00> : vector<16xf32>
    %563 = vector.multi_reduction <add>, %546, %cst_166 [1] : vector<16x128xf32> to vector<16xf32>
    %564 = vector.shape_cast %563 : vector<16xf32> to vector<16x1xf32>
    %565 = arith.addf %562, %564 : vector<16x1xf32>
    %cst_167 = arith.constant dense<0.000000e+00> : vector<16xf32>
    %566 = vector.multi_reduction <add>, %548, %cst_167 [1] : vector<16x128xf32> to vector<16xf32>
    %567 = vector.shape_cast %566 : vector<16xf32> to vector<16x1xf32>
    %568 = arith.addf %565, %567 : vector<16x1xf32>
    %cst_168 = arith.constant dense<0.000000e+00> : vector<16xf32>
    %569 = vector.multi_reduction <add>, %550, %cst_168 [1] : vector<16x128xf32> to vector<16xf32>
    %570 = vector.shape_cast %569 : vector<16xf32> to vector<16x1xf32>
    %571 = arith.addf %568, %570 : vector<16x1xf32>
    %cst_169 = arith.constant dense<0.000000e+00> : vector<16xf32>
    %572 = vector.multi_reduction <add>, %552, %cst_169 [1] : vector<16x128xf32> to vector<16xf32>
    %573 = vector.shape_cast %572 : vector<16xf32> to vector<16x1xf32>
    %574 = arith.addf %571, %573 : vector<16x1xf32>
    %cst_170 = arith.constant dense<0.000000e+00> : vector<16xf32>
    %575 = vector.multi_reduction <add>, %554, %cst_170 [1] : vector<16x128xf32> to vector<16xf32>
    %576 = vector.shape_cast %575 : vector<16xf32> to vector<16x1xf32>
    %577 = arith.addf %574, %576 : vector<16x1xf32>
    %cst_171 = arith.constant dense<0.000000e+00> : vector<16xf32>
    %578 = vector.multi_reduction <add>, %556, %cst_171 [1] : vector<16x128xf32> to vector<16xf32>
    %579 = vector.shape_cast %578 : vector<16xf32> to vector<16x1xf32>
    %580 = arith.addf %577, %579 : vector<16x1xf32>
    %cst_172 = arith.constant dense<0.000000e+00> : vector<16xf32>
    %581 = vector.multi_reduction <add>, %558, %cst_172 [1] : vector<16x128xf32> to vector<16xf32>
    %582 = vector.shape_cast %581 : vector<16xf32> to vector<16x1xf32>
    %583 = arith.addf %580, %582 : vector<16x1xf32>
    %cst_173 = arith.constant dense<0.000000e+00> : vector<16xf32>
    %584 = vector.multi_reduction <add>, %560, %cst_173 [1] : vector<16x128xf32> to vector<16xf32>
    %585 = vector.shape_cast %584 : vector<16xf32> to vector<16x1xf32>
    %586 = arith.addf %583, %585 : vector<16x1xf32>
    %cst_174 = arith.constant 8.68055562E-4 : f32
    %587 = vector.broadcast %cst_174 : f32 to vector<16x1xf32>
    %588 = arith.mulf %586, %587 : vector<16x1xf32>
    %589 = vector.broadcast %588 : vector<16x1xf32> to vector<16x128xf32>
    %590 = arith.subf %544, %589 : vector<16x128xf32>
    %591 = vector.broadcast %588 : vector<16x1xf32> to vector<16x128xf32>
    %592 = arith.subf %546, %591 : vector<16x128xf32>
    %593 = vector.broadcast %588 : vector<16x1xf32> to vector<16x128xf32>
    %594 = arith.subf %548, %593 : vector<16x128xf32>
    %595 = vector.broadcast %588 : vector<16x1xf32> to vector<16x128xf32>
    %596 = arith.subf %550, %595 : vector<16x128xf32>
    %597 = vector.broadcast %588 : vector<16x1xf32> to vector<16x128xf32>
    %598 = arith.subf %552, %597 : vector<16x128xf32>
    %599 = vector.broadcast %588 : vector<16x1xf32> to vector<16x128xf32>
    %600 = arith.subf %554, %599 : vector<16x128xf32>
    %601 = vector.broadcast %588 : vector<16x1xf32> to vector<16x128xf32>
    %602 = arith.subf %556, %601 : vector<16x128xf32>
    %603 = vector.broadcast %588 : vector<16x1xf32> to vector<16x128xf32>
    %604 = arith.subf %558, %603 : vector<16x128xf32>
    %605 = vector.broadcast %588 : vector<16x1xf32> to vector<16x128xf32>
    %606 = arith.subf %560, %605 : vector<16x128xf32>
    %607 = arith.mulf %590, %590 : vector<16x128xf32>
    %cst_175 = arith.constant dense<0.000000e+00> : vector<16xf32>
    %608 = vector.multi_reduction <add>, %607, %cst_175 [1] : vector<16x128xf32> to vector<16xf32>
    %609 = vector.shape_cast %608 : vector<16xf32> to vector<16x1xf32>
    %610 = arith.mulf %592, %592 : vector<16x128xf32>
    %cst_176 = arith.constant dense<0.000000e+00> : vector<16xf32>
    %611 = vector.multi_reduction <add>, %610, %cst_176 [1] : vector<16x128xf32> to vector<16xf32>
    %612 = vector.shape_cast %611 : vector<16xf32> to vector<16x1xf32>
    %613 = arith.addf %609, %612 : vector<16x1xf32>
    %614 = arith.mulf %594, %594 : vector<16x128xf32>
    %cst_177 = arith.constant dense<0.000000e+00> : vector<16xf32>
    %615 = vector.multi_reduction <add>, %614, %cst_177 [1] : vector<16x128xf32> to vector<16xf32>
    %616 = vector.shape_cast %615 : vector<16xf32> to vector<16x1xf32>
    %617 = arith.addf %613, %616 : vector<16x1xf32>
    %618 = arith.mulf %596, %596 : vector<16x128xf32>
    %cst_178 = arith.constant dense<0.000000e+00> : vector<16xf32>
    %619 = vector.multi_reduction <add>, %618, %cst_178 [1] : vector<16x128xf32> to vector<16xf32>
    %620 = vector.shape_cast %619 : vector<16xf32> to vector<16x1xf32>
    %621 = arith.addf %617, %620 : vector<16x1xf32>
    %622 = arith.mulf %598, %598 : vector<16x128xf32>
    %cst_179 = arith.constant dense<0.000000e+00> : vector<16xf32>
    %623 = vector.multi_reduction <add>, %622, %cst_179 [1] : vector<16x128xf32> to vector<16xf32>
    %624 = vector.shape_cast %623 : vector<16xf32> to vector<16x1xf32>
    %625 = arith.addf %621, %624 : vector<16x1xf32>
    %626 = arith.mulf %600, %600 : vector<16x128xf32>
    %cst_180 = arith.constant dense<0.000000e+00> : vector<16xf32>
    %627 = vector.multi_reduction <add>, %626, %cst_180 [1] : vector<16x128xf32> to vector<16xf32>
    %628 = vector.shape_cast %627 : vector<16xf32> to vector<16x1xf32>
    %629 = arith.addf %625, %628 : vector<16x1xf32>
    %630 = arith.mulf %602, %602 : vector<16x128xf32>
    %cst_181 = arith.constant dense<0.000000e+00> : vector<16xf32>
    %631 = vector.multi_reduction <add>, %630, %cst_181 [1] : vector<16x128xf32> to vector<16xf32>
    %632 = vector.shape_cast %631 : vector<16xf32> to vector<16x1xf32>
    %633 = arith.addf %629, %632 : vector<16x1xf32>
    %634 = arith.mulf %604, %604 : vector<16x128xf32>
    %cst_182 = arith.constant dense<0.000000e+00> : vector<16xf32>
    %635 = vector.multi_reduction <add>, %634, %cst_182 [1] : vector<16x128xf32> to vector<16xf32>
    %636 = vector.shape_cast %635 : vector<16xf32> to vector<16x1xf32>
    %637 = arith.addf %633, %636 : vector<16x1xf32>
    %638 = arith.mulf %606, %606 : vector<16x128xf32>
    %cst_183 = arith.constant dense<0.000000e+00> : vector<16xf32>
    %639 = vector.multi_reduction <add>, %638, %cst_183 [1] : vector<16x128xf32> to vector<16xf32>
    %640 = vector.shape_cast %639 : vector<16xf32> to vector<16x1xf32>
    %641 = arith.addf %637, %640 : vector<16x1xf32>
    %cst_184 = arith.constant 8.68055562E-4 : f32
    %642 = vector.broadcast %cst_184 : f32 to vector<16x1xf32>
    %643 = arith.mulf %641, %642 : vector<16x1xf32>
    %cst_185 = arith.constant 9.99999974E-6 : f32
    %644 = vector.broadcast %cst_185 : f32 to vector<16x1xf32>
    %645 = arith.addf %643, %644 : vector<16x1xf32>
    %646 = math.rsqrt %645 : vector<16x1xf32>
    %647 = vector.broadcast %646 : vector<16x1xf32> to vector<16x128xf32>
    %648 = arith.mulf %590, %647 : vector<16x128xf32>
    %c0_186 = arith.constant 0 : index
    %c0_187 = arith.constant 0 : index
    %c0_188 = arith.constant 0 : index
    %649 = vector.load %arg11[%c0_186, %c0_187, %c0_188] : memref<9x1x128xf32, #tpu.memory_space<vmem>>, vector<1x1x128xf32>
    %650 = vector.shape_cast %649 : vector<1x1x128xf32> to vector<1x128xf32>
    %651 = vector.broadcast %650 : vector<1x128xf32> to vector<16x128xf32>
    %652 = arith.mulf %648, %651 : vector<16x128xf32>
    %c0_189 = arith.constant 0 : index
    %c0_190 = arith.constant 0 : index
    %c0_191 = arith.constant 0 : index
    %653 = vector.load %arg12[%c0_189, %c0_190, %c0_191] : memref<9x1x128xf32, #tpu.memory_space<vmem>>, vector<1x1x128xf32>
    %654 = vector.shape_cast %653 : vector<1x1x128xf32> to vector<1x128xf32>
    %655 = vector.broadcast %654 : vector<1x128xf32> to vector<16x128xf32>
    %656 = arith.addf %652, %655 : vector<16x128xf32>
    %657 = vector.broadcast %646 : vector<16x1xf32> to vector<16x128xf32>
    %658 = arith.mulf %592, %657 : vector<16x128xf32>
    %c1_192 = arith.constant 1 : index
    %c0_193 = arith.constant 0 : index
    %c0_194 = arith.constant 0 : index
    %659 = vector.load %arg11[%c1_192, %c0_193, %c0_194] : memref<9x1x128xf32, #tpu.memory_space<vmem>>, vector<1x1x128xf32>
    %660 = vector.shape_cast %659 : vector<1x1x128xf32> to vector<1x128xf32>
    %661 = vector.broadcast %660 : vector<1x128xf32> to vector<16x128xf32>
    %662 = arith.mulf %658, %661 : vector<16x128xf32>
    %c1_195 = arith.constant 1 : index
    %c0_196 = arith.constant 0 : index
    %c0_197 = arith.constant 0 : index
    %663 = vector.load %arg12[%c1_195, %c0_196, %c0_197] : memref<9x1x128xf32, #tpu.memory_space<vmem>>, vector<1x1x128xf32>
    %664 = vector.shape_cast %663 : vector<1x1x128xf32> to vector<1x128xf32>
    %665 = vector.broadcast %664 : vector<1x128xf32> to vector<16x128xf32>
    %666 = arith.addf %662, %665 : vector<16x128xf32>
    %667 = vector.broadcast %646 : vector<16x1xf32> to vector<16x128xf32>
    %668 = arith.mulf %594, %667 : vector<16x128xf32>
    %c2_198 = arith.constant 2 : index
    %c0_199 = arith.constant 0 : index
    %c0_200 = arith.constant 0 : index
    %669 = vector.load %arg11[%c2_198, %c0_199, %c0_200] : memref<9x1x128xf32, #tpu.memory_space<vmem>>, vector<1x1x128xf32>
    %670 = vector.shape_cast %669 : vector<1x1x128xf32> to vector<1x128xf32>
    %671 = vector.broadcast %670 : vector<1x128xf32> to vector<16x128xf32>
    %672 = arith.mulf %668, %671 : vector<16x128xf32>
    %c2_201 = arith.constant 2 : index
    %c0_202 = arith.constant 0 : index
    %c0_203 = arith.constant 0 : index
    %673 = vector.load %arg12[%c2_201, %c0_202, %c0_203] : memref<9x1x128xf32, #tpu.memory_space<vmem>>, vector<1x1x128xf32>
    %674 = vector.shape_cast %673 : vector<1x1x128xf32> to vector<1x128xf32>
    %675 = vector.broadcast %674 : vector<1x128xf32> to vector<16x128xf32>
    %676 = arith.addf %672, %675 : vector<16x128xf32>
    %677 = vector.broadcast %646 : vector<16x1xf32> to vector<16x128xf32>
    %678 = arith.mulf %596, %677 : vector<16x128xf32>
    %c3_204 = arith.constant 3 : index
    %c0_205 = arith.constant 0 : index
    %c0_206 = arith.constant 0 : index
    %679 = vector.load %arg11[%c3_204, %c0_205, %c0_206] : memref<9x1x128xf32, #tpu.memory_space<vmem>>, vector<1x1x128xf32>
    %680 = vector.shape_cast %679 : vector<1x1x128xf32> to vector<1x128xf32>
    %681 = vector.broadcast %680 : vector<1x128xf32> to vector<16x128xf32>
    %682 = arith.mulf %678, %681 : vector<16x128xf32>
    %c3_207 = arith.constant 3 : index
    %c0_208 = arith.constant 0 : index
    %c0_209 = arith.constant 0 : index
    %683 = vector.load %arg12[%c3_207, %c0_208, %c0_209] : memref<9x1x128xf32, #tpu.memory_space<vmem>>, vector<1x1x128xf32>
    %684 = vector.shape_cast %683 : vector<1x1x128xf32> to vector<1x128xf32>
    %685 = vector.broadcast %684 : vector<1x128xf32> to vector<16x128xf32>
    %686 = arith.addf %682, %685 : vector<16x128xf32>
    %687 = vector.broadcast %646 : vector<16x1xf32> to vector<16x128xf32>
    %688 = arith.mulf %598, %687 : vector<16x128xf32>
    %c4_210 = arith.constant 4 : index
    %c0_211 = arith.constant 0 : index
    %c0_212 = arith.constant 0 : index
    %689 = vector.load %arg11[%c4_210, %c0_211, %c0_212] : memref<9x1x128xf32, #tpu.memory_space<vmem>>, vector<1x1x128xf32>
    %690 = vector.shape_cast %689 : vector<1x1x128xf32> to vector<1x128xf32>
    %691 = vector.broadcast %690 : vector<1x128xf32> to vector<16x128xf32>
    %692 = arith.mulf %688, %691 : vector<16x128xf32>
    %c4_213 = arith.constant 4 : index
    %c0_214 = arith.constant 0 : index
    %c0_215 = arith.constant 0 : index
    %693 = vector.load %arg12[%c4_213, %c0_214, %c0_215] : memref<9x1x128xf32, #tpu.memory_space<vmem>>, vector<1x1x128xf32>
    %694 = vector.shape_cast %693 : vector<1x1x128xf32> to vector<1x128xf32>
    %695 = vector.broadcast %694 : vector<1x128xf32> to vector<16x128xf32>
    %696 = arith.addf %692, %695 : vector<16x128xf32>
    %697 = vector.broadcast %646 : vector<16x1xf32> to vector<16x128xf32>
    %698 = arith.mulf %600, %697 : vector<16x128xf32>
    %c5_216 = arith.constant 5 : index
    %c0_217 = arith.constant 0 : index
    %c0_218 = arith.constant 0 : index
    %699 = vector.load %arg11[%c5_216, %c0_217, %c0_218] : memref<9x1x128xf32, #tpu.memory_space<vmem>>, vector<1x1x128xf32>
    %700 = vector.shape_cast %699 : vector<1x1x128xf32> to vector<1x128xf32>
    %701 = vector.broadcast %700 : vector<1x128xf32> to vector<16x128xf32>
    %702 = arith.mulf %698, %701 : vector<16x128xf32>
    %c5_219 = arith.constant 5 : index
    %c0_220 = arith.constant 0 : index
    %c0_221 = arith.constant 0 : index
    %703 = vector.load %arg12[%c5_219, %c0_220, %c0_221] : memref<9x1x128xf32, #tpu.memory_space<vmem>>, vector<1x1x128xf32>
    %704 = vector.shape_cast %703 : vector<1x1x128xf32> to vector<1x128xf32>
    %705 = vector.broadcast %704 : vector<1x128xf32> to vector<16x128xf32>
    %706 = arith.addf %702, %705 : vector<16x128xf32>
    %707 = vector.broadcast %646 : vector<16x1xf32> to vector<16x128xf32>
    %708 = arith.mulf %602, %707 : vector<16x128xf32>
    %c6_222 = arith.constant 6 : index
    %c0_223 = arith.constant 0 : index
    %c0_224 = arith.constant 0 : index
    %709 = vector.load %arg11[%c6_222, %c0_223, %c0_224] : memref<9x1x128xf32, #tpu.memory_space<vmem>>, vector<1x1x128xf32>
    %710 = vector.shape_cast %709 : vector<1x1x128xf32> to vector<1x128xf32>
    %711 = vector.broadcast %710 : vector<1x128xf32> to vector<16x128xf32>
    %712 = arith.mulf %708, %711 : vector<16x128xf32>
    %c6_225 = arith.constant 6 : index
    %c0_226 = arith.constant 0 : index
    %c0_227 = arith.constant 0 : index
    %713 = vector.load %arg12[%c6_225, %c0_226, %c0_227] : memref<9x1x128xf32, #tpu.memory_space<vmem>>, vector<1x1x128xf32>
    %714 = vector.shape_cast %713 : vector<1x1x128xf32> to vector<1x128xf32>
    %715 = vector.broadcast %714 : vector<1x128xf32> to vector<16x128xf32>
    %716 = arith.addf %712, %715 : vector<16x128xf32>
    %717 = vector.broadcast %646 : vector<16x1xf32> to vector<16x128xf32>
    %718 = arith.mulf %604, %717 : vector<16x128xf32>
    %c7_228 = arith.constant 7 : index
    %c0_229 = arith.constant 0 : index
    %c0_230 = arith.constant 0 : index
    %719 = vector.load %arg11[%c7_228, %c0_229, %c0_230] : memref<9x1x128xf32, #tpu.memory_space<vmem>>, vector<1x1x128xf32>
    %720 = vector.shape_cast %719 : vector<1x1x128xf32> to vector<1x128xf32>
    %721 = vector.broadcast %720 : vector<1x128xf32> to vector<16x128xf32>
    %722 = arith.mulf %718, %721 : vector<16x128xf32>
    %c7_231 = arith.constant 7 : index
    %c0_232 = arith.constant 0 : index
    %c0_233 = arith.constant 0 : index
    %723 = vector.load %arg12[%c7_231, %c0_232, %c0_233] : memref<9x1x128xf32, #tpu.memory_space<vmem>>, vector<1x1x128xf32>
    %724 = vector.shape_cast %723 : vector<1x1x128xf32> to vector<1x128xf32>
    %725 = vector.broadcast %724 : vector<1x128xf32> to vector<16x128xf32>
    %726 = arith.addf %722, %725 : vector<16x128xf32>
    %727 = vector.broadcast %646 : vector<16x1xf32> to vector<16x128xf32>
    %728 = arith.mulf %606, %727 : vector<16x128xf32>
    %c8_234 = arith.constant 8 : index
    %c0_235 = arith.constant 0 : index
    %c0_236 = arith.constant 0 : index
    %729 = vector.load %arg11[%c8_234, %c0_235, %c0_236] : memref<9x1x128xf32, #tpu.memory_space<vmem>>, vector<1x1x128xf32>
    %730 = vector.shape_cast %729 : vector<1x1x128xf32> to vector<1x128xf32>
    %731 = vector.broadcast %730 : vector<1x128xf32> to vector<16x128xf32>
    %732 = arith.mulf %728, %731 : vector<16x128xf32>
    %c8_237 = arith.constant 8 : index
    %c0_238 = arith.constant 0 : index
    %c0_239 = arith.constant 0 : index
    %733 = vector.load %arg12[%c8_237, %c0_238, %c0_239] : memref<9x1x128xf32, #tpu.memory_space<vmem>>, vector<1x1x128xf32>
    %734 = vector.shape_cast %733 : vector<1x1x128xf32> to vector<1x128xf32>
    %735 = vector.broadcast %734 : vector<1x128xf32> to vector<16x128xf32>
    %736 = arith.addf %732, %735 : vector<16x128xf32>
    %c0_240 = arith.constant 0 : index
    %c0_241 = arith.constant 0 : index
    %737 = vector.load %arg6[%c0_240, %c0_241] : memref<1152x64xf32, #tpu.memory_space<vmem>>, vector<1152x64xf32>
    %738 = arith.addf %479, %656 : vector<16x128xf32>
    %739 = vector.extract_strided_slice %737 {offsets = [0, 0], sizes = [128, 64], strides = [1, 1]} : vector<1152x64xf32> to vector<128x64xf32>
    %cst_242 = arith.constant dense<0.000000e+00> : vector<16x64xf32>
    %740 = tpu.matmul %738, %739, %cst_242 {dimension_numbers = #tpu.dot_dimension_numbers<[1], [0], [0], [1], [0, 0, 1, 1], [], []>} : vector<16x128xf32>, vector<128x64xf32>, vector<16x64xf32> -> vector<16x64xf32>
    %741 = arith.addf %486, %666 : vector<16x128xf32>
    %742 = vector.extract_strided_slice %737 {offsets = [128, 0], sizes = [128, 64], strides = [1, 1]} : vector<1152x64xf32> to vector<128x64xf32>
    %cst_243 = arith.constant dense<0.000000e+00> : vector<16x64xf32>
    %743 = tpu.matmul %741, %742, %cst_243 {dimension_numbers = #tpu.dot_dimension_numbers<[1], [0], [0], [1], [0, 0, 1, 1], [], []>} : vector<16x128xf32>, vector<128x64xf32>, vector<16x64xf32> -> vector<16x64xf32>
    %744 = arith.addf %740, %743 : vector<16x64xf32>
    %745 = arith.addf %493, %676 : vector<16x128xf32>
    %746 = vector.extract_strided_slice %737 {offsets = [256, 0], sizes = [128, 64], strides = [1, 1]} : vector<1152x64xf32> to vector<128x64xf32>
    %cst_244 = arith.constant dense<0.000000e+00> : vector<16x64xf32>
    %747 = tpu.matmul %745, %746, %cst_244 {dimension_numbers = #tpu.dot_dimension_numbers<[1], [0], [0], [1], [0, 0, 1, 1], [], []>} : vector<16x128xf32>, vector<128x64xf32>, vector<16x64xf32> -> vector<16x64xf32>
    %748 = arith.addf %744, %747 : vector<16x64xf32>
    %749 = arith.addf %500, %686 : vector<16x128xf32>
    %750 = vector.extract_strided_slice %737 {offsets = [384, 0], sizes = [128, 64], strides = [1, 1]} : vector<1152x64xf32> to vector<128x64xf32>
    %cst_245 = arith.constant dense<0.000000e+00> : vector<16x64xf32>
    %751 = tpu.matmul %749, %750, %cst_245 {dimension_numbers = #tpu.dot_dimension_numbers<[1], [0], [0], [1], [0, 0, 1, 1], [], []>} : vector<16x128xf32>, vector<128x64xf32>, vector<16x64xf32> -> vector<16x64xf32>
    %752 = arith.addf %748, %751 : vector<16x64xf32>
    %753 = arith.addf %507, %696 : vector<16x128xf32>
    %754 = vector.extract_strided_slice %737 {offsets = [512, 0], sizes = [128, 64], strides = [1, 1]} : vector<1152x64xf32> to vector<128x64xf32>
    %cst_246 = arith.constant dense<0.000000e+00> : vector<16x64xf32>
    %755 = tpu.matmul %753, %754, %cst_246 {dimension_numbers = #tpu.dot_dimension_numbers<[1], [0], [0], [1], [0, 0, 1, 1], [], []>} : vector<16x128xf32>, vector<128x64xf32>, vector<16x64xf32> -> vector<16x64xf32>
    %756 = arith.addf %752, %755 : vector<16x64xf32>
    %757 = arith.addf %514, %706 : vector<16x128xf32>
    %758 = vector.extract_strided_slice %737 {offsets = [640, 0], sizes = [128, 64], strides = [1, 1]} : vector<1152x64xf32> to vector<128x64xf32>
    %cst_247 = arith.constant dense<0.000000e+00> : vector<16x64xf32>
    %759 = tpu.matmul %757, %758, %cst_247 {dimension_numbers = #tpu.dot_dimension_numbers<[1], [0], [0], [1], [0, 0, 1, 1], [], []>} : vector<16x128xf32>, vector<128x64xf32>, vector<16x64xf32> -> vector<16x64xf32>
    %760 = arith.addf %756, %759 : vector<16x64xf32>
    %761 = arith.addf %521, %716 : vector<16x128xf32>
    %762 = vector.extract_strided_slice %737 {offsets = [768, 0], sizes = [128, 64], strides = [1, 1]} : vector<1152x64xf32> to vector<128x64xf32>
    %cst_248 = arith.constant dense<0.000000e+00> : vector<16x64xf32>
    %763 = tpu.matmul %761, %762, %cst_248 {dimension_numbers = #tpu.dot_dimension_numbers<[1], [0], [0], [1], [0, 0, 1, 1], [], []>} : vector<16x128xf32>, vector<128x64xf32>, vector<16x64xf32> -> vector<16x64xf32>
    %764 = arith.addf %760, %763 : vector<16x64xf32>
    %765 = arith.addf %528, %726 : vector<16x128xf32>
    %766 = vector.extract_strided_slice %737 {offsets = [896, 0], sizes = [128, 64], strides = [1, 1]} : vector<1152x64xf32> to vector<128x64xf32>
    %cst_249 = arith.constant dense<0.000000e+00> : vector<16x64xf32>
    %767 = tpu.matmul %765, %766, %cst_249 {dimension_numbers = #tpu.dot_dimension_numbers<[1], [0], [0], [1], [0, 0, 1, 1], [], []>} : vector<16x128xf32>, vector<128x64xf32>, vector<16x64xf32> -> vector<16x64xf32>
    %768 = arith.addf %764, %767 : vector<16x64xf32>
    %769 = arith.addf %535, %736 : vector<16x128xf32>
    %770 = vector.extract_strided_slice %737 {offsets = [1024, 0], sizes = [128, 64], strides = [1, 1]} : vector<1152x64xf32> to vector<128x64xf32>
    %cst_250 = arith.constant dense<0.000000e+00> : vector<16x64xf32>
    %771 = tpu.matmul %769, %770, %cst_250 {dimension_numbers = #tpu.dot_dimension_numbers<[1], [0], [0], [1], [0, 0, 1, 1], [], []>} : vector<16x128xf32>, vector<128x64xf32>, vector<16x64xf32> -> vector<16x64xf32>
    %772 = arith.addf %768, %771 : vector<16x64xf32>
    %c0_251 = arith.constant 0 : index
    %c0_252 = arith.constant 0 : index
    %773 = vector.load %arg16[%c0_251, %c0_252] : memref<1x64xf32, #tpu.memory_space<vmem>>, vector<1x64xf32>
    %774 = vector.broadcast %773 : vector<1x64xf32> to vector<16x64xf32>
    %775 = arith.addf %772, %774 : vector<16x64xf32>
    %c0_253 = arith.constant 0 : index
    %c0_254 = arith.constant 0 : index
    %776 = vector.load %arg17[%c0_253, %c0_254] : memref<1x64xf32, #tpu.memory_space<vmem>>, vector<1x64xf32>
    %c0_255 = arith.constant 0 : index
    %c0_256 = arith.constant 0 : index
    %777 = vector.load %arg18[%c0_255, %c0_256] : memref<1x64xf32, #tpu.memory_space<vmem>>, vector<1x64xf32>
    %778 = vector.extract_strided_slice %775 {offsets = [0, 0], sizes = [16, 32], strides = [1, 1]} : vector<16x64xf32> to vector<16x32xf32>
    %779 = vector.extract_strided_slice %776 {offsets = [0, 0], sizes = [1, 32], strides = [1, 1]} : vector<1x64xf32> to vector<1x32xf32>
    %780 = vector.extract_strided_slice %777 {offsets = [0, 0], sizes = [1, 32], strides = [1, 1]} : vector<1x64xf32> to vector<1x32xf32>
    %cst_257 = arith.constant dense<0.000000e+00> : vector<16xf32>
    %781 = vector.multi_reduction <add>, %778, %cst_257 [1] : vector<16x32xf32> to vector<16xf32>
    %782 = vector.shape_cast %781 : vector<16xf32> to vector<16x1xf32>
    %cst_258 = arith.constant 3.200000e+01 : f32
    %783 = vector.broadcast %cst_258 : f32 to vector<16x1xf32>
    %784 = arith.divf %782, %783 : vector<16x1xf32>
    %785 = vector.broadcast %784 : vector<16x1xf32> to vector<16x32xf32>
    %786 = arith.subf %778, %785 : vector<16x32xf32>
    %787 = arith.mulf %786, %786 : vector<16x32xf32>
    %cst_259 = arith.constant dense<0.000000e+00> : vector<16xf32>
    %788 = vector.multi_reduction <add>, %787, %cst_259 [1] : vector<16x32xf32> to vector<16xf32>
    %789 = vector.shape_cast %788 : vector<16xf32> to vector<16x1xf32>
    %cst_260 = arith.constant 3.200000e+01 : f32
    %790 = vector.broadcast %cst_260 : f32 to vector<16x1xf32>
    %791 = arith.divf %789, %790 : vector<16x1xf32>
    %cst_261 = arith.constant 9.99999974E-6 : f32
    %792 = vector.broadcast %cst_261 : f32 to vector<16x1xf32>
    %793 = arith.addf %791, %792 : vector<16x1xf32>
    %794 = math.rsqrt %793 : vector<16x1xf32>
    %795 = vector.broadcast %794 : vector<16x1xf32> to vector<16x32xf32>
    %796 = arith.mulf %786, %795 : vector<16x32xf32>
    %797 = vector.broadcast %779 : vector<1x32xf32> to vector<16x32xf32>
    %798 = arith.mulf %796, %797 : vector<16x32xf32>
    %799 = vector.broadcast %780 : vector<1x32xf32> to vector<16x32xf32>
    %800 = arith.addf %798, %799 : vector<16x32xf32>
    %cst_262 = arith.constant 0.000000e+00 : f32
    %801 = vector.broadcast %cst_262 : f32 to vector<16x32xf32>
    %802 = arith.subf %801, %800 : vector<16x32xf32>
    %803 = math.exp %802 : vector<16x32xf32>
    %cst_263 = arith.constant 1.000000e+00 : f32
    %804 = vector.broadcast %cst_263 : f32 to vector<16x32xf32>
    %805 = arith.addf %804, %803 : vector<16x32xf32>
    %806 = tpu.reciprocal %805 {approx = true} : vector<16x32xf32> -> vector<16x32xf32>
    %807 = arith.mulf %800, %806 : vector<16x32xf32>
    %808 = vector.extract_strided_slice %775 {offsets = [0, 32], sizes = [16, 32], strides = [1, 1]} : vector<16x64xf32> to vector<16x32xf32>
    %809 = vector.extract_strided_slice %776 {offsets = [0, 32], sizes = [1, 32], strides = [1, 1]} : vector<1x64xf32> to vector<1x32xf32>
    %810 = vector.extract_strided_slice %777 {offsets = [0, 32], sizes = [1, 32], strides = [1, 1]} : vector<1x64xf32> to vector<1x32xf32>
    %cst_264 = arith.constant dense<0.000000e+00> : vector<16xf32>
    %811 = vector.multi_reduction <add>, %808, %cst_264 [1] : vector<16x32xf32> to vector<16xf32>
    %812 = vector.shape_cast %811 : vector<16xf32> to vector<16x1xf32>
    %cst_265 = arith.constant 3.200000e+01 : f32
    %813 = vector.broadcast %cst_265 : f32 to vector<16x1xf32>
    %814 = arith.divf %812, %813 : vector<16x1xf32>
    %815 = vector.broadcast %814 : vector<16x1xf32> to vector<16x32xf32>
    %816 = arith.subf %808, %815 : vector<16x32xf32>
    %817 = arith.mulf %816, %816 : vector<16x32xf32>
    %cst_266 = arith.constant dense<0.000000e+00> : vector<16xf32>
    %818 = vector.multi_reduction <add>, %817, %cst_266 [1] : vector<16x32xf32> to vector<16xf32>
    %819 = vector.shape_cast %818 : vector<16xf32> to vector<16x1xf32>
    %cst_267 = arith.constant 3.200000e+01 : f32
    %820 = vector.broadcast %cst_267 : f32 to vector<16x1xf32>
    %821 = arith.divf %819, %820 : vector<16x1xf32>
    %cst_268 = arith.constant 9.99999974E-6 : f32
    %822 = vector.broadcast %cst_268 : f32 to vector<16x1xf32>
    %823 = arith.addf %821, %822 : vector<16x1xf32>
    %824 = math.rsqrt %823 : vector<16x1xf32>
    %825 = vector.broadcast %824 : vector<16x1xf32> to vector<16x32xf32>
    %826 = arith.mulf %816, %825 : vector<16x32xf32>
    %827 = vector.broadcast %809 : vector<1x32xf32> to vector<16x32xf32>
    %828 = arith.mulf %826, %827 : vector<16x32xf32>
    %829 = vector.broadcast %810 : vector<1x32xf32> to vector<16x32xf32>
    %830 = arith.addf %828, %829 : vector<16x32xf32>
    %cst_269 = arith.constant 0.000000e+00 : f32
    %831 = vector.broadcast %cst_269 : f32 to vector<16x32xf32>
    %832 = arith.subf %831, %830 : vector<16x32xf32>
    %833 = math.exp %832 : vector<16x32xf32>
    %cst_270 = arith.constant 1.000000e+00 : f32
    %834 = vector.broadcast %cst_270 : f32 to vector<16x32xf32>
    %835 = arith.addf %834, %833 : vector<16x32xf32>
    %836 = tpu.reciprocal %835 {approx = true} : vector<16x32xf32> -> vector<16x32xf32>
    %837 = arith.mulf %830, %836 : vector<16x32xf32>
    %cst_271 = arith.constant 9.99999997E-7 : f32
    %838 = vector.broadcast %cst_271 : f32 to vector<16x32xf32>
    %839 = arith.addf %837, %838 : vector<16x32xf32>
    %c0_272 = arith.constant 0 : index
    %c0_273 = arith.constant 0 : index
    %840 = vector.load %arg19[%c0_272, %c0_273] : memref<16x64xf32, #tpu.memory_space<vmem>>, vector<16x32xf32>
    tpu.vector_store %arg19[%c0_272, %c0_273], %807 {strides = array<i32>} : memref<16x64xf32, #tpu.memory_space<vmem>>, vector<16x32xf32>,
    %c0_274 = arith.constant 0 : index
    %c32 = arith.constant 32 : index
    %841 = vector.load %arg19[%c0_274, %c32] : memref<16x64xf32, #tpu.memory_space<vmem>>, vector<16x32xf32>
    tpu.vector_store %arg19[%c0_274, %c32], %839 {strides = array<i32>} : memref<16x64xf32, #tpu.memory_space<vmem>>, vector<16x32xf32>,
    return
  }
  func.func @transform_0(%arg0: i32) -> (i32, i32) {
    %c0_i32 = arith.constant 0 : i32
    %c0_i32_0 = arith.constant 0 : i32
    return %arg0, %c0_i32 : i32, i32
  }
  func.func @transform_1(%arg0: i32) -> (i32, i32) {
    %c0_i32 = arith.constant 0 : i32
    %c0_i32_0 = arith.constant 0 : i32
    return %arg0, %c0_i32 : i32, i32
  }
  func.func @transform_2(%arg0: i32) -> (i32, i32) {
    %c0_i32 = arith.constant 0 : i32
    %c0_i32_0 = arith.constant 0 : i32
    %c0_i32_1 = arith.constant 0 : i32
    return %c0_i32, %c0_i32_0 : i32, i32
  }
  func.func @transform_3(%arg0: i32) -> (i32, i32) {
    %c0_i32 = arith.constant 0 : i32
    %c0_i32_0 = arith.constant 0 : i32
    %c0_i32_1 = arith.constant 0 : i32
    return %c0_i32, %c0_i32_0 : i32, i32
  }
  func.func @transform_4(%arg0: i32) -> (i32, i32) {
    %c0_i32 = arith.constant 0 : i32
    %c0_i32_0 = arith.constant 0 : i32
    %c0_i32_1 = arith.constant 0 : i32
    return %c0_i32, %c0_i32_0 : i32, i32
  }
  func.func @transform_5(%arg0: i32) -> (i32, i32) {
    %c0_i32 = arith.constant 0 : i32
    %c0_i32_0 = arith.constant 0 : i32
    %c0_i32_1 = arith.constant 0 : i32
    return %c0_i32, %c0_i32_0 : i32, i32
  }
  func.func @transform_6(%arg0: i32) -> (i32, i32, i32) {
    %c0_i32 = arith.constant 0 : i32
    %c0_i32_0 = arith.constant 0 : i32
    %c0_i32_1 = arith.constant 0 : i32
    %c0_i32_2 = arith.constant 0 : i32
    return %c0_i32, %c0_i32_0, %c0_i32_1 : i32, i32, i32
  }
  func.func @transform_7(%arg0: i32) -> (i32, i32, i32) {
    %c0_i32 = arith.constant 0 : i32
    %c0_i32_0 = arith.constant 0 : i32
    %c0_i32_1 = arith.constant 0 : i32
    %c0_i32_2 = arith.constant 0 : i32
    return %c0_i32, %c0_i32_0, %c0_i32_1 : i32, i32, i32
  }
  func.func @transform_8(%arg0: i32) -> (i32, i32, i32) {
    %c0_i32 = arith.constant 0 : i32
    %c0_i32_0 = arith.constant 0 : i32
    %c0_i32_1 = arith.constant 0 : i32
    %c0_i32_2 = arith.constant 0 : i32
    return %c0_i32, %c0_i32_0, %c0_i32_1 : i32, i32, i32
  }
  func.func @transform_9(%arg0: i32) -> (i32, i32, i32) {
    %c0_i32 = arith.constant 0 : i32
    %c0_i32_0 = arith.constant 0 : i32
    %c0_i32_1 = arith.constant 0 : i32
    %c0_i32_2 = arith.constant 0 : i32
    return %c0_i32, %c0_i32_0, %c0_i32_1 : i32, i32, i32
  }
  func.func @transform_10(%arg0: i32) -> (i32, i32, i32) {
    %c0_i32 = arith.constant 0 : i32
    %c0_i32_0 = arith.constant 0 : i32
    %c0_i32_1 = arith.constant 0 : i32
    %c0_i32_2 = arith.constant 0 : i32
    return %c0_i32, %c0_i32_0, %c0_i32_1 : i32, i32, i32
  }
  func.func @transform_11(%arg0: i32) -> (i32, i32, i32) {
    %c0_i32 = arith.constant 0 : i32
    %c0_i32_0 = arith.constant 0 : i32
    %c0_i32_1 = arith.constant 0 : i32
    %c0_i32_2 = arith.constant 0 : i32
    return %c0_i32, %c0_i32_0, %c0_i32_1 : i32, i32, i32
  }
  func.func @transform_12(%arg0: i32) -> (i32, i32) {
    %c0_i32 = arith.constant 0 : i32
    %c0_i32_0 = arith.constant 0 : i32
    %c0_i32_1 = arith.constant 0 : i32
    return %c0_i32, %c0_i32_0 : i32, i32
  }
  func.func @transform_13(%arg0: i32) -> (i32, i32) {
    %c0_i32 = arith.constant 0 : i32
    %c0_i32_0 = arith.constant 0 : i32
    %c0_i32_1 = arith.constant 0 : i32
    return %c0_i32, %c0_i32_0 : i32, i32
  }
  func.func @transform_14(%arg0: i32) -> (i32, i32) {
    %c0_i32 = arith.constant 0 : i32
    %c0_i32_0 = arith.constant 0 : i32
    %c0_i32_1 = arith.constant 0 : i32
    return %c0_i32, %c0_i32_0 : i32, i32
  }
  func.func @transform_15(%arg0: i32) -> (i32, i32) {
    %c0_i32 = arith.constant 0 : i32
    %c0_i32_0 = arith.constant 0 : i32
    %c0_i32_1 = arith.constant 0 : i32
    return %c0_i32, %c0_i32_0 : i32, i32
  }
  func.func @transform_16(%arg0: i32) -> (i32, i32) {
    %c0_i32 = arith.constant 0 : i32
    %c0_i32_0 = arith.constant 0 : i32
    %c0_i32_1 = arith.constant 0 : i32
    return %c0_i32, %c0_i32_0 : i32, i32
  }
  func.func @transform_17(%arg0: i32) -> (i32, i32) {
    %c0_i32 = arith.constant 0 : i32
    %c0_i32_0 = arith.constant 0 : i32
    %c0_i32_1 = arith.constant 0 : i32
    return %c0_i32, %c0_i32_0 : i32, i32
  }
  func.func @transform_18(%arg0: i32) -> (i32, i32) {
    %c0_i32 = arith.constant 0 : i32
    %c0_i32_0 = arith.constant 0 : i32
    return %arg0, %c0_i32 : i32, i32
  }
}

</mosaic_0001>

<bundles_post_ra>
// kernel: tpu_custom_call.1
= control target key start
LH: loop header
LB: loop body
LE: loop exit
PB: predicated region body
PF: predicated region fallthrough
CT: control target
= control target key end

     0   :  { %s12748_s0 = inlined_call_operand.vmem [shape: bf16[400,153], index: 0, kind: input, shape index: {}]   ;;  %s12749_s1 = inlined_call_operand.vmem [shape: bf16[144,17], index: 1, kind: input, shape index: {}]   ;;  %s12750_s2 = inlined_call_operand.vmem [shape: bf16[153,64], index: 2, kind: input, shape index: {}]   ;;  %s12751_s3 = inlined_call_operand.vmem [shape: bf16[576,128], index: 3, kind: input, shape index: {}]   ;;  %s12752_s4 = inlined_call_operand.vmem [shape: bf16[17,128], index: 4, kind: input, shape index: {}]   ;;  %s12753_s5 = inlined_call_operand.vmem [shape: f32[1152,64], index: 5, kind: input, shape index: {}]   ;;  %s12754_s6 = inlined_call_operand.vmem [shape: f32[25,1,64], index: 6, kind: input, shape index: {}]   ;;  %s12755_s7 = inlined_call_operand.vmem [shape: f32[25,1,64], index: 7, kind: input, shape index: {}]   ;;  %s12756_s8 = inlined_call_operand.vmem [shape: f32[9,1,128], index: 8, kind: input, shape index: {}]   ;;  %s12757_s9 = inlined_call_operand.vmem [shape: f32[9,1,128], index: 9, kind: input, shape index: {}]   ;;  %s12758_s10 = inlined_call_operand.vmem [shape: f32[9,1,128], index: 10, kind: input, shape index: {}]   ;;  %s12759_s11 = inlined_call_operand.vmem [shape: f32[9,1,128], index: 11, kind: input, shape index: {}]   ;;  %s12760_s12 = inlined_call_operand.vmem [shape: f32[1,64], index: 12, kind: input, shape index: {}]   ;;  %s12761_s13 = inlined_call_operand.vmem [shape: f32[1,128], index: 13, kind: input, shape index: {}]   ;;  %s12762_s14 = inlined_call_operand.vmem [shape: f32[1,128], index: 14, kind: input, shape index: {}]   ;;  %s12763_s15 = inlined_call_operand.vmem [shape: f32[1,64], index: 15, kind: input, shape index: {}]   ;;  %s12764_s16 = inlined_call_operand.vmem [shape: f32[1,64], index: 16, kind: input, shape index: {}]   ;;  %s12765_s17 = inlined_call_operand.vmem [shape: f32[1,64], index: 17, kind: input, shape index: {}]   ;;  %s12766_s18 = inlined_call_operand.hbm [shape: f32[16,64], index: 18, kind: output, shape index: {}]  }
   0x1   :  { %12858 = sst [smem:[#allocation45_spill]] %s12748_s0 }
   0x2   :  { %12859 = sst [smem:[#allocation46_spill]] %s12749_s1 }
   0x3   :  { %12860 = sst [smem:[#allocation47_spill]] %s12750_s2 }
   0x4   :  { %s12861_s29 = sld [smem:[#allocation47_spill]]  ;;  %v12770_v1 = vmov 0   ;;  %vm422_vm0 = vcmask 203776   ;;  %s12862_s23 = sld [smem:[#allocation45_spill]]  ;;  %vm498_vm1 = vcmask 1043456   ;;  %vm499_vm2 = vcmask 1044480  }
   0x5   :  { %505 = vmatprep.subr.bf16.mxu0 %v12770_v1  ;;  %8506 = vmatprep.subr.bf16.mxu1 %v12770_v1  ;;  %v9052_v11 = vmov 65535  }
   0x6   :  { %v500_v12 = vsel %vm498_vm1, 4294967295, %v9052_v11 }
   0x7   :  { %v501_v15 = vsel %vm499_vm2, %v500_v12, 0 }
   0xa   :  { %v8550_v0 = vld [vmem:[%s12861_s29] sm:$0xff]   ;;  %v8551_v2 = vld [vmem:[%s12861_s29 + $0x8] sm:$0xff]   ;;  %v8552_v3 = vld [vmem:[%s12861_s29 + $0x10] sm:$0xff]  }
   0xb   :  { %506 = vmatpush1.bf16.msra.mxu0 %v8550_v0  ;;  %8516 = vmatpush1.bf16.msra.mxu1 %v8550_v0  ;;  %v8553_v4 = vld [vmem:[%s12861_s29 + $0x18] sm:$0xff]   ;;  %v8562_v5 = vld [vmem:[%s12862_s23 + $0x4] ss:$8 sps:$4 sm:$0xff]   ;;  %v8556_v9 = vld [vmem:[%s12861_s29 + $0x30] sm:$0xff]  }
   0xc   :  { %507 = vmatprep.subr.bf16.mxu0 %v12770_v1  ;;  %8507 = vmatprep.subr.bf16.mxu1 %v12770_v1  ;;  %v8565_v6 = vld [vmem:[%s12862_s23 + $0xd4] ss:$8 sps:$4 sm:$0xff]   ;;  %v8554_v7 = vld [vmem:[%s12861_s29 + $0x20] sm:$0xff]   ;;  %v8555_v8 = vld [vmem:[%s12861_s29 + $0x28] sm:$0xff]  }
   0xd   :  { %6604 = vmatprep.mubr.msk.bf16.mxu0 %vm422_vm0, %v8562_v5  ;;  %6617 = vmatprep.mubr.msk.bf16.mxu1 %vm422_vm0, %v8565_v6  ;;  %v8557_v10 = vld [vmem:[%s12861_s29 + $0x38] sm:$0xff]   ;;  %v8558_v13 = vld [vmem:[%s12861_s29 + $0x40] sm:$0xff]   ;;  %v8559_v14 = vld [vmem:[%s12861_s29 + $0x48] sm:$0x1f]  }
   0xe   :  { %v503_v16 = vand.u32 %v8559_v14, %v501_v15  ;;  %v8560_v17 = vld [vmem:[%s12862_s23] ss:$8 sps:$4 sm:$0xff]   ;;  %v8563_v18 = vld [vmem:[%s12862_s23 + $0xd0] ss:$8 sps:$4 sm:$0xff]   ;;  %v8566_v19 = vld [vmem:[%s12862_s23 + $0x14] ss:$8 sps:$4 sm:$0xff]  }
   0xf   :  { %508 = vmatpush1.bf16.msra.mxu0 %v8551_v2  ;;  %8517 = vmatpush1.bf16.msra.mxu1 %v8551_v2  ;;  %v8569_v20 = vld [vmem:[%s12862_s23 + $0xe4] ss:$8 sps:$4 sm:$0xff]   ;;  %v8568_v21 = vld [vmem:[%s12862_s23 + $0x10] ss:$8 sps:$4 sm:$0xff]   ;;  %v8571_v22 = vld [vmem:[%s12862_s23 + $0xe0] ss:$8 sps:$4 sm:$0xff]  }
  0x10   :  { %509 = vmatprep.subr.bf16.mxu0 %v12770_v1  ;;  %8508 = vmatprep.subr.bf16.mxu1 %v12770_v1  ;;  %v8572_v23 = vld [vmem:[%s12862_s23 + $0x24] ss:$8 sps:$4 sm:$0xff]   ;;  %v8575_v24 = vld [vmem:[%s12862_s23 + $0xf4] ss:$8 sps:$4 sm:$0xff]   ;;  %v8574_v25 = vld [vmem:[%s12862_s23 + $0x20] ss:$8 sps:$4 sm:$0xff]  }
  0x11   :  { %v8577_v26 = vld [vmem:[%s12862_s23 + $0xf0] ss:$8 sps:$4 sm:$0xff]   ;;  %v8578_v27 = vld [vmem:[%s12862_s23 + $0x34] ss:$8 sps:$4 sm:$0xff]   ;;  %v8581_v28 = vld [vmem:[%s12862_s23 + $0x104] ss:$8 sps:$4 sm:$0xff]  }
  0x12   :  { %v8580_v29 = vld [vmem:[%s12862_s23 + $0x30] ss:$8 sps:$4 sm:$0xff]   ;;  %v8583_v30 = vld [vmem:[%s12862_s23 + $0x100] ss:$8 sps:$4 sm:$0xff]   ;;  %v8584_v31 = vld [vmem:[%s12862_s23 + $0x44] ss:$8 sps:$4 sm:$0xff]  }
  0x13   :  { %510 = vmatpush1.bf16.msra.mxu0 %v8552_v3  ;;  %8518 = vmatpush1.bf16.msra.mxu1 %v8552_v3  ;;  %v8587_v32 = vld [vmem:[%s12862_s23 + $0x114] ss:$8 sps:$4 sm:$0xff]   ;;  %v8586_v33 = vld [vmem:[%s12862_s23 + $0x40] ss:$8 sps:$4 sm:$0xff]   ;;  %v8589_v34 = vld [vmem:[%s12862_s23 + $0x110] ss:$8 sps:$4 sm:$0xff]  }
  0x14   :  { %511 = vmatprep.subr.bf16.mxu0 %v12770_v1  ;;  %8509 = vmatprep.subr.bf16.mxu1 %v12770_v1  ;;  %v8590_v35 = vld [vmem:[%s12862_s23 + $0x54] ss:$8 sps:$4 sm:$0xff]   ;;  %v8593_v36 = vld [vmem:[%s12862_s23 + $0x124] ss:$8 sps:$4 sm:$0xff]  }
  0x17   :  { %512 = vmatpush1.bf16.msra.mxu0 %v8553_v4  ;;  %8519 = vmatpush1.bf16.msra.mxu1 %v8553_v4 }
  0x18   :  { %513 = vmatprep.subr.bf16.mxu0 %v12770_v1  ;;  %8510 = vmatprep.subr.bf16.mxu1 %v12770_v1 }
  0x1b   :  { %514 = vmatpush1.bf16.msra.mxu0 %v8554_v7  ;;  %8520 = vmatpush1.bf16.msra.mxu1 %v8554_v7 }
  0x1c   :  { %515 = vmatprep.subr.bf16.mxu0 %v12770_v1  ;;  %8511 = vmatprep.subr.bf16.mxu1 %v12770_v1 }
  0x1f   :  { %516 = vmatpush1.bf16.msra.mxu0 %v8555_v8  ;;  %8521 = vmatpush1.bf16.msra.mxu1 %v8555_v8 }
  0x20   :  { %517 = vmatprep.subr.bf16.mxu0 %v12770_v1  ;;  %8512 = vmatprep.subr.bf16.mxu1 %v12770_v1 }
  0x23   :  { %518 = vmatpush1.bf16.msra.mxu0 %v8556_v9  ;;  %8522 = vmatpush1.bf16.msra.mxu1 %v8556_v9 }
  0x24   :  { %519 = vmatprep.subr.bf16.mxu0 %v12770_v1  ;;  %8513 = vmatprep.subr.bf16.mxu1 %v12770_v1 }
  0x27   :  { %520 = vmatpush1.bf16.msra.mxu0 %v8557_v10  ;;  %8523 = vmatpush1.bf16.msra.mxu1 %v8557_v10 }
  0x28   :  { %521 = vmatprep.subr.bf16.mxu0 %v12770_v1  ;;  %8514 = vmatprep.subr.bf16.mxu1 %v12770_v1 }
  0x2b   :  { %522 = vmatpush1.bf16.msra.mxu0 %v8558_v13  ;;  %8524 = vmatpush1.bf16.msra.mxu1 %v8558_v13 }
  0x2c   :  { %523 = vmatprep.subr.bf16.mxu0 %v12770_v1  ;;  %8515 = vmatprep.subr.bf16.mxu1 %v12770_v1 }
  0x2f   :  { %524 = vmatpush1.bf16.msra.mxu0 %v503_v16  ;;  %8525 = vmatpush1.bf16.msra.mxu1 %v503_v16 }
  0x32   :  { %538 = vmatmul.mubr.bf16.vlgmr.msra.gmra.mrb[0].mxu0 %v8560_v17  ;;  %642 = vmatmul.mubr.bf16.vlgmr.msra.gmra.mrb[0].mxu1 %v8563_v18 }
  0x33   :  { %6605 = vmatprep.mubr.msk.bf16.mxu0 %vm422_vm0, %v8566_v19  ;;  %6618 = vmatprep.mubr.msk.bf16.mxu1 %vm422_vm0, %v8569_v20 }
  0x3a   :  { %546 = vmatmul.mubr.bf16.gmra.mrb[4].mxu0 %v8568_v21  ;;  %650 = vmatmul.mubr.bf16.gmra.mrb[4].mxu1 %v8571_v22 }
  0x3b   :  { %6606 = vmatprep.mubr.msk.bf16.mxu0 %vm422_vm0, %v8572_v23  ;;  %6619 = vmatprep.mubr.msk.bf16.mxu1 %vm422_vm0, %v8575_v24 }
  0x42   :  { %554 = vmatmul.mubr.bf16.gmra.mrb[8].mxu0 %v8574_v25  ;;  %658 = vmatmul.mubr.bf16.gmra.mrb[8].mxu1 %v8577_v26 }
  0x43   :  { %6607 = vmatprep.mubr.msk.bf16.mxu0 %vm422_vm0, %v8578_v27  ;;  %6620 = vmatprep.mubr.msk.bf16.mxu1 %vm422_vm0, %v8581_v28 }
  0x4a   :  { %562 = vmatmul.mubr.bf16.gmra.mrb[12].mxu0 %v8580_v29  ;;  %666 = vmatmul.mubr.bf16.gmra.mrb[12].mxu1 %v8583_v30 }
  0x4b   :  { %6608 = vmatprep.mubr.msk.bf16.mxu0 %vm422_vm0, %v8584_v31  ;;  %6621 = vmatprep.mubr.msk.bf16.mxu1 %vm422_vm0, %v8587_v32 }
  0x52   :  { %570 = vmatmul.mubr.bf16.gmra.mrb[16].mxu0 %v8586_v33  ;;  %674 = vmatmul.mubr.bf16.gmra.mrb[16].mxu1 %v8589_v34 }
  0x53   :  { %6609 = vmatprep.mubr.msk.bf16.mxu0 %vm422_vm0, %v8590_v35  ;;  %6622 = vmatprep.mubr.msk.bf16.mxu1 %vm422_vm0, %v8593_v36 }
  0x54   :  { %23 = vsyncpa [#allocation3], 0  ;;  %v8592_v37 = vld [vmem:[%s12862_s23 + $0x50] ss:$8 sps:$4 sm:$0xff]   ;;  %v8595_v38 = vld [vmem:[%s12862_s23 + $0x120] ss:$8 sps:$4 sm:$0xff]  }
  0x55   :  { %v8596_v39 = vld [vmem:[%s12862_s23 + $0x64] ss:$8 sps:$4 sm:$0xff]   ;;  %v8608_v40 = vld [vmem:[%s12862_s23 + $0x134] ss:$8 sps:$4 sm:$0xff]   ;;  %v8598_v41 = vld [vmem:[%s12862_s23 + $0x60] ss:$8 sps:$4 sm:$0xff]  }
  0x56   :  { %v8610_v42 = vld [vmem:[%s12862_s23 + $0x130] ss:$8 sps:$4 sm:$0xff]   ;;  %v8599_v43 = vld [vmem:[%s12862_s23 + $0x74] ss:$8 sps:$4 sm:$0xff]   ;;  %v8614_v44 = vld [vmem:[%s12862_s23 + $0x144] ss:$8 sps:$4 sm:$0xff]  }
  0x57   :  { %v8601_v45 = vld [vmem:[%s12862_s23 + $0x70] ss:$8 sps:$4 sm:$0xff]   ;;  %v8616_v46 = vld [vmem:[%s12862_s23 + $0x140] ss:$8 sps:$4 sm:$0xff]   ;;  %v8602_v47 = vld [vmem:[%s12862_s23 + $0x84] ss:$8 sps:$4 sm:$0xff]  }
  0x58   :  { %v8620_v48 = vld [vmem:[%s12862_s23 + $0x154] ss:$8 sps:$4 sm:$0xff]   ;;  %v8604_v49 = vld [vmem:[%s12862_s23 + $0x80] ss:$8 sps:$4 sm:$0xff]   ;;  %v8622_v50 = vld [vmem:[%s12862_s23 + $0x150] ss:$8 sps:$4 sm:$0xff]  }
  0x59   :  { %v8605_v51 = vld [vmem:[%s12862_s23 + $0x94] ss:$8 sps:$4 sm:$0xff]   ;;  %v8626_v52 = vld [vmem:[%s12862_s23 + $0x164] ss:$8 sps:$4 sm:$0xff]   ;;  %v8607_v53 = vld [vmem:[%s12862_s23 + $0x90] ss:$8 sps:$4 sm:$0xff]  }
  0x5a   :  { %578 = vmatmul.mubr.bf16.gmra.mrb[20].mxu0 %v8592_v37  ;;  %682 = vmatmul.mubr.bf16.gmra.mrb[20].mxu1 %v8595_v38  ;;  %v8628_v54 = vld [vmem:[%s12862_s23 + $0x160] ss:$8 sps:$4 sm:$0xff]   ;;  %v8611_v55 = vld [vmem:[%s12862_s23 + $0xa4] ss:$8 sps:$4 sm:$0xff]   ;;  %v8629_v56 = vld [vmem:[%s12862_s23 + $0x174] ss:$8 sps:$4 sm:$0xff]  }
  0x5b   :  { %6610 = vmatprep.mubr.msk.bf16.mxu0 %vm422_vm0, %v8596_v39  ;;  %6623 = vmatprep.mubr.msk.bf16.mxu1 %vm422_vm0, %v8608_v40  ;;  %v8613_v57 = vld [vmem:[%s12862_s23 + $0xa0] ss:$8 sps:$4 sm:$0xff]   ;;  %v8631_v58 = vld [vmem:[%s12862_s23 + $0x170] ss:$8 sps:$4 sm:$0xff]   ;;  %v8617_v59 = vld [vmem:[%s12862_s23 + $0xb4] ss:$8 sps:$4 sm:$0xff]  }
  0x5c   :  { %v8632_v60 = vld [vmem:[%s12862_s23 + $0x184] ss:$8 sps:$4 sm:$0xff]   ;;  %v8619_v61 = vld [vmem:[%s12862_s23 + $0xb0] ss:$8 sps:$4 sm:$0xff]   ;;  %v8634_v62 = vld [vmem:[%s12862_s23 + $0x180] ss:$8 sps:$4 sm:$0xff]  }
  0x5d   :  { %v8623_v63 = vld [vmem:[%s12862_s23 + $0xc4] ss:$8 sps:$4 sm:$0xff]   ;;  %v8625_v0 = vld [vmem:[%s12862_s23 + $0xc0] ss:$8 sps:$4 sm:$0xff]   ;;  %vm788_vm3 = vcmask 523264   ;;  %vm9054_vm4 = vmmov 0  }
  0x5e   :  { %v9382_v2 = vld [vmem:[%s12760_s12] ss:$0 sm:$0xff]  ;;  %vm5089_vm5 = vcmask 1040384   ;;  %s13009_s0 = sld [smem:[#allocation46_spill]]  ;;  %vm5061_vm6 = vcmask 138240   ;;  %vm6406_vm7 = vcmask 261120  }
  0x5f   :  { %vm6524_vm8 = vcmask 523520  }
  0x62   :  { %586 = vmatmul.mubr.bf16.gmra.mrb[24].mxu0 %v8598_v41  ;;  %690 = vmatmul.mubr.bf16.gmra.mrb[24].mxu1 %v8610_v42 }
  0x63   :  { %6611 = vmatprep.mubr.msk.bf16.mxu0 %vm422_vm0, %v8599_v43  ;;  %6624 = vmatprep.mubr.msk.bf16.mxu1 %vm422_vm0, %v8614_v44 }
  0x6a   :  { %594 = vmatmul.mubr.bf16.gmra.mrb[28].mxu0 %v8601_v45  ;;  %698 = vmatmul.mubr.bf16.gmra.mrb[28].mxu1 %v8616_v46 }
  0x6b   :  { %6612 = vmatprep.mubr.msk.bf16.mxu0 %vm422_vm0, %v8602_v47  ;;  %6625 = vmatprep.mubr.msk.bf16.mxu1 %vm422_vm0, %v8620_v48 }
  0x72   :  { %602 = vmatmul.mubr.bf16.gmra.mrb[32].mxu0 %v8604_v49  ;;  %706 = vmatmul.mubr.bf16.gmra.mrb[32].mxu1 %v8622_v50 }
  0x73   :  { %6613 = vmatprep.mubr.msk.bf16.mxu0 %vm422_vm0, %v8605_v51  ;;  %6626 = vmatprep.mubr.msk.bf16.mxu1 %vm422_vm0, %v8626_v52 }
  0x7a   :  { %610 = vmatmul.mubr.bf16.gmra.mrb[36].mxu0 %v8607_v53  ;;  %714 = vmatmul.mubr.bf16.gmra.mrb[36].mxu1 %v8628_v54 }
  0x7b   :  { %6614 = vmatprep.mubr.msk.bf16.mxu0 %vm422_vm0, %v8611_v55  ;;  %6627 = vmatprep.mubr.msk.bf16.mxu1 %vm422_vm0, %v8629_v56 }
  0x82   :  { %618 = vmatmul.mubr.bf16.gmra.mrb[40].mxu0 %v8613_v57  ;;  %722 = vmatmul.mubr.bf16.gmra.mrb[40].mxu1 %v8631_v58 }
  0x83   :  { %6615 = vmatprep.mubr.msk.bf16.mxu0 %vm422_vm0, %v8617_v59  ;;  %6628 = vmatprep.mubr.msk.bf16.mxu1 %vm422_vm0, %v8632_v60 }
  0x8a   :  { %626 = vmatmul.mubr.bf16.gmra.mrb[44].mxu0 %v8619_v61  ;;  %730 = vmatmul.mubr.bf16.gmra.mrb[44].mxu1 %v8634_v62 }
  0x8b   :  { %6616 = vmatprep.mubr.msk.bf16.mxu0 %vm422_vm0, %v8623_v63 }
  0x92   :  { %634 = vmatmul.mubr.bf16.gmra.mrb[48].mxu0 %v8625_v0 }
 0x105   :  { %v539_v3 = vpop.f32.mrb[0].mxu0  ;;  %v643_v4 = vpop.f32.mrb[0].mxu1 }
 0x106   :  { %v9385_v5 = vadd.f32 %v9382_v2, %v539_v3  ;;  %v541_v6 = vpop.f32.mrb[1].mxu0  ;;  %v9388_v7 = vadd.f32 %v9382_v2, %v643_v4  ;;  %v645_v8 = vpop.f32.mrb[1].mxu1 }
 0x107   :  { %v542_v9 = vpop.f32.mrb[2].mxu0  ;;  %v646_v10 = vpop.f32.mrb[2].mxu1 }
 0x108   :  { %12863 = vst [vmem:[#allocation5_spill] sm:$0xff] %v9388_v7  ;;  %v544_v11 = vpop.f32.mrb[3].mxu0  ;;  %v9391_v12 = vadd.f32 %v9382_v2, %v646_v10  ;;  %v789_v13 = vsel %vm788_vm3, %v9385_v5, 0.0  ;;  %v648_v14 = vpop.f32.mrb[3].mxu1  ;;  %v867_v16 = vsel %vm788_vm3, %v9388_v7, 0.0  ;;  %v9400_v17 = vadd.f32 %v9382_v2, %v542_v9 }
 0x109   :  { %790 = vadd.xlane.f32.xlu0 %v789_v13 }
 0x10a   :  { %12864 = vst [vmem:[#allocation6_spill] sm:$0xff] %v9391_v12  ;;  %v870_v15 = vsel %vm788_vm3, %v9391_v12, 0.0  ;;  %v792_v29 = vsel %vm788_vm3, %v9400_v17, 0.0 }
 0x10b   :  { %871 = vadd.xlane.f32.xlu1 %v870_v15 }
 0x10d   :  { %v547_v18 = vpop.f32.mrb[4].mxu0  ;;  %868 = vadd.xlane.f32.xlu0 %v867_v16  ;;  %v651_v19 = vpop.f32.mrb[4].mxu1 }
 0x10e   :  { %v9403_v20 = vadd.f32 %v9382_v2, %v547_v18  ;;  %v549_v21 = vpop.f32.mrb[5].mxu0  ;;  %v9406_v22 = vadd.f32 %v9382_v2, %v651_v19  ;;  %v653_v23 = vpop.f32.mrb[5].mxu1 }
 0x10f   :  { %v550_v24 = vpop.f32.mrb[6].mxu0  ;;  %v654_v25 = vpop.f32.mrb[6].mxu1 }
 0x110   :  { %12865 = vst [vmem:[#allocation7_spill] sm:$0xff] %v9406_v22  ;;  %v9409_v26 = vadd.f32 %v9382_v2, %v550_v24  ;;  %v552_v27 = vpop.f32.mrb[7].mxu0  ;;  %v795_v28 = vsel %vm788_vm3, %v9403_v20, 0.0  ;;  %v656_v30 = vpop.f32.mrb[7].mxu1  ;;  %v9416_v31 = vadd.f32 %v9382_v2, %v654_v25  ;;  %v873_v32 = vsel %vm788_vm3, %v9406_v22, 0.0 }
 0x111   :  { %796 = vadd.xlane.f32.xlu1 %v795_v28  ;;  %793 = vadd.xlane.f32.xlu0 %v792_v29 }
 0x112   :  { %12866 = vst [vmem:[#allocation8_spill] sm:$0xff] %v9416_v31  ;;  %v798_v33 = vsel %vm788_vm3, %v9409_v26, 0.0  ;;  %v876_v39 = vsel %vm788_vm3, %v9416_v31, 0.0 }
 0x115   :  { %v555_v34 = vpop.f32.mrb[8].mxu0  ;;  %799 = vadd.xlane.f32.xlu1 %v798_v33  ;;  %874 = vadd.xlane.f32.xlu0 %v873_v32  ;;  %v659_v35 = vpop.f32.mrb[8].mxu1 }
 0x116   :  { %v9423_v36 = vadd.f32 %v9382_v2, %v555_v34  ;;  %v557_v37 = vpop.f32.mrb[9].mxu0  ;;  %v9426_v38 = vadd.f32 %v9382_v2, %v659_v35  ;;  %v661_v40 = vpop.f32.mrb[9].mxu1 }
 0x117   :  { %v558_v41 = vpop.f32.mrb[10].mxu0  ;;  %v662_v42 = vpop.f32.mrb[10].mxu1 }
 0x118   :  { %12867 = vst [vmem:[#allocation9_spill] sm:$0xff] %v9426_v38  ;;  %v9431_v43 = vadd.f32 %v9382_v2, %v558_v41  ;;  %v560_v44 = vpop.f32.mrb[11].mxu0  ;;  %v801_v45 = vsel %vm788_vm3, %v9423_v36, 0.0  ;;  %v664_v46 = vpop.f32.mrb[11].mxu1  ;;  %v9436_v47 = vadd.f32 %v9382_v2, %v662_v42  ;;  %v879_v48 = vsel %vm788_vm3, %v9426_v38, 0.0 }
 0x119   :  { %877 = vadd.xlane.f32.xlu1 %v876_v39  ;;  %802 = vadd.xlane.f32.xlu0 %v801_v45 }
 0x11a   :  { %12868 = vst [vmem:[#allocation10_spill] sm:$0xff] %v9436_v47  ;;  %v804_v49 = vsel %vm788_vm3, %v9431_v43, 0.0  ;;  %v882_v55 = vsel %vm788_vm3, %v9436_v47, 0.0 }
 0x11d   :  { %v563_v50 = vpop.f32.mrb[12].mxu0  ;;  %805 = vadd.xlane.f32.xlu1 %v804_v49  ;;  %880 = vadd.xlane.f32.xlu0 %v879_v48  ;;  %v667_v51 = vpop.f32.mrb[12].mxu1 }
 0x11e   :  { %v9443_v52 = vadd.f32 %v9382_v2, %v563_v50  ;;  %v565_v53 = vpop.f32.mrb[13].mxu0  ;;  %v9446_v54 = vadd.f32 %v9382_v2, %v667_v51  ;;  %v669_v56 = vpop.f32.mrb[13].mxu1 }
 0x11f   :  { %v566_v57 = vpop.f32.mrb[14].mxu0  ;;  %v670_v58 = vpop.f32.mrb[14].mxu1 }
 0x120   :  { %12869 = vst [vmem:[#allocation11_spill] sm:$0xff] %v9446_v54  ;;  %v9451_v59 = vadd.f32 %v9382_v2, %v566_v57  ;;  %v568_v60 = vpop.f32.mrb[15].mxu0  ;;  %v807_v61 = vsel %vm788_vm3, %v9443_v52, 0.0  ;;  %v672_v62 = vpop.f32.mrb[15].mxu1  ;;  %v9456_v63 = vadd.f32 %v9382_v2, %v670_v58  ;;  %v885_v0 = vsel %vm788_vm3, %v9446_v54, 0.0 }
 0x121   :  { %883 = vadd.xlane.f32.xlu1 %v882_v55  ;;  %808 = vadd.xlane.f32.xlu0 %v807_v61 }
 0x122   :  { %12870 = vst [vmem:[#allocation12_spill] sm:$0xff] %v9456_v63  ;;  %v810_v3 = vsel %vm788_vm3, %v9451_v59, 0.0  ;;  %v888_v11 = vsel %vm788_vm3, %v9456_v63, 0.0 }
 0x125   :  { %v571_v4 = vpop.f32.mrb[16].mxu0  ;;  %811 = vadd.xlane.f32.xlu1 %v810_v3  ;;  %886 = vadd.xlane.f32.xlu0 %v885_v0  ;;  %v675_v6 = vpop.f32.mrb[16].mxu1 }
 0x126   :  { %v9463_v8 = vadd.f32 %v9382_v2, %v571_v4  ;;  %v573_v9 = vpop.f32.mrb[17].mxu0  ;;  %v9466_v10 = vadd.f32 %v9382_v2, %v675_v6  ;;  %v677_v13 = vpop.f32.mrb[17].mxu1 }
 0x127   :  { %v574_v14 = vpop.f32.mrb[18].mxu0  ;;  %v678_v15 = vpop.f32.mrb[18].mxu1 }
 0x128   :  { %12871 = vst [vmem:[#allocation13_spill] sm:$0xff] %v9466_v10  ;;  %v9471_v16 = vadd.f32 %v9382_v2, %v574_v14  ;;  %v576_v18 = vpop.f32.mrb[19].mxu0  ;;  %v813_v19 = vsel %vm788_vm3, %v9463_v8, 0.0  ;;  %v680_v21 = vpop.f32.mrb[19].mxu1  ;;  %v9476_v23 = vadd.f32 %v9382_v2, %v678_v15  ;;  %v891_v24 = vsel %vm788_vm3, %v9466_v10, 0.0 }
 0x129   :  { %889 = vadd.xlane.f32.xlu1 %v888_v11  ;;  %814 = vadd.xlane.f32.xlu0 %v813_v19 }
 0x12a   :  { %12872 = vst [vmem:[#allocation14_spill] sm:$0xff] %v9476_v23  ;;  %v816_v25 = vsel %vm788_vm3, %v9471_v16, 0.0  ;;  %v894_v33 = vsel %vm788_vm3, %v9476_v23, 0.0 }
 0x12d   :  { %v579_v27 = vpop.f32.mrb[20].mxu0  ;;  %817 = vadd.xlane.f32.xlu1 %v816_v25  ;;  %892 = vadd.xlane.f32.xlu0 %v891_v24  ;;  %v683_v28 = vpop.f32.mrb[20].mxu1 }
 0x12e   :  { %v9483_v29 = vadd.f32 %v9382_v2, %v579_v27  ;;  %v581_v30 = vpop.f32.mrb[21].mxu0  ;;  %v9486_v32 = vadd.f32 %v9382_v2, %v683_v28  ;;  %v685_v34 = vpop.f32.mrb[21].mxu1 }
 0x12f   :  { %v582_v35 = vpop.f32.mrb[22].mxu0  ;;  %v686_v37 = vpop.f32.mrb[22].mxu1 }
 0x130   :  { %12873 = vst [vmem:[#allocation15_spill] sm:$0xff] %v9486_v32  ;;  %v9491_v39 = vadd.f32 %v9382_v2, %v582_v35  ;;  %v584_v40 = vpop.f32.mrb[23].mxu0  ;;  %v819_v41 = vsel %vm788_vm3, %v9483_v29, 0.0  ;;  %v688_v42 = vpop.f32.mrb[23].mxu1  ;;  %v9496_v44 = vadd.f32 %v9382_v2, %v686_v37  ;;  %v897_v45 = vsel %vm788_vm3, %v9486_v32, 0.0 }
 0x131   :  { %895 = vadd.xlane.f32.xlu1 %v894_v33  ;;  %820 = vadd.xlane.f32.xlu0 %v819_v41 }
 0x132   :  { %12874 = vst [vmem:[#allocation16_spill] sm:$0xff] %v9496_v44  ;;  %v822_v46 = vsel %vm788_vm3, %v9491_v39, 0.0  ;;  %v900_v53 = vsel %vm788_vm3, %v9496_v44, 0.0 }
 0x135   :  { %v587_v48 = vpop.f32.mrb[24].mxu0  ;;  %823 = vadd.xlane.f32.xlu1 %v822_v46  ;;  %898 = vadd.xlane.f32.xlu0 %v897_v45  ;;  %v9502_v49 = vpop.f32.mrb[24].mxu1 }
 0x136   :  { %v9505_v50 = vadd.f32 %v9382_v2, %v587_v48  ;;  %v589_v51 = vpop.f32.mrb[25].mxu0  ;;  %v693_v55 = vpop.f32.mrb[25].mxu1 }
 0x137   :  { %v590_v56 = vpop.f32.mrb[26].mxu0  ;;  %v9509_v57 = vpop.f32.mrb[26].mxu1 }
 0x138   :  { %v9512_v58 = vadd.f32 %v9382_v2, %v590_v56  ;;  %v592_v60 = vpop.f32.mrb[27].mxu0  ;;  %v825_v61 = vsel %vm788_vm3, %v9505_v50, 0.0  ;;  %v696_v62 = vpop.f32.mrb[27].mxu1 }
 0x139   :  { %901 = vadd.xlane.f32.xlu1 %v900_v53  ;;  %826 = vadd.xlane.f32.xlu0 %v825_v61 }
 0x13a   :  { %v828_v0 = vsel %vm788_vm3, %v9512_v58, 0.0 }
 0x13d   :  { %v595_v3 = vpop.f32.mrb[28].mxu0  ;;  %829 = vadd.xlane.f32.xlu1 %v828_v0  ;;  %v9518_v4 = vpop.f32.mrb[28].mxu1 }
 0x13e   :  { %v9521_v6 = vadd.f32 %v9382_v2, %v595_v3  ;;  %v597_v9 = vpop.f32.mrb[29].mxu0  ;;  %v701_v11 = vpop.f32.mrb[29].mxu1 }
 0x13f   :  { %v598_v13 = vpop.f32.mrb[30].mxu0  ;;  %v9523_v14 = vpop.f32.mrb[30].mxu1 }
 0x140   :  { %v9526_v15 = vadd.f32 %v9382_v2, %v598_v13  ;;  %v600_v18 = vpop.f32.mrb[31].mxu0  ;;  %v831_v19 = vsel %vm788_vm3, %v9521_v6, 0.0  ;;  %v704_v21 = vpop.f32.mrb[31].mxu1 }
 0x141   :  { %832 = vadd.xlane.f32.xlu0 %v831_v19 }
 0x142   :  { %v834_v24 = vsel %vm788_vm3, %v9526_v15, 0.0 }
 0x143   :  { %835 = vadd.xlane.f32.xlu1 %v834_v24 }
 0x145   :  { %v603_v25 = vpop.f32.mrb[32].mxu0  ;;  %v9532_v27 = vpop.f32.mrb[32].mxu1 }
 0x146   :  { %v9535_v28 = vadd.f32 %v9382_v2, %v603_v25  ;;  %v605_v30 = vpop.f32.mrb[33].mxu0  ;;  %v709_v33 = vpop.f32.mrb[33].mxu1 }
 0x147   :  { %v606_v34 = vpop.f32.mrb[34].mxu0  ;;  %v9537_v35 = vpop.f32.mrb[34].mxu1 }
 0x148   :  { %v9540_v37 = vadd.f32 %v9382_v2, %v606_v34  ;;  %v608_v40 = vpop.f32.mrb[35].mxu0  ;;  %v837_v41 = vsel %vm788_vm3, %v9535_v28, 0.0  ;;  %v712_v42 = vpop.f32.mrb[35].mxu1 }
 0x149   :  { %838 = vadd.xlane.f32.xlu0 %v837_v41 }
 0x14a   :  { %v840_v45 = vsel %vm788_vm3, %v9540_v37, 0.0 }
 0x14b   :  { %841 = vadd.xlane.f32.xlu1 %v840_v45 }
 0x14d   :  { %v611_v46 = vpop.f32.mrb[36].mxu0  ;;  %v9546_v48 = vpop.f32.mrb[36].mxu1 }
 0x14e   :  { %v9549_v51 = vadd.f32 %v9382_v2, %v611_v46  ;;  %v613_v53 = vpop.f32.mrb[37].mxu0  ;;  %v717_v55 = vpop.f32.mrb[37].mxu1 }
 0x14f   :  { %v614_v56 = vpop.f32.mrb[38].mxu0  ;;  %v9551_v60 = vpop.f32.mrb[38].mxu1 }
 0x150   :  { %12875 = vst [vmem:[#allocation17_spill] sm:$0xff] %v9549_v51  ;;  %v9554_v61 = vadd.f32 %v9382_v2, %v614_v56  ;;  %v616_v62 = vpop.f32.mrb[39].mxu0  ;;  %v843_v0 = vsel %vm788_vm3, %v9549_v51, 0.0  ;;  %v720_v3 = vpop.f32.mrb[39].mxu1 }
 0x151   :  { %844 = vadd.xlane.f32.xlu0 %v843_v0 }
 0x152   :  { %12876 = vst [vmem:[#allocation18_spill] sm:$0xff] %v9554_v61  ;;  %v846_v9 = vsel %vm788_vm3, %v9554_v61, 0.0 }
 0x153   :  { %847 = vadd.xlane.f32.xlu1 %v846_v9 }
 0x155   :  { %v619_v11 = vpop.f32.mrb[40].mxu0  ;;  %v723_v13 = vpop.f32.mrb[40].mxu1 }
 0x156   :  { %v9561_v18 = vadd.f32 %v9382_v2, %v619_v11  ;;  %v621_v19 = vpop.f32.mrb[41].mxu0  ;;  %v725_v21 = vpop.f32.mrb[41].mxu1 }
 0x157   :  { %v622_v24 = vpop.f32.mrb[42].mxu0  ;;  %v726_v25 = vpop.f32.mrb[42].mxu1 }
 0x158   :  { %12877 = vst [vmem:[#allocation19_spill] sm:$0xff] %v9561_v18  ;;  %v9564_v30 = vadd.f32 %v9382_v2, %v622_v24  ;;  %v624_v33 = vpop.f32.mrb[43].mxu0  ;;  %v849_v34 = vsel %vm788_vm3, %v9561_v18, 0.0  ;;  %v728_v40 = vpop.f32.mrb[43].mxu1 }
 0x159   :  { %850 = vadd.xlane.f32.xlu0 %v849_v34  ;;  %v9585_v40 = vadd.f32 %v9382_v2, %v9502_v49  ;;  %v9600_v49 = vadd.f32 %v9382_v2, %v9518_v4 }
 0x15a   :  { %12878 = vst [vmem:[#allocation20_spill] sm:$0xff] %v9564_v30  ;;  %v852_v41 = vsel %vm788_vm3, %v9564_v30, 0.0 }
 0x15b   :  { %853 = vadd.xlane.f32.xlu1 %v852_v41  ;;  %12882 = vst [vmem:[#allocation24_spill] sm:$0xff] %v9585_v40  ;;  %12885 = vst [vmem:[#allocation27_spill] sm:$0xff] %v9600_v49  ;;  %v909_v4 = vsel %vm788_vm3, %v9600_v49, 0.0 }
 0x15d   :  { %v627_v42 = vpop.f32.mrb[44].mxu0  ;;  %v731_v45 = vpop.f32.mrb[44].mxu1 }
 0x15e   :  { %v9571_v46 = vadd.f32 %v9382_v2, %v627_v42  ;;  %v629_v53 = vpop.f32.mrb[45].mxu0  ;;  %v733_v55 = vpop.f32.mrb[45].mxu1 }
 0x15f   :  { %v630_v56 = vpop.f32.mrb[46].mxu0  ;;  %v734_v62 = vpop.f32.mrb[46].mxu1  ;;  %v9594_v55 = vadd.f32 %v9382_v2, %v9509_v57 }
 0x160   :  { %12879 = vst [vmem:[#allocation21_spill] sm:$0xff] %v9571_v46  ;;  %v9574_v0 = vadd.f32 %v9382_v2, %v630_v56  ;;  %v632_v3 = vpop.f32.mrb[47].mxu0  ;;  %v855_v9 = vsel %vm788_vm3, %v9571_v46, 0.0  ;;  %v736_v11 = vpop.f32.mrb[47].mxu1 }
 0x161   :  { %856 = vadd.xlane.f32.xlu0 %v855_v9  ;;  %12884 = vst [vmem:[#allocation26_spill] sm:$0xff] %v9594_v55  ;;  %v903_v3 = vsel %vm788_vm3, %v9585_v40, 0.0  ;;  %v9606_v9 = vadd.f32 %v9382_v2, %v9523_v14  ;;  %v906_v57 = vsel %vm788_vm3, %v9594_v55, 0.0  ;;  %v9612_v11 = vadd.f32 %v9382_v2, %v9532_v27 }
 0x162   :  { %12880 = vst [vmem:[#allocation22_spill] sm:$0xff] %v9574_v0  ;;  %v858_v19 = vsel %vm788_vm3, %v9574_v0, 0.0 }
 0x163   :  { %859 = vadd.xlane.f32.xlu1 %v858_v19  ;;  %12886 = vst [vmem:[#allocation28_spill] sm:$0xff] %v9606_v9  ;;  %12887 = vst [vmem:[#allocation29_spill] sm:$0xff] %v9612_v11  ;;  %v9618_v19 = vadd.f32 %v9382_v2, %v9537_v35  ;;  %v912_v14 = vsel %vm788_vm3, %v9606_v9, 0.0  ;;  %v915_v27 = vsel %vm788_vm3, %v9612_v11, 0.0 }
 0x165   :  { %v635_v21 = vpop.f32.mrb[48].mxu0  ;;  %12888 = vst [vmem:[#allocation30_spill] sm:$0xff] %v9618_v19  ;;  %v918_v35 = vsel %vm788_vm3, %v9618_v19, 0.0 }
 0x166   :  { %v9581_v24 = vadd.f32 %v9382_v2, %v635_v21  ;;  %v637_v33 = vpop.f32.mrb[49].mxu0  ;;  %v9624_v21 = vadd.f32 %v9382_v2, %v9546_v48  ;;  %v9640_v48 = vadd.f32 %v9382_v2, %v726_v25 }
 0x167   :  { %v638_v34 = vpop.f32.mrb[50].mxu0  ;;  %v9630_v33 = vadd.f32 %v9382_v2, %v9551_v60 }
 0x168   :  { %12881 = vst [vmem:[#allocation23_spill] sm:$0xff] %v9581_v24  ;;  %v9588_v41 = vadd.f32 %v9382_v2, %v638_v34  ;;  %v640_v42 = vpop.f32.mrb[51].mxu0  ;;  %v861_v53 = vsel %vm788_vm3, %v9581_v24, 0.0  ;;  %12889 = vst [vmem:[#allocation31_spill] sm:$0xff] %v9624_v21  ;;  %v9635_v34 = vadd.f32 %v9382_v2, %v723_v13  ;;  %v9650_v13 = vadd.f32 %v9382_v2, %v734_v62 }
 0x169   :  { %862 = vadd.xlane.f32.xlu0 %v861_v53  ;;  %12890 = vst [vmem:[#allocation32_spill] sm:$0xff] %v9630_v33  ;;  %v921_v42 = vsel %vm788_vm3, %v9624_v21, 0.0  ;;  %12892 = vst [vmem:[#allocation34_spill] sm:$0xff] %v9640_v48  ;;  %v9643_v53 = vadd.f32 %v9382_v2, %v731_v45  ;;  %v924_v60 = vsel %vm788_vm3, %v9630_v33, 0.0 }
 0x16a   :  { %12883 = vst [vmem:[#allocation25_spill] sm:$0xff] %v9588_v41  ;;  %v864_v56 = vsel %vm788_vm3, %v9588_v41, 0.0  ;;  %12891 = vst [vmem:[#allocation33_spill] sm:$0xff] %v9635_v34  ;;  %v936_v45 = vsel %vm788_vm3, %v9650_v13, 0.0 }
 0x16b   :  { %865 = vadd.xlane.f32.xlu1 %v864_v56  ;;  %12893 = vst [vmem:[#allocation35_spill] sm:$0xff] %v9643_v53  ;;  %v927_v56 = vsel %vm788_vm3, %v9635_v34, 0.0  ;;  %12894 = vst [vmem:[#allocation36_spill] sm:$0xff] %v9650_v13  ;;  %v933_v25 = vsel %vm788_vm3, %v9643_v53, 0.0 }
 0x16d   :  { %904 = vadd.xlane.f32.xlu0 %v903_v3  ;;  %v930_v3 = vsel %vm788_vm3, %v9640_v48, 0.0 }
 0x16f   :  { %907 = vadd.xlane.f32.xlu1 %v906_v57 }
 0x171   :  { %910 = vadd.xlane.f32.xlu0 %v909_v4 }
 0x173   :  { %913 = vadd.xlane.f32.xlu1 %v912_v14 }
 0x175   :  { %916 = vadd.xlane.f32.xlu0 %v915_v27 }
 0x177   :  { %919 = vadd.xlane.f32.xlu1 %v918_v35 }
 0x179   :  { %922 = vadd.xlane.f32.xlu0 %v921_v42 }
 0x17b   :  { %925 = vadd.xlane.f32.xlu1 %v924_v60 }
 0x17d   :  { %928 = vadd.xlane.f32.xlu0 %v927_v56 }
 0x17f   :  { %931 = vadd.xlane.f32.xlu1 %v930_v3 }
 0x181   :  { %934 = vadd.xlane.f32.xlu0 %v933_v25 }
 0x183   :  { %937 = vadd.xlane.f32.xlu1 %v936_v45 }
 0x196   :  { %v791_v57 = vpop.xlane.xlu0 %790 }
 0x198   :  { %v9658_v4 = vpop.xlane.xlu1 %871 }
 0x19a   :  { %v869_v14 = vpop.xlane.xlu0 %868 }
 0x19e   :  { %v797_v27 = vpop.xlane.xlu1 %796  ;;  %v794_v35 = vpop.xlane.xlu0 %793 }
 0x19f   :  { %v939_v44 = vadd.f32 %v797_v27, %v791_v57 }
 0x1a2   :  { %v800_v2 = vpop.xlane.xlu1 %799  ;;  %v875_v62 = vpop.xlane.xlu0 %874 }
 0x1a3   :  { %v963_v23 = vadd.f32 %v800_v2, %v794_v35 }
 0x1a6   :  { %v878_v42 = vpop.xlane.xlu1 %877  ;;  %v803_v60 = vpop.xlane.xlu0 %802 }
 0x1a7   :  { %v940_v10 = vadd.f32 %v939_v44, %v803_v60 }
 0x1aa   :  { %v806_v56 = vpop.xlane.xlu1 %805  ;;  %v881_v1 = vpop.xlane.xlu0 %880 }
 0x1ab   :  { %v964_v54 = vadd.f32 %v963_v23, %v806_v56 }
 0x1ae   :  { %v884_v48 = vpop.xlane.xlu1 %883  ;;  %v809_v53 = vpop.xlane.xlu0 %808 }
 0x1af   :  { %v941_v47 = vadd.f32 %v940_v10, %v809_v53 }
 0x1b2   :  { %v812_v3 = vpop.xlane.xlu1 %811  ;;  %v887_v25 = vpop.xlane.xlu0 %886 }
 0x1b3   :  { %v965_v31 = vadd.f32 %v964_v54, %v812_v3 }
 0x1b6   :  { %v890_v34 = vpop.xlane.xlu1 %889  ;;  %v815_v33 = vpop.xlane.xlu0 %814 }
 0x1b7   :  { %v942_v22 = vadd.f32 %v941_v47, %v815_v33 }
 0x1ba   :  { %v818_v13 = vpop.xlane.xlu1 %817  ;;  %v893_v45 = vpop.xlane.xlu0 %892 }
 0x1bb   :  { %v966_v7 = vadd.f32 %v965_v31, %v818_v13 }
 0x1be   :  { %v896_v21 = vpop.xlane.xlu1 %895  ;;  %v821_v19 = vpop.xlane.xlu0 %820 }
 0x1bf   :  { %v943_v41 = vadd.f32 %v942_v22, %v821_v19 }
 0x1c2   :  { %v824_v11 = vpop.xlane.xlu1 %823  ;;  %v899_v9 = vpop.xlane.xlu0 %898 }
 0x1c3   :  { %v967_v0 = vadd.f32 %v966_v7, %v824_v11 }
 0x1c6   :  { %v902_v49 = vpop.xlane.xlu1 %901  ;;  %v827_v55 = vpop.xlane.xlu0 %826 }
 0x1c7   :  { %v944_v46 = vadd.f32 %v943_v41, %v827_v55 }
 0x1ca   :  { %v830_v40 = vpop.xlane.xlu1 %829 }
 0x1cb   :  { %v968_v18 = vadd.f32 %v967_v0, %v830_v40 }
 0x1ce   :  { %v833_v32 = vpop.xlane.xlu0 %832 }
 0x1cf   :  { %v945_v61 = vadd.f32 %v944_v46, %v833_v32 }
 0x1d0   :  { %v836_v63 = vpop.xlane.xlu1 %835 }
 0x1d1   :  { %v969_v57 = vadd.f32 %v968_v18, %v836_v63 }
 0x1d6   :  { %v839_v38 = vpop.xlane.xlu0 %838 }
 0x1d7   :  { %v946_v27 = vadd.f32 %v945_v61, %v839_v38 }
 0x1d8   :  { %v842_v12 = vpop.xlane.xlu1 %841 }
 0x1d9   :  { %v970_v44 = vadd.f32 %v969_v57, %v842_v12 }
 0x1de   :  { %v845_v24 = vpop.xlane.xlu0 %844 }
 0x1df   :  { %v947_v2 = vadd.f32 %v946_v27, %v845_v24 }
 0x1e0   :  { %v848_v30 = vpop.xlane.xlu1 %847 }
 0x1e1   :  { %v971_v10 = vadd.f32 %v970_v44, %v848_v30 }
 0x1e6   :  { %v851_v51 = vpop.xlane.xlu0 %850 }
 0x1e7   :  { %v948_v53 = vadd.f32 %v947_v2, %v851_v51 }
 0x1e8   :  { %v854_v35 = vpop.xlane.xlu1 %853 }
 0x1e9   :  { %v972_v47 = vadd.f32 %v971_v10, %v854_v35 }
 0x1ee   :  { %v857_v23 = vpop.xlane.xlu0 %856 }
 0x1ef   :  { %v949_v33 = vadd.f32 %v948_v53, %v857_v23 }
 0x1f0   :  { %v860_v54 = vpop.xlane.xlu1 %859 }
 0x1f1   :  { %v973_v22 = vadd.f32 %v972_v47, %v860_v54 }
 0x1f6   :  { %v863_v31 = vpop.xlane.xlu0 %862 }
 0x1f7   :  { %v950_v19 = vadd.f32 %v949_v33, %v863_v31 }
 0x1f8   :  { %v866_v7 = vpop.xlane.xlu1 %865 }
 0x1f9   :  { %v951_v41 = vadd.f32 %v950_v19, %v869_v14  ;;  %v974_v55 = vadd.f32 %v973_v22, %v866_v7 }
 0x1fa   :  { %v905_v0 = vpop.xlane.xlu0 %904 }
 0x1fb   :  { %v952_v32 = vadd.f32 %v951_v41, %v875_v62  ;;  %v975_v63 = vadd.f32 %v974_v55, %v9658_v4 }
 0x1fc   :  { %v908_v38 = vpop.xlane.xlu1 %907 }
 0x1fd   :  { %v953_v61 = vadd.f32 %v952_v32, %v881_v1  ;;  %v976_v12 = vadd.f32 %v975_v63, %v878_v42 }
 0x1fe   :  { %v911_v18 = vpop.xlane.xlu0 %910 }
 0x1ff   :  { %v977_v46 = vadd.f32 %v976_v12, %v884_v48  ;;  %v954_v30 = vadd.f32 %v953_v61, %v887_v25 }
 0x200   :  { %v914_v51 = vpop.xlane.xlu1 %913 }
 0x201   :  { %v955_v24 = vadd.f32 %v954_v30, %v893_v45  ;;  %v978_v40 = vadd.f32 %v977_v46, %v890_v34 }
 0x202   :  { %v917_v11 = vpop.xlane.xlu0 %916 }
 0x203   :  { %v956_v13 = vadd.f32 %v955_v24, %v899_v9  ;;  %v979_v60 = vadd.f32 %v978_v40, %v896_v21 }
 0x204   :  { %v920_v56 = vpop.xlane.xlu1 %919 }
 0x205   :  { %v957_v3 = vadd.f32 %v956_v13, %v905_v0  ;;  %v980_v14 = vadd.f32 %v979_v60, %v902_v49 }
 0x206   :  { %v923_v57 = vpop.xlane.xlu0 %922 }
 0x207   :  { %v981_v27 = vadd.f32 %v980_v14, %v908_v38  ;;  %v958_v62 = vadd.f32 %v957_v3, %v911_v18 }
 0x208   :  { %v926_v35 = vpop.xlane.xlu1 %925 }
 0x209   :  { %v982_v4 = vadd.f32 %v981_v27, %v914_v51  ;;  %v959_v44 = vadd.f32 %v958_v62, %v917_v11 }
 0x20a   :  { %v929_v1 = vpop.xlane.xlu0 %928 }
 0x20b   :  { %v983_v42 = vadd.f32 %v982_v4, %v920_v56  ;;  %v960_v2 = vadd.f32 %v959_v44, %v923_v57 }
 0x20c   :  { %v932_v48 = vpop.xlane.xlu1 %931 }
 0x20d   :  { %v984_v25 = vadd.f32 %v983_v42, %v926_v35  ;;  %v961_v23 = vadd.f32 %v960_v2, %v929_v1  ;;  %v12901_v42 = vld [vmem:[#allocation17_spill] sm:$0xff] }
 0x20e   :  { %v935_v45 = vpop.xlane.xlu0 %934 }
 0x20f   :  { %v985_v34 = vadd.f32 %v984_v25, %v932_v48  ;;  %v962_v10 = vadd.f32 %v961_v23, %v935_v45  ;;  %v12903_v25 = vld [vmem:[#allocation18_spill] sm:$0xff] }
 0x210   :  { %v938_v9 = vpop.xlane.xlu1 %937 }
 0x211   :  { %v9661_v21 = vmul.f32 0.000625, %v962_v10  ;;  %v986_v53 = vadd.f32 %v985_v34, %v938_v9  ;;  %v12905_v34 = vld [vmem:[#allocation19_spill] sm:$0xff] }
 0x213   :  { %v9663_v49 = vmul.f32 0.000625, %v986_v53  ;;  %v9667_v54 = vsub.f32 %v9385_v5, %v9661_v21  ;;  %v9671_v47 = vsub.f32 %v9403_v20, %v9661_v21  ;;  %v9690_v7 = vsub.f32 %v9423_v36, %v9661_v21 }
 0x214   :  { %v9704_v36 = vsub.f32 %v9443_v52, %v9661_v21  ;;  %v9718_v52 = vsub.f32 %v9463_v8, %v9661_v21  ;;  %v9732_v8 = vsub.f32 %v9483_v29, %v9661_v21  ;;  %v9746_v29 = vsub.f32 %v9505_v50, %v9661_v21 }
 0x215   :  { %v1039_v33 = vmul.f32 %v9667_v54, %v9667_v54  ;;  %v9677_v31 = vsub.f32 %v9400_v17, %v9663_v49  ;;  %v9681_v22 = vsub.f32 %v9409_v26, %v9663_v49  ;;  %v1041_v20 = vmul.f32 %v9671_v47, %v9671_v47 }
 0x216   :  { %v9697_v26 = vsub.f32 %v9431_v43, %v9663_v49  ;;  %v1043_v0 = vmul.f32 %v9690_v7, %v9690_v7  ;;  %12895 = vst [vmem:[#allocation37_spill] sm:$0xff] %v9704_v36  ;;  %v9711_v43 = vsub.f32 %v9451_v59, %v9663_v49  ;;  %v1045_v61 = vmul.f32 %v9704_v36, %v9704_v36 }
 0x217   :  { %v1089_v19 = vsel %vm788_vm3, %v1039_v33, 0.0  ;;  %v1040_v5 = vmul.f32 %v9677_v31, %v9677_v31  ;;  %v1042_v41 = vmul.f32 %v9681_v22, %v9681_v22  ;;  %v1095_v55 = vsel %vm788_vm3, %v1041_v20, 0.0  ;;  %12897 = vst [vmem:[#allocation39_spill] sm:$0xff] %v9718_v52  ;;  %v12906_v33 = vld [vmem:[#allocation20_spill] sm:$0xff] }
 0x218   :  { %1090 = vadd.xlane.f32.xlu0 %v1089_v19  ;;  %v1044_v63 = vmul.f32 %v9697_v26, %v9697_v26  ;;  %12896 = vst [vmem:[#allocation38_spill] sm:$0xff] %v9711_v43  ;;  %v1101_v38 = vsel %vm788_vm3, %v1043_v0, 0.0  ;;  %v1046_v18 = vmul.f32 %v9711_v43, %v9711_v43  ;;  %v9725_v59 = vsub.f32 %v9471_v16, %v9663_v49 }
 0x219   :  { %v1092_v17 = vsel %vm788_vm3, %v1040_v5, 0.0  ;;  %v1098_v32 = vsel %vm788_vm3, %v1042_v41, 0.0  ;;  %v1107_v46 = vsel %vm788_vm3, %v1045_v61, 0.0  ;;  %v1047_v30 = vmul.f32 %v9718_v52, %v9718_v52 }
 0x21a   :  { %1093 = vadd.xlane.f32.xlu1 %v1092_v17  ;;  %v1104_v12 = vsel %vm788_vm3, %v1044_v63, 0.0  ;;  %12898 = vst [vmem:[#allocation40_spill] sm:$0xff] %v9725_v59  ;;  %v1110_v51 = vsel %vm788_vm3, %v1046_v18, 0.0  ;;  %v1048_v24 = vmul.f32 %v9725_v59, %v9725_v59  ;;  %v9739_v16 = vsub.f32 %v9491_v39, %v9663_v49  ;;  %v12907_v17 = vld [vmem:[#allocation21_spill] sm:$0xff] }
 0x21b   :  { %v1113_v40 = vsel %vm788_vm3, %v1047_v30, 0.0  ;;  %v1049_v11 = vmul.f32 %v9732_v8, %v9732_v8  ;;  %v9753_v39 = vsub.f32 %v9512_v58, %v9663_v49  ;;  %v1051_v3 = vmul.f32 %v9746_v29, %v9746_v29 }
 0x21c   :  { %1096 = vadd.xlane.f32.xlu0 %v1095_v55  ;;  %v1116_v13 = vsel %vm788_vm3, %v1048_v24, 0.0  ;;  %v1050_v60 = vmul.f32 %v9739_v16, %v9739_v16  ;;  %v9760_v50 = vsub.f32 %v9521_v6, %v9661_v21  ;;  %v9767_v58 = vsub.f32 %v9526_v15, %v9663_v49 }
 0x21d   :  { %v1119_v56 = vsel %vm788_vm3, %v1049_v11, 0.0  ;;  %v1052_v57 = vmul.f32 %v9753_v39, %v9753_v39  ;;  %v1125_v27 = vsel %vm788_vm3, %v1051_v3, 0.0  ;;  %v9774_v6 = vsub.f32 %v9535_v28, %v9661_v21 }
 0x21e   :  { %1099 = vadd.xlane.f32.xlu1 %v1098_v32  ;;  %v1122_v14 = vsel %vm788_vm3, %v1050_v60, 0.0  ;;  %v1053_v62 = vmul.f32 %v9760_v50, %v9760_v50  ;;  %v1054_v4 = vmul.f32 %v9767_v58, %v9767_v58  ;;  %v9781_v15 = vsub.f32 %v9540_v37, %v9663_v49  ;;  %v12909_v32 = vld [vmem:[#allocation22_spill] sm:$0xff] }
 0x21f   :  { %12899 = vst [vmem:[#allocation41_spill] sm:$0xff] %v9774_v6  ;;  %v1128_v35 = vsel %vm788_vm3, %v1052_v57, 0.0  ;;  %v1055_v1 = vmul.f32 %v9774_v6, %v9774_v6  ;;  %v9788_v28 = vsub.f32 %v12901_v42, %v9661_v21  ;;  %v9795_v37 = vsub.f32 %v12903_v25, %v9663_v49  ;;  %v12921_v42 = vld [vmem:[#allocation8_spill] sm:$0xff] }
 0x220   :  { %1102 = vadd.xlane.f32.xlu0 %v1101_v38  ;;  %12900 = vst [vmem:[#allocation42_spill] sm:$0xff] %v9781_v15  ;;  %v1131_v44 = vsel %vm788_vm3, %v1053_v62, 0.0  ;;  %v1134_v2 = vsel %vm788_vm3, %v1054_v4, 0.0  ;;  %v1056_v48 = vmul.f32 %v9781_v15, %v9781_v15  ;;  %v9802_v10 = vsub.f32 %v12905_v34, %v9661_v21 }
 0x221   :  { %12902 = vst [vmem:[#allocation17_spill] sm:$0xff] %v9788_v28  ;;  %12904 = vst [vmem:[#allocation18_spill] sm:$0xff] %v9795_v37  ;;  %v1137_v23 = vsel %vm788_vm3, %v1055_v1, 0.0  ;;  %v1057_v45 = vmul.f32 %v9788_v28, %v9788_v28  ;;  %v1058_v53 = vmul.f32 %v9795_v37, %v9795_v37  ;;  %v9809_v19 = vsub.f32 %v12906_v33, %v9663_v49 }
 0x222   :  { %1105 = vadd.xlane.f32.xlu1 %v1104_v12  ;;  %v1140_v9 = vsel %vm788_vm3, %v1056_v48, 0.0  ;;  %v1059_v20 = vmul.f32 %v9802_v10, %v9802_v10  ;;  %v9816_v41 = vsub.f32 %v12907_v17, %v9661_v21  ;;  %v9823_v63 = vsub.f32 %v12909_v32, %v9663_v49  ;;  %v12911_v12 = vld [vmem:[#allocation23_spill] sm:$0xff] }
 0x223   :  { %v1143_v5 = vsel %vm788_vm3, %v1057_v45, 0.0  ;;  %v1146_v55 = vsel %vm788_vm3, %v1058_v53, 0.0  ;;  %v1060_v0 = vmul.f32 %v9809_v19, %v9809_v19  ;;  %v9830_v18 = vsub.f32 %v12911_v12, %v9661_v21  ;;  %v12924_v53 = vld [vmem:[#allocation10_spill] sm:$0xff]  ;;  %v12925_v17 = vld [vmem:[#allocation11_spill] sm:$0xff] }
 0x224   :  { %1108 = vadd.xlane.f32.xlu0 %v1107_v46  ;;  %12908 = vst [vmem:[#allocation19_spill] sm:$0xff] %v9816_v41  ;;  %12910 = vst [vmem:[#allocation20_spill] sm:$0xff] %v9823_v63  ;;  %v1149_v38 = vsel %vm788_vm3, %v1059_v20, 0.0  ;;  %v1061_v61 = vmul.f32 %v9816_v41, %v9816_v41  ;;  %v1062_v30 = vmul.f32 %v9823_v63, %v9823_v63 }
 0x225   :  { %12912 = vst [vmem:[#allocation21_spill] sm:$0xff] %v9830_v18  ;;  %v1152_v46 = vsel %vm788_vm3, %v1060_v0, 0.0  ;;  %v1063_v11 = vmul.f32 %v9830_v18, %v9830_v18  ;;  %v9879_v33 = vsub.f32 %v12924_v53, %v9663_v49 }
 0x226   :  { %1111 = vadd.xlane.f32.xlu1 %v1110_v51  ;;  %v12913_v51 = vld [vmem:[#allocation25_spill] sm:$0xff] }
 0x227   :  { %v9837_v24 = vsub.f32 %v12913_v51, %v9663_v49  ;;  %v1070_v32 = vmul.f32 %v9879_v33, %v9879_v33 }
 0x228   :  { %1114 = vadd.xlane.f32.xlu0 %v1113_v40  ;;  %v1155_v40 = vsel %vm788_vm3, %v1061_v61, 0.0 }
 0x229   :  { %12914 = vst [vmem:[#allocation22_spill] sm:$0xff] %v9837_v24  ;;  %v1064_v3 = vmul.f32 %v9837_v24, %v9837_v24 }
 0x22a   :  { %1117 = vadd.xlane.f32.xlu1 %v1116_v13  ;;  %v12915_v13 = vld [vmem:[#allocation5_spill] sm:$0xff] }
 0x22b   :  { %v9844_v60 = vsub.f32 %v12915_v13, %v9661_v21  ;;  %v12931_v13 = vld [vmem:[#allocation14_spill] sm:$0xff] }
 0x22c   :  { %1120 = vadd.xlane.f32.xlu0 %v1119_v56  ;;  %v1158_v56 = vsel %vm788_vm3, %v1062_v30, 0.0  ;;  %v12929_v30 = vld [vmem:[#allocation13_spill] sm:$0xff] }
 0x22d   :  { %12916 = vst [vmem:[#allocation23_spill] sm:$0xff] %v9844_v60  ;;  %v1065_v62 = vmul.f32 %v9844_v60, %v9844_v60  ;;  %v9900_v51 = vsub.f32 %v12929_v30, %v9661_v21 }
 0x22e   :  { %1123 = vadd.xlane.f32.xlu1 %v1122_v14  ;;  %v12917_v14 = vld [vmem:[#allocation6_spill] sm:$0xff] }
 0x22f   :  { %v9851_v57 = vsub.f32 %v12917_v14, %v9663_v49  ;;  %v1167_v48 = vsel %vm788_vm3, %v1065_v62, 0.0  ;;  %v1073_v14 = vmul.f32 %v9900_v51, %v9900_v51 }
 0x230   :  { %1126 = vadd.xlane.f32.xlu0 %v1125_v27  ;;  %v1161_v27 = vsel %vm788_vm3, %v1063_v11, 0.0 }
 0x231   :  { %12918 = vst [vmem:[#allocation25_spill] sm:$0xff] %v9851_v57  ;;  %v1066_v1 = vmul.f32 %v9851_v57, %v9851_v57 }
 0x232   :  { %1129 = vadd.xlane.f32.xlu1 %v1128_v35  ;;  %v12919_v35 = vld [vmem:[#allocation7_spill] sm:$0xff] }
 0x233   :  { %v9858_v4 = vsub.f32 %v12919_v35, %v9661_v21  ;;  %v1170_v34 = vsel %vm788_vm3, %v1066_v1, 0.0  ;;  %v12935_v1 = vld [vmem:[#allocation16_spill] sm:$0xff] }
 0x234   :  { %1132 = vadd.xlane.f32.xlu0 %v1131_v44  ;;  %v1164_v44 = vsel %vm788_vm3, %v1064_v3, 0.0 }
 0x235   :  { %12920 = vst [vmem:[#allocation5_spill] sm:$0xff] %v9858_v4  ;;  %v1067_v25 = vmul.f32 %v9858_v4, %v9858_v4 }
 0x236   :  { %1135 = vadd.xlane.f32.xlu1 %v1134_v2  ;;  %v9865_v2 = vsub.f32 %v12921_v42, %v9663_v49  ;;  %v9921_v42 = vsub.f32 %v12935_v1, %v9663_v49 }
 0x238   :  { %1138 = vadd.xlane.f32.xlu0 %v1137_v23  ;;  %12922 = vst [vmem:[#allocation6_spill] sm:$0xff] %v9865_v2  ;;  %v12923_v23 = vld [vmem:[#allocation9_spill] sm:$0xff]  ;;  %v1076_v53 = vmul.f32 %v9921_v42, %v9921_v42 }
 0x239   :  { %v9872_v45 = vsub.f32 %v12923_v23, %v9661_v21  ;;  %12930 = vst [vmem:[#allocation9_spill] sm:$0xff] %v9900_v51  ;;  %v12937_v23 = vld [vmem:[#allocation24_spill] sm:$0xff] }
 0x23a   :  { %1141 = vadd.xlane.f32.xlu1 %v1140_v9  ;;  %v1068_v9 = vmul.f32 %v9865_v2, %v9865_v2  ;;  %v1200_v30 = vsel %vm788_vm3, %v1076_v53, 0.0  ;;  %v12949_v53 = vld [vmem:[#allocation31_spill] sm:$0xff] }
 0x23b   :  { %v1069_v20 = vmul.f32 %v9872_v45, %v9872_v45 }
 0x23c   :  { %1144 = vadd.xlane.f32.xlu0 %v1143_v5  ;;  %v1173_v5 = vsel %vm788_vm3, %v1067_v25, 0.0  ;;  %v1176_v0 = vsel %vm788_vm3, %v1068_v9, 0.0 }
 0x23d   :  { %v1179_v12 = vsel %vm788_vm3, %v1069_v20, 0.0 }
 0x23e   :  { %1147 = vadd.xlane.f32.xlu1 %v1146_v55  ;;  %v9886_v55 = vsub.f32 %v12925_v17, %v9661_v21 }
 0x240   :  { %1150 = vadd.xlane.f32.xlu0 %v1149_v38  ;;  %12926 = vst [vmem:[#allocation7_spill] sm:$0xff] %v9886_v55  ;;  %v12927_v38 = vld [vmem:[#allocation12_spill] sm:$0xff] }
 0x241   :  { %v9893_v61 = vsub.f32 %v12927_v38, %v9663_v49  ;;  %12936 = vst [vmem:[#allocation12_spill] sm:$0xff] %v9921_v42 }
 0x242   :  { %1153 = vadd.xlane.f32.xlu1 %v1152_v46  ;;  %v1071_v46 = vmul.f32 %v9886_v55, %v9886_v55 }
 0x243   :  { %12928 = vst [vmem:[#allocation8_spill] sm:$0xff] %v9893_v61  ;;  %v1072_v11 = vmul.f32 %v9893_v61, %v9893_v61 }
 0x244   :  { %1156 = vadd.xlane.f32.xlu0 %v1155_v40  ;;  %v1182_v40 = vsel %vm788_vm3, %v1070_v32, 0.0  ;;  %v1185_v3 = vsel %vm788_vm3, %v1071_v46, 0.0  ;;  %v12941_v32 = vld [vmem:[#allocation27_spill] sm:$0xff] }
 0x245   :  { %v1188_v35 = vsel %vm788_vm3, %v1072_v11, 0.0  ;;  %v9942_v38 = vsub.f32 %v12941_v32, %v9661_v21  ;;  %v9949_v46 = vld [vmem:[%s12751_s3 + $0x80] sm:$0xff]   ;;  %v12943_v11 = vld [vmem:[#allocation28_spill] sm:$0xff] }
 0x246   :  { %1159 = vadd.xlane.f32.xlu1 %v1158_v56  ;;  %v9907_v56 = vsub.f32 %v12931_v13, %v9663_v49  ;;  %v9956_v13 = vsub.f32 %v12943_v11, %v9663_v49  ;;  %v12951_v32 = vld [vmem:[#allocation32_spill] sm:$0xff] }
 0x248   :  { %1162 = vadd.xlane.f32.xlu0 %v1161_v27  ;;  %12932 = vst [vmem:[#allocation10_spill] sm:$0xff] %v9907_v56  ;;  %v12933_v27 = vld [vmem:[#allocation15_spill] sm:$0xff]  ;;  %12944 = vst [vmem:[#allocation16_spill] sm:$0xff] %v9956_v13  ;;  %v1080_v1 = vmul.f32 %v9956_v13, %v9956_v13 }
 0x249   :  { %v9914_v62 = vsub.f32 %v12933_v27, %v9661_v21  ;;  %12942 = vst [vmem:[#allocation15_spill] sm:$0xff] %v9942_v38  ;;  %v12945_v27 = vld [vmem:[#allocation29_spill] sm:$0xff] }
 0x24a   :  { %1165 = vadd.xlane.f32.xlu1 %v1164_v44  ;;  %v1074_v44 = vmul.f32 %v9907_v56, %v9907_v56 }
 0x24b   :  { %12934 = vst [vmem:[#allocation11_spill] sm:$0xff] %v9914_v62  ;;  %v1075_v25 = vmul.f32 %v9914_v62, %v9914_v62 }
 0x24c   :  { %1168 = vadd.xlane.f32.xlu0 %v1167_v48  ;;  %v1191_v48 = vsel %vm788_vm3, %v1073_v14, 0.0  ;;  %v1194_v9 = vsel %vm788_vm3, %v1074_v44, 0.0  ;;  %v1079_v14 = vmul.f32 %v9942_v38, %v9942_v38 }
 0x24d   :  { %v1197_v17 = vsel %vm788_vm3, %v1075_v25, 0.0 }
 0x24e   :  { %1171 = vadd.xlane.f32.xlu1 %v1170_v34  ;;  %v9928_v34 = vsub.f32 %v12937_v23, %v9661_v21  ;;  %v1209_v23 = vsel %vm788_vm3, %v1079_v14, 0.0 }
 0x250   :  { %1174 = vadd.xlane.f32.xlu0 %v1173_v5  ;;  %12938 = vst [vmem:[#allocation13_spill] sm:$0xff] %v9928_v34  ;;  %v12939_v5 = vld [vmem:[#allocation26_spill] sm:$0xff] }
 0x251   :  { %v9935_v20 = vsub.f32 %v12939_v5, %v9663_v49  ;;  %v9979_v5 = vsub.f32 %v12949_v53, %v9661_v21  ;;  %v12957_v53 = vld [vmem:[#allocation35_spill] sm:$0xff] }
 0x252   :  { %1177 = vadd.xlane.f32.xlu1 %v1176_v0  ;;  %v1077_v0 = vmul.f32 %v9928_v34, %v9928_v34 }
 0x253   :  { %12940 = vst [vmem:[#allocation14_spill] sm:$0xff] %v9935_v20  ;;  %12950 = vst [vmem:[#allocation27_spill] sm:$0xff] %v9979_v5  ;;  %v1083_v11 = vmul.f32 %v9979_v5, %v9979_v5 }
 0x254   :  { %1180 = vadd.xlane.f32.xlu0 %v1179_v12  ;;  %v12817_v12 = vmov 0.0  }
 0x255   :  { %7287 = vmatprep.subr.bf16.mxu1 %v12817_v12  ;;  %7275 = vmatprep.subr.bf16.mxu0 %v12817_v12 }
 0x256   :  { %1183 = vadd.xlane.f32.xlu1 %v1182_v40  ;;  %v1078_v40 = vmul.f32 %v9935_v20, %v9935_v20  ;;  %7288 = vmatpush3.bf16.msra.mxu1 %v9949_v46 }
 0x257   :  { %7289 = vmatprep.subr.bf16.mxu1 %v12817_v12  ;;  %7283 = vmatprep.mubr.msk.bf16.mxu0 %vm9054_vm4, %v12817_v12 }
 0x258   :  { %1186 = vadd.xlane.f32.xlu0 %v1185_v3  ;;  %v1203_v3 = vsel %vm788_vm3, %v1077_v0, 0.0  ;;  %v1206_v44 = vsel %vm788_vm3, %v1078_v40, 0.0  ;;  %7295 = vmatprep.mubr.msk.bf16.mxu1 %vm9054_vm4, %v12817_v12 }
 0x25a   :  { %1189 = vadd.xlane.f32.xlu1 %v1188_v35  ;;  %v9964_v35 = vsub.f32 %v12945_v27, %v9661_v21 }
 0x25c   :  { %1192 = vadd.xlane.f32.xlu0 %v1191_v48  ;;  %12946 = vst [vmem:[#allocation24_spill] sm:$0xff] %v9964_v35  ;;  %v12947_v48 = vld [vmem:[#allocation30_spill] sm:$0xff] }
 0x25d   :  { %v9972_v25 = vsub.f32 %v12947_v48, %v9663_v49 }
 0x25e   :  { %1195 = vadd.xlane.f32.xlu1 %v1194_v9  ;;  %v1081_v9 = vmul.f32 %v9964_v35, %v9964_v35 }
 0x25f   :  { %12948 = vst [vmem:[#allocation26_spill] sm:$0xff] %v9972_v25  ;;  %v1082_v0 = vmul.f32 %v9972_v25, %v9972_v25 }
 0x260   :  { %1198 = vadd.xlane.f32.xlu0 %v1197_v17  ;;  %v1212_v17 = vsel %vm788_vm3, %v1080_v1, 0.0  ;;  %v1215_v40 = vsel %vm788_vm3, %v1081_v9, 0.0  ;;  %v12955_v1 = vld [vmem:[#allocation34_spill] sm:$0xff] }
 0x261   :  { %v1218_v27 = vsel %vm788_vm3, %v1082_v0, 0.0  ;;  %v10000_v48 = vsub.f32 %v12955_v1, %v9663_v49 }
 0x262   :  { %1201 = vadd.xlane.f32.xlu1 %v1200_v30  ;;  %v9986_v30 = vsub.f32 %v12951_v32, %v9663_v49 }
 0x263   :  { %12956 = vst [vmem:[#allocation30_spill] sm:$0xff] %v10000_v48  ;;  %v1086_v32 = vmul.f32 %v10000_v48, %v10000_v48 }
 0x264   :  { %1204 = vadd.xlane.f32.xlu0 %v1203_v3  ;;  %12952 = vst [vmem:[#allocation28_spill] sm:$0xff] %v9986_v30  ;;  %v12953_v3 = vld [vmem:[#allocation33_spill] sm:$0xff] }
 0x265   :  { %v9993_v14 = vsub.f32 %v12953_v3, %v9661_v21 }
 0x266   :  { %1207 = vadd.xlane.f32.xlu1 %v1206_v44  ;;  %v1084_v44 = vmul.f32 %v9986_v30, %v9986_v30 }
 0x267   :  { %12954 = vst [vmem:[#allocation29_spill] sm:$0xff] %v9993_v14  ;;  %v1085_v9 = vmul.f32 %v9993_v14, %v9993_v14 }
 0x268   :  { %1210 = vadd.xlane.f32.xlu0 %v1209_v23  ;;  %v1221_v23 = vsel %vm788_vm3, %v1083_v11, 0.0  ;;  %v1224_v0 = vsel %vm788_vm3, %v1084_v44, 0.0 }
 0x269   :  { %v1227_v11 = vsel %vm788_vm3, %v1085_v9, 0.0  ;;  %v10034_v9 = vld [vmem:[%s12751_s3 + $0x90] sm:$0xff]  }
 0x26a   :  { %1213 = vadd.xlane.f32.xlu1 %v1212_v17  ;;  %v10007_v17 = vsub.f32 %v12957_v53, %v9661_v21  ;;  %v1230_v21 = vsel %vm788_vm3, %v1086_v32, 0.0  ;;  %12961 = vst [vmem:[#allocation33_spill] sm:$0xff] %v10034_v9  ;;  %v10039_v53 = vld [vmem:[%s12751_s3 + $0xa0] sm:$0xff]   ;;  %v10055_v32 = vld [vmem:[%s12751_s3 + $0xa8] sm:$0xff]  }
 0x26b   :  { %12962 = vst [vmem:[#allocation34_spill] sm:$0xff] %v10039_v53  ;;  %7276 = vmatpush3.bf16.msra.mxu0 %v10039_v53 }
 0x26c   :  { %1216 = vadd.xlane.f32.xlu0 %v1215_v40  ;;  %12958 = vst [vmem:[#allocation31_spill] sm:$0xff] %v10007_v17  ;;  %v12959_v40 = vld [vmem:[#allocation36_spill] sm:$0xff]  ;;  %7277 = vmatprep.subr.bf16.mxu0 %v12817_v12 }
 0x26d   :  { %v10014_v3 = vsub.f32 %v12959_v40, %v9663_v49  ;;  %v10026_v49 = vld [vmem:[%s12751_s3 + $0x88] sm:$0xff]   ;;  %12964 = vst [vmem:[#allocation36_spill] sm:$0xff] %v10055_v32  ;;  %v10064_v40 = vld [vmem:[%s12751_s3 + $0xb0] sm:$0xff]  }
 0x26e   :  { %1219 = vadd.xlane.f32.xlu1 %v1218_v27  ;;  %v1087_v27 = vmul.f32 %v10007_v17, %v10007_v17  ;;  %7290 = vmatpush3.bf16.msra.mxu1 %v10026_v49  ;;  %12965 = vst [vmem:[#allocation43_spill] sm:$0xff] %v10064_v40 }
 0x26f   :  { %12960 = vst [vmem:[#allocation32_spill] sm:$0xff] %v10014_v3  ;;  %v1088_v1 = vmul.f32 %v10014_v3, %v10014_v3  ;;  %7291 = vmatprep.subr.bf16.mxu1 %v12817_v12  ;;  %7278 = vmatpush3.bf16.msra.mxu0 %v10055_v32 }
 0x270   :  { %1222 = vadd.xlane.f32.xlu0 %v1221_v23  ;;  %v1233_v44 = vsel %vm788_vm3, %v1087_v27, 0.0  ;;  %7279 = vmatprep.subr.bf16.mxu0 %v12817_v12 }
 0x271   :  { %v1236_v23 = vsel %vm788_vm3, %v1088_v1, 0.0 }
 0x272   :  { %1225 = vadd.xlane.f32.xlu1 %v1224_v0  ;;  %7292 = vmatpush3.bf16.msra.mxu1 %v10034_v9  ;;  %v10049_v0 = vld [vmem:[%s12751_s3 + $0x98] sm:$0xff]  }
 0x273   :  { %12963 = vst [vmem:[#allocation35_spill] sm:$0xff] %v10049_v0  ;;  %7293 = vmatprep.subr.bf16.mxu1 %v12817_v12  ;;  %7280 = vmatpush3.bf16.msra.mxu0 %v10064_v40 }
 0x274   :  { %1228 = vadd.xlane.f32.xlu0 %v1227_v11  ;;  %v10072_v11 = vld [vmem:[%s12751_s3 + $0xb8] sm:$0xff]   ;;  %7281 = vmatprep.subr.bf16.mxu0 %v12817_v12 }
 0x275   :  { %12966 = vst [vmem:[#allocation44_spill] sm:$0xff] %v10072_v11 }
 0x276   :  { %1231 = vadd.xlane.f32.xlu1 %v1230_v21  ;;  %7294 = vmatpush3.bf16.msra.mxu1 %v10049_v0 }
 0x277   :  { %7299 = vmatprep.subr.bf16.mxu1 %v12817_v12  ;;  %7282 = vmatpush3.bf16.msra.mxu0 %v10072_v11 }
 0x278   :  { %1234 = vadd.xlane.f32.xlu0 %v1233_v44  ;;  %7443 = vmatprep.subr.bf16.mxu0 %v12817_v12 }
 0x27a   :  { %1237 = vadd.xlane.f32.xlu1 %v1236_v23 }
 0x2a5   :  { %v1091_v27 = vpop.xlane.xlu0 %1090 }
 0x2a7   :  { %v1094_v21 = vpop.xlane.xlu1 %1093 }
 0x2a9   :  { %v1097_v1 = vpop.xlane.xlu0 %1096 }
 0x2aa   :  { %v1239_v4 = vadd.f32 %v1097_v1, %v1091_v27 }
 0x2ab   :  { %v1100_v44 = vpop.xlane.xlu1 %1099 }
 0x2ac   :  { %v1263_v52 = vadd.f32 %v1100_v44, %v1094_v21 }
 0x2ad   :  { %v1103_v23 = vpop.xlane.xlu0 %1102 }
 0x2ae   :  { %v1240_v59 = vadd.f32 %v1239_v4, %v1103_v23 }
 0x2af   :  { %v1106_v5 = vpop.xlane.xlu1 %1105 }
 0x2b0   :  { %v1264_v62 = vadd.f32 %v1263_v52, %v1106_v5 }
 0x2b1   :  { %v1109_v30 = vpop.xlane.xlu0 %1108 }
 0x2b2   :  { %v1241_v40 = vadd.f32 %v1240_v59, %v1109_v30 }
 0x2b3   :  { %v1112_v38 = vpop.xlane.xlu1 %1111 }
 0x2b4   :  { %v1265_v32 = vadd.f32 %v1264_v62, %v1112_v38 }
 0x2b5   :  { %v1115_v13 = vpop.xlane.xlu0 %1114 }
 0x2b6   :  { %v1242_v53 = vadd.f32 %v1241_v40, %v1115_v13 }
 0x2b7   :  { %v1118_v56 = vpop.xlane.xlu1 %1117 }
 0x2b8   :  { %v1266_v61 = vadd.f32 %v1265_v32, %v1118_v56 }
 0x2b9   :  { %v1121_v51 = vpop.xlane.xlu0 %1120 }
 0x2ba   :  { %v1243_v24 = vadd.f32 %v1242_v53, %v1121_v51 }
 0x2bb   :  { %v1124_v60 = vpop.xlane.xlu1 %1123 }
 0x2bc   :  { %v1267_v0 = vadd.f32 %v1266_v61, %v1124_v60 }
 0x2bd   :  { %v1127_v17 = vpop.xlane.xlu0 %1126 }
 0x2be   :  { %v1244_v6 = vadd.f32 %v1243_v24, %v1127_v17 }
 0x2bf   :  { %v1130_v57 = vpop.xlane.xlu1 %1129 }
 0x2c0   :  { %v1268_v15 = vadd.f32 %v1267_v0, %v1130_v57 }
 0x2c1   :  { %v1133_v3 = vpop.xlane.xlu0 %1132 }
 0x2c2   :  { %v1245_v43 = vadd.f32 %v1244_v6, %v1133_v3 }
 0x2c3   :  { %v1136_v14 = vpop.xlane.xlu1 %1135 }
 0x2c4   :  { %v1269_v27 = vadd.f32 %v1268_v15, %v1136_v14 }
 0x2c5   :  { %v1139_v48 = vpop.xlane.xlu0 %1138 }
 0x2c6   :  { %v1246_v1 = vadd.f32 %v1245_v43, %v1139_v48 }
 0x2c7   :  { %v1142_v41 = vpop.xlane.xlu1 %1141 }
 0x2c8   :  { %v1270_v4 = vadd.f32 %v1269_v27, %v1142_v41 }
 0x2c9   :  { %v1145_v63 = vpop.xlane.xlu0 %1144 }
 0x2ca   :  { %v1247_v44 = vadd.f32 %v1246_v1, %v1145_v63 }
 0x2cb   :  { %v1148_v12 = vpop.xlane.xlu1 %1147 }
 0x2cc   :  { %v1271_v59 = vadd.f32 %v1270_v4, %v1148_v12 }
 0x2cd   :  { %v1151_v35 = vpop.xlane.xlu0 %1150 }
 0x2ce   :  { %v1248_v5 = vadd.f32 %v1247_v44, %v1151_v35 }
 0x2cf   :  { %v1154_v25 = vpop.xlane.xlu1 %1153 }
 0x2d0   :  { %v1272_v38 = vadd.f32 %v1271_v59, %v1154_v25 }
 0x2d1   :  { %v1157_v28 = vpop.xlane.xlu0 %1156 }
 0x2d2   :  { %v1249_v13 = vadd.f32 %v1248_v5, %v1157_v28 }
 0x2d3   :  { %v1160_v37 = vpop.xlane.xlu1 %1159 }
 0x2d4   :  { %v1273_v51 = vadd.f32 %v1272_v38, %v1160_v37 }
 0x2d5   :  { %v1163_v34 = vpop.xlane.xlu0 %1162 }
 0x2d6   :  { %v1250_v30 = vadd.f32 %v1249_v13, %v1163_v34 }
 0x2d7   :  { %v1166_v20 = vpop.xlane.xlu1 %1165 }
 0x2d8   :  { %v1274_v24 = vadd.f32 %v1273_v51, %v1166_v20  ;;  %v6629_v51 = vld [vmem:[%s12754_s6] ss:$0 sm:$0xff] }
 0x2d9   :  { %v1169_v2 = vpop.xlane.xlu0 %1168 }
 0x2da   :  { %v1251_v61 = vadd.f32 %v1250_v30, %v1169_v2 }
 0x2db   :  { %v1172_v11 = vpop.xlane.xlu1 %1171 }
 0x2dc   :  { %v1275_v6 = vadd.f32 %v1274_v24, %v1172_v11  ;;  %v6634_v24 = vld [vmem:[%s12754_s6 + $0x5] ss:$0 sm:$0xff] }
 0x2dd   :  { %v1175_v42 = vpop.xlane.xlu0 %1174 }
 0x2de   :  { %v1252_v17 = vadd.f32 %v1251_v61, %v1175_v42 }
 0x2df   :  { %v1178_v55 = vpop.xlane.xlu1 %1177 }
 0x2e0   :  { %v1276_v43 = vadd.f32 %v1275_v6, %v1178_v55  ;;  %v6655_v6 = vld [vmem:[%s12755_s7 + $0x1] ss:$0 sm:$0xff] }
 0x2e1   :  { %v1181_v18 = vpop.xlane.xlu0 %1180 }
 0x2e2   :  { %v1253_v14 = vadd.f32 %v1252_v17, %v1181_v18 }
 0x2e3   :  { %v1184_v9 = vpop.xlane.xlu1 %1183 }
 0x2e4   :  { %v1277_v63 = vadd.f32 %v1276_v43, %v1184_v9 }
 0x2e5   :  { %v1187_v36 = vpop.xlane.xlu0 %1186 }
 0x2e6   :  { %v1254_v48 = vadd.f32 %v1253_v14, %v1187_v36  ;;  %v6635_v14 = vld [vmem:[%s12754_s6 + $0x6] ss:$0 sm:$0xff] }
 0x2e7   :  { %v1190_v21 = vpop.xlane.xlu1 %1189 }
 0x2e8   :  { %v1278_v35 = vadd.f32 %v1277_v63, %v1190_v21 }
 0x2e9   :  { %v1193_v52 = vpop.xlane.xlu0 %1192 }
 0x2ea   :  { %v1255_v3 = vadd.f32 %v1254_v48, %v1193_v52 }
 0x2eb   :  { %v1196_v62 = vpop.xlane.xlu1 %1195 }
 0x2ec   :  { %v1279_v28 = vadd.f32 %v1278_v35, %v1196_v62 }
 0x2ed   :  { %v1199_v56 = vpop.xlane.xlu0 %1198 }
 0x2ee   :  { %v1256_v53 = vadd.f32 %v1255_v3, %v1199_v56  ;;  %v6630_v56 = vld [vmem:[%s12754_s6 + $0x1] ss:$0 sm:$0xff] }
 0x2ef   :  { %v1202_v60 = vpop.xlane.xlu1 %1201 }
 0x2f0   :  { %v1280_v34 = vadd.f32 %v1279_v28, %v1202_v60 }
 0x2f1   :  { %v1205_v57 = vpop.xlane.xlu0 %1204 }
 0x2f2   :  { %v1257_v0 = vadd.f32 %v1256_v53, %v1205_v57 }
 0x2f3   :  { %v1208_v15 = vpop.xlane.xlu1 %1207 }
 0x2f4   :  { %v1281_v2 = vadd.f32 %v1280_v34, %v1208_v15  ;;  %v6660_v34 = vld [vmem:[%s12755_s7 + $0x6] ss:$0 sm:$0xff] }
 0x2f5   :  { %v1211_v41 = vpop.xlane.xlu0 %1210 }
 0x2f6   :  { %v1258_v32 = vadd.f32 %v1257_v0, %v1211_v41 }
 0x2f7   :  { %v1214_v12 = vpop.xlane.xlu1 %1213 }
 0x2f8   :  { %v1282_v42 = vadd.f32 %v1281_v2, %v1214_v12 }
 0x2f9   :  { %v1217_v25 = vpop.xlane.xlu0 %1216 }
 0x2fa   :  { %v1259_v11 = vadd.f32 %v1258_v32, %v1217_v25 }
 0x2fb   :  { %v1220_v37 = vpop.xlane.xlu1 %1219 }
 0x2fc   :  { %v1283_v18 = vadd.f32 %v1282_v42, %v1220_v37 }
 0x2fd   :  { %v1223_v20 = vpop.xlane.xlu0 %1222 }
 0x2fe   :  { %v1260_v23 = vadd.f32 %v1259_v11, %v1223_v20 }
 0x2ff   :  { %v1226_v40 = vpop.xlane.xlu1 %1225 }
 0x300   :  { %v1284_v36 = vadd.f32 %v1283_v18, %v1226_v40 }
 0x301   :  { %v1229_v55 = vpop.xlane.xlu0 %1228 }
 0x302   :  { %v1261_v27 = vadd.f32 %v1260_v23, %v1229_v55 }
 0x303   :  { %v1232_v9 = vpop.xlane.xlu1 %1231 }
 0x304   :  { %v1285_v21 = vadd.f32 %v1284_v36, %v1232_v9 }
 0x305   :  { %v1235_v1 = vpop.xlane.xlu0 %1234 }
 0x306   :  { %v1262_v4 = vadd.f32 %v1261_v27, %v1235_v1 }
 0x307   :  { %v1238_v44 = vpop.xlane.xlu1 %1237 }
 0x308   :  { %v1287_v52 = vmul.f32 0.000625, %v1262_v4  ;;  %v1286_v59 = vadd.f32 %v1285_v21, %v1238_v44 }
 0x30a   :  { %v1289_v5 = vadd.f32 1e-05, %v1287_v52  ;;  %v1288_v62 = vmul.f32 0.000625, %v1286_v59  ;;  %v6639_v52 = vld [vmem:[%s12754_s6 + $0xa] ss:$0 sm:$0xff] }
 0x30c   :  { %8682 = vrsqrt.f32 %v1289_v5  ;;  %v1290_v38 = vadd.f32 1e-05, %v1288_v62 }
 0x30e   :  { %8684 = vrsqrt.f32 %v1290_v38 }
 0x316   :  { %v10077_v13 = vpop.eup %8682 }
 0x317   :  { %v1295_v30 = vmul.f32 %v10077_v13, %v9671_v47  ;;  %v1293_v60 = vmul.f32 %v10077_v13, %v9667_v54  ;;  %v1303_v61 = vmul.f32 %v10077_v13, %v9732_v8  ;;  %v6654_v47 = vld [vmem:[%s12755_s7] ss:$0 sm:$0xff]  ;;  %v1305_v54 = vmul.f32 %v10077_v13, %v9746_v29 }
 0x318   :  { %v10094_v57 = vpop.eup %8684  ;;  %v1313_v4 = vmul.f32 %v10077_v13, %v9802_v10 }
 0x319   :  { %v1296_v17 = vmul.f32 %v10094_v57, %v9681_v22  ;;  %v1495_v15 = vmul.f32 %v6630_v56, %v1295_v30  ;;  %v1294_v8 = vmul.f32 %v10094_v57, %v9677_v31  ;;  %v1493_v43 = vmul.f32 %v6629_v51, %v1293_v60  ;;  %v6659_v31 = vld [vmem:[%s12755_s7 + $0x5] ss:$0 sm:$0xff] }
 0x31a   :  { %v1304_v41 = vmul.f32 %v10094_v57, %v9739_v16  ;;  %v1503_v63 = vmul.f32 %v6634_v24, %v1303_v61  ;;  %v1306_v48 = vmul.f32 %v10094_v57, %v9753_v39  ;;  %v1505_v25 = vmul.f32 %v6635_v14, %v1305_v54 }
 0x31b   :  { %v1496_v29 = vmul.f32 %v6630_v56, %v1296_v17  ;;  %v10115_v12 = vadd.f32 %v6655_v6, %v1495_v15  ;;  %v1494_v22 = vmul.f32 %v6629_v51, %v1294_v8  ;;  %v10117_v35 = vadd.f32 %v6654_v47, %v1493_v43  ;;  %v6664_v51 = vld [vmem:[%s12755_s7 + $0xa] ss:$0 sm:$0xff] }
 0x31c   :  { %v1504_v3 = vmul.f32 %v6634_v24, %v1304_v41  ;;  %v1506_v28 = vmul.f32 %v6635_v14, %v1306_v48  ;;  %v10131_v0 = vadd.f32 %v6659_v31, %v1503_v63  ;;  %v10139_v23 = vadd.f32 %v6660_v34, %v1505_v25  ;;  %v6631_v25 = vld [vmem:[%s12754_s6 + $0x2] ss:$0 sm:$0xff] }
 0x31d   :  { %v10122_v53 = vadd.f32 %v6655_v6, %v1496_v29  ;;  %v1745_v16 = vsub.f32 0.0, %v10115_v12  ;;  %v10125_v37 = vadd.f32 %v6654_v47, %v1494_v22  ;;  %v1743_v39 = vsub.f32 0.0, %v10117_v35 }
 0x31e   :  { %v10133_v20 = vadd.f32 %v6660_v34, %v1506_v28  ;;  %v10137_v11 = vadd.f32 %v6659_v31, %v1504_v3  ;;  %v1753_v9 = vsub.f32 0.0, %v10131_v0  ;;  %v1755_v1 = vsub.f32 0.0, %v10139_v23 }
 0x31f   :  { %v1746_v2 = vsub.f32 0.0, %v10122_v53  ;;  %v1797_v32 = vmul.f32 1.442695, %v1745_v16  ;;  %v1744_v40 = vsub.f32 0.0, %v10125_v37  ;;  %v1793_v42 = vmul.f32 1.442695, %v1743_v39 }
 0x320   :  { %v1756_v36 = vsub.f32 0.0, %v10133_v20  ;;  %v1754_v27 = vsub.f32 0.0, %v10137_v11  ;;  %v1813_v21 = vmul.f32 1.442695, %v1753_v9  ;;  %v1314_v59 = vmul.f32 %v10094_v57, %v9809_v19 }
 0x321   :  { %8686 = vpow2.f32 %v1797_v32  ;;  %v1799_v55 = vmul.f32 1.442695, %v1746_v2  ;;  %v1795_v18 = vmul.f32 1.442695, %v1744_v40  ;;  %v1817_v62 = vmul.f32 1.442695, %v1755_v1 }
 0x322   :  { %8688 = vpow2.f32 %v1793_v42  ;;  %v1819_v44 = vmul.f32 1.442695, %v1756_v36  ;;  %v1815_v5 = vmul.f32 1.442695, %v1754_v27  ;;  %v1513_v38 = vmul.f32 %v6639_v52, %v1313_v4  ;;  %v6656_v27 = vld [vmem:[%s12755_s7 + $0x2] ss:$0 sm:$0xff] }
 0x323   :  { %8690 = vpow2.f32 %v1799_v55  ;;  %v1514_v30 = vmul.f32 %v6639_v52, %v1314_v59  ;;  %v1298_v41 = vmul.f32 %v10094_v57, %v9697_v26  ;;  %v1297_v29 = vmul.f32 %v10077_v13, %v9690_v7  ;;  %v6644_v26 = vld [vmem:[%s12754_s6 + $0xf] ss:$0 sm:$0xff] }
 0x324   :  { %8692 = vpow2.f32 %v1795_v18  ;;  %v10155_v19 = vadd.f32 %v6664_v51, %v1513_v38  ;;  %v1324_v22 = vmul.f32 %v10094_v57, %v9879_v33  ;;  %v1323_v7 = vmul.f32 %v10077_v13, %v9872_v45  ;;  %v6669_v52 = vld [vmem:[%s12755_s7 + $0xf] ss:$0 sm:$0xff] }
 0x325   :  { %8694 = vpow2.f32 %v1813_v21  ;;  %v10157_v17 = vadd.f32 %v6664_v51, %v1514_v30  ;;  %v1498_v2 = vmul.f32 %v6631_v25, %v1298_v41  ;;  %v1497_v40 = vmul.f32 %v6631_v25, %v1297_v29  ;;  %v10185_v21 = vld [vmem:[%s12751_s3 + $0x40] sm:$0xff]   ;;  %v10217_v38 = vld [vmem:[%s12751_s3 + $0xe8] sm:$0xff]  }
 0x326   :  { %8696 = vpow2.f32 %v1819_v44  ;;  %v1763_v15 = vsub.f32 0.0, %v10155_v19  ;;  %v1524_v42 = vmul.f32 %v6644_v26, %v1324_v22  ;;  %v1523_v44 = vmul.f32 %v6644_v26, %v1323_v7 }
 0x327   :  { %8698 = vpow2.f32 %v1815_v5  ;;  %v1764_v8 = vsub.f32 0.0, %v10157_v17  ;;  %v10210_v5 = vld [vmem:[%s12751_s3 + $0x48] sm:$0xff]   ;;  %v1308_v41 = vmul.f32 %v10094_v57, %v9767_v58  ;;  %v1307_v25 = vmul.f32 %v10077_v13, %v9760_v50 }
 0x328   :  { %8700 = vpow2.f32 %v1817_v62  ;;  %v1833_v48 = vmul.f32 1.442695, %v1763_v15  ;;  %v10203_v59 = vadd.f32 %v6669_v52, %v1524_v42  ;;  %v12967_v62 = vmov 0.0  }
 0x329   :  { %v1835_v3 = vmul.f32 1.442695, %v1764_v8  ;;  %v10220_v51 = vadd.f32 %v6669_v52, %v1523_v44  ;;  %v12969_v52 = vld [vmem:[#allocation38_spill] sm:$0xff] }
 0x32b   :  { %v8687_v56 = vpop.eup %8686 }
 0x32c   :  { %v8689_v10 = vpop.eup %8688  ;;  %v1895_v60 = vadd.f32 1.0, %v8687_v56 }
 0x32d   :  { %v8691_v24 = vpop.eup %8690  ;;  %v1893_v61 = vadd.f32 1.0, %v8689_v10  ;;  %v1774_v10 = vsub.f32 0.0, %v10203_v59 }
 0x32e   :  { %v8693_v6 = vpop.eup %8692  ;;  %v1896_v47 = vadd.f32 1.0, %v8691_v24  ;;  %8702 = vrcp.f32 %v1895_v60  ;;  %v10233_v24 = vld [vmem:[%s12751_s3 + $0x50] sm:$0xff]  }
 0x32f   :  { %v1894_v54 = vadd.f32 1.0, %v8693_v6  ;;  %8704 = vrcp.f32 %v1893_v61  ;;  %v8695_v43 = vpop.eup %8694  ;;  %v10240_v6 = vld [vmem:[%s12751_s3 + $0xf0] sm:$0xff]  }
 0x330   :  { %8706 = vrcp.f32 %v1896_v47  ;;  %v8697_v14 = vpop.eup %8696  ;;  %v1903_v36 = vadd.f32 1.0, %v8695_v43 }
 0x331   :  { %8708 = vrcp.f32 %v1894_v54  ;;  %v8699_v63 = vpop.eup %8698  ;;  %v1906_v16 = vadd.f32 1.0, %v8697_v14  ;;  %v1773_v54 = vsub.f32 0.0, %v10220_v51  ;;  %v1855_v14 = vmul.f32 1.442695, %v1774_v10 }
 0x332   :  { %v8701_v31 = vpop.eup %8700  ;;  %v1904_v34 = vadd.f32 1.0, %v8699_v63  ;;  %8710 = vpow2.f32 %v1833_v48  ;;  %v10250_v48 = vld [vmem:[%s12751_s3 + $0x58] sm:$0xff]  }
 0x333   :  { %v1905_v33 = vadd.f32 1.0, %v8701_v31  ;;  %8712 = vpow2.f32 %v1835_v3  ;;  %v10257_v31 = vld [vmem:[%s12751_s3 + $0xf8] sm:$0xff]   ;;  %v1853_v3 = vmul.f32 1.442695, %v1773_v54  ;;  %v12971_v54 = vld [vmem:[#allocation33_spill] sm:$0xff] }
 0x334   :  { %8714 = vrcp.f32 %v1906_v16 }
 0x335   :  { %8716 = vrcp.f32 %v1904_v34 }
 0x336   :  { %8718 = vrcp.f32 %v1905_v33 }
 0x337   :  { %8720 = vrcp.f32 %v1903_v36 }
 0x338   :  { %v8703_v28 = vpop.eup %8702 }
 0x339   :  { %v8705_v39 = vpop.eup %8704  ;;  %v1995_v18 = vmul.f32 %v8703_v28, %v10115_v12  ;;  %v10192_v12 = vld [vmem:[%s12751_s3 + $0xe0] sm:$0xff]  }
 0x33a   :  { %v8707_v32 = vpop.eup %8706  ;;  %v1993_v1 = vmul.f32 %v8705_v39, %v10117_v35  ;;  %v6636_v39 = vld [vmem:[%s12754_s6 + $0x7] ss:$0 sm:$0xff] }
 0x33b   :  { %v8709_v55 = vpop.eup %8708  ;;  %v1996_v9 = vmul.f32 %v8707_v32, %v10122_v53  ;;  %v10194_v53 = vadd.f32 %v6656_v27, %v1498_v2  ;;  %v1508_v2 = vmul.f32 %v6636_v39, %v1308_v41  ;;  %v10297_v32 = vld [vmem:[%s12751_s3 + $0x108] sm:$0xff]  }
 0x33c   :  { %v1994_v45 = vmul.f32 %v8709_v55, %v10125_v37  ;;  %v10196_v37 = vadd.f32 %v6656_v27, %v1497_v40  ;;  %v8711_v60 = vpop.eup %8710  ;;  %v12968_v27 = vld [vmem:[#allocation37_spill] sm:$0xff] }
 0x33d   :  { %v10187_v4 = vpack.c.bf16 %v1996_v9, %v1995_v18  ;;  %v1748_v56 = vsub.f32 0.0, %v10194_v53  ;;  %v8713_v61 = vpop.eup %8712  ;;  %v1913_v16 = vadd.f32 1.0, %v8711_v60  ;;  %v10313_v9 = vld [vmem:[%s12751_s3 + $0x110] sm:$0xff]   ;;  %v12970_v60 = vld [vmem:[#allocation42_spill] sm:$0xff] }
 0x33e   :  { %v2043_v35 = vpack.c.bf16 %v1994_v45, %v1993_v1  ;;  %v1747_v30 = vsub.f32 0.0, %v10196_v37  ;;  %v8715_v15 = vpop.eup %8714  ;;  %v1914_v29 = vadd.f32 1.0, %v8713_v61  ;;  %v1299_v1 = vmul.f32 %v10077_v13, %v12968_v27 }
 0x33f   :  { %7284 = vmatmul.mubr.msk.bf16.vlgmr.msra.gmra.mrb[52].mxu0 %vm788_vm3, %v10187_v4  ;;  %v1803_v47 = vmul.f32 1.442695, %v1748_v56  ;;  %v8717_v43 = vpop.eup %8716  ;;  %v2006_v58 = vmul.f32 %v8715_v15, %v10133_v20  ;;  %v1300_v56 = vmul.f32 %v10094_v57, %v12969_v52  ;;  %v1310_v61 = vmul.f32 %v10094_v57, %v12970_v60  ;;  %v12975_v60 = vld [vmem:[#allocation22_spill] sm:$0xff] }
 0x340   :  { %7296 = vmatmul.mubr.msk.bf16.vlgmr.msra.gmra.mrb[48].mxu1 %vm788_vm3, %v2043_v35  ;;  %7444 = vmatpush3.bf16.msra.mxu0 %v10185_v21  ;;  %v1801_v8 = vmul.f32 1.442695, %v1747_v30  ;;  %v8719_v63 = vpop.eup %8718  ;;  %v2004_v28 = vmul.f32 %v8717_v43, %v10137_v11  ;;  %v10277_v11 = vld [vmem:[%s12751_s3 + $0x100] sm:$0xff]  }
 0x341   :  { %7300 = vmatpush3.bf16.msra.mxu1 %v10192_v12  ;;  %7445 = vmatprep.subr.bf16.mxu0 %v12967_v62  ;;  %v8721_v22 = vpop.eup %8720  ;;  %8722 = vpow2.f32 %v1803_v47  ;;  %v2005_v34 = vmul.f32 %v8719_v63, %v10139_v23  ;;  %v1507_v23 = vmul.f32 %v6636_v39, %v1307_v25  ;;  %v6632_v35 = vld [vmem:[%s12754_s6 + $0x3] ss:$0 sm:$0xff]  ;;  %v12972_v63 = vld [vmem:[#allocation41_spill] sm:$0xff]  ;;  %v6637_v25 = vld [vmem:[%s12754_s6 + $0x8] ss:$0 sm:$0xff] }
 0x342   :  { %7301 = vmatprep.subr.bf16.mxu1 %v12967_v62  ;;  %7307 = vmatprep.mubr.msk.bf16.mxu1 %vm9054_vm4, %v12967_v62  ;;  %8724 = vpow2.f32 %v1801_v8  ;;  %v2003_v20 = vmul.f32 %v8721_v22, %v10131_v0  ;;  %v6661_v0 = vld [vmem:[%s12755_s7 + $0x7] ss:$0 sm:$0xff]  ;;  %v10332_v8 = vld [vmem:[%s12751_s3 + $0x118] sm:$0xff]   ;;  %v1499_v41 = vmul.f32 %v6632_v35, %v1299_v1 }
 0x343   :  { %7451 = vmatprep.mubr.msk.bf16.mxu0 %vm9054_vm4, %v12967_v62  ;;  %8726 = vpow2.f32 %v1855_v14  ;;  %v10271_v50 = vpack.c.bf16 %v2006_v58, %v2005_v34  ;;  %v10287_v7 = vadd.f32 %v6661_v0, %v1508_v2  ;;  %v10299_v33 = vadd.f32 %v6661_v0, %v1507_v23  ;;  %v6657_v58 = vld [vmem:[%s12755_s7 + $0x3] ss:$0 sm:$0xff] }
 0x344   :  { %7446 = vmatpush3.bf16.msra.mxu0 %v10210_v5  ;;  %8728 = vrcp.f32 %v1914_v29  ;;  %v10279_v26 = vpack.c.bf16 %v2004_v28, %v2003_v20  ;;  %v1309_v29 = vmul.f32 %v10077_v13, %v12972_v63  ;;  %v12973_v39 = vld [vmem:[#allocation35_spill] sm:$0xff]  ;;  %v10348_v2 = vadd.f32 %v6657_v58, %v1499_v41 }
 0x345   :  { %7302 = vmatpush3.bf16.msra.mxu1 %v10217_v38  ;;  %7447 = vmatprep.subr.bf16.mxu0 %v12967_v62  ;;  %8730 = vpow2.f32 %v1853_v3  ;;  %v1758_v42 = vsub.f32 0.0, %v10287_v7  ;;  %v1757_v36 = vsub.f32 0.0, %v10299_v33  ;;  %v1500_v3 = vmul.f32 %v6632_v35, %v1300_v56  ;;  %v12974_v35 = vld [vmem:[#allocation21_spill] sm:$0xff] }
 0x346   :  { %7303 = vmatprep.subr.bf16.mxu1 %v12967_v62  ;;  %8732 = vrcp.f32 %v1913_v16  ;;  %v1510_v16 = vmul.f32 %v6637_v25, %v1310_v61  ;;  %v1509_v20 = vmul.f32 %v6637_v25, %v1309_v29  ;;  %v1317_v52 = vmul.f32 %v10077_v13, %v12974_v35 }
 0x347   :  { %v1823_v10 = vmul.f32 1.442695, %v1758_v42  ;;  %v1821_v14 = vmul.f32 1.442695, %v1757_v36  ;;  %v10351_v23 = vadd.f32 %v6657_v58, %v1500_v3  ;;  %v10401_v3 = vld [vmem:[%s12751_s3 + $0x20] sm:$0xff]  }
 0x348   :  { %7448 = vmatpush3.bf16.msra.mxu0 %v10233_v24 }
 0x349   :  { %7304 = vmatpush3.bf16.msra.mxu1 %v10240_v6  ;;  %7449 = vmatprep.subr.bf16.mxu0 %v12967_v62 }
 0x34a   :  { %7305 = vmatprep.subr.bf16.mxu1 %v12967_v62 }
 0x34b   :  { %v8723_v40 = vpop.eup %8722 }
 0x34c   :  { %7450 = vmatpush3.bf16.msra.mxu0 %v10250_v48  ;;  %v8725_v55 = vpop.eup %8724  ;;  %v1898_v44 = vadd.f32 1.0, %v8723_v40  ;;  %v1749_v40 = vsub.f32 0.0, %v10348_v2 }
 0x34d   :  { %7306 = vmatpush3.bf16.msra.mxu1 %v10257_v31  ;;  %7467 = vmatprep.subr.bf16.mxu0 %v12967_v62  ;;  %v8727_v18 = vpop.eup %8726  ;;  %v1897_v28 = vadd.f32 1.0, %v8725_v55  ;;  %v1750_v55 = vsub.f32 0.0, %v10351_v23 }
 0x34e   :  { %7311 = vmatprep.subr.bf16.mxu1 %v12967_v62  ;;  %v8729_v45 = vpop.eup %8728  ;;  %v1924_v15 = vadd.f32 1.0, %v8727_v18  ;;  %8734 = vrcp.f32 %v1898_v44  ;;  %v1805_v27 = vmul.f32 1.442695, %v1749_v40  ;;  %v10444_v40 = vld [vmem:[%s12751_s3 + $0x30] sm:$0xff]  }
 0x34f   :  { %7452 = vmatmul.mubr.msk.bf16.vlgmr.msra.gmra.mrb[56].mxu0 %vm788_vm3, %v10271_v50  ;;  %v8731_v30 = vpop.eup %8730  ;;  %v2014_v43 = vmul.f32 %v8729_v45, %v10157_v17  ;;  %8736 = vpow2.f32 %v1823_v10  ;;  %v1807_v44 = vmul.f32 1.442695, %v1750_v55  ;;  %v6641_v10 = vld [vmem:[%s12754_s6 + $0xc] ss:$0 sm:$0xff] }
 0x350   :  { %7308 = vmatmul.mubr.msk.bf16.vlgmr.msra.gmra.mrb[52].mxu1 %vm788_vm3, %v10279_v26  ;;  %7468 = vmatpush3.bf16.msra.mxu0 %v9949_v46  ;;  %v8733_v47 = vpop.eup %8732  ;;  %v1923_v22 = vadd.f32 1.0, %v8731_v30  ;;  %8738 = vrcp.f32 %v1924_v15  ;;  %v1517_v29 = vmul.f32 %v6641_v10, %v1317_v52  ;;  %v10460_v52 = vld [vmem:[%s12751_s3 + $0x38] sm:$0xff]  }
 0x351   :  { %7312 = vmatpush3.bf16.msra.mxu1 %v10277_v11  ;;  %7469 = vmatprep.subr.bf16.mxu0 %v12967_v62  ;;  %v2013_v17 = vmul.f32 %v8733_v47, %v10155_v19  ;;  %8740 = vpow2.f32 %v1821_v14  ;;  %v6662_v19 = vld [vmem:[%s12755_s7 + $0x8] ss:$0 sm:$0xff] }
 0x352   :  { %7313 = vmatprep.subr.bf16.mxu1 %v12967_v62  ;;  %7319 = vmatprep.mubr.msk.bf16.mxu1 %vm9054_vm4, %v12967_v62  ;;  %8742 = vrcp.f32 %v1923_v22  ;;  %v10357_v0 = vadd.f32 %v6662_v19, %v1510_v16  ;;  %v10365_v42 = vadd.f32 %v6662_v19, %v1509_v20  ;;  %v10431_v16 = vld [vmem:[%s12751_s3 + $0x68] sm:$0xff]  }
 0x353   :  { %7475 = vmatprep.mubr.msk.bf16.mxu0 %vm9054_vm4, %v12967_v62  ;;  %v2053_v34 = vpack.c.bf16 %v2014_v43, %v2013_v17  ;;  %8744 = vrcp.f32 %v1897_v28  ;;  %v10424_v28 = vld [vmem:[%s12751_s3 + $0x28] sm:$0xff]  }
 0x354   :  { %7470 = vmatpush3.bf16.msra.mxu0 %v10026_v49  ;;  %v1760_v18 = vsub.f32 0.0, %v10357_v0  ;;  %v1759_v1 = vsub.f32 0.0, %v10365_v42  ;;  %8746 = vpow2.f32 %v1805_v27 }
 0x355   :  { %7314 = vmatpush3.bf16.msra.mxu1 %v10297_v32  ;;  %7471 = vmatprep.subr.bf16.mxu0 %v12967_v62  ;;  %8748 = vpow2.f32 %v1807_v44 }
 0x356   :  { %7315 = vmatprep.subr.bf16.mxu1 %v12967_v62  ;;  %v1827_v30 = vmul.f32 1.442695, %v1760_v18  ;;  %v1825_v14 = vmul.f32 1.442695, %v1759_v1  ;;  %v10451_v18 = vld [vmem:[%s12751_s3 + $0x70] sm:$0xff]  }
 0x358   :  { %7472 = vmatpush3.bf16.msra.mxu0 %v12971_v54  ;;  %v8735_v36 = vpop.eup %8734  ;;  %8750 = vpow2.f32 %v1827_v30  ;;  %v10467_v30 = vld [vmem:[%s12751_s3 + $0x78] sm:$0xff]  }
 0x359   :  { %7316 = vmatpush3.bf16.msra.mxu1 %v10313_v9  ;;  %7473 = vmatprep.subr.bf16.mxu0 %v12967_v62  ;;  %v1998_v41 = vmul.f32 %v8735_v36, %v10194_v53 }
 0x35a   :  { %7317 = vmatprep.subr.bf16.mxu1 %v12967_v62 }
 0x35c   :  { %7474 = vmatpush3.bf16.msra.mxu0 %v12973_v39 }
 0x35d   :  { %7318 = vmatpush3.bf16.msra.mxu1 %v10332_v8  ;;  %7491 = vmatprep.subr.bf16.mxu0 %v12967_v62 }
 0x35e   :  { %7323 = vmatprep.subr.bf16.mxu1 %v12967_v62 }
 0x35f   :  { %7476 = vmatmul.mubr.msk.bf16.vlgmr.msra.gmra.mrb[60].mxu0 %vm788_vm3, %v2053_v34 }
 0x360   :  { %7320 = vmatmul.mubr.msk.bf16.vlgmr.msra.gmra.mrb[56].mxu1 %vm788_vm3, %v10271_v50  ;;  %7492 = vmatpush3.bf16.msra.mxu0 %v10192_v12 }
 0x361   :  { %7324 = vmatpush3.bf16.msra.mxu1 %v9949_v46  ;;  %7493 = vmatprep.subr.bf16.mxu0 %v12967_v62  ;;  %v8737_v46 = vpop.eup %8736 }
 0x362   :  { %7325 = vmatprep.subr.bf16.mxu1 %v12967_v62  ;;  %7331 = vmatprep.mubr.msk.bf16.mxu1 %vm9054_vm4, %v12967_v62  ;;  %v8739_v45 = vpop.eup %8738  ;;  %v1908_v47 = vadd.f32 1.0, %v8737_v46 }
 0x363   :  { %7499 = vmatprep.mubr.msk.bf16.mxu0 %vm9054_vm4, %v12967_v62  ;;  %v8741_v56 = vpop.eup %8740  ;;  %v2024_v43 = vmul.f32 %v8739_v45, %v10203_v59  ;;  %v12976_v45 = vld [vmem:[#allocation8_spill] sm:$0xff] }
 0x364   :  { %7494 = vmatpush3.bf16.msra.mxu0 %v10217_v38  ;;  %v8743_v61 = vpop.eup %8742  ;;  %v1907_v63 = vadd.f32 1.0, %v8741_v56  ;;  %8752 = vrcp.f32 %v1908_v47  ;;  %v1326_v44 = vmul.f32 %v10094_v57, %v12976_v45 }
 0x365   :  { %7326 = vmatpush3.bf16.msra.mxu1 %v10026_v49  ;;  %7495 = vmatprep.subr.bf16.mxu0 %v12967_v62  ;;  %v1318_v49 = vmul.f32 %v10094_v57, %v12975_v60  ;;  %v8745_v15 = vpop.eup %8744  ;;  %v2023_v22 = vmul.f32 %v8743_v61, %v10220_v51  ;;  %v10410_v51 = vld [vmem:[%s12751_s3 + $0x60] sm:$0xff]   ;;  %8754 = vpow2.f32 %v1825_v14 }
 0x366   :  { %7327 = vmatprep.subr.bf16.mxu1 %v12967_v62  ;;  %v1997_v59 = vmul.f32 %v8745_v15, %v10196_v37  ;;  %8756 = vrcp.f32 %v1907_v63  ;;  %v8747_v34 = vpop.eup %8746  ;;  %v6645_v15 = vld [vmem:[%s12754_s6 + $0x10] ss:$0 sm:$0xff] }
 0x367   :  { %v1518_v58 = vmul.f32 %v6641_v10, %v1318_v49  ;;  %v10404_v53 = vpack.c.bf16 %v2024_v43, %v2023_v22  ;;  %v8749_v19 = vpop.eup %8748  ;;  %v12977_v49 = vld [vmem:[#allocation7_spill] sm:$0xff]  ;;  %v1899_v14 = vadd.f32 1.0, %v8747_v34  ;;  %v12978_v22 = vld [vmem:[#allocation34_spill] sm:$0xff] }
 0x368   :  { %7496 = vmatpush3.bf16.msra.mxu0 %v10240_v6  ;;  %v2045_v25 = vpack.c.bf16 %v1998_v41, %v1997_v59  ;;  %v8751_v55 = vpop.eup %8750  ;;  %v1900_v60 = vadd.f32 1.0, %v8749_v19  ;;  %v1325_v61 = vmul.f32 %v10077_v13, %v12977_v49  ;;  %v1526_v41 = vmul.f32 %v6645_v15, %v1326_v44  ;;  %v12980_v19 = vld [vmem:[#allocation12_spill] sm:$0xff]  ;;  %v12982_v44 = vld [vmem:[#allocation11_spill] sm:$0xff] }
 0x369   :  { %7328 = vmatpush3.bf16.msra.mxu1 %v12971_v54  ;;  %7497 = vmatprep.subr.bf16.mxu0 %v12967_v62  ;;  %v6666_v54 = vld [vmem:[%s12755_s7 + $0xc] ss:$0 sm:$0xff]  ;;  %v1910_v56 = vadd.f32 1.0, %v8751_v55  ;;  %v1330_v55 = vmul.f32 %v10094_v57, %v12980_v19  ;;  %v10586_v19 = vld [vmem:[%s12751_s3 + $0x90] sm:$0xff]  }
 0x36a   :  { %7329 = vmatprep.subr.bf16.mxu1 %v12967_v62  ;;  %v10413_v37 = vadd.f32 %v6666_v54, %v1517_v29  ;;  %v10417_v17 = vadd.f32 %v6666_v54, %v1518_v58  ;;  %v1525_v63 = vmul.f32 %v6645_v15, %v1325_v61  ;;  %v12983_v61 = vld [vmem:[#allocation44_spill] sm:$0xff] }
 0x36c   :  { %7498 = vmatpush3.bf16.msra.mxu0 %v10257_v31  ;;  %v1768_v20 = vsub.f32 0.0, %v10417_v17 }
 0x36d   :  { %7330 = vmatpush3.bf16.msra.mxu1 %v12973_v39  ;;  %7515 = vmatprep.subr.bf16.mxu0 %v12967_v62  ;;  %v1767_v39 = vsub.f32 0.0, %v10413_v37 }
 0x36e   :  { %7335 = vmatprep.subr.bf16.mxu1 %v12967_v62  ;;  %v8753_v36 = vpop.eup %8752  ;;  %v1843_v1 = vmul.f32 1.442695, %v1768_v20 }
 0x36f   :  { %7500 = vmatmul.mubr.msk.bf16.vlgmr.msra.gmra.mrb[64].mxu0 %vm788_vm3, %v10404_v53  ;;  %v1841_v46 = vmul.f32 1.442695, %v1767_v39  ;;  %v8755_v27 = vpop.eup %8754  ;;  %v2008_v10 = vmul.f32 %v8753_v36, %v10287_v7 }
 0x370   :  { %7332 = vmatmul.mubr.msk.bf16.vlgmr.msra.gmra.mrb[60].mxu1 %vm788_vm3, %v2045_v25  ;;  %7516 = vmatpush3.bf16.msra.mxu0 %v10401_v3  ;;  %v8757_v35 = vpop.eup %8756  ;;  %v1909_v47 = vadd.f32 1.0, %v8755_v27  ;;  %v12981_v27 = vld [vmem:[#allocation43_spill] sm:$0xff] }
 0x371   :  { %7336 = vmatpush3.bf16.msra.mxu1 %v10410_v51  ;;  %7517 = vmatprep.subr.bf16.mxu0 %v12967_v62  ;;  %8758 = vpow2.f32 %v1841_v46  ;;  %v2007_v43 = vmul.f32 %v8757_v35, %v10299_v33  ;;  %v6670_v33 = vld [vmem:[%s12755_s7 + $0x10] ss:$0 sm:$0xff]  ;;  %v1329_v35 = vmul.f32 %v10077_v13, %v12982_v44  ;;  %v6633_v44 = vld [vmem:[%s12754_s6 + $0x4] ss:$0 sm:$0xff] }
 0x372   :  { %7337 = vmatprep.subr.bf16.mxu1 %v12967_v62  ;;  %7343 = vmatprep.mubr.msk.bf16.mxu1 %vm9054_vm4, %v12967_v62  ;;  %8760 = vpow2.f32 %v1843_v1  ;;  %v10488_v29 = vadd.f32 %v6670_v33, %v1526_v41  ;;  %v10495_v54 = vadd.f32 %v6670_v33, %v1525_v63  ;;  %v10569_v33 = vld [vmem:[%s12751_s3 + $0x88] sm:$0xff]  }
 0x373   :  { %7523 = vmatprep.mubr.msk.bf16.mxu0 %vm9054_vm4, %v12967_v62  ;;  %8762 = vrcp.f32 %v1910_v56  ;;  %v10479_v7 = vpack.c.bf16 %v2008_v10, %v2007_v43  ;;  %v10548_v43 = vld [vmem:[%s12751_s3 + $0x80] sm:$0xff]  }
 0x374   :  { %7518 = vmatpush3.bf16.msra.mxu0 %v10424_v28  ;;  %8764 = vrcp.f32 %v1900_v60  ;;  %v1776_v58 = vsub.f32 0.0, %v10488_v29  ;;  %v1775_v25 = vsub.f32 0.0, %v10495_v54 }
 0x375   :  { %7338 = vmatpush3.bf16.msra.mxu1 %v10431_v16  ;;  %7519 = vmatprep.subr.bf16.mxu0 %v12967_v62  ;;  %8766 = vrcp.f32 %v1909_v47 }
 0x376   :  { %7339 = vmatprep.subr.bf16.mxu1 %v12967_v62  ;;  %8768 = vrcp.f32 %v1899_v14  ;;  %v1859_v20 = vmul.f32 1.442695, %v1776_v58  ;;  %v1857_v45 = vmul.f32 1.442695, %v1775_v25  ;;  %v10556_v14 = vld [vmem:[%s12751_s3 + $0xc8] sm:$0xff]   ;;  %v10577_v58 = vld [vmem:[%s12751_s3 + $0xd0] sm:$0xff]  }
 0x378   :  { %7520 = vmatpush3.bf16.msra.mxu0 %v10444_v40  ;;  %8770 = vpow2.f32 %v1859_v20 }
 0x379   :  { %7340 = vmatpush3.bf16.msra.mxu1 %v10451_v18  ;;  %7521 = vmatprep.subr.bf16.mxu0 %v12967_v62 }
 0x37a   :  { %7341 = vmatprep.subr.bf16.mxu1 %v12967_v62 }
 0x37b   :  { %v8759_v59 = vpop.eup %8758 }
 0x37c   :  { %7522 = vmatpush3.bf16.msra.mxu0 %v10460_v52  ;;  %v1917_v10 = vadd.f32 1.0, %v8759_v59 }
 0x37d   :  { %7342 = vmatpush3.bf16.msra.mxu1 %v10467_v30  ;;  %7539 = vmatprep.subr.bf16.mxu0 %v12967_v62 }
 0x37e   :  { %7347 = vmatprep.subr.bf16.mxu1 %v12967_v62 }
 0x37f   :  { %7524 = vmatmul.mubr.msk.bf16.vlgmr.msra.gmra.mrb[68].mxu0 %vm788_vm3, %v10479_v7 }
 0x380   :  { %7344 = vmatmul.mubr.msk.bf16.vlgmr.msra.gmra.mrb[64].mxu1 %vm788_vm3, %v10187_v4  ;;  %7540 = vmatpush3.bf16.msra.mxu0 %v10185_v21  ;;  %v8761_v21 = vpop.eup %8760  ;;  %v12979_v4 = vld [vmem:[#allocation36_spill] sm:$0xff] }
 0x381   :  { %7348 = vmatpush3.bf16.msra.mxu1 %v12978_v22  ;;  %7541 = vmatprep.subr.bf16.mxu0 %v12967_v62  ;;  %v8763_v39 = vpop.eup %8762  ;;  %v1918_v46 = vadd.f32 1.0, %v8761_v21 }
 0x382   :  { %7349 = vmatprep.subr.bf16.mxu1 %v12967_v62  ;;  %7355 = vmatprep.mubr.msk.bf16.mxu1 %vm9054_vm4, %v12967_v62  ;;  %v8765_v34 = vpop.eup %8764  ;;  %v2010_v1 = vmul.f32 %v8763_v39, %v10357_v0  ;;  %v12984_v39 = vld [vmem:[#allocation40_spill] sm:$0xff] }
 0x383   :  { %7547 = vmatprep.mubr.msk.bf16.mxu0 %vm9054_vm4, %v12967_v62  ;;  %v8767_v36 = vpop.eup %8766  ;;  %v2000_v56 = vmul.f32 %v8765_v34, %v10351_v23  ;;  %8772 = vrcp.f32 %v1918_v46  ;;  %v10531_v23 = vld [vmem:[%s12751_s3 + $0xc0] sm:$0xff]   ;;  %v1302_v34 = vmul.f32 %v10094_v57, %v12984_v39 }
 0x384   :  { %7542 = vmatpush3.bf16.msra.mxu0 %v10210_v5  ;;  %v8769_v5 = vpop.eup %8768  ;;  %v2009_v60 = vmul.f32 %v8767_v36, %v10365_v42  ;;  %8774 = vpow2.f32 %v1857_v45  ;;  %v10594_v36 = vld [vmem:[%s12751_s3 + $0xd8] sm:$0xff]  }
 0x385   :  { %7350 = vmatpush3.bf16.msra.mxu1 %v12979_v4  ;;  %7543 = vmatprep.subr.bf16.mxu0 %v12967_v62  ;;  %v1999_v0 = vmul.f32 %v8769_v5, %v10348_v2  ;;  %8776 = vrcp.f32 %v1917_v10  ;;  %v8771_v22 = vpop.eup %8770  ;;  %v10607_v10 = vld [vmem:[%s12751_s3 + $0x98] sm:$0xff]  }
 0x386   :  { %7351 = vmatprep.subr.bf16.mxu1 %v12967_v62  ;;  %v10525_v47 = vpack.c.bf16 %v2010_v1, %v2009_v60 }
 0x387   :  { %v10533_v15 = vpack.c.bf16 %v2000_v56, %v1999_v0  ;;  %v1502_v56 = vmul.f32 %v6633_v44, %v1302_v34 }
 0x388   :  { %7544 = vmatpush3.bf16.msra.mxu0 %v10233_v24  ;;  %v6647_v24 = vld [vmem:[%s12754_s6 + $0x12] ss:$0 sm:$0xff] }
 0x389   :  { %7352 = vmatpush3.bf16.msra.mxu1 %v12981_v27  ;;  %7545 = vmatprep.subr.bf16.mxu0 %v12967_v62  ;;  %v1530_v49 = vmul.f32 %v6647_v24, %v1330_v55  ;;  %v1529_v42 = vmul.f32 %v6647_v24, %v1329_v35  ;;  %v1926_v55 = vadd.f32 1.0, %v8771_v22  ;;  %v12985_v27 = vld [vmem:[#allocation39_spill] sm:$0xff]  ;;  %v12986_v22 = vld [vmem:[#allocation6_spill] sm:$0xff] }
 0x38a   :  { %7353 = vmatprep.subr.bf16.mxu1 %v12967_v62  ;;  %v1301_v1 = vmul.f32 %v10077_v13, %v12985_v27 }
 0x38c   :  { %7546 = vmatpush3.bf16.msra.mxu0 %v10250_v48  ;;  %v6672_v48 = vld [vmem:[%s12755_s7 + $0x12] ss:$0 sm:$0xff]  ;;  %v1501_v24 = vmul.f32 %v6633_v44, %v1301_v1 }
 0x38d   :  { %7354 = vmatpush3.bf16.msra.mxu1 %v12983_v61  ;;  %7563 = vmatprep.subr.bf16.mxu0 %v12967_v62  ;;  %v10541_v2 = vadd.f32 %v6672_v48, %v1530_v49  ;;  %v10558_v41 = vadd.f32 %v6672_v48, %v1529_v42  ;;  %v8773_v21 = vpop.eup %8772 }
 0x38e   :  { %7359 = vmatprep.subr.bf16.mxu1 %v12967_v62  ;;  %v8775_v4 = vpop.eup %8774  ;;  %v2018_v46 = vmul.f32 %v8773_v21, %v10417_v17 }
 0x38f   :  { %7548 = vmatmul.mubr.msk.bf16.vlgmr.msra.gmra.mrb[72].mxu0 %vm788_vm3, %v10525_v47  ;;  %v1780_v63 = vsub.f32 0.0, %v10541_v2  ;;  %v1779_v59 = vsub.f32 0.0, %v10558_v41  ;;  %v8777_v20 = vpop.eup %8776  ;;  %v1925_v45 = vadd.f32 1.0, %v8775_v4 }
 0x390   :  { %7356 = vmatmul.mubr.msk.bf16.vlgmr.msra.gmra.mrb[68].mxu1 %vm788_vm3, %v10533_v15  ;;  %7564 = vmatpush3.bf16.msra.mxu0 %v10548_v43  ;;  %v2017_v35 = vmul.f32 %v8777_v20, %v10413_v37  ;;  %v6658_v37 = vld [vmem:[%s12755_s7 + $0x4] ss:$0 sm:$0xff]  ;;  %v6643_v20 = vld [vmem:[%s12754_s6 + $0xe] ss:$0 sm:$0xff] }
 0x391   :  { %7360 = vmatpush3.bf16.msra.mxu1 %v10531_v23  ;;  %7565 = vmatprep.subr.bf16.mxu0 %v12967_v62  ;;  %v1867_v25 = vmul.f32 1.442695, %v1780_v63  ;;  %v1865_v5 = vmul.f32 1.442695, %v1779_v59  ;;  %v10617_v60 = vadd.f32 %v6658_v37, %v1502_v56  ;;  %v10624_v49 = vadd.f32 %v6658_v37, %v1501_v24  ;;  %v12988_v56 = vld [vmem:[#allocation14_spill] sm:$0xff] }
 0x392   :  { %7361 = vmatprep.subr.bf16.mxu1 %v12967_v62  ;;  %7367 = vmatprep.mubr.msk.bf16.mxu1 %vm9054_vm4, %v12967_v62  ;;  %v2055_v17 = vpack.c.bf16 %v2018_v46, %v2017_v35  ;;  %v1322_v59 = vmul.f32 %v10094_v57, %v12986_v22 }
 0x393   :  { %7571 = vmatprep.mubr.msk.bf16.mxu0 %vm9054_vm4, %v12967_v62  ;;  %8778 = vpow2.f32 %v1867_v25  ;;  %v1752_v0 = vsub.f32 0.0, %v10617_v60  ;;  %v12987_v25 = vld [vmem:[#allocation5_spill] sm:$0xff] }
 0x394   :  { %7566 = vmatpush3.bf16.msra.mxu0 %v10569_v33  ;;  %8780 = vrcp.f32 %v1926_v55  ;;  %v1321_v39 = vmul.f32 %v10077_v13, %v12987_v25 }
 0x395   :  { %7362 = vmatpush3.bf16.msra.mxu1 %v10556_v14  ;;  %7567 = vmatprep.subr.bf16.mxu0 %v12967_v62  ;;  %8782 = vpow2.f32 %v1865_v5  ;;  %v1811_v63 = vmul.f32 1.442695, %v1752_v0  ;;  %v1522_v5 = vmul.f32 %v6643_v20, %v1322_v59 }
 0x396   :  { %7363 = vmatprep.subr.bf16.mxu1 %v12967_v62  ;;  %8784 = vrcp.f32 %v1925_v45 }
 0x397   :  { %8786 = vpow2.f32 %v1811_v63 }
 0x398   :  { %7568 = vmatpush3.bf16.msra.mxu0 %v10586_v19 }
 0x399   :  { %7364 = vmatpush3.bf16.msra.mxu1 %v10577_v58  ;;  %7569 = vmatprep.subr.bf16.mxu0 %v12967_v62 }
 0x39a   :  { %7365 = vmatprep.subr.bf16.mxu1 %v12967_v62 }
 0x39c   :  { %7570 = vmatpush3.bf16.msra.mxu0 %v10607_v10 }
 0x39d   :  { %7366 = vmatpush3.bf16.msra.mxu1 %v10594_v36  ;;  %7587 = vmatprep.subr.bf16.mxu0 %v12967_v62  ;;  %v8779_v61 = vpop.eup %8778 }
 0x39e   :  { %7371 = vmatprep.subr.bf16.mxu1 %v12967_v62  ;;  %v8781_v42 = vpop.eup %8780  ;;  %v1930_v4 = vadd.f32 1.0, %v8779_v61  ;;  %v12989_v61 = vld [vmem:[#allocation13_spill] sm:$0xff] }
 0x39f   :  { %7572 = vmatmul.mubr.msk.bf16.vlgmr.msra.gmra.mrb[76].mxu0 %vm788_vm3, %v2055_v17  ;;  %v8783_v48 = vpop.eup %8782  ;;  %v1332_v17 = vmul.f32 %v10094_v57, %v12988_v56 }
 0x3a0   :  { %7368 = vmatmul.mubr.msk.bf16.vlgmr.msra.gmra.mrb[72].mxu1 %vm788_vm3, %v10271_v50  ;;  %7588 = vmatpush3.bf16.msra.mxu0 %v10531_v23  ;;  %v8785_v21 = vpop.eup %8784  ;;  %v1929_v55 = vadd.f32 1.0, %v8783_v48  ;;  %8788 = vrcp.f32 %v1930_v4 }
 0x3a1   :  { %7372 = vmatpush3.bf16.msra.mxu1 %v10192_v12  ;;  %7589 = vmatprep.subr.bf16.mxu0 %v12967_v62  ;;  %v1751_v12 = vsub.f32 0.0, %v10624_v49  ;;  %v2025_v46 = vmul.f32 %v8785_v21, %v10495_v54  ;;  %v8787_v45 = vpop.eup %8786 }
 0x3a2   :  { %7373 = vmatprep.subr.bf16.mxu1 %v12967_v62  ;;  %7379 = vmatprep.mubr.msk.bf16.mxu1 %vm9054_vm4, %v12967_v62  ;;  %v1902_v0 = vadd.f32 1.0, %v8787_v45 }
 0x3a3   :  { %7595 = vmatprep.mubr.msk.bf16.mxu0 %vm9054_vm4, %v12967_v62  ;;  %v1809_v34 = vmul.f32 1.442695, %v1751_v12  ;;  %v1331_v12 = vmul.f32 %v10077_v13, %v12989_v61 }
 0x3a4   :  { %7590 = vmatpush3.bf16.msra.mxu0 %v10556_v14 }
 0x3a5   :  { %7374 = vmatpush3.bf16.msra.mxu1 %v10217_v38  ;;  %7591 = vmatprep.subr.bf16.mxu0 %v12967_v62  ;;  %v2026_v38 = vmul.f32 %v8781_v42, %v10488_v29  ;;  %8790 = vpow2.f32 %v1809_v34  ;;  %v6668_v29 = vld [vmem:[%s12755_s7 + $0xe] ss:$0 sm:$0xff]  ;;  %v6648_v42 = vld [vmem:[%s12754_s6 + $0x13] ss:$0 sm:$0xff] }
 0x3a6   :  { %7375 = vmatprep.subr.bf16.mxu1 %v12967_v62  ;;  %8792 = vrcp.f32 %v1929_v55  ;;  %v10661_v54 = vadd.f32 %v6668_v29, %v1522_v5  ;;  %v1532_v22 = vmul.f32 %v6648_v42, %v1332_v17  ;;  %v1531_v59 = vmul.f32 %v6648_v42, %v1331_v12  ;;  %v12990_v5 = vld [vmem:[#allocation18_spill] sm:$0xff]  ;;  %v6638_v17 = vld [vmem:[%s12754_s6 + $0x9] ss:$0 sm:$0xff] }
 0x3a7   :  { %v10652_v27 = vpack.c.bf16 %v2026_v38, %v2025_v46 }
 0x3a8   :  { %7592 = vmatpush3.bf16.msra.mxu0 %v10577_v58  ;;  %v1772_v1 = vsub.f32 0.0, %v10661_v54 }
 0x3a9   :  { %7376 = vmatpush3.bf16.msra.mxu1 %v10240_v6  ;;  %7593 = vmatprep.subr.bf16.mxu0 %v12967_v62  ;;  %v1521_v6 = vmul.f32 %v6643_v20, %v1321_v39  ;;  %v10734_v39 = vld [vmem:[%s12751_s3 + $0x10] sm:$0xff]  }
 0x3aa   :  { %7377 = vmatprep.subr.bf16.mxu1 %v12967_v62  ;;  %v1851_v35 = vmul.f32 1.442695, %v1772_v1 }
 0x3ac   :  { %7594 = vmatpush3.bf16.msra.mxu0 %v10594_v36  ;;  %8794 = vpow2.f32 %v1851_v35 }
 0x3ad   :  { %7378 = vmatpush3.bf16.msra.mxu1 %v10257_v31  ;;  %7611 = vmatprep.subr.bf16.mxu0 %v12967_v62  ;;  %v10666_v31 = vadd.f32 %v6668_v29, %v1521_v6  ;;  %v1312_v6 = vmul.f32 %v10094_v57, %v12990_v5  ;;  %v10746_v29 = vld [vmem:[%s12751_s3 + $0x18] sm:$0xff]  }
 0x3ae   :  { %7383 = vmatprep.subr.bf16.mxu1 %v12967_v62 }
 0x3af   :  { %7596 = vmatmul.mubr.msk.bf16.vlgmr.msra.gmra.mrb[80].mxu0 %vm788_vm3, %v10652_v27 }
 0x3b0   :  { %7380 = vmatmul.mubr.msk.bf16.vlgmr.msra.gmra.mrb[76].mxu1 %vm788_vm3, %v10479_v7  ;;  %7612 = vmatpush3.bf16.msra.mxu0 %v10277_v11  ;;  %v1771_v7 = vsub.f32 0.0, %v10666_v31 }
 0x3b1   :  { %7384 = vmatpush3.bf16.msra.mxu1 %v10277_v11  ;;  %7613 = vmatprep.subr.bf16.mxu0 %v12967_v62  ;;  %v8789_v11 = vpop.eup %8788 }
 0x3b2   :  { %7385 = vmatprep.subr.bf16.mxu1 %v12967_v62  ;;  %7391 = vmatprep.mubr.msk.bf16.mxu1 %vm9054_vm4, %v12967_v62  ;;  %v8791_v44 = vpop.eup %8790  ;;  %v1849_v37 = vmul.f32 1.442695, %v1771_v7 }
 0x3b3   :  { %7619 = vmatprep.mubr.msk.bf16.mxu0 %vm9054_vm4, %v12967_v62  ;;  %v8793_v24 = vpop.eup %8792  ;;  %v1901_v63 = vadd.f32 1.0, %v8791_v44 }
 0x3b4   :  { %7614 = vmatpush3.bf16.msra.mxu0 %v10297_v32  ;;  %v2029_v48 = vmul.f32 %v8793_v24, %v10558_v41  ;;  %8796 = vpow2.f32 %v1849_v37  ;;  %v6673_v41 = vld [vmem:[%s12755_s7 + $0x13] ss:$0 sm:$0xff]  ;;  %v1512_v24 = vmul.f32 %v6638_v17, %v1312_v6 }
 0x3b5   :  { %7386 = vmatpush3.bf16.msra.mxu1 %v10297_v32  ;;  %7615 = vmatprep.subr.bf16.mxu0 %v12967_v62  ;;  %v2030_v32 = vmul.f32 %v8789_v11, %v10541_v2  ;;  %8798 = vrcp.f32 %v1902_v0  ;;  %v10710_v21 = vadd.f32 %v6673_v41, %v1532_v22  ;;  %v10722_v4 = vadd.f32 %v6673_v41, %v1531_v59  ;;  %v12991_v11 = vld [vmem:[#allocation17_spill] sm:$0xff]  ;;  %v12992_v59 = vld [vmem:[#allocation26_spill] sm:$0xff] }
 0x3b6   :  { %7387 = vmatprep.subr.bf16.mxu1 %v12967_v62  ;;  %8800 = vrcp.f32 %v1901_v63  ;;  %v8795_v38 = vpop.eup %8794  ;;  %v1311_v44 = vmul.f32 %v10077_v13, %v12991_v11  ;;  %v1336_v41 = vmul.f32 %v10094_v57, %v12992_v59  ;;  %v10830_v11 = vld [vmem:[%s12751_s3 + $0xe8] sm:$0xff]  }
 0x3b7   :  { %v10701_v2 = vpack.c.bf16 %v2030_v32, %v2029_v48  ;;  %v1782_v25 = vsub.f32 0.0, %v10710_v21  ;;  %v1781_v34 = vsub.f32 0.0, %v10722_v4  ;;  %v1922_v1 = vadd.f32 1.0, %v8795_v38 }
 0x3b8   :  { %7616 = vmatpush3.bf16.msra.mxu0 %v10313_v9  ;;  %v1511_v32 = vmul.f32 %v6638_v17, %v1311_v44 }
 0x3b9   :  { %7388 = vmatpush3.bf16.msra.mxu1 %v10313_v9  ;;  %7617 = vmatprep.subr.bf16.mxu0 %v12967_v62  ;;  %v10698_v9 = vld [vmem:[%s12751_s3] sm:$0xff]   ;;  %v1871_v46 = vmul.f32 1.442695, %v1782_v25  ;;  %v1869_v45 = vmul.f32 1.442695, %v1781_v34 }
 0x3ba   :  { %7389 = vmatprep.subr.bf16.mxu1 %v12967_v62 }
 0x3bb   :  { %8802 = vpow2.f32 %v1871_v46  ;;  %v6650_v46 = vld [vmem:[%s12754_s6 + $0x15] ss:$0 sm:$0xff] }
 0x3bc   :  { %7618 = vmatpush3.bf16.msra.mxu0 %v10332_v8  ;;  %8804 = vrcp.f32 %v1922_v1  ;;  %v1536_v6 = vmul.f32 %v6650_v46, %v1336_v41 }
 0x3bd   :  { %7390 = vmatpush3.bf16.msra.mxu1 %v10332_v8  ;;  %7635 = vmatprep.subr.bf16.mxu0 %v12967_v62  ;;  %v10718_v8 = vld [vmem:[%s12751_s3 + $0x8] sm:$0xff]   ;;  %8806 = vpow2.f32 %v1869_v45 }
 0x3be   :  { %7395 = vmatprep.subr.bf16.mxu1 %v12967_v62  ;;  %v8797_v20 = vpop.eup %8796 }
 0x3bf   :  { %7620 = vmatmul.mubr.msk.bf16.vlgmr.msra.gmra.mrb[84].mxu0 %vm788_vm3, %v10701_v2  ;;  %v8799_v55 = vpop.eup %8798  ;;  %v1921_v56 = vadd.f32 1.0, %v8797_v20 }
 0x3c0   :  { %7392 = vmatmul.mubr.msk.bf16.vlgmr.msra.gmra.mrb[80].mxu1 %vm788_vm3, %v10525_v47  ;;  %7636 = vmatpush3.bf16.msra.mxu0 %v10698_v9  ;;  %v8801_v7 = vpop.eup %8800  ;;  %v2002_v35 = vmul.f32 %v8799_v55, %v10617_v60  ;;  %v6663_v60 = vld [vmem:[%s12755_s7 + $0x9] ss:$0 sm:$0xff] }
 0x3c1   :  { %7396 = vmatpush3.bf16.msra.mxu1 %v10548_v43  ;;  %7637 = vmatprep.subr.bf16.mxu0 %v12967_v62  ;;  %v2001_v37 = vmul.f32 %v8801_v7, %v10624_v49  ;;  %8808 = vrcp.f32 %v1921_v56  ;;  %v10767_v61 = vadd.f32 %v6663_v60, %v1512_v24  ;;  %v10773_v49 = vadd.f32 %v6663_v60, %v1511_v32  ;;  %v12994_v24 = vld [vmem:[#allocation20_spill] sm:$0xff] }
 0x3c2   :  { %7397 = vmatprep.subr.bf16.mxu1 %v12967_v62  ;;  %7403 = vmatprep.mubr.msk.bf16.mxu1 %vm9054_vm4, %v12967_v62 }
 0x3c3   :  { %7643 = vmatprep.mubr.msk.bf16.mxu0 %vm9054_vm4, %v12967_v62  ;;  %v2047_v0 = vpack.c.bf16 %v2002_v35, %v2001_v37  ;;  %v1762_v12 = vsub.f32 0.0, %v10767_v61  ;;  %v1316_v37 = vmul.f32 %v10094_v57, %v12994_v24  ;;  %v12997_v24 = vld [vmem:[#allocation29_spill] sm:$0xff] }
 0x3c4   :  { %7638 = vmatpush3.bf16.msra.mxu0 %v10718_v8 }
 0x3c5   :  { %7398 = vmatpush3.bf16.msra.mxu1 %v10569_v33  ;;  %7639 = vmatprep.subr.bf16.mxu0 %v12967_v62  ;;  %v8803_v42 = vpop.eup %8802  ;;  %v1831_v22 = vmul.f32 1.442695, %v1762_v12 }
 0x3c6   :  { %7399 = vmatprep.subr.bf16.mxu1 %v12967_v62  ;;  %v8805_v48 = vpop.eup %8804  ;;  %v1932_v38 = vadd.f32 1.0, %v8803_v42  ;;  %v12995_v42 = vld [vmem:[#allocation19_spill] sm:$0xff] }
 0x3c7   :  { %v8807_v63 = vpop.eup %8806  ;;  %v2022_v20 = vmul.f32 %v8805_v48, %v10661_v54  ;;  %8810 = vpow2.f32 %v1831_v22  ;;  %v6675_v54 = vld [vmem:[%s12755_s7 + $0x15] ss:$0 sm:$0xff]  ;;  %v6640_v48 = vld [vmem:[%s12754_s6 + $0xb] ss:$0 sm:$0xff] }
 0x3c8   :  { %7640 = vmatpush3.bf16.msra.mxu0 %v10734_v39  ;;  %v1931_v5 = vadd.f32 1.0, %v8807_v63  ;;  %8812 = vrcp.f32 %v1932_v38  ;;  %v1516_v59 = vmul.f32 %v6640_v48, %v1316_v37  ;;  %v1339_v37 = vmul.f32 %v10077_v13, %v12997_v24 }
 0x3c9   :  { %7400 = vmatpush3.bf16.msra.mxu1 %v10586_v19  ;;  %7641 = vmatprep.subr.bf16.mxu0 %v12967_v62 }
 0x3ca   :  { %7401 = vmatprep.subr.bf16.mxu1 %v12967_v62 }
 0x3cb   :  { %v8809_v25 = vpop.eup %8808 }
 0x3cc   :  { %7642 = vmatpush3.bf16.msra.mxu0 %v10746_v29 }
 0x3cd   :  { %7402 = vmatpush3.bf16.msra.mxu1 %v10607_v10  ;;  %7659 = vmatprep.subr.bf16.mxu0 %v12967_v62 }
 0x3ce   :  { %7407 = vmatprep.subr.bf16.mxu1 %v12967_v62 }
 0x3cf   :  { %7644 = vmatmul.mubr.msk.bf16.vlgmr.msra.gmra.mrb[88].mxu0 %vm788_vm3, %v10525_v47 }
 0x3d0   :  { %7404 = vmatmul.mubr.msk.bf16.vlgmr.msra.gmra.mrb[84].mxu1 %vm788_vm3, %v2047_v0  ;;  %7660 = vmatpush3.bf16.msra.mxu0 %v10548_v43  ;;  %v1761_v43 = vsub.f32 0.0, %v10773_v49  ;;  %v10842_v0 = vld [vmem:[%s12751_s3 + $0xf0] sm:$0xff]  }
 0x3d1   :  { %7408 = vmatpush3.bf16.msra.mxu1 %v10410_v51  ;;  %7661 = vmatprep.subr.bf16.mxu0 %v12967_v62  ;;  %v8811_v44 = vpop.eup %8810 }
 0x3d2   :  { %7409 = vmatprep.subr.bf16.mxu1 %v12967_v62  ;;  %7415 = vmatprep.mubr.msk.bf16.mxu1 %vm9054_vm4, %v12967_v62  ;;  %v1829_v55 = vmul.f32 1.442695, %v1761_v43  ;;  %v8813_v35 = vpop.eup %8812  ;;  %v1912_v12 = vadd.f32 1.0, %v8811_v44  ;;  %v1315_v43 = vmul.f32 %v10077_v13, %v12995_v42 }
 0x3d3   :  { %7667 = vmatprep.mubr.msk.bf16.mxu0 %vm9054_vm4, %v12967_v62 }
 0x3d4   :  { %7662 = vmatpush3.bf16.msra.mxu0 %v10569_v33  ;;  %v12993_v33 = vld [vmem:[#allocation24_spill] sm:$0xff]  ;;  %8814 = vpow2.f32 %v1829_v55  ;;  %v1515_v41 = vmul.f32 %v6640_v48, %v1315_v43 }
 0x3d5   :  { %7410 = vmatpush3.bf16.msra.mxu1 %v10431_v16  ;;  %7663 = vmatprep.subr.bf16.mxu0 %v12967_v62  ;;  %v1335_v34 = vmul.f32 %v10077_v13, %v12993_v33  ;;  %8816 = vrcp.f32 %v1931_v5 }
 0x3d6   :  { %7411 = vmatprep.subr.bf16.mxu1 %v12967_v62 }
 0x3d7   :  { %v1535_v1 = vmul.f32 %v6650_v46, %v1335_v34 }
 0x3d8   :  { %7664 = vmatpush3.bf16.msra.mxu0 %v10586_v19  ;;  %v2021_v19 = vmul.f32 %v8809_v25, %v10666_v31  ;;  %v10807_v31 = vadd.f32 %v6675_v54, %v1536_v6 }
 0x3d9   :  { %7412 = vmatpush3.bf16.msra.mxu1 %v10451_v18  ;;  %7665 = vmatprep.subr.bf16.mxu0 %v12967_v62  ;;  %v10817_v45 = vadd.f32 %v6675_v54, %v1535_v1 }
 0x3da   :  { %7413 = vmatprep.subr.bf16.mxu1 %v12967_v62  ;;  %v2057_v7 = vpack.c.bf16 %v2022_v20, %v2021_v19 }
 0x3dc   :  { %7666 = vmatpush3.bf16.msra.mxu0 %v10607_v10  ;;  %v10814_v10 = vld [vmem:[%s12751_s3 + $0xe0] sm:$0xff]  }
 0x3dd   :  { %7414 = vmatpush3.bf16.msra.mxu1 %v10467_v30  ;;  %7683 = vmatprep.subr.bf16.mxu0 %v12967_v62 }
 0x3de   :  { %7419 = vmatprep.subr.bf16.mxu1 %v12967_v62  ;;  %v8815_v56 = vpop.eup %8814 }
 0x3df   :  { %7668 = vmatmul.mubr.msk.bf16.vlgmr.msra.gmra.mrb[92].mxu0 %vm788_vm3, %v2057_v7  ;;  %v8817_v32 = vpop.eup %8816  ;;  %v1911_v22 = vadd.f32 1.0, %v8815_v56  ;;  %v10934_v56 = vld [vmem:[%s12751_s3 + $0xb0] sm:$0xff]  }
 0x3e0   :  { %7416 = vmatmul.mubr.msk.bf16.vlgmr.msra.gmra.mrb[88].mxu1 %vm788_vm3, %v10533_v15  ;;  %7684 = vmatpush3.bf16.msra.mxu0 %v10814_v10  ;;  %v1786_v15 = vsub.f32 0.0, %v10807_v31  ;;  %v2031_v63 = vmul.f32 %v8817_v32, %v10722_v4  ;;  %v6665_v4 = vld [vmem:[%s12755_s7 + $0xb] ss:$0 sm:$0xff]  ;;  %v6652_v32 = vld [vmem:[%s12754_s6 + $0x17] ss:$0 sm:$0xff] }
 0x3e1   :  { %7420 = vmatpush3.bf16.msra.mxu1 %v10531_v23  ;;  %7685 = vmatprep.subr.bf16.mxu0 %v12967_v62  ;;  %v1785_v23 = vsub.f32 0.0, %v10817_v45  ;;  %v10871_v25 = vadd.f32 %v6665_v4, %v1516_v59  ;;  %v1539_v42 = vmul.f32 %v6652_v32, %v1339_v37 }
 0x3e2   :  { %7421 = vmatprep.subr.bf16.mxu1 %v12967_v62  ;;  %7427 = vmatprep.mubr.msk.bf16.mxu1 %vm9054_vm4, %v12967_v62  ;;  %v1879_v17 = vmul.f32 1.442695, %v1786_v15 }
 0x3e3   :  { %7691 = vmatprep.mubr.msk.bf16.mxu0 %vm9054_vm4, %v12967_v62  ;;  %v1877_v60 = vmul.f32 1.442695, %v1785_v23  ;;  %v1766_v38 = vsub.f32 0.0, %v10871_v25  ;;  %v12996_v23 = vld [vmem:[#allocation30_spill] sm:$0xff] }
 0x3e4   :  { %7686 = vmatpush3.bf16.msra.mxu0 %v10830_v11  ;;  %8818 = vpow2.f32 %v1879_v17  ;;  %v1340_v44 = vmul.f32 %v10094_v57, %v12996_v23 }
 0x3e5   :  { %7422 = vmatpush3.bf16.msra.mxu1 %v10556_v14  ;;  %7687 = vmatprep.subr.bf16.mxu0 %v12967_v62  ;;  %v2032_v14 = vmul.f32 %v8813_v35, %v10710_v21  ;;  %8820 = vpow2.f32 %v1877_v60  ;;  %v1839_v55 = vmul.f32 1.442695, %v1766_v38 }
 0x3e6   :  { %7423 = vmatprep.subr.bf16.mxu1 %v12967_v62  ;;  %8822 = vrcp.f32 %v1912_v12  ;;  %v1540_v12 = vmul.f32 %v6652_v32, %v1340_v44 }
 0x3e7   :  { %v10862_v21 = vpack.c.bf16 %v2032_v14, %v2031_v63  ;;  %8824 = vrcp.f32 %v1911_v22 }
 0x3e8   :  { %7688 = vmatpush3.bf16.msra.mxu0 %v10842_v0  ;;  %8826 = vpow2.f32 %v1839_v55 }
 0x3e9   :  { %7424 = vmatpush3.bf16.msra.mxu1 %v10577_v58  ;;  %7689 = vmatprep.subr.bf16.mxu0 %v12967_v62  ;;  %v10858_v58 = vld [vmem:[%s12751_s3 + $0xf8] sm:$0xff]  }
 0x3ea   :  { %7425 = vmatprep.subr.bf16.mxu1 %v12967_v62 }
 0x3ec   :  { %7690 = vmatpush3.bf16.msra.mxu0 %v10858_v58 }
 0x3ed   :  { %7426 = vmatpush3.bf16.msra.mxu1 %v10594_v36  ;;  %7707 = vmatprep.subr.bf16.mxu0 %v12967_v62  ;;  %v10878_v36 = vadd.f32 %v6665_v4, %v1515_v41 }
 0x3ee   :  { %7431 = vmatprep.subr.bf16.mxu1 %v12967_v62 }
 0x3ef   :  { %7692 = vmatmul.mubr.msk.bf16.vlgmr.msra.gmra.mrb[96].mxu0 %vm788_vm3, %v10862_v21  ;;  %v1765_v33 = vsub.f32 0.0, %v10878_v36 }
 0x3f0   :  { %7428 = vmatmul.mubr.msk.bf16.vlgmr.msra.gmra.mrb[92].mxu1 %vm788_vm3, %v10525_v47  ;;  %7708 = vmatpush3.bf16.msra.mxu0 %v10401_v3  ;;  %v8819_v47 = vpop.eup %8818 }
 0x3f1   :  { %7432 = vmatpush3.bf16.msra.mxu1 %v10814_v10  ;;  %7709 = vmatprep.subr.bf16.mxu0 %v12967_v62  ;;  %v8821_v34 = vpop.eup %8820  ;;  %v1936_v46 = vadd.f32 1.0, %v8819_v47  ;;  %v1837_v19 = vmul.f32 1.442695, %v1765_v33 }
 0x3f2   :  { %7433 = vmatprep.subr.bf16.mxu1 %v12967_v62  ;;  %7439 = vmatprep.mubr.msk.bf16.mxu1 %vm9054_vm4, %v12967_v62  ;;  %v8823_v20 = vpop.eup %8822  ;;  %v1935_v1 = vadd.f32 1.0, %v8821_v34 }
 0x3f3   :  { %7715 = vmatprep.mubr.msk.bf16.mxu0 %vm9054_vm4, %v12967_v62  ;;  %v8825_v5 = vpop.eup %8824  ;;  %v2012_v6 = vmul.f32 %v8823_v20, %v10767_v61  ;;  %8828 = vrcp.f32 %v1936_v46  ;;  %v10910_v61 = vld [vmem:[%s12751_s3 + $0xa0] sm:$0xff]  }
 0x3f4   :  { %7710 = vmatpush3.bf16.msra.mxu0 %v10424_v28  ;;  %v2011_v7 = vmul.f32 %v8825_v5, %v10773_v49  ;;  %8830 = vpow2.f32 %v1837_v19  ;;  %v8827_v49 = vpop.eup %8826 }
 0x3f5   :  { %7434 = vmatpush3.bf16.msra.mxu1 %v10830_v11  ;;  %7711 = vmatprep.subr.bf16.mxu0 %v12967_v62  ;;  %8832 = vrcp.f32 %v1935_v1  ;;  %v1916_v17 = vadd.f32 1.0, %v8827_v49 }
 0x3f6   :  { %7435 = vmatprep.subr.bf16.mxu1 %v12967_v62  ;;  %v10900_v54 = vpack.c.bf16 %v2012_v6, %v2011_v7 }
 0x3f7   :  { %8834 = vrcp.f32 %v1916_v17 }
 0x3f8   :  { %7712 = vmatpush3.bf16.msra.mxu0 %v10444_v40 }
 0x3f9   :  { %7436 = vmatpush3.bf16.msra.mxu1 %v10842_v0  ;;  %7713 = vmatprep.subr.bf16.mxu0 %v12967_v62 }
 0x3fa   :  { %7437 = vmatprep.subr.bf16.mxu1 %v12967_v62 }
 0x3fc   :  { %7714 = vmatpush3.bf16.msra.mxu0 %v10460_v52 }
 0x3fd   :  { %7438 = vmatpush3.bf16.msra.mxu1 %v10858_v58  ;;  %7731 = vmatprep.subr.bf16.mxu0 %v12967_v62 }
 0x3fe   :  { %7455 = vmatprep.subr.bf16.mxu1 %v12967_v62 }
 0x3ff   :  { %7716 = vmatmul.mubr.msk.bf16.vlgmr.msra.gmra.mrb[100].mxu0 %vm788_vm3, %v10404_v53  ;;  %v10923_v53 = vld [vmem:[%s12751_s3 + $0xa8] sm:$0xff]  }
 0x400   :  { %7440 = vmatmul.mubr.msk.bf16.vlgmr.msra.gmra.mrb[96].mxu1 %vm788_vm3, %v10900_v54  ;;  %7732 = vmatpush3.bf16.msra.mxu0 %v10910_v61 }
 0x401   :  { %7456 = vmatpush3.bf16.msra.mxu1 %v10401_v3  ;;  %7733 = vmatprep.subr.bf16.mxu0 %v12967_v62  ;;  %v8829_v3 = vpop.eup %8828 }
 0x402   :  { %7457 = vmatprep.subr.bf16.mxu1 %v12967_v62  ;;  %7463 = vmatprep.mubr.msk.bf16.mxu1 %vm9054_vm4, %v12967_v62  ;;  %v8831_v15 = vpop.eup %8830 }
 0x403   :  { %7739 = vmatprep.mubr.msk.bf16.mxu0 %vm9054_vm4, %v12967_v62  ;;  %v8833_v35 = vpop.eup %8832  ;;  %v1915_v14 = vadd.f32 1.0, %v8831_v15 }
 0x404   :  { %7734 = vmatpush3.bf16.msra.mxu0 %v10923_v53  ;;  %v2035_v60 = vmul.f32 %v8833_v35, %v10817_v45  ;;  %v6677_v45 = vld [vmem:[%s12755_s7 + $0x17] ss:$0 sm:$0xff]  ;;  %v8835_v55 = vpop.eup %8834 }
 0x405   :  { %7458 = vmatpush3.bf16.msra.mxu1 %v10424_v28  ;;  %7735 = vmatprep.subr.bf16.mxu0 %v12967_v62  ;;  %v2036_v28 = vmul.f32 %v8829_v3, %v10807_v31  ;;  %8836 = vrcp.f32 %v1915_v14  ;;  %v10963_v43 = vadd.f32 %v6677_v45, %v1540_v12  ;;  %v2016_v6 = vmul.f32 %v8835_v55, %v10871_v25  ;;  %v9002_v25 = vld [vmem:[%s12751_s3 + $0x100] sm:$0xff]   ;;  %v12999_v12 = vld [vmem:[#allocation25_spill] sm:$0xff] }
 0x406   :  { %7459 = vmatprep.subr.bf16.mxu1 %v12967_v62 }
 0x407   :  { %v10954_v31 = vpack.c.bf16 %v2036_v28, %v2035_v60  ;;  %v9003_v28 = vld [vmem:[%s12751_s3 + $0x108] sm:$0xff]  }
 0x408   :  { %7736 = vmatpush3.bf16.msra.mxu0 %v10934_v56  ;;  %v12998_v60 = vld [vmem:[#allocation32_spill] sm:$0xff] }
 0x409   :  { %7460 = vmatpush3.bf16.msra.mxu1 %v10444_v40  ;;  %7737 = vmatprep.subr.bf16.mxu0 %v12967_v62  ;;  %v10950_v40 = vld [vmem:[%s12751_s3 + $0xb8] sm:$0xff]   ;;  %v1342_v14 = vmul.f32 %v10094_v57, %v12998_v60 }
 0x40a   :  { %7461 = vmatprep.subr.bf16.mxu1 %v12967_v62 }
 0x40c   :  { %7738 = vmatpush3.bf16.msra.mxu0 %v10950_v40 }
 0x40d   :  { %7462 = vmatpush3.bf16.msra.mxu1 %v10460_v52  ;;  %7755 = vmatprep.subr.bf16.mxu0 %v12967_v62  ;;  %v10970_v52 = vadd.f32 %v6677_v45, %v1539_v42  ;;  %v1320_v42 = vmul.f32 %v10094_v57, %v12999_v12  ;;  %v9004_v45 = vld [vmem:[%s12751_s3 + $0x110] sm:$0xff]  }
 0x40e   :  { %7479 = vmatprep.subr.bf16.mxu1 %v12967_v62  ;;  %v13002_v12 = vld [vmem:[#allocation9_spill] sm:$0xff] }
 0x40f   :  { %7740 = vmatmul.mubr.msk.bf16.vlgmr.msra.gmra.mrb[104].mxu0 %vm788_vm3, %v10954_v31  ;;  %v1789_v33 = vsub.f32 0.0, %v10970_v52  ;;  %v8837_v5 = vpop.eup %8836 }
 0x410   :  { %7464 = vmatmul.mubr.msk.bf16.vlgmr.msra.gmra.mrb[100].mxu1 %vm788_vm3, %v10279_v26  ;;  %7756 = vmatpush3.bf16.msra.mxu0 %v10698_v9  ;;  %v1790_v26 = vsub.f32 0.0, %v10963_v43  ;;  %v2015_v1 = vmul.f32 %v8837_v5, %v10878_v36 }
 0x411   :  { %7480 = vmatpush3.bf16.msra.mxu1 %v10910_v61  ;;  %7757 = vmatprep.subr.bf16.mxu0 %v12967_v62  ;;  %v1885_v19 = vmul.f32 1.442695, %v1789_v33 }
 0x412   :  { %v2202_v48 = vpop.f32.mrb[52].mxu0  ;;  %7481 = vmatprep.subr.bf16.mxu1 %v12967_v62  ;;  %7487 = vmatprep.mubr.msk.bf16.mxu1 %vm9054_vm4, %v12967_v62  ;;  %v1887_v46 = vmul.f32 1.442695, %v1790_v26  ;;  %v10992_v7 = vpack.c.bf16 %v2016_v6, %v2015_v1  ;;  %v13001_v26 = vld [vmem:[#allocation23_spill] sm:$0xff] }
 0x413   :  { %v2270_v63 = vpop.f32.mrb[48].mxu1  ;;  %v7285_v22 = vpop.f32.mrb[53].mxu0  ;;  %7763 = vmatprep.mubr.msk.bf16.mxu0 %vm9054_vm4, %v12967_v62  ;;  %v11074_v6 = vld [vmem:[%s12761_s13] ss:$0 sm:$0xff] }
 0x414   :  { %v2271_v59 = vadd.f32 %v2270_v63, %v2202_v48  ;;  %v7297_v41 = vpop.f32.mrb[49].mxu1  ;;  %7758 = vmatpush3.bf16.msra.mxu0 %v10718_v8  ;;  %v2205_v4 = vpop.f32.mrb[54].mxu0  ;;  %8838 = vpow2.f32 %v1887_v46  ;;  %v13000_v48 = vld [vmem:[#allocation31_spill] sm:$0xff] }
 0x415   :  { %7482 = vmatpush3.bf16.msra.mxu1 %v10923_v53  ;;  %v2273_v38 = vpop.f32.mrb[50].mxu1  ;;  %v7286_v47 = vpop.f32.mrb[55].mxu0  ;;  %7759 = vmatprep.subr.bf16.mxu0 %v12967_v62  ;;  %8840 = vpow2.f32 %v1885_v19  ;;  %v1341_v63 = vmul.f32 %v10077_v13, %v13000_v48  ;;  %v6642_v41 = vld [vmem:[%s12754_s6 + $0xd] ss:$0 sm:$0xff]  ;;  %v6646_v48 = vld [vmem:[%s12754_s6 + $0x11] ss:$0 sm:$0xff] }
 0x416   :  { %v2274_v34 = vadd.f32 %v2273_v38, %v2205_v4  ;;  %v7298_v20 = vpop.f32.mrb[51].mxu1  ;;  %7483 = vmatprep.subr.bf16.mxu1 %v12967_v62  ;;  %v1520_v38 = vmul.f32 %v6642_v41, %v1320_v42  ;;  %v9005_v47 = vld [vmem:[%s12751_s3 + $0x118] sm:$0xff]   ;;  %v1327_v42 = vmul.f32 %v10077_v13, %v13002_v12 }
 0x417   :  { %v6678_v20 = vld [vmem:[%s12755_s7 + $0x18] ss:$0 sm:$0xff] }
 0x418   :  { %7760 = vmatpush3.bf16.msra.mxu0 %v10734_v39 }
 0x419   :  { %7484 = vmatpush3.bf16.msra.mxu1 %v10934_v56  ;;  %7761 = vmatprep.subr.bf16.mxu0 %v12967_v62 }
 0x41a   :  { %7485 = vmatprep.subr.bf16.mxu1 %v12967_v62 }
 0x41c   :  { %7762 = vmatpush3.bf16.msra.mxu0 %v10746_v29 }
 0x41d   :  { %7486 = vmatpush3.bf16.msra.mxu1 %v10950_v40  ;;  %7779 = vmatprep.subr.bf16.mxu0 %v12967_v62 }
 0x41e   :  { %7503 = vmatprep.subr.bf16.mxu1 %v12967_v62  ;;  %v8839_v44 = vpop.eup %8838 }
 0x41f   :  { %7764 = vmatmul.mubr.msk.bf16.vlgmr.msra.gmra.mrb[108].mxu0 %vm788_vm3, %v10652_v27  ;;  %v8841_v32 = vpop.eup %8840 }
 0x420   :  { %7488 = vmatmul.mubr.msk.bf16.vlgmr.msra.gmra.mrb[104].mxu1 %vm788_vm3, %v10992_v7  ;;  %7780 = vmatpush3.bf16.msra.mxu0 %v10410_v51  ;;  %v1939_v22 = vadd.f32 1.0, %v8841_v32 }
 0x421   :  { %7504 = vmatpush3.bf16.msra.mxu1 %v9002_v25  ;;  %7781 = vmatprep.subr.bf16.mxu0 %v12967_v62 }
 0x422   :  { %v11004_v36 = vpop.f32.mrb[56].mxu0  ;;  %7505 = vmatprep.subr.bf16.mxu1 %v12967_v62  ;;  %7511 = vmatprep.mubr.msk.bf16.mxu1 %vm9054_vm4, %v12967_v62 }
 0x423   :  { %v2338_v49 = vpop.f32.mrb[52].mxu1  ;;  %v7453_v3 = vpop.f32.mrb[57].mxu0  ;;  %7787 = vmatprep.mubr.msk.bf16.mxu0 %vm9054_vm4, %v12967_v62 }
 0x424   :  { %v2345_v51 = vadd.f32 %v2338_v49, %v2271_v59  ;;  %v7309_v15 = vpop.f32.mrb[53].mxu1  ;;  %v11011_v23 = vpop.f32.mrb[58].mxu0  ;;  %7782 = vmatpush3.bf16.msra.mxu0 %v10431_v16  ;;  %v1940_v16 = vadd.f32 1.0, %v8839_v44  ;;  %v6653_v59 = vld [vmem:[%s12754_s6 + $0x18] ss:$0 sm:$0xff] }
 0x425   :  { %v2341_v35 = vpop.f32.mrb[54].mxu1  ;;  %7506 = vmatpush3.bf16.msra.mxu1 %v9003_v28  ;;  %v7454_v17 = vpop.f32.mrb[59].mxu0  ;;  %7783 = vmatprep.subr.bf16.mxu0 %v12967_v62  ;;  %v1542_v4 = vmul.f32 %v6653_v59, %v1342_v14  ;;  %v1541_v33 = vmul.f32 %v6653_v59, %v1341_v63  ;;  %v13003_v63 = vld [vmem:[#allocation10_spill] sm:$0xff] }
 0x426   :  { %v2346_v24 = vadd.f32 %v2341_v35, %v2274_v34  ;;  %v7310_v37 = vpop.f32.mrb[55].mxu1  ;;  %7507 = vmatprep.subr.bf16.mxu1 %v12967_v62  ;;  %8842 = vrcp.f32 %v1940_v16 }
 0x427   :  { %8844 = vrcp.f32 %v1939_v22  ;;  %v11053_v55 = vadd.f32 %v6678_v20, %v1542_v4  ;;  %v11062_v5 = vadd.f32 %v6678_v20, %v1541_v33  ;;  %v1328_v22 = vmul.f32 %v10094_v57, %v13003_v63  ;;  %v6671_v33 = vld [vmem:[%s12755_s7 + $0x11] ss:$0 sm:$0xff] }
 0x428   :  { %7784 = vmatpush3.bf16.msra.mxu0 %v10451_v18  ;;  %v1319_v18 = vmul.f32 %v10077_v13, %v13001_v26 }
 0x429   :  { %7508 = vmatpush3.bf16.msra.mxu1 %v9004_v45  ;;  %7785 = vmatprep.subr.bf16.mxu0 %v12967_v62  ;;  %v1792_v49 = vsub.f32 0.0, %v11053_v55  ;;  %v1791_v37 = vsub.f32 0.0, %v11062_v5 }
 0x42a   :  { %7509 = vmatprep.subr.bf16.mxu1 %v12967_v62  ;;  %v1519_v34 = vmul.f32 %v6642_v41, %v1319_v18 }
 0x42b   :  { %v1891_v45 = vmul.f32 1.442695, %v1792_v49  ;;  %v1889_v59 = vmul.f32 1.442695, %v1791_v37 }
 0x42c   :  { %7786 = vmatpush3.bf16.msra.mxu0 %v10467_v30  ;;  %v6667_v30 = vld [vmem:[%s12755_s7 + $0xd] ss:$0 sm:$0xff] }
 0x42d   :  { %7510 = vmatpush3.bf16.msra.mxu1 %v9005_v47  ;;  %7803 = vmatprep.subr.bf16.mxu0 %v12967_v62  ;;  %v11058_v46 = vadd.f32 %v6667_v30, %v1520_v38  ;;  %v11069_v19 = vadd.f32 %v6667_v30, %v1519_v34  ;;  %v1527_v38 = vmul.f32 %v6646_v48, %v1327_v42  ;;  %8846 = vpow2.f32 %v1891_v45  ;;  %v11130_v30 = vld [vmem:[%s12751_s3 + $0x60] sm:$0xff]   ;;  %v11158_v45 = vld [vmem:[%s12751_s3 + $0x70] sm:$0xff]  }
 0x42e   :  { %7527 = vmatprep.subr.bf16.mxu1 %v12967_v62  ;;  %v1528_v34 = vmul.f32 %v6646_v48, %v1328_v22 }
 0x42f   :  { %7788 = vmatmul.mubr.msk.bf16.vlgmr.msra.gmra.mrb[112].mxu0 %vm788_vm3, %v10954_v31  ;;  %v1770_v35 = vsub.f32 0.0, %v11058_v46  ;;  %v1769_v16 = vsub.f32 0.0, %v11069_v19 }
 0x430   :  { %7512 = vmatmul.mubr.msk.bf16.vlgmr.msra.gmra.mrb[108].mxu1 %vm788_vm3, %v10652_v27  ;;  %7804 = vmatpush3.bf16.msra.mxu0 %v10910_v61  ;;  %v8843_v32 = vpop.eup %8842  ;;  %v11122_v20 = vadd.f32 %v6671_v33, %v1528_v34 }
 0x431   :  { %7528 = vmatpush3.bf16.msra.mxu1 %v10698_v9  ;;  %7805 = vmatprep.subr.bf16.mxu0 %v12967_v62  ;;  %v8845_v26 = vpop.eup %8844  ;;  %v2040_v18 = vmul.f32 %v8843_v32, %v10963_v43  ;;  %v1845_v4 = vmul.f32 1.442695, %v1769_v16 }
 0x432   :  { %v11064_v31 = vpop.f32.mrb[60].mxu0  ;;  %7529 = vmatprep.subr.bf16.mxu1 %v12967_v62  ;;  %7535 = vmatprep.mubr.msk.bf16.mxu1 %vm9054_vm4, %v12967_v62  ;;  %v2039_v47 = vmul.f32 %v8845_v26, %v10970_v52  ;;  %v11118_v52 = vadd.f32 %v6671_v33, %v1527_v38  ;;  %v1778_v49 = vsub.f32 0.0, %v11122_v20 }
 0x433   :  { %v2408_v1 = vpop.f32.mrb[56].mxu1  ;;  %v7477_v25 = vpop.f32.mrb[61].mxu0  ;;  %7811 = vmatprep.mubr.msk.bf16.mxu0 %vm9054_vm4, %v12967_v62 }
 0x434   :  { %v2415_v3 = vadd.f32 %v2408_v1, %v2345_v51  ;;  %v7321_v15 = vpop.f32.mrb[57].mxu1  ;;  %v11079_v44 = vpop.f32.mrb[62].mxu0  ;;  %7806 = vmatpush3.bf16.msra.mxu0 %v10923_v53  ;;  %v11114_v43 = vpack.c.bf16 %v2040_v18, %v2039_v47  ;;  %v1863_v12 = vmul.f32 1.442695, %v1778_v49 }
 0x435   :  { %v2411_v28 = vpop.f32.mrb[58].mxu1  ;;  %7530 = vmatpush3.bf16.msra.mxu1 %v10718_v8  ;;  %v7478_v17 = vpop.f32.mrb[63].mxu0  ;;  %7807 = vmatprep.subr.bf16.mxu0 %v12967_v62 }
 0x436   :  { %v11087_v60 = vadd.f32 %v11074_v6, %v2415_v3  ;;  %v2416_v51 = vadd.f32 %v2411_v28, %v2346_v24  ;;  %v7322_v14 = vpop.f32.mrb[59].mxu1  ;;  %7531 = vmatprep.subr.bf16.mxu1 %v12967_v62  ;;  %v1847_v24 = vmul.f32 1.442695, %v1770_v35  ;;  %v11149_v17 = vld [vmem:[%s12751_s3 + $0x68] sm:$0xff]  }
 0x437   :  { %v8847_v35 = vpop.eup %8846 }
 0x438   :  { %4527 = vadd.xlane.f32.xlu0 %v11087_v60  ;;  %7808 = vmatpush3.bf16.msra.mxu0 %v10934_v56  ;;  %v11104_v41 = vadd.f32 %v11074_v6, %v2416_v51  ;;  %8848 = vpow2.f32 %v1847_v24  ;;  %v1942_v42 = vadd.f32 1.0, %v8847_v35  ;;  %v11205_v35 = vld [vmem:[%s12751_s3 + $0x90] sm:$0xff]  }
 0x439   :  { %7532 = vmatpush3.bf16.msra.mxu1 %v10734_v39  ;;  %7809 = vmatprep.subr.bf16.mxu0 %v12967_v62  ;;  %8850 = vpow2.f32 %v1889_v59 }
 0x43a   :  { %7533 = vmatprep.subr.bf16.mxu1 %v12967_v62  ;;  %8852 = vpow2.f32 %v1845_v4 }
 0x43c   :  { %4529 = vadd.xlane.f32.xlu0 %v11104_v41  ;;  %7810 = vmatpush3.bf16.msra.mxu0 %v10950_v40 }
 0x43d   :  { %7534 = vmatpush3.bf16.msra.mxu1 %v10746_v29  ;;  %7827 = vmatprep.subr.bf16.mxu0 %v12967_v62 }
 0x43e   :  { %7551 = vmatprep.subr.bf16.mxu1 %v12967_v62 }
 0x43f   :  { %7812 = vmatmul.mubr.msk.bf16.vlgmr.msra.gmra.mrb[116].mxu0 %vm788_vm3, %v11114_v43 }
 0x440   :  { %7536 = vmatmul.mubr.msk.bf16.vlgmr.msra.gmra.mrb[112].mxu1 %vm788_vm3, %v10271_v50  ;;  %7828 = vmatpush3.bf16.msra.mxu0 %v10698_v9  ;;  %v1777_v50 = vsub.f32 0.0, %v11118_v52 }
 0x441   :  { %7552 = vmatpush3.bf16.msra.mxu1 %v11130_v30  ;;  %7829 = vmatprep.subr.bf16.mxu0 %v12967_v62 }
 0x442   :  { %v11134_v1 = vpop.f32.mrb[64].mxu0  ;;  %7553 = vmatprep.subr.bf16.mxu1 %v12967_v62  ;;  %7559 = vmatprep.mubr.msk.bf16.mxu1 %vm9054_vm4, %v12967_v62  ;;  %v8849_v32 = vpop.eup %8848  ;;  %v1861_v14 = vmul.f32 1.442695, %v1777_v50 }
 0x443   :  { %v2462_v25 = vpop.f32.mrb[60].mxu1  ;;  %v7501_v9 = vpop.f32.mrb[65].mxu0  ;;  %7835 = vmatprep.mubr.msk.bf16.mxu0 %vm9054_vm4, %v12967_v62  ;;  %v1920_v48 = vadd.f32 1.0, %v8849_v32 }
 0x444   :  { %v7333_v3 = vpop.f32.mrb[61].mxu1  ;;  %v11143_v15 = vpop.f32.mrb[66].mxu0  ;;  %7830 = vmatpush3.bf16.msra.mxu0 %v10718_v8  ;;  %8854 = vpow2.f32 %v1861_v14 }
 0x445   :  { %v2465_v28 = vpop.f32.mrb[62].mxu1  ;;  %7554 = vmatpush3.bf16.msra.mxu1 %v11149_v17  ;;  %v7502_v37 = vpop.f32.mrb[67].mxu0  ;;  %7831 = vmatprep.subr.bf16.mxu0 %v12967_v62  ;;  %8856 = vpow2.f32 %v1863_v12 }
 0x446   :  { %v7334_v51 = vpop.f32.mrb[63].mxu1  ;;  %7555 = vmatprep.subr.bf16.mxu1 %v12967_v62  ;;  %v8851_v16 = vpop.eup %8850  ;;  %8858 = vrcp.f32 %v1942_v42 }
 0x447   :  { %v8853_v8 = vpop.eup %8852  ;;  %v1941_v63 = vadd.f32 1.0, %v8851_v16  ;;  %8860 = vrcp.f32 %v1920_v48  ;;  %v11217_v16 = vld [vmem:[%s12751_s3 + $0x98] sm:$0xff]  }
 0x448   :  { %7832 = vmatpush3.bf16.msra.mxu0 %v10734_v39  ;;  %v1919_v22 = vadd.f32 1.0, %v8853_v8  ;;  %v11167_v39 = vld [vmem:[%s12751_s3 + $0x78] sm:$0xff]  }
 0x449   :  { %7556 = vmatpush3.bf16.msra.mxu1 %v11158_v45  ;;  %7833 = vmatprep.subr.bf16.mxu0 %v12967_v62  ;;  %8862 = vrcp.f32 %v1941_v63 }
 0x44a   :  { %7557 = vmatprep.subr.bf16.mxu1 %v12967_v62  ;;  %8864 = vrcp.f32 %v1919_v22 }
 0x44c   :  { %7834 = vmatpush3.bf16.msra.mxu0 %v10746_v29  ;;  %v11179_v29 = vld [vmem:[%s12751_s3 + $0x80] sm:$0xff]  }
 0x44d   :  { %7558 = vmatpush3.bf16.msra.mxu1 %v11167_v39  ;;  %7851 = vmatprep.subr.bf16.mxu0 %v12967_v62 }
 0x44e   :  { %7575 = vmatprep.subr.bf16.mxu1 %v12967_v62  ;;  %v8855_v18 = vpop.eup %8854 }
 0x44f   :  { %7836 = vmatmul.mubr.msk.bf16.vlgmr.msra.gmra.mrb[120].mxu0 %vm788_vm3, %v10701_v2  ;;  %v8857_v47 = vpop.eup %8856  ;;  %v1927_v14 = vadd.f32 1.0, %v8855_v18 }
 0x450   :  { %7560 = vmatmul.mubr.msk.bf16.vlgmr.msra.gmra.mrb[116].mxu1 %vm788_vm3, %v10992_v7  ;;  %7852 = vmatpush3.bf16.msra.mxu0 %v11179_v29  ;;  %v8859_v50 = vpop.eup %8858 }
 0x451   :  { %7576 = vmatpush3.bf16.msra.mxu1 %v10910_v61  ;;  %7853 = vmatprep.subr.bf16.mxu0 %v12967_v62  ;;  %v11196_v61 = vld [vmem:[%s12751_s3 + $0x88] sm:$0xff]   ;;  %v8861_v49 = vpop.eup %8860 }
 0x452   :  { %v11184_v26 = vpop.f32.mrb[68].mxu0  ;;  %7577 = vmatprep.subr.bf16.mxu1 %v12967_v62  ;;  %7583 = vmatprep.mubr.msk.bf16.mxu1 %vm9054_vm4, %v12967_v62  ;;  %v2020_v32 = vmul.f32 %v8861_v49, %v11058_v46 }
 0x453   :  { %v2527_v24 = vpop.f32.mrb[64].mxu1  ;;  %v7525_v7 = vpop.f32.mrb[69].mxu0  ;;  %7859 = vmatprep.mubr.msk.bf16.mxu0 %vm9054_vm4, %v12967_v62 }
 0x454   :  { %v2528_v59 = vadd.f32 %v2527_v24, %v2462_v25  ;;  %v7345_v4 = vpop.f32.mrb[65].mxu1  ;;  %v11191_v38 = vpop.f32.mrb[70].mxu0  ;;  %7854 = vmatpush3.bf16.msra.mxu0 %v11196_v61 }
 0x455   :  { %v2530_v33 = vpop.f32.mrb[66].mxu1  ;;  %7578 = vmatpush3.bf16.msra.mxu1 %v10923_v53  ;;  %v7526_v34 = vpop.f32.mrb[71].mxu0  ;;  %7855 = vmatprep.subr.bf16.mxu0 %v12967_v62  ;;  %v2042_v53 = vmul.f32 %v8859_v50, %v11053_v55  ;;  %v11264_v50 = vld [vmem:[%s12751_s3 + $0x28] sm:$0xff]  }
 0x456   :  { %v2531_v9 = vadd.f32 %v2530_v33, %v2465_v28  ;;  %v7346_v25 = vpop.f32.mrb[67].mxu1  ;;  %7579 = vmatprep.subr.bf16.mxu1 %v12967_v62  ;;  %v8863_v3 = vpop.eup %8862  ;;  %v1928_v28 = vadd.f32 1.0, %v8857_v47 }
 0x457   :  { %v8865_v37 = vpop.eup %8864  ;;  %v2041_v51 = vmul.f32 %v8863_v3, %v11062_v5  ;;  %v11271_v3 = vld [vmem:[%s12751_s3 + $0x30] sm:$0xff]  }
 0x458   :  { %7856 = vmatpush3.bf16.msra.mxu0 %v11205_v35  ;;  %8866 = vrcp.f32 %v1928_v28 }
 0x459   :  { %7580 = vmatpush3.bf16.msra.mxu1 %v10934_v56  ;;  %7857 = vmatprep.subr.bf16.mxu0 %v12967_v62  ;;  %v2019_v56 = vmul.f32 %v8865_v37, %v11069_v19  ;;  %v2067_v55 = vpack.c.bf16 %v2042_v53, %v2041_v51  ;;  %8868 = vrcp.f32 %v1927_v14  ;;  %v11278_v37 = vld [vmem:[%s12751_s3 + $0x38] sm:$0xff]  }
 0x45a   :  { %7581 = vmatprep.subr.bf16.mxu1 %v12967_v62 }
 0x45b   :  { %v11222_v12 = vpack.c.bf16 %v2020_v32, %v2019_v56 }
 0x45c   :  { %7858 = vmatpush3.bf16.msra.mxu0 %v11217_v16 }
 0x45d   :  { %7582 = vmatpush3.bf16.msra.mxu1 %v10950_v40 }
 0x45e   :  { %7599 = vmatprep.subr.bf16.mxu1 %v12967_v62 }
 0x45f   :  { %7860 = vmatmul.mubr.msk.bf16.vlgmr.msra.gmra.mrb[124].mxu0 %vm788_vm3, %v2067_v55 }
 0x460   :  { %7584 = vmatmul.mubr.msk.bf16.vlgmr.msra.gmra.mrb[120].mxu1 %vm788_vm3, %v11222_v12 }
 0x461   :  { %7600 = vmatpush3.bf16.msra.mxu1 %v10814_v10  ;;  %7607 = vmatprep.mubr.msk.bf16.mxu1 %vm9054_vm4, %v12967_v62 }
 0x462   :  { %v11231_v46 = vpop.f32.mrb[72].mxu0  ;;  %7601 = vmatprep.subr.bf16.mxu1 %v12967_v62  ;;  %v8867_v10 = vpop.eup %8866 }
 0x463   :  { %v2571_v40 = vpop.f32.mrb[68].mxu1  ;;  %v7549_v5 = vpop.f32.mrb[73].mxu0  ;;  %v2028_v18 = vmul.f32 %v8867_v10, %v11122_v20 }
 0x464   :  { %v2578_v19 = vadd.f32 %v2571_v40, %v2528_v59  ;;  %v7357_v8 = vpop.f32.mrb[69].mxu1  ;;  %v11234_v42 = vpop.f32.mrb[74].mxu0 }
 0x465   :  { %v2574_v48 = vpop.f32.mrb[70].mxu1  ;;  %7602 = vmatpush3.bf16.msra.mxu1 %v10830_v11  ;;  %v7550_v63 = vpop.f32.mrb[75].mxu0  ;;  %v11251_v11 = vld [vmem:[%s12751_s3 + $0x20] sm:$0xff]  }
 0x466   :  { %v2579_v22 = vadd.f32 %v2574_v48, %v2531_v9  ;;  %v7358_v24 = vpop.f32.mrb[71].mxu1  ;;  %7603 = vmatprep.subr.bf16.mxu1 %v12967_v62  ;;  %v8869_v7 = vpop.eup %8868  ;;  %v13005_v48 = vld [vmem:[#allocation15_spill] sm:$0xff] }
 0x467   :  { %v2027_v59 = vmul.f32 %v8869_v7, %v11118_v52  ;;  %v1333_v63 = vmul.f32 %v10077_v13, %v13005_v48  ;;  %v6674_v7 = vld [vmem:[%s12755_s7 + $0x14] ss:$0 sm:$0xff] }
 0x469   :  { %7604 = vmatpush3.bf16.msra.mxu1 %v10842_v0  ;;  %v11243_v4 = vpack.c.bf16 %v2028_v18, %v2027_v59  ;;  %v9018_v59 = vld [vmem:[%s12751_s3 + $0xc0] sm:$0xff]  }
 0x46a   :  { %7605 = vmatprep.subr.bf16.mxu1 %v12967_v62 }
 0x46d   :  { %7606 = vmatpush3.bf16.msra.mxu1 %v10858_v58 }
 0x46e   :  { %7623 = vmatprep.subr.bf16.mxu1 %v12967_v62 }
 0x470   :  { %7608 = vmatmul.mubr.msk.bf16.vlgmr.msra.gmra.mrb[124].mxu1 %vm788_vm3, %v11243_v4 }
 0x471   :  { %7624 = vmatpush3.bf16.msra.mxu1 %v11251_v11  ;;  %7631 = vmatprep.mubr.msk.bf16.mxu1 %vm9054_vm4, %v12967_v62 }
 0x472   :  { %v11256_v0 = vpop.f32.mrb[76].mxu0  ;;  %7625 = vmatprep.subr.bf16.mxu1 %v12967_v62 }
 0x473   :  { %v2638_v58 = vpop.f32.mrb[72].mxu1  ;;  %v7573_v52 = vpop.f32.mrb[77].mxu0 }
 0x474   :  { %v2645_v20 = vadd.f32 %v2638_v58, %v2578_v19  ;;  %v7369_v47 = vpop.f32.mrb[73].mxu1  ;;  %v11259_v33 = vpop.f32.mrb[78].mxu0  ;;  %v13004_v19 = vld [vmem:[#allocation16_spill] sm:$0xff] }
 0x475   :  { %v2641_v34 = vpop.f32.mrb[74].mxu1  ;;  %7626 = vmatpush3.bf16.msra.mxu1 %v11264_v50  ;;  %v7574_v9 = vpop.f32.mrb[79].mxu0  ;;  %v1334_v8 = vmul.f32 %v10094_v57, %v13004_v19  ;;  %v9020_v19 = vld [vmem:[%s12751_s3 + $0xd0] sm:$0xff]  }
 0x476   :  { %v2646_v25 = vadd.f32 %v2641_v34, %v2579_v22  ;;  %v7370_v49 = vpop.f32.mrb[75].mxu1  ;;  %7627 = vmatprep.subr.bf16.mxu1 %v12967_v62  ;;  %v6649_v22 = vld [vmem:[%s12754_s6 + $0x14] ss:$0 sm:$0xff] }
 0x477   :  { %v1534_v24 = vmul.f32 %v6649_v22, %v1334_v8  ;;  %v1533_v10 = vmul.f32 %v6649_v22, %v1333_v63  ;;  %v11351_v63 = vld [vmem:[%s12751_s3 + $0x40] sm:$0xff]  }
 0x479   :  { %7628 = vmatpush3.bf16.msra.mxu1 %v11271_v3  ;;  %v11310_v18 = vadd.f32 %v6674_v7, %v1534_v24  ;;  %v11320_v52 = vadd.f32 %v6674_v7, %v1533_v10 }
 0x47a   :  { %7629 = vmatprep.subr.bf16.mxu1 %v12967_v62 }
 0x47d   :  { %7630 = vmatpush3.bf16.msra.mxu1 %v11278_v37 }
 0x47e   :  { %7647 = vmatprep.subr.bf16.mxu1 %v12967_v62 }
 0x480   :  { %7632 = vmatmul.mubr.msk.bf16.vlgmr.msra.gmra.mrb[128].mxu1 %vm788_vm3, %v10900_v54 }
 0x481   :  { %7648 = vmatpush3.bf16.msra.mxu1 %v11130_v30  ;;  %7655 = vmatprep.mubr.msk.bf16.mxu1 %vm9054_vm4, %v12967_v62 }
 0x482   :  { %v11287_v53 = vpop.f32.mrb[80].mxu0  ;;  %7649 = vmatprep.subr.bf16.mxu1 %v12967_v62 }
 0x483   :  { %v2684_v28 = vpop.f32.mrb[76].mxu1  ;;  %v7597_v32 = vpop.f32.mrb[81].mxu0 }
 0x484   :  { %v2691_v51 = vadd.f32 %v2684_v28, %v2645_v20  ;;  %v7381_v14 = vpop.f32.mrb[77].mxu1  ;;  %v11290_v56 = vpop.f32.mrb[82].mxu0  ;;  %v9019_v28 = vld [vmem:[%s12751_s3 + $0xc8] sm:$0xff]  }
 0x485   :  { %v2687_v55 = vpop.f32.mrb[78].mxu1  ;;  %7650 = vmatpush3.bf16.msra.mxu1 %v11149_v17  ;;  %v7598_v40 = vpop.f32.mrb[83].mxu0 }
 0x486   :  { %v2692_v54 = vadd.f32 %v2687_v55, %v2646_v25  ;;  %v7382_v5 = vpop.f32.mrb[79].mxu1  ;;  %7651 = vmatprep.subr.bf16.mxu1 %v12967_v62  ;;  %v1784_v25 = vsub.f32 0.0, %v11310_v18 }
 0x488   :  { %v1875_v5 = vmul.f32 1.442695, %v1784_v25 }
 0x489   :  { %7652 = vmatpush3.bf16.msra.mxu1 %v11158_v45 }
 0x48a   :  { %7653 = vmatprep.subr.bf16.mxu1 %v12967_v62  ;;  %8870 = vpow2.f32 %v1875_v5 }
 0x48d   :  { %7654 = vmatpush3.bf16.msra.mxu1 %v11167_v39 }
 0x48e   :  { %7671 = vmatprep.subr.bf16.mxu1 %v12967_v62 }
 0x490   :  { %7656 = vmatmul.mubr.msk.bf16.vlgmr.msra.gmra.mrb[132].mxu1 %vm788_vm3, %v11222_v12 }
 0x491   :  { %7672 = vmatpush3.bf16.msra.mxu1 %v9018_v59  ;;  %7679 = vmatprep.mubr.msk.bf16.mxu1 %vm9054_vm4, %v12967_v62 }
 0x492   :  { %v11317_v58 = vpop.f32.mrb[84].mxu0  ;;  %7673 = vmatprep.subr.bf16.mxu1 %v12967_v62 }
 0x493   :  { %v2730_v20 = vpop.f32.mrb[80].mxu1  ;;  %v7621_v47 = vpop.f32.mrb[85].mxu0 }
 0x494   :  { %v2737_v34 = vadd.f32 %v2730_v20, %v2691_v51  ;;  %v7393_v12 = vpop.f32.mrb[81].mxu1  ;;  %v11322_v9 = vpop.f32.mrb[86].mxu0  ;;  %v1783_v51 = vsub.f32 0.0, %v11320_v52  ;;  %v11364_v47 = vld [vmem:[%s12751_s3 + $0x48] sm:$0xff]  }
 0x495   :  { %v2733_v49 = vpop.f32.mrb[82].mxu1  ;;  %7674 = vmatpush3.bf16.msra.mxu1 %v9019_v28  ;;  %v7622_v32 = vpop.f32.mrb[87].mxu0  ;;  %v11371_v28 = vld [vmem:[%s12751_s3 + $0x50] sm:$0xff]  }
 0x496   :  { %v11329_v14 = vadd.f32 %v11074_v6, %v2737_v34  ;;  %v2738_v55 = vadd.f32 %v2733_v49, %v2692_v54  ;;  %v7394_v40 = vpop.f32.mrb[83].mxu1  ;;  %7675 = vmatprep.subr.bf16.mxu1 %v12967_v62  ;;  %v1873_v48 = vmul.f32 1.442695, %v1783_v51  ;;  %v9021_v54 = vld [vmem:[%s12751_s3 + $0xd8] sm:$0xff]   ;;  %v8871_v12 = vpop.eup %8870 }
 0x497   :  { %v1934_v32 = vadd.f32 1.0, %v8871_v12  ;;  %v11378_v40 = vld [vmem:[%s12751_s3 + $0x58] sm:$0xff]  }
 0x498   :  { %4531 = vadd.xlane.f32.xlu1 %v11329_v14  ;;  %v11338_v8 = vadd.f32 %v11074_v6, %v2738_v55  ;;  %8872 = vpow2.f32 %v1873_v48 }
 0x499   :  { %7676 = vmatpush3.bf16.msra.mxu1 %v9020_v19  ;;  %8874 = vrcp.f32 %v1934_v32 }
 0x49a   :  { %7677 = vmatprep.subr.bf16.mxu1 %v12967_v62 }
 0x49c   :  { %4533 = vadd.xlane.f32.xlu1 %v11338_v8 }
 0x49d   :  { %7678 = vmatpush3.bf16.msra.mxu1 %v9021_v54 }
 0x49e   :  { %7695 = vmatprep.subr.bf16.mxu1 %v12967_v62 }
 0x4a0   :  { %7680 = vmatmul.mubr.msk.bf16.vlgmr.msra.gmra.mrb[136].mxu1 %vm788_vm3, %v10701_v2 }
 0x4a1   :  { %7696 = vmatpush3.bf16.msra.mxu1 %v11351_v63  ;;  %7703 = vmatprep.mubr.msk.bf16.mxu1 %vm9054_vm4, %v12967_v62 }
 0x4a2   :  { %v11356_v22 = vpop.f32.mrb[88].mxu0  ;;  %7697 = vmatprep.subr.bf16.mxu1 %v12967_v62  ;;  %v8873_v49 = vpop.eup %8872 }
 0x4a3   :  { %v2778_v24 = vpop.f32.mrb[84].mxu1  ;;  %v7645_v10 = vpop.f32.mrb[89].mxu0  ;;  %v1933_v55 = vadd.f32 1.0, %v8873_v49  ;;  %v13006_v49 = vld [vmem:[#allocation28_spill] sm:$0xff] }
 0x4a4   :  { %v7405_v7 = vpop.f32.mrb[85].mxu1  ;;  %v11359_v59 = vpop.f32.mrb[90].mxu0  ;;  %v1338_v32 = vmul.f32 %v10094_v57, %v13006_v49 }
 0x4a5   :  { %v2781_v20 = vpop.f32.mrb[86].mxu1  ;;  %7698 = vmatpush3.bf16.msra.mxu1 %v11364_v47  ;;  %v7646_v34 = vpop.f32.mrb[91].mxu0  ;;  %8876 = vrcp.f32 %v1933_v55 }
 0x4a6   :  { %v7406_v25 = vpop.f32.mrb[87].mxu1  ;;  %7699 = vmatprep.subr.bf16.mxu1 %v12967_v62 }
 0x4a7   :  { %v8875_v25 = vpop.eup %8874 }
 0x4a9   :  { %7700 = vmatpush3.bf16.msra.mxu1 %v11371_v28 }
 0x4aa   :  { %7701 = vmatprep.subr.bf16.mxu1 %v12967_v62 }
 0x4ad   :  { %7702 = vmatpush3.bf16.msra.mxu1 %v11378_v40 }
 0x4ae   :  { %7719 = vmatprep.subr.bf16.mxu1 %v12967_v62 }
 0x4af   :  { %v8877_v55 = vpop.eup %8876 }
 0x4b0   :  { %7704 = vmatmul.mubr.msk.bf16.vlgmr.msra.gmra.mrb[140].mxu1 %vm788_vm3, %v10652_v27 }
 0x4b1   :  { %7720 = vmatpush3.bf16.msra.mxu1 %v11179_v29  ;;  %7727 = vmatprep.mubr.msk.bf16.mxu1 %vm9054_vm4, %v12967_v62 }
 0x4b2   :  { %v11387_v51 = vpop.f32.mrb[92].mxu0  ;;  %7721 = vmatprep.subr.bf16.mxu1 %v12967_v62 }
 0x4b3   :  { %v2819_v5 = vpop.f32.mrb[88].mxu1  ;;  %v7669_v19 = vpop.f32.mrb[93].mxu0 }
 0x4b4   :  { %v2820_v48 = vadd.f32 %v2819_v5, %v2778_v24  ;;  %v7417_v54 = vpop.f32.mrb[89].mxu1  ;;  %v11390_v10 = vpop.f32.mrb[94].mxu0  ;;  %v2034_v24 = vmul.f32 %v8875_v25, %v11310_v18  ;;  %v13007_v5 = vld [vmem:[#allocation27_spill] sm:$0xff]  ;;  %v6676_v18 = vld [vmem:[%s12755_s7 + $0x16] ss:$0 sm:$0xff] }
 0x4b5   :  { %v2822_v7 = vpop.f32.mrb[90].mxu1  ;;  %7722 = vmatpush3.bf16.msra.mxu1 %v11196_v61  ;;  %v7670_v34 = vpop.f32.mrb[95].mxu0  ;;  %v1337_v19 = vmul.f32 %v10077_v13, %v13007_v5  ;;  %v2033_v54 = vmul.f32 %v8877_v55, %v11320_v52 }
 0x4b6   :  { %v2823_v27 = vadd.f32 %v2822_v7, %v2781_v20  ;;  %v7418_v12 = vpop.f32.mrb[91].mxu1  ;;  %7723 = vmatprep.subr.bf16.mxu1 %v12967_v62  ;;  %v6651_v20 = vld [vmem:[%s12754_s6 + $0x16] ss:$0 sm:$0xff] }
 0x4b7   :  { %v1538_v7 = vmul.f32 %v6651_v20, %v1338_v32  ;;  %v2063_v57 = vpack.c.bf16 %v2034_v24, %v2033_v54  ;;  %v1537_v34 = vmul.f32 %v6651_v20, %v1337_v19 }
 0x4b9   :  { %7724 = vmatpush3.bf16.msra.mxu1 %v11205_v35  ;;  %v11411_v13 = vadd.f32 %v6676_v18, %v1538_v7  ;;  %v11419_v12 = vadd.f32 %v6676_v18, %v1537_v34 }
 0x4ba   :  { %7725 = vmatprep.subr.bf16.mxu1 %v12967_v62 }
 0x4bb   :  { %v1788_v5 = vsub.f32 0.0, %v11411_v13 }
 0x4bd   :  { %7726 = vmatpush3.bf16.msra.mxu1 %v11217_v16  ;;  %v1883_v34 = vmul.f32 1.442695, %v1788_v5 }
 0x4be   :  { %7743 = vmatprep.subr.bf16.mxu1 %v12967_v62 }
 0x4bf   :  { %8878 = vpow2.f32 %v1883_v34 }
 0x4c0   :  { %7728 = vmatmul.mubr.msk.bf16.vlgmr.msra.gmra.mrb[144].mxu1 %vm788_vm3, %v2063_v57  ;;  %v1787_v57 = vsub.f32 0.0, %v11419_v12 }
 0x4c1   :  { %7744 = vmatpush3.bf16.msra.mxu1 %v11251_v11  ;;  %7751 = vmatprep.mubr.msk.bf16.mxu1 %vm9054_vm4, %v12967_v62 }
 0x4c2   :  { %v11416_v52 = vpop.f32.mrb[96].mxu0  ;;  %7745 = vmatprep.subr.bf16.mxu1 %v12967_v62 }
 0x4c3   :  { %v2860_v25 = vpop.f32.mrb[92].mxu1  ;;  %v7693_v49 = vpop.f32.mrb[97].mxu0 }
 0x4c4   :  { %v2867_v32 = vadd.f32 %v2860_v25, %v2820_v48  ;;  %v7429_v55 = vpop.f32.mrb[93].mxu1  ;;  %v11421_v24 = vpop.f32.mrb[98].mxu0  ;;  %v1881_v48 = vmul.f32 1.442695, %v1787_v57 }
 0x4c5   :  { %7746 = vmatpush3.bf16.msra.mxu1 %v11264_v50  ;;  %v2863_v19 = vpop.f32.mrb[94].mxu1  ;;  %v7694_v7 = vpop.f32.mrb[99].mxu0 }
 0x4c6   :  { %v2868_v20 = vadd.f32 %v2863_v19, %v2823_v27  ;;  %v7430_v54 = vpop.f32.mrb[95].mxu1  ;;  %7747 = vmatprep.subr.bf16.mxu1 %v12967_v62  ;;  %8880 = vpow2.f32 %v1881_v48 }
 0x4c9   :  { %7748 = vmatpush3.bf16.msra.mxu1 %v11271_v3 }
 0x4ca   :  { %7749 = vmatprep.subr.bf16.mxu1 %v12967_v62 }
 0x4cd   :  { %7750 = vmatpush3.bf16.msra.mxu1 %v11278_v37 }
 0x4ce   :  { %7767 = vmatprep.subr.bf16.mxu1 %v12967_v62 }
 0x4d0   :  { %7752 = vmatmul.mubr.msk.bf16.vlgmr.msra.gmra.mrb[148].mxu1 %vm788_vm3, %v11243_v4  ;;  %v8879_v4 = vpop.eup %8878 }
 0x4d1   :  { %7768 = vmatpush3.bf16.msra.mxu1 %v11351_v63  ;;  %7775 = vmatprep.mubr.msk.bf16.mxu1 %vm9054_vm4, %v12967_v62  ;;  %v8881_v34 = vpop.eup %8880 }
 0x4d2   :  { %v11436_v27 = vpop.f32.mrb[100].mxu0  ;;  %7769 = vmatprep.subr.bf16.mxu1 %v12967_v62 }
 0x4d3   :  { %v2906_v18 = vpop.f32.mrb[96].mxu1  ;;  %v7717_v25 = vpop.f32.mrb[101].mxu0 }
 0x4d4   :  { %v2913_v49 = vadd.f32 %v2906_v18, %v2867_v32  ;;  %v7441_v55 = vpop.f32.mrb[97].mxu1  ;;  %v11439_v5 = vpop.f32.mrb[102].mxu0  ;;  %v1938_v32 = vadd.f32 1.0, %v8879_v4 }
 0x4d5   :  { %v2909_v19 = vpop.f32.mrb[98].mxu1  ;;  %7770 = vmatpush3.bf16.msra.mxu1 %v11364_v47  ;;  %v7718_v54 = vpop.f32.mrb[103].mxu0  ;;  %v1937_v47 = vadd.f32 1.0, %v8881_v34 }
 0x4d6   :  { %v11443_v63 = vadd.f32 %v11074_v6, %v2913_v49  ;;  %v2914_v7 = vadd.f32 %v2909_v19, %v2868_v20  ;;  %v7442_v57 = vpop.f32.mrb[99].mxu1  ;;  %7771 = vmatprep.subr.bf16.mxu1 %v12967_v62  ;;  %8882 = vrcp.f32 %v1938_v32 }
 0x4d7   :  { %8884 = vrcp.f32 %v1937_v47 }
 0x4d8   :  { %v11447_v48 = vadd.f32 %v11074_v6, %v2914_v7  ;;  %4537 = vadd.xlane.f32.xlu0 %v11443_v63 }
 0x4d9   :  { %7772 = vmatpush3.bf16.msra.mxu1 %v11371_v28 }
 0x4da   :  { %4539 = vadd.xlane.f32.xlu1 %v11447_v48  ;;  %7773 = vmatprep.subr.bf16.mxu1 %v12967_v62 }
 0x4dd   :  { %7774 = vmatpush3.bf16.msra.mxu1 %v11378_v40 }
 0x4de   :  { %7791 = vmatprep.subr.bf16.mxu1 %v12967_v62 }
 0x4e0   :  { %7776 = vmatmul.mubr.msk.bf16.vlgmr.msra.gmra.mrb[152].mxu1 %vm788_vm3, %v10701_v2  ;;  %v8883_v4 = vpop.eup %8882 }
 0x4e1   :  { %7792 = vmatpush3.bf16.msra.mxu1 %v11179_v29  ;;  %7799 = vmatprep.mubr.msk.bf16.mxu1 %vm9054_vm4, %v12967_v62  ;;  %v8885_v57 = vpop.eup %8884 }
 0x4e2   :  { %v11460_v28 = vpop.f32.mrb[104].mxu0  ;;  %7793 = vmatprep.subr.bf16.mxu1 %v12967_v62 }
 0x4e3   :  { %v3040_v20 = vpop.f32.mrb[100].mxu1  ;;  %v7741_v18 = vpop.f32.mrb[105].mxu0 }
 0x4e4   :  { %v3041_v40 = vadd.f32 %v3040_v20, %v11004_v36  ;;  %v7465_v25 = vpop.f32.mrb[101].mxu1  ;;  %v11464_v49 = vpop.f32.mrb[106].mxu0  ;;  %v2038_v36 = vmul.f32 %v8883_v4, %v11411_v13 }
 0x4e5   :  { %v3043_v55 = vpop.f32.mrb[102].mxu1  ;;  %7794 = vmatpush3.bf16.msra.mxu1 %v11196_v61  ;;  %v7742_v2 = vpop.f32.mrb[107].mxu0  ;;  %v2037_v61 = vmul.f32 %v8885_v57, %v11419_v12 }
 0x4e6   :  { %v3044_v29 = vadd.f32 %v3043_v55, %v11011_v23  ;;  %v7466_v19 = vpop.f32.mrb[103].mxu1  ;;  %7795 = vmatprep.subr.bf16.mxu1 %v12967_v62  ;;  %v3091_v54 = vadd.f32 %v11064_v31, %v3041_v40 }
 0x4e7   :  { %v2065_v23 = vpack.c.bf16 %v2038_v36, %v2037_v61  ;;  %v8672_v19 = vld [vmem:[%s12752_s4 + $0x8] ss:$0 sps:$4 sm:$0x11]  }
 0x4e8   :  { %v3092_v7 = vadd.f32 %v11079_v44, %v3044_v29 }
 0x4e9   :  { %7796 = vmatpush3.bf16.msra.mxu1 %v11205_v35 }
 0x4ea   :  { %7797 = vmatprep.subr.bf16.mxu1 %v12967_v62 }
 0x4ed   :  { %7798 = vmatpush3.bf16.msra.mxu1 %v11217_v16 }
 0x4ee   :  { %7815 = vmatprep.subr.bf16.mxu1 %v12967_v62 }
 0x4f0   :  { %7800 = vmatmul.mubr.msk.bf16.vlgmr.msra.gmra.mrb[156].mxu1 %vm788_vm3, %v2065_v23 }
 0x4f1   :  { %7816 = vmatpush3.bf16.msra.mxu1 %v11251_v11  ;;  %7823 = vmatprep.mubr.msk.bf16.mxu1 %vm9054_vm4, %v12967_v62 }
 0x4f2   :  { %v11481_v31 = vpop.f32.mrb[108].mxu0  ;;  %7817 = vmatprep.subr.bf16.mxu1 %v12967_v62 }
 0x4f3   :  { %v3130_v44 = vpop.f32.mrb[104].mxu1  ;;  %v7765_v35 = vpop.f32.mrb[109].mxu0 }
 0x4f4   :  { %v3137_v13 = vadd.f32 %v3130_v44, %v3091_v54  ;;  %v7489_v12 = vpop.f32.mrb[105].mxu1  ;;  %v11484_v34 = vpop.f32.mrb[110].mxu0  ;;  %v13008_v54 = vmov 0  }
 0x4f5   :  { %v3133_v16 = vpop.f32.mrb[106].mxu1  ;;  %7818 = vmatpush3.bf16.msra.mxu1 %v11264_v50  ;;  %v7766_v32 = vpop.f32.mrb[111].mxu0  ;;  %v5091_v4 = vsel %vm5089_vm5, 65535, %v13008_v54 }
 0x4f6   :  { %v3138_v47 = vadd.f32 %v3133_v16, %v3092_v7  ;;  %v7490_v20 = vpop.f32.mrb[107].mxu1  ;;  %7819 = vmatprep.subr.bf16.mxu1 %v12967_v62  ;;  %v3183_v11 = vadd.f32 %v11134_v1, %v3137_v13  ;;  %v8674_v32 = vld [vmem:[%s13009_s0 + $0x8] sm:$0xff]  }
 0x4f8   :  { %v3184_v18 = vadd.f32 %v11143_v15, %v3138_v47 }
 0x4f9   :  { %7820 = vmatpush3.bf16.msra.mxu1 %v11271_v3 }
 0x4fa   :  { %7821 = vmatprep.subr.bf16.mxu1 %v12967_v62 }
 0x4fd   :  { %7822 = vmatpush3.bf16.msra.mxu1 %v11278_v37 }
 0x4fe   :  { %7839 = vmatprep.subr.bf16.mxu1 %v12967_v62 }
 0x500   :  { %7824 = vmatmul.mubr.msk.bf16.vlgmr.msra.gmra.mrb[160].mxu1 %vm788_vm3, %v10862_v21 }
 0x501   :  { %7840 = vmatpush3.bf16.msra.mxu1 %v11130_v30  ;;  %7847 = vmatprep.mubr.msk.bf16.mxu1 %vm9054_vm4, %v12967_v62 }
 0x502   :  { %v11499_v50 = vpop.f32.mrb[112].mxu0  ;;  %7841 = vmatprep.subr.bf16.mxu1 %v12967_v62 }
 0x503   :  { %v3222_v1 = vpop.f32.mrb[108].mxu1  ;;  %v7789_v15 = vpop.f32.mrb[113].mxu0 }
 0x504   :  { %v3229_v3 = vadd.f32 %v3222_v1, %v3183_v11  ;;  %v7513_v40 = vpop.f32.mrb[109].mxu1  ;;  %v11502_v25 = vpop.f32.mrb[114].mxu0 }
 0x505   :  { %v3225_v37 = vpop.f32.mrb[110].mxu1  ;;  %7842 = vmatpush3.bf16.msra.mxu1 %v11149_v17  ;;  %v7790_v55 = vpop.f32.mrb[115].mxu0  ;;  %v8671_v17 = vld [vmem:[%s12752_s4] sm:$0xff]  }
 0x506   :  { %v11506_v21 = vadd.f32 %v11074_v6, %v3229_v3  ;;  %v3230_v30 = vadd.f32 %v3225_v37, %v3184_v18  ;;  %v7514_v2 = vpop.f32.mrb[111].mxu1  ;;  %7843 = vmatprep.subr.bf16.mxu1 %v12967_v62 }
 0x508   :  { %v11510_v29 = vadd.f32 %v11074_v6, %v3230_v30  ;;  %4543 = vadd.xlane.f32.xlu0 %v11506_v21  ;;  %v8676_v30 = vld [vmem:[%s13009_s0 + $0x18] sm:$0xff]  }
 0x509   :  { %7844 = vmatpush3.bf16.msra.mxu1 %v11158_v45  ;;  %v5093_v45 = vand.u32 %v8672_v19, %v5091_v4 }
 0x50a   :  { %4545 = vadd.xlane.f32.xlu1 %v11510_v29  ;;  %7845 = vmatprep.subr.bf16.mxu1 %v12967_v62 }
 0x50d   :  { %7846 = vmatpush3.bf16.msra.mxu1 %v11167_v39 }
 0x50e   :  { %7863 = vmatprep.subr.bf16.mxu1 %v12967_v62 }
 0x510   :  { %7848 = vmatmul.mubr.msk.bf16.vlgmr.msra.gmra.mrb[164].mxu1 %vm788_vm3, %v11114_v43  ;;  %v8673_v43 = vld [vmem:[%s13009_s0] sm:$0xff]  }
 0x511   :  { %7864 = vmatpush3.bf16.msra.mxu1 %v8671_v17  ;;  %7867 = vmatprep.mubr.msk.bf16.mxu1 %vm9054_vm4, %v12967_v62 }
 0x512   :  { %v11529_v39 = vpop.f32.mrb[116].mxu0  ;;  %7865 = vmatprep.subr.bf16.mxu1 %v12967_v62 }
 0x513   :  { %v3332_v7 = vpop.f32.mrb[112].mxu1  ;;  %v7813_v57 = vpop.f32.mrb[117].mxu0 }
 0x514   :  { %v3333_v36 = vadd.f32 %v3332_v7, %v11184_v26  ;;  %v7537_v61 = vpop.f32.mrb[113].mxu1  ;;  %v11533_v23 = vpop.f32.mrb[118].mxu0 }
 0x515   :  { %v3335_v44 = vpop.f32.mrb[114].mxu1  ;;  %7866 = vmatpush3.bf16.msra.mxu1 %v5093_v45  ;;  %v7814_v35 = vpop.f32.mrb[119].mxu0 }
 0x516   :  { %v3336_v13 = vadd.f32 %v3335_v44, %v11191_v38  ;;  %v7538_v12 = vpop.f32.mrb[115].mxu1  ;;  %v3380_v16 = vadd.f32 %v11231_v46, %v3333_v36  ;;  %v8678_v44 = vld [vmem:[%s13009_s0 + $0x28] sm:$0xff]  }
 0x518   :  { %7868 = vmatmul.mubr.msk.bf16.vlgmr.msra.gmra.mrb[168].mxu1 %vm5061_vm6, %v8673_v43  ;;  %v3381_v26 = vadd.f32 %v11234_v42, %v3336_v13  ;;  %v8675_v42 = vld [vmem:[%s13009_s0 + $0x10] sm:$0xff]  }
 0x519   :  { %7871 = vmatprep.mubr.msk.bf16.mxu1 %vm9054_vm4, %v12967_v62 }
 0x520   :  { %7872 = vmatmul.mubr.msk.bf16.gmra.mrb[172].mxu1 %vm5061_vm6, %v8674_v32 }
 0x521   :  { %7875 = vmatprep.mubr.msk.bf16.mxu1 %vm9054_vm4, %v12967_v62 }
 0x522   :  { %v11550_v38 = vpop.f32.mrb[120].mxu0 }
 0x523   :  { %v3416_v47 = vpop.f32.mrb[116].mxu1  ;;  %v7837_v46 = vpop.f32.mrb[121].mxu0 }
 0x524   :  { %v3423_v20 = vadd.f32 %v3416_v47, %v3380_v16  ;;  %v7561_v11 = vpop.f32.mrb[117].mxu1  ;;  %v11552_v18 = vpop.f32.mrb[122].mxu0 }
 0x525   :  { %v3419_v1 = vpop.f32.mrb[118].mxu1  ;;  %v7838_v40 = vpop.f32.mrb[123].mxu0 }
 0x526   :  { %v3424_v15 = vadd.f32 %v3419_v1, %v3381_v26  ;;  %v7562_v3 = vpop.f32.mrb[119].mxu1  ;;  %v3469_v37 = vadd.f32 %v11256_v0, %v3423_v20 }
 0x528   :  { %7876 = vmatmul.mubr.msk.bf16.gmra.mrb[176].mxu1 %vm5061_vm6, %v8675_v42  ;;  %v3470_v55 = vadd.f32 %v11259_v33, %v3424_v15  ;;  %v8677_v33 = vld [vmem:[%s13009_s0 + $0x20] sm:$0xff]  }
 0x529   :  { %7879 = vmatprep.mubr.msk.bf16.mxu1 %vm9054_vm4, %v12967_v62 }
 0x530   :  { %7880 = vmatmul.mubr.msk.bf16.gmra.mrb[180].mxu1 %vm5061_vm6, %v8676_v30 }
 0x531   :  { %7883 = vmatprep.mubr.msk.bf16.mxu1 %vm9054_vm4, %v12967_v62 }
 0x532   :  { %v11568_v2 = vpop.f32.mrb[124].mxu0 }
 0x533   :  { %v3508_v17 = vpop.f32.mrb[120].mxu1  ;;  %v7861_v0 = vpop.f32.mrb[125].mxu0 }
 0x534   :  { %v3515_v19 = vadd.f32 %v3508_v17, %v3469_v37  ;;  %v7585_v54 = vpop.f32.mrb[121].mxu1  ;;  %v11570_v4 = vpop.f32.mrb[126].mxu0 }
 0x535   :  { %v3511_v45 = vpop.f32.mrb[122].mxu1  ;;  %v7862_v7 = vpop.f32.mrb[127].mxu0 }
 0x536   :  { %v3516_v57 = vadd.f32 %v3511_v45, %v3470_v55  ;;  %v7586_v36 = vpop.f32.mrb[123].mxu1  ;;  %v3558_v61 = vadd.f32 %v11287_v53, %v3515_v19  ;;  %v8679_v53 = vld [vmem:[%s13009_s0 + $0x30] sm:$0xff]  }
 0x538   :  { %7884 = vmatmul.mubr.msk.bf16.gmra.mrb[184].mxu1 %vm5061_vm6, %v8677_v33  ;;  %v3559_v43 = vadd.f32 %v11290_v56, %v3516_v57 }
 0x539   :  { %7887 = vmatprep.mubr.msk.bf16.mxu1 %vm9054_vm4, %v12967_v62 }
 0x540   :  { %7888 = vmatmul.mubr.msk.bf16.gmra.mrb[188].mxu1 %vm5061_vm6, %v8678_v44 }
 0x541   :  { %7891 = vmatprep.mubr.msk.bf16.mxu1 %vm9054_vm4, %v12967_v62 }
 0x543   :  { %v3597_v35 = vpop.f32.mrb[124].mxu1 }
 0x544   :  { %v3604_v13 = vadd.f32 %v3597_v35, %v3558_v61  ;;  %v7609_v12 = vpop.f32.mrb[125].mxu1  ;;  %v11621_v61 = vld [vmem:[%s12761_s13] ss:$0 sm:$0xff] }
 0x545   :  { %v3600_v56 = vpop.f32.mrb[126].mxu1 }
 0x546   :  { %v3650_v16 = vadd.f32 %v11317_v58, %v3604_v13  ;;  %v3605_v26 = vadd.f32 %v3600_v56, %v3559_v43  ;;  %v7610_v32 = vpop.f32.mrb[127].mxu1  ;;  %v8680_v58 = vld [vmem:[%s13009_s0 + $0x38] sm:$0xff]  }
 0x548   :  { %v3651_v47 = vadd.f32 %v11322_v9, %v3605_v26  ;;  %7892 = vmatmul.mubr.msk.bf16.gmra.mrb[192].mxu1 %vm5061_vm6, %v8679_v53  ;;  %v11593_v46 = vadd.f32 %v11074_v6, %v3650_v16 }
 0x549   :  { %7895 = vmatprep.mubr.msk.bf16.mxu1 %vm9054_vm4, %v12967_v62 }
 0x54a   :  { %4549 = vadd.xlane.f32.xlu0 %v11593_v46  ;;  %v11599_v20 = vadd.f32 %v11074_v6, %v3651_v47  ;;  %v8681_v6 = vld [vmem:[%s13009_s0 + $0x40] sm:$0xff]  }
 0x54c   :  { %4551 = vadd.xlane.f32.xlu1 %v11599_v20 }
 0x550   :  { %7896 = vmatmul.mubr.msk.bf16.gmra.mrb[196].mxu1 %vm5061_vm6, %v8680_v58 }
 0x551   :  { %7899 = vmatprep.mubr.msk.bf16.mxu1 %vm9054_vm4, %v12967_v62 }
 0x553   :  { %v3688_v9 = vpop.f32.mrb[128].mxu1 }
 0x554   :  { %v3730_v11 = vadd.f32 %v11356_v22, %v3688_v9  ;;  %v7633_v42 = vpop.f32.mrb[129].mxu1 }
 0x555   :  { %v3691_v1 = vpop.f32.mrb[130].mxu1 }
 0x556   :  { %v3733_v15 = vadd.f32 %v11359_v59, %v3691_v1  ;;  %v7634_v3 = vpop.f32.mrb[131].mxu1 }
 0x558   :  { %7900 = vmatmul.mubr.msk.bf16.gmra.mrb[200].mxu1 %vm5061_vm6, %v8681_v6 }
 0x563   :  { %v3770_v40 = vpop.f32.mrb[132].mxu1 }
 0x564   :  { %v3777_v37 = vadd.f32 %v3770_v40, %v3730_v11  ;;  %v7657_v55 = vpop.f32.mrb[133].mxu1 }
 0x565   :  { %v3773_v30 = vpop.f32.mrb[134].mxu1 }
 0x566   :  { %v3778_v17 = vadd.f32 %v3773_v30, %v3733_v15  ;;  %v7658_v62 = vpop.f32.mrb[135].mxu1  ;;  %v3823_v0 = vadd.f32 %v11387_v51, %v3777_v37 }
 0x568   :  { %v3824_v22 = vadd.f32 %v11390_v10, %v3778_v17 }
 0x573   :  { %v3859_v19 = vpop.f32.mrb[136].mxu1 }
 0x574   :  { %v3866_v54 = vadd.f32 %v3859_v19, %v3823_v0  ;;  %v7681_v33 = vpop.f32.mrb[137].mxu1 }
 0x575   :  { %v3862_v45 = vpop.f32.mrb[138].mxu1 }
 0x576   :  { %v3912_v7 = vadd.f32 %v11416_v52, %v3866_v54  ;;  %v3867_v59 = vadd.f32 %v3862_v45, %v3824_v22  ;;  %v7682_v57 = vpop.f32.mrb[139].mxu1 }
 0x578   :  { %v3913_v36 = vadd.f32 %v11421_v24, %v3867_v59  ;;  %v11624_v43 = vadd.f32 %v11621_v61, %v3912_v7 }
 0x57a   :  { %4555 = vadd.xlane.f32.xlu0 %v11624_v43  ;;  %v11628_v51 = vadd.f32 %v11621_v61, %v3913_v36 }
 0x57c   :  { %4557 = vadd.xlane.f32.xlu1 %v11628_v51 }
 0x583   :  { %v3950_v10 = vpop.f32.mrb[140].mxu1 }
 0x584   :  { %v3992_v52 = vadd.f32 %v11436_v27, %v3950_v10  ;;  %v7705_v44 = vpop.f32.mrb[141].mxu1 }
 0x585   :  { %v3953_v24 = vpop.f32.mrb[142].mxu1 }
 0x586   :  { %v3995_v35 = vadd.f32 %v11439_v5, %v3953_v24  ;;  %v7706_v13 = vpop.f32.mrb[143].mxu1 }
 0x593   :  { %v4035_v12 = vpop.f32.mrb[144].mxu1 }
 0x594   :  { %v4042_v53 = vadd.f32 %v4035_v12, %v3992_v52  ;;  %v7729_v56 = vpop.f32.mrb[145].mxu1 }
 0x595   :  { %v4038_v16 = vpop.f32.mrb[146].mxu1 }
 0x596   :  { %v4088_v26 = vadd.f32 %v11460_v28, %v4042_v53  ;;  %v4043_v32 = vadd.f32 %v4038_v16, %v3995_v35  ;;  %v7730_v47 = vpop.f32.mrb[147].mxu1 }
 0x598   :  { %v4089_v58 = vadd.f32 %v11464_v49, %v4043_v32  ;;  %v11636_v9 = vadd.f32 %v11621_v61, %v4088_v26 }
 0x59a   :  { %4561 = vadd.xlane.f32.xlu0 %v11636_v9  ;;  %v11640_v27 = vadd.f32 %v11621_v61, %v4089_v58 }
 0x59c   :  { %4563 = vadd.xlane.f32.xlu1 %v11640_v27 }
 0x5a3   :  { %v4126_v5 = vpop.f32.mrb[148].mxu1 }
 0x5a4   :  { %v4168_v11 = vadd.f32 %v11481_v31, %v4126_v5  ;;  %v7753_v42 = vpop.f32.mrb[149].mxu1 }
 0x5a5   :  { %v4129_v6 = vpop.f32.mrb[150].mxu1 }
 0x5a6   :  { %v4171_v28 = vadd.f32 %v11484_v34, %v4129_v6  ;;  %v7754_v1 = vpop.f32.mrb[151].mxu1 }
 0x5b3   :  { %v4208_v15 = vpop.f32.mrb[152].mxu1 }
 0x5b4   :  { %v4215_v49 = vadd.f32 %v4208_v15, %v4168_v11  ;;  %v7777_v3 = vpop.f32.mrb[153].mxu1 }
 0x5b5   :  { %v4211_v40 = vpop.f32.mrb[154].mxu1 }
 0x5b6   :  { %v4216_v37 = vadd.f32 %v4211_v40, %v4171_v28  ;;  %v7778_v55 = vpop.f32.mrb[155].mxu1  ;;  %v4258_v30 = vadd.f32 %v11499_v50, %v4215_v49 }
 0x5b8   :  { %v4259_v17 = vadd.f32 %v11502_v25, %v4216_v37 }
 0x5c3   :  { %v4297_v62 = vpop.f32.mrb[156].mxu1 }
 0x5c4   :  { %v4304_v0 = vadd.f32 %v4297_v62, %v4258_v30  ;;  %v7801_v22 = vpop.f32.mrb[157].mxu1 }
 0x5c5   :  { %v4300_v19 = vpop.f32.mrb[158].mxu1 }
 0x5c6   :  { %v4350_v31 = vadd.f32 %v11529_v39, %v4304_v0  ;;  %v4305_v54 = vadd.f32 %v4300_v19, %v4259_v17  ;;  %v7802_v33 = vpop.f32.mrb[159].mxu1 }
 0x5c8   :  { %v4351_v34 = vadd.f32 %v11533_v23, %v4305_v54  ;;  %v11650_v45 = vadd.f32 %v11621_v61, %v4350_v31 }
 0x5ca   :  { %4567 = vadd.xlane.f32.xlu0 %v11650_v45  ;;  %v11654_v7 = vadd.f32 %v11621_v61, %v4351_v34 }
 0x5cc   :  { %4569 = vadd.xlane.f32.xlu1 %v11654_v7 }
 0x5d3   :  { %v4388_v50 = vpop.f32.mrb[160].mxu1 }
 0x5d4   :  { %v4430_v25 = vadd.f32 %v11550_v38, %v4388_v50  ;;  %v7825_v59 = vpop.f32.mrb[161].mxu1  ;;  %v11667_v38 = vld [vmem:[%s12762_s14] ss:$0 sm:$0xff] }
 0x5d5   :  { %v4391_v57 = vpop.f32.mrb[162].mxu1 }
 0x5d6   :  { %v4433_v39 = vadd.f32 %v11552_v18, %v4391_v57  ;;  %v7826_v36 = vpop.f32.mrb[163].mxu1 }
 0x5e3   :  { %v4470_v10 = vpop.f32.mrb[164].mxu1 }
 0x5e4   :  { %v4477_v23 = vadd.f32 %v4470_v10, %v4430_v25  ;;  %v7849_v52 = vpop.f32.mrb[165].mxu1 }
 0x5e5   :  { %v4473_v44 = vpop.f32.mrb[166].mxu1 }
 0x5e6   :  { %v4523_v24 = vadd.f32 %v11568_v2, %v4477_v23  ;;  %v4478_v35 = vadd.f32 %v4473_v44, %v4433_v39  ;;  %v7850_v13 = vpop.f32.mrb[167].mxu1 }
 0x5e8   :  { %v4524_v12 = vadd.f32 %v11570_v4, %v4478_v35  ;;  %v11662_v53 = vadd.f32 %v11621_v61, %v4523_v24 }
 0x5ea   :  { %4573 = vadd.xlane.f32.xlu0 %v11662_v53  ;;  %v11671_v18 = vadd.f32 %v11621_v61, %v4524_v12 }
 0x5eb   :  { %v5129_v56 = vpop.f32.mrb[168].mxu1 }
 0x5ec   :  { %v11674_v2 = vadd.f32 %v11667_v38, %v5129_v56  ;;  %4575 = vadd.xlane.f32.xlu1 %v11671_v18  ;;  %v7869_v4 = vpop.f32.mrb[169].mxu1 }
 0x5ed   :  { %v5132_v16 = vpop.f32.mrb[170].mxu1 }
 0x5ee   :  { %5200 = vadd.xlane.f32.xlu0 %v11674_v2  ;;  %v7870_v26 = vpop.f32.mrb[171].mxu1  ;;  %v11679_v32 = vadd.f32 %v11667_v38, %v5132_v16 }
 0x5f2   :  { %5202 = vadd.xlane.f32.xlu0 %v11679_v32 }
 0x5f3   :  { %v5137_v47 = vpop.f32.mrb[172].mxu1 }
 0x5f4   :  { %v11683_v61 = vadd.f32 %v11667_v38, %v5137_v47  ;;  %v7873_v58 = vpop.f32.mrb[173].mxu1 }
 0x5f5   :  { %v5140_v5 = vpop.f32.mrb[174].mxu1 }
 0x5f6   :  { %5204 = vadd.xlane.f32.xlu1 %v11683_v61  ;;  %v7874_v11 = vpop.f32.mrb[175].mxu1  ;;  %v11687_v42 = vadd.f32 %v11667_v38, %v5140_v5 }
 0x5fa   :  { %5206 = vadd.xlane.f32.xlu1 %v11687_v42 }
 0x5fb   :  { %v5145_v6 = vpop.f32.mrb[176].mxu1 }
 0x5fc   :  { %v11691_v28 = vadd.f32 %v11667_v38, %v5145_v6  ;;  %v7877_v1 = vpop.f32.mrb[177].mxu1 }
 0x5fd   :  { %v5148_v15 = vpop.f32.mrb[178].mxu1  ;;  %v4528_v1 = vpop.xlane.xlu0 %4527 }
 0x5fe   :  { %v11694_v49 = vadd.f32 %v11667_v38, %v5148_v15  ;;  %5210 = vadd.xlane.f32.xlu0 %v11691_v28  ;;  %v7878_v3 = vpop.f32.mrb[179].mxu1  ;;  %v4532_v15 = vpop.xlane.xlu1 %4531 }
 0x600   :  { %5212 = vadd.xlane.f32.xlu1 %v11694_v49 }
 0x601   :  { %v4530_v3 = vpop.xlane.xlu0 %4529 }
 0x603   :  { %v5153_v40 = vpop.f32.mrb[180].mxu1 }
 0x604   :  { %v11699_v37 = vadd.f32 %v11667_v38, %v5153_v40  ;;  %v7881_v55 = vpop.f32.mrb[181].mxu1  ;;  %v4534_v40 = vpop.xlane.xlu1 %4533 }
 0x605   :  { %v5156_v30 = vpop.f32.mrb[182].mxu1  ;;  %v4538_v55 = vpop.xlane.xlu0 %4537 }
 0x606   :  { %v11702_v17 = vadd.f32 %v11667_v38, %v5156_v30  ;;  %5216 = vadd.xlane.f32.xlu0 %v11699_v37  ;;  %v7882_v62 = vpop.f32.mrb[183].mxu1 }
 0x608   :  { %5218 = vadd.xlane.f32.xlu1 %v11702_v17  ;;  %v4540_v30 = vpop.xlane.xlu1 %4539 }
 0x609   :  { %v4544_v62 = vpop.xlane.xlu0 %4543 }
 0x60b   :  { %v5161_v0 = vpop.f32.mrb[184].mxu1 }
 0x60c   :  { %v11707_v22 = vadd.f32 %v11667_v38, %v5161_v0  ;;  %v7885_v19 = vpop.f32.mrb[185].mxu1  ;;  %v4546_v0 = vpop.xlane.xlu1 %4545 }
 0x60d   :  { %v5164_v31 = vpop.f32.mrb[186].mxu1  ;;  %v4550_v19 = vpop.xlane.xlu0 %4549 }
 0x60e   :  { %v11710_v54 = vadd.f32 %v11667_v38, %v5164_v31  ;;  %5222 = vadd.xlane.f32.xlu0 %v11707_v22  ;;  %v7886_v33 = vpop.f32.mrb[187].mxu1 }
 0x60f   :  { %v4535_v33 = vadd.f32 %v4532_v15, %v4528_v1 }
 0x610   :  { %5224 = vadd.xlane.f32.xlu1 %v11710_v54  ;;  %v4552_v31 = vpop.xlane.xlu1 %4551 }
 0x613   :  { %v5169_v34 = vpop.f32.mrb[188].mxu1 }
 0x614   :  { %v11715_v50 = vadd.f32 %v11667_v38, %v5169_v34  ;;  %v7889_v25 = vpop.f32.mrb[189].mxu1  ;;  %v4556_v34 = vpop.xlane.xlu0 %4555 }
 0x615   :  { %v5172_v59 = vpop.f32.mrb[190].mxu1  ;;  %v4536_v25 = vadd.f32 %v4534_v40, %v4530_v3 }
 0x616   :  { %v11718_v57 = vadd.f32 %v11667_v38, %v5172_v59  ;;  %5228 = vadd.xlane.f32.xlu0 %v11715_v50  ;;  %v7890_v39 = vpop.f32.mrb[191].mxu1  ;;  %v4558_v59 = vpop.xlane.xlu1 %4557 }
 0x617   :  { %v4542_v39 = vadd.f32 %v4540_v30, %v4536_v25 }
 0x618   :  { %5230 = vadd.xlane.f32.xlu1 %v11718_v57 }
 0x61b   :  { %v5177_v36 = vpop.f32.mrb[192].mxu1 }
 0x61c   :  { %v11723_v10 = vadd.f32 %v11667_v38, %v5177_v36  ;;  %v7893_v23 = vpop.f32.mrb[193].mxu1 }
 0x61d   :  { %v5180_v52 = vpop.f32.mrb[194].mxu1 }
 0x61e   :  { %v11726_v44 = vadd.f32 %v11667_v38, %v5180_v52  ;;  %5234 = vadd.xlane.f32.xlu0 %v11723_v10  ;;  %v7894_v24 = vpop.f32.mrb[195].mxu1  ;;  %v4548_v52 = vadd.f32 %v4546_v0, %v4542_v39 }
 0x620   :  { %5236 = vadd.xlane.f32.xlu1 %v11726_v44 }
 0x623   :  { %v5185_v35 = vpop.f32.mrb[196].mxu1 }
 0x624   :  { %v11731_v13 = vadd.f32 %v11667_v38, %v5185_v35  ;;  %v7897_v12 = vpop.f32.mrb[197].mxu1 }
 0x625   :  { %v5188_v56 = vpop.f32.mrb[198].mxu1  ;;  %v4554_v12 = vadd.f32 %v4552_v31, %v4548_v52 }
 0x626   :  { %v11734_v4 = vadd.f32 %v11667_v38, %v5188_v56  ;;  %5240 = vadd.xlane.f32.xlu0 %v11731_v13  ;;  %v7898_v16 = vpop.f32.mrb[199].mxu1 }
 0x627   :  { %v4562_v23 = vpop.xlane.xlu0 %4561 }
 0x628   :  { %5242 = vadd.xlane.f32.xlu1 %v11734_v4 }
 0x629   :  { %v4564_v35 = vpop.xlane.xlu1 %4563 }
 0x62b   :  { %v5193_v26 = vpop.f32.mrb[200].mxu1 }
 0x62c   :  { %v11739_v47 = vadd.f32 %v11667_v38, %v5193_v26  ;;  %v7901_v58 = vpop.f32.mrb[201].mxu1  ;;  %v4560_v26 = vadd.f32 %v4558_v59, %v4554_v12 }
 0x62d   :  { %v5196_v5 = vpop.f32.mrb[202].mxu1 }
 0x62e   :  { %13010 = vst [vmem:[#allocation37_spill] sm:$0xff] %v11739_v47  ;;  %v11742_v11 = vadd.f32 %v11667_v38, %v5196_v5  ;;  %5246 = vadd.xlane.f32.xlu0 %v11739_v47  ;;  %v7902_v6 = vpop.f32.mrb[203].mxu1  ;;  %v4541_v38 = vadd.f32 %v4538_v55, %v4535_v33 }
 0x62f   :  { %v4566_v6 = vadd.f32 %v4564_v35, %v4560_v26 }
 0x630   :  { %13011 = vst [vmem:[#allocation38_spill] sm:$0xff] %v11742_v11  ;;  %5248 = vadd.xlane.f32.xlu1 %v11742_v11  ;;  %v4547_v36 = vadd.f32 %v4544_v62, %v4541_v38 }
 0x632   :  { %v4553_v24 = vadd.f32 %v4550_v19, %v4547_v36 }
 0x634   :  { %v4559_v56 = vadd.f32 %v4556_v34, %v4553_v24 }
 0x636   :  { %v4565_v58 = vadd.f32 %v4562_v23, %v4559_v56 }
 0x657   :  { %v4568_v16 = vpop.xlane.xlu0 %4567 }
 0x658   :  { %v4571_v47 = vadd.f32 %v4568_v16, %v4565_v58 }
 0x659   :  { %v4570_v5 = vpop.xlane.xlu1 %4569 }
 0x65a   :  { %v4572_v1 = vadd.f32 %v4570_v5, %v4566_v6 }
 0x677   :  { %v4574_v11 = vpop.xlane.xlu0 %4573 }
 0x678   :  { %v4577_v15 = vadd.f32 %v4574_v11, %v4571_v47 }
 0x679   :  { %v4576_v3 = vpop.xlane.xlu1 %4575 }
 0x67a   :  { %v4579_v40 = vmul.f32 0.00086805556, %v4577_v15  ;;  %v4578_v55 = vadd.f32 %v4576_v3, %v4572_v1 }
 0x67c   :  { %v4580_v30 = vmul.f32 0.00086805556, %v4578_v55  ;;  %v11747_v62 = vsub.f32 %v11087_v60, %v4579_v40  ;;  %v11750_v0 = vsub.f32 %v11329_v14, %v4579_v40  ;;  %v11757_v33 = vsub.f32 %v11443_v63, %v4579_v40 }
 0x67d   :  { %v11767_v11 = vsub.f32 %v11506_v21, %v4579_v40  ;;  %v11777_v25 = vsub.f32 %v11593_v46, %v4579_v40  ;;  %v11787_v59 = vsub.f32 %v11624_v43, %v4579_v40  ;;  %v11797_v36 = vsub.f32 %v11636_v9, %v4579_v40 }
 0x67e   :  { %v4599_v19 = vmul.f32 %v11747_v62, %v11747_v62  ;;  %v4605_v31 = vmul.f32 %v11750_v0, %v11750_v0  ;;  %v11760_v47 = vsub.f32 %v11338_v8, %v4580_v30  ;;  %v4613_v60 = vmul.f32 %v11757_v33, %v11757_v33 }
 0x67f   :  { %v11770_v34 = vsub.f32 %v11447_v48, %v4580_v30  ;;  %v4621_v8 = vmul.f32 %v11767_v11, %v11767_v11  ;;  %v11780_v38 = vsub.f32 %v11510_v29, %v4580_v30  ;;  %v4629_v48 = vmul.f32 %v11777_v25, %v11777_v25 }
 0x680   :  { %4601 = vadd.xlane.f32.xlu0 %v4599_v19  ;;  %4607 = vadd.xlane.f32.xlu1 %v4605_v31  ;;  %v4606_v14 = vmul.f32 %v11760_v47, %v11760_v47  ;;  %v11790_v39 = vsub.f32 %v11599_v20, %v4580_v30  ;;  %v4637_v29 = vmul.f32 %v11787_v59, %v11787_v59 }
 0x681   :  { %v4614_v63 = vmul.f32 %v11770_v34, %v11770_v34  ;;  %v4622_v21 = vmul.f32 %v11780_v38, %v11780_v38  ;;  %v11800_v23 = vsub.f32 %v11628_v51, %v4580_v30  ;;  %v4645_v20 = vmul.f32 %v11797_v36, %v11797_v36 }
 0x682   :  { %v4630_v46 = vmul.f32 %v11790_v39, %v11790_v39  ;;  %v11807_v52 = vsub.f32 %v11104_v41, %v4580_v30  ;;  %v11810_v24 = vsub.f32 %v11640_v27, %v4580_v30  ;;  %v11817_v35 = vsub.f32 %v11650_v45, %v4579_v40  ;;  %v5201_v41 = vpop.xlane.xlu0 %5200 }
 0x683   :  { %v4638_v43 = vmul.f32 %v11800_v23, %v11800_v23  ;;  %v11820_v12 = vsub.f32 %v11654_v7, %v4580_v30  ;;  %v11827_v16 = vsub.f32 %v11662_v53, %v4579_v40  ;;  %v11830_v26 = vsub.f32 %v11671_v18, %v4580_v30  ;;  %v5205_v45 = vpop.xlane.xlu1 %5204 }
 0x684   :  { %4615 = vadd.xlane.f32.xlu0 %v4613_v60  ;;  %4609 = vadd.xlane.f32.xlu1 %v4606_v14  ;;  %v4600_v51 = vmul.f32 %v11807_v52, %v11807_v52  ;;  %v4646_v9 = vmul.f32 %v11810_v24, %v11810_v24  ;;  %v4653_v27 = vmul.f32 %v11817_v35, %v11817_v35 }
 0x685   :  { %v4654_v56 = vmul.f32 %v11820_v12, %v11820_v12  ;;  %v4661_v7 = vmul.f32 %v11827_v16, %v11827_v16  ;;  %v4662_v58 = vmul.f32 %v11830_v26, %v11830_v26  ;;  %v5208_v55 = vadd.f32 %v5205_v45, %v5201_v41 }
 0x686   :  { %v5203_v5 = vpop.xlane.xlu0 %5202 }
 0x687   :  { %v5207_v6 = vpop.xlane.xlu1 %5206 }
 0x688   :  { %4623 = vadd.xlane.f32.xlu0 %v4621_v8  ;;  %4617 = vadd.xlane.f32.xlu1 %v4614_v63  ;;  %v5209_v19 = vadd.f32 %v5207_v6, %v5203_v5 }
 0x68b   :  { %v5211_v1 = vpop.xlane.xlu0 %5210 }
 0x68c   :  { %4631 = vadd.xlane.f32.xlu0 %v4629_v48  ;;  %4625 = vadd.xlane.f32.xlu1 %v4622_v21  ;;  %v5214_v31 = vadd.f32 %v5211_v1, %v5208_v55 }
 0x68d   :  { %v5213_v15 = vpop.xlane.xlu1 %5212 }
 0x68e   :  { %v5215_v14 = vadd.f32 %v5213_v15, %v5209_v19 }
 0x690   :  { %4639 = vadd.xlane.f32.xlu0 %v4637_v29  ;;  %4633 = vadd.xlane.f32.xlu1 %v4630_v46 }
 0x693   :  { %v5217_v53 = vpop.xlane.xlu0 %5216 }
 0x694   :  { %4647 = vadd.xlane.f32.xlu0 %v4645_v20  ;;  %4641 = vadd.xlane.f32.xlu1 %v4638_v43  ;;  %v5220_v8 = vadd.f32 %v5217_v53, %v5214_v31 }
 0x695   :  { %v5219_v3 = vpop.xlane.xlu1 %5218 }
 0x696   :  { %v5221_v48 = vadd.f32 %v5219_v3, %v5215_v14 }
 0x698   :  { %4603 = vadd.xlane.f32.xlu0 %v4600_v51  ;;  %4649 = vadd.xlane.f32.xlu1 %v4646_v9 }
 0x69b   :  { %v5223_v40 = vpop.xlane.xlu0 %5222 }
 0x69c   :  { %4655 = vadd.xlane.f32.xlu0 %v4653_v27  ;;  %4657 = vadd.xlane.f32.xlu1 %v4654_v56  ;;  %v5226_v21 = vadd.f32 %v5223_v40, %v5220_v8 }
 0x69d   :  { %v5225_v18 = vpop.xlane.xlu1 %5224 }
 0x69e   :  { %v5227_v46 = vadd.f32 %v5225_v18, %v5221_v48 }
 0x6a0   :  { %4663 = vadd.xlane.f32.xlu0 %v4661_v7  ;;  %4665 = vadd.xlane.f32.xlu1 %v4662_v58 }
 0x6a3   :  { %v5229_v30 = vpop.xlane.xlu0 %5228 }
 0x6a4   :  { %v5232_v20 = vadd.f32 %v5229_v30, %v5226_v21 }
 0x6a5   :  { %v5231_v60 = vpop.xlane.xlu1 %5230 }
 0x6a6   :  { %v5233_v51 = vadd.f32 %v5231_v60, %v5227_v46 }
 0x6ab   :  { %v5235_v63 = vpop.xlane.xlu0 %5234 }
 0x6ac   :  { %v5238_v9 = vadd.f32 %v5235_v63, %v5232_v20 }
 0x6ad   :  { %v5237_v29 = vpop.xlane.xlu1 %5236 }
 0x6ae   :  { %v5239_v56 = vadd.f32 %v5237_v29, %v5233_v51  ;;  %v13017_v51 = vld [vmem:[#allocation38_spill] sm:$0xff] }
 0x6b3   :  { %v5241_v43 = vpop.xlane.xlu0 %5240 }
 0x6b4   :  { %v5244_v7 = vadd.f32 %v5241_v43, %v5238_v9 }
 0x6b5   :  { %v5243_v27 = vpop.xlane.xlu1 %5242 }
 0x6b6   :  { %v5245_v41 = vadd.f32 %v5243_v27, %v5239_v56  ;;  %v13019_v27 = vld [vmem:[#allocation37_spill] sm:$0xff] }
 0x6bb   :  { %v5247_v58 = vpop.xlane.xlu0 %5246 }
 0x6bc   :  { %v5250_v45 = vadd.f32 %v5247_v58, %v5244_v7  ;;  %v5544_v7 = vld [vmem:[%s12753_s5] sm:$0xff]  ;;  %v5545_v58 = vld [vmem:[%s12753_s5 + $0x8] sm:$0xff] }
 0x6bd   :  { %v5249_v5 = vpop.xlane.xlu1 %5248 }
 0x6be   :  { %v5252_v6 = vmul.f32 0.00086805556, %v5250_v45  ;;  %v5251_v1 = vadd.f32 %v5249_v5, %v5245_v41  ;;  %v5560_v41 = vld [vmem:[%s12753_s5 + $0x80] sm:$0xff]  ;;  %v8250_v45 = vpack.c.bf16 %v5545_v58, %v5544_v7  ;;  %v5561_v5 = vld [vmem:[%s12753_s5 + $0x88] sm:$0xff] }
 0x6c0   :  { %v5253_v15 = vmul.f32 0.00086805556, %v5251_v1  ;;  %v11837_v53 = vsub.f32 %v11674_v2, %v5252_v6  ;;  %v11840_v3 = vsub.f32 %v11683_v61, %v5252_v6  ;;  %v11847_v55 = vsub.f32 %v11691_v28, %v5252_v6  ;;  %v5546_v1 = vld [vmem:[%s12753_s5 + $0x10] sm:$0xff]  ;;  %8251 = vmatprep.subr.bf16.mxu0 %v8250_v45 }
 0x6c1   :  { %v11857_v19 = vsub.f32 %v11699_v37, %v5252_v6  ;;  %v11867_v60 = vsub.f32 %v11707_v22, %v5252_v6  ;;  %v11890_v21 = vsub.f32 %v11715_v50, %v5252_v6  ;;  %v11900_v46 = vsub.f32 %v11723_v10, %v5252_v6  ;;  %8253 = vmatpush3.bf16.msra.mxu0 %v8250_v45  ;;  %v5555_v45 = vld [vmem:[%s12753_s5 + $0x58] sm:$0xff] }
 0x6c2   :  { %v5272_v40 = vmul.f32 %v11837_v53, %v11837_v53  ;;  %v5278_v18 = vmul.f32 %v11840_v3, %v11840_v3  ;;  %v11850_v30 = vsub.f32 %v11687_v42, %v5253_v15  ;;  %v5286_v2 = vmul.f32 %v11847_v55, %v11847_v55 }
 0x6c3   :  { %13012 = vst [vmem:[#allocation42_spill] sm:$0xff] %v11857_v19  ;;  %v11860_v31 = vsub.f32 %v11694_v49, %v5253_v15  ;;  %v5294_v42 = vmul.f32 %v11857_v19, %v11857_v19  ;;  %v11870_v14 = vsub.f32 %v11702_v17, %v5253_v15  ;;  %v5302_v49 = vmul.f32 %v11867_v60, %v11867_v60 }
 0x6c4   :  { %5274 = vadd.xlane.f32.xlu0 %v5272_v40  ;;  %5280 = vadd.xlane.f32.xlu1 %v5278_v18  ;;  %v5279_v61 = vmul.f32 %v11850_v30, %v11850_v30  ;;  %v11877_v8 = vsub.f32 %v11710_v54, %v5253_v15  ;;  %v11880_v63 = vsub.f32 %v11679_v32, %v5253_v15  ;;  %v5562_v40 = vld [vmem:[%s12753_s5 + $0x90] sm:$0xff] }
 0x6c5   :  { %13013 = vst [vmem:[#allocation33_spill] sm:$0xff] %v11860_v31  ;;  %v5287_v28 = vmul.f32 %v11860_v31, %v11860_v31  ;;  %v5295_v37 = vmul.f32 %v11870_v14, %v11870_v14  ;;  %v11887_v48 = vsub.f32 %v11718_v57, %v5253_v15  ;;  %v5310_v54 = vmul.f32 %v11890_v21, %v11890_v21 }
 0x6c6   :  { %v5303_v17 = vmul.f32 %v11877_v8, %v11877_v8  ;;  %v5273_v22 = vmul.f32 %v11880_v63, %v11880_v63  ;;  %v11897_v29 = vsub.f32 %v11726_v44, %v5253_v15  ;;  %v5318_v57 = vmul.f32 %v11900_v46, %v11900_v46 }
 0x6c7   :  { %v5311_v32 = vmul.f32 %v11887_v48, %v11887_v48  ;;  %v11907_v20 = vsub.f32 %v11734_v4, %v5253_v15  ;;  %v11910_v43 = vsub.f32 %v11731_v13, %v5252_v6  ;;  %v11917_v9 = vsub.f32 %v13017_v51, %v5253_v15  ;;  %v5547_v15 = vld [vmem:[%s12753_s5 + $0x18] sm:$0xff] }
 0x6c8   :  { %5288 = vadd.xlane.f32.xlu0 %v5286_v2  ;;  %5282 = vadd.xlane.f32.xlu1 %v5279_v61  ;;  %13014 = vst [vmem:[#allocation41_spill] sm:$0xff] %v11897_v29  ;;  %v5319_v50 = vmul.f32 %v11897_v29, %v11897_v29  ;;  %v11920_v56 = vsub.f32 %v13019_v27, %v5252_v6  ;;  %v5563_v2 = vld [vmem:[%s12753_s5 + $0x98] sm:$0xff]  ;;  %v5553_v27 = vld [vmem:[%s12753_s5 + $0x48] sm:$0xff] }
 0x6c9   :  { %13015 = vst [vmem:[#allocation35_spill] sm:$0xff] %v11907_v20  ;;  %13016 = vst [vmem:[#allocation21_spill] sm:$0xff] %v11910_v43  ;;  %v5327_v10 = vmul.f32 %v11907_v20, %v11907_v20  ;;  %v5326_v44 = vmul.f32 %v11910_v43, %v11910_v43  ;;  %v5335_v13 = vmul.f32 %v11917_v9, %v11917_v9 }
 0x6ca   :  { %13018 = vst [vmem:[#allocation22_spill] sm:$0xff] %v11917_v9  ;;  %13020 = vst [vmem:[#allocation8_spill] sm:$0xff] %v11920_v56  ;;  %v5334_v4 = vmul.f32 %v11920_v56, %v11920_v56  ;;  %v8218_v6 = vpack.c.bf16 %v5561_v5, %v5560_v41  ;;  %v8254_v18 = vpack.c.bf16 %v5547_v15, %v5546_v1  ;;  %v5554_v41 = vld [vmem:[%s12753_s5 + $0x50] sm:$0xff] }
 0x6cb   :  { %v8222_v61 = vpack.c.bf16 %v5563_v2, %v5562_v40  ;;  %v5570_v5 = vld [vmem:[%s12753_s5 + $0xd0] sm:$0xff]  ;;  %v8270_v1 = vpack.c.bf16 %v5555_v45, %v5554_v41  ;;  %v5556_v40 = vld [vmem:[%s12753_s5 + $0x60] sm:$0xff] }
 0x6cc   :  { %5296 = vadd.xlane.f32.xlu0 %v5294_v42  ;;  %5290 = vadd.xlane.f32.xlu1 %v5287_v28  ;;  %v5548_v42 = vld [vmem:[%s12753_s5 + $0x20] sm:$0xff]  ;;  %v5549_v28 = vld [vmem:[%s12753_s5 + $0x28] sm:$0xff] }
 0x6cd   :  { %8219 = vmatprep.subr.bf16.mxu1 %v8218_v6  ;;  %8255 = vmatprep.subr.bf16.mxu0 %v8254_v18  ;;  %v5572_v2 = vld [vmem:[%s12753_s5 + $0xe0] sm:$0xff] }
 0x6ce   :  { %8221 = vmatpush3.bf16.msra.mxu1 %v8218_v6  ;;  %8257 = vmatpush3.bf16.msra.mxu0 %v8254_v18  ;;  %v5571_v6 = vld [vmem:[%s12753_s5 + $0xd8] sm:$0xff]  ;;  %v5557_v18 = vld [vmem:[%s12753_s5 + $0x68] sm:$0xff] }
 0x6cf   :  { %8223 = vmatprep.subr.bf16.mxu1 %v8222_v61  ;;  %v8238_v15 = vpack.c.bf16 %v5571_v6, %v5570_v5 }
 0x6d0   :  { %5304 = vadd.xlane.f32.xlu0 %v5302_v49  ;;  %5298 = vadd.xlane.f32.xlu1 %v5295_v37  ;;  %v5564_v49 = vld [vmem:[%s12753_s5 + $0xa0] sm:$0xff]  ;;  %v8258_v37 = vpack.c.bf16 %v5549_v28, %v5548_v42  ;;  %v8274_v42 = vpack.c.bf16 %v5557_v18, %v5556_v40 }
 0x6d2   :  { %8225 = vmatpush3.bf16.msra.mxu1 %v8222_v61  ;;  %8259 = vmatprep.subr.bf16.mxu0 %v8258_v37  ;;  %v5573_v61 = vld [vmem:[%s12753_s5 + $0xe8] sm:$0xff] }
 0x6d3   :  { %8261 = vmatpush3.bf16.msra.mxu0 %v8258_v37  ;;  %v8242_v28 = vpack.c.bf16 %v5573_v61, %v5572_v2  ;;  %v5559_v37 = vld [vmem:[%s12753_s5 + $0x78] sm:$0xff] }
 0x6d4   :  { %5306 = vadd.xlane.f32.xlu1 %v5303_v17  ;;  %5276 = vadd.xlane.f32.xlu0 %v5273_v22  ;;  %v5565_v17 = vld [vmem:[%s12753_s5 + $0xa8] sm:$0xff]  ;;  %v5550_v22 = vld [vmem:[%s12753_s5 + $0x30] sm:$0xff] }
 0x6d8   :  { %5314 = vadd.xlane.f32.xlu1 %v5311_v32  ;;  %5312 = vadd.xlane.f32.xlu0 %v5310_v54  ;;  %v5551_v32 = vld [vmem:[%s12753_s5 + $0x38] sm:$0xff]  ;;  %v8226_v54 = vpack.c.bf16 %v5565_v17, %v5564_v49  ;;  %v5558_v49 = vld [vmem:[%s12753_s5 + $0x70] sm:$0xff] }
 0x6d9   :  { %v5574_v17 = vld [vmem:[%s12753_s5 + $0xf0] sm:$0xff] }
 0x6da   :  { %8227 = vmatprep.subr.bf16.mxu1 %v8226_v54 }
 0x6db   :  { %8229 = vmatpush3.bf16.msra.mxu1 %v8226_v54 }
 0x6dc   :  { %5322 = vadd.xlane.f32.xlu1 %v5319_v50  ;;  %5320 = vadd.xlane.f32.xlu0 %v5318_v57  ;;  %v8262_v50 = vpack.c.bf16 %v5551_v32, %v5550_v22  ;;  %v5566_v57 = vld [vmem:[%s12753_s5 + $0xb0] sm:$0xff]  ;;  %v5575_v22 = vld [vmem:[%s12753_s5 + $0xf8] sm:$0xff]  ;;  %v8278_v32 = vpack.c.bf16 %v5559_v37, %v5558_v49 }
 0x6dd   :  { %v8246_v54 = vpack.c.bf16 %v5575_v22, %v5574_v17 }
 0x6de   :  { %8263 = vmatprep.subr.bf16.mxu0 %v8262_v50 }
 0x6df   :  { %8265 = vmatpush3.bf16.msra.mxu0 %v8262_v50  ;;  %v5576_v50 = vld [vmem:[%s12753_s5 + $0x100] sm:$0xff] }
 0x6e0   :  { %5330 = vadd.xlane.f32.xlu1 %v5327_v10  ;;  %5328 = vadd.xlane.f32.xlu0 %v5326_v44  ;;  %v5567_v10 = vld [vmem:[%s12753_s5 + $0xb8] sm:$0xff]  ;;  %v5552_v44 = vld [vmem:[%s12753_s5 + $0x40] sm:$0xff] }
 0x6e1   :  { %v8230_v51 = vpack.c.bf16 %v5567_v10, %v5566_v57  ;;  %v8266_v7 = vpack.c.bf16 %v5553_v27, %v5552_v44  ;;  %v5577_v57 = vld [vmem:[%s12753_s5 + $0x108] sm:$0xff] }
 0x6e3   :  { %8231 = vmatprep.subr.bf16.mxu1 %v8230_v51  ;;  %8267 = vmatprep.subr.bf16.mxu0 %v8266_v7 }
 0x6e4   :  { %5338 = vadd.xlane.f32.xlu1 %v5335_v13  ;;  %5336 = vadd.xlane.f32.xlu0 %v5334_v4  ;;  %v5568_v13 = vld [vmem:[%s12753_s5 + $0xc0] sm:$0xff]  ;;  %v5569_v4 = vld [vmem:[%s12753_s5 + $0xc8] sm:$0xff] }
 0x6e5   :  { %v8234_v58 = vpack.c.bf16 %v5569_v4, %v5568_v13  ;;  %8233 = vmatpush3.bf16.msra.mxu1 %v8230_v51  ;;  %8269 = vmatpush3.bf16.msra.mxu0 %v8266_v7  ;;  %v12028_v51 = vpack.c.bf16 %v5577_v57, %v5576_v50 }
 0x6e6   :  { %8271 = vmatprep.subr.bf16.mxu0 %v8270_v1 }
 0x6e7   :  { %8235 = vmatprep.subr.bf16.mxu1 %v8234_v58  ;;  %13021 = vst [vmem:[#allocation7_spill] sm:$0xff] %v12028_v51 }
 0x6e9   :  { %8237 = vmatpush3.bf16.msra.mxu1 %v8234_v58  ;;  %8273 = vmatpush3.bf16.msra.mxu0 %v8270_v1 }
 0x6ea   :  { %8239 = vmatprep.subr.bf16.mxu1 %v8238_v15  ;;  %8275 = vmatprep.subr.bf16.mxu0 %v8274_v42 }
 0x6ed   :  { %8241 = vmatpush3.bf16.msra.mxu1 %v8238_v15  ;;  %8277 = vmatpush3.bf16.msra.mxu0 %v8274_v42 }
 0x6ee   :  { %8243 = vmatprep.subr.bf16.mxu1 %v8242_v28  ;;  %8279 = vmatprep.subr.bf16.mxu0 %v8278_v32 }
 0x6f1   :  { %8245 = vmatpush3.bf16.msra.mxu1 %v8242_v28  ;;  %8281 = vmatpush3.bf16.msra.mxu0 %v8278_v32 }
 0x6f2   :  { %8247 = vmatprep.subr.bf16.mxu1 %v8246_v54  ;;  %8283 = vmatprep.subr.bf16.mxu0 %v12028_v51 }
 0x6f5   :  { %8249 = vmatpush3.bf16.msra.mxu1 %v8246_v54 }
 0x70d   :  { %v4602_v10 = vpop.xlane.xlu0 %4601  ;;  %v4608_v44 = vpop.xlane.xlu1 %4607 }
 0x70e   :  { %v4611_v6 = vadd.f32 %v4608_v44, %v4602_v10 }
 0x711   :  { %v4616_v27 = vpop.xlane.xlu0 %4615  ;;  %v4610_v13 = vpop.xlane.xlu1 %4609 }
 0x712   :  { %v4619_v40 = vadd.f32 %v4616_v27, %v4611_v6 }
 0x715   :  { %v4624_v4 = vpop.xlane.xlu0 %4623  ;;  %v4618_v7 = vpop.xlane.xlu1 %4617 }
 0x716   :  { %v4627_v18 = vadd.f32 %v4624_v4, %v4619_v40 }
 0x719   :  { %v4632_v58 = vpop.xlane.xlu0 %4631  ;;  %v4626_v41 = vpop.xlane.xlu1 %4625 }
 0x71a   :  { %v4635_v61 = vadd.f32 %v4632_v58, %v4627_v18 }
 0x71d   :  { %v4640_v45 = vpop.xlane.xlu0 %4639  ;;  %v4634_v5 = vpop.xlane.xlu1 %4633 }
 0x71e   :  { %v4643_v49 = vadd.f32 %v4640_v45, %v4635_v61  ;;  %v6768_v45 = vld [vmem:[%s12756_s8 + $0x1] ss:$0 sm:$0xff] }
 0x721   :  { %v4648_v1 = vpop.xlane.xlu0 %4647  ;;  %v4642_v15 = vpop.xlane.xlu1 %4641 }
 0x722   :  { %v4651_v22 = vadd.f32 %v4648_v1, %v4643_v49  ;;  %v6770_v1 = vld [vmem:[%s12757_s9 + $0x1] ss:$0 sm:$0xff] }
 0x725   :  { %v4604_v2 = vpop.xlane.xlu0 %4603  ;;  %v4650_v28 = vpop.xlane.xlu1 %4649 }
 0x726   :  { %v4612_v42 = vadd.f32 %v4610_v13, %v4604_v2  ;;  %v12066_v2 = vld [vmem:[%s12757_s9 + $0x2] ss:$0 sm:$0xff] }
 0x728   :  { %v4620_v37 = vadd.f32 %v4618_v7, %v4612_v42 }
 0x729   :  { %v4656_v17 = vpop.xlane.xlu0 %4655  ;;  %v4658_v57 = vpop.xlane.xlu1 %4657 }
 0x72a   :  { %v4628_v32 = vadd.f32 %v4626_v41, %v4620_v37  ;;  %v4659_v50 = vadd.f32 %v4656_v17, %v4651_v22  ;;  %v6780_v17 = vld [vmem:[%s12756_s8 + $0x4] ss:$0 sm:$0xff] }
 0x72c   :  { %v4636_v54 = vadd.f32 %v4634_v5, %v4628_v32  ;;  %v12086_v32 = vld [vmem:[%s12756_s8 + $0x3] ss:$0 sm:$0xff] }
 0x72d   :  { %v4664_v19 = vpop.xlane.xlu0 %4663  ;;  %v4666_v4 = vpop.xlane.xlu1 %4665 }
 0x72e   :  { %v4644_v31 = vadd.f32 %v4642_v15, %v4636_v54  ;;  %v4667_v9 = vadd.f32 %v4664_v19, %v4659_v50 }
 0x730   :  { %v4652_v10 = vadd.f32 %v4650_v28, %v4644_v31  ;;  %v4669_v44 = vmul.f32 0.00086805556, %v4667_v9  ;;  %v6765_v31 = vld [vmem:[%s12756_s8] ss:$0 sm:$0xff] }
 0x732   :  { %v4660_v56 = vadd.f32 %v4658_v57, %v4652_v10  ;;  %v4671_v27 = vadd.f32 1e-05, %v4669_v44 }
 0x734   :  { %v4668_v6 = vadd.f32 %v4666_v4, %v4660_v56  ;;  %8886 = vrsqrt.f32 %v4671_v27 }
 0x736   :  { %v4670_v58 = vmul.f32 0.00086805556, %v4668_v6  ;;  %v6782_v6 = vld [vmem:[%s12757_s9 + $0x4] ss:$0 sm:$0xff] }
 0x738   :  { %v4672_v13 = vadd.f32 1e-05, %v4670_v58 }
 0x73a   :  { %8888 = vrsqrt.f32 %v4672_v13  ;;  %v12107_v13 = vld [vmem:[%s12757_s9 + $0x3] ss:$0 sm:$0xff] }
 0x73e   :  { %v12031_v7 = vpop.eup %8886 }
 0x73f   :  { %v4695_v41 = vmul.f32 %v12031_v7, %v11750_v0  ;;  %v4675_v19 = vmul.f32 %v12031_v7, %v11747_v62  ;;  %v4717_v9 = vmul.f32 %v12031_v7, %v11757_v33  ;;  %v12050_v0 = vld [vmem:[%s12756_s8 + $0x2] ss:$0 sm:$0xff]  ;;  %v6766_v33 = vld [vmem:[%s12757_s9] ss:$0 sm:$0xff]  ;;  %v4761_v37 = vmul.f32 %v12031_v7, %v11777_v25 }
 0x741   :  { %v4705_v5 = vmul.f32 %v6768_v45, %v4695_v41  ;;  %v4684_v62 = vmul.f32 %v6765_v31, %v4675_v19  ;;  %v4727_v40 = vmul.f32 %v12050_v0, %v4717_v9  ;;  %v4771_v44 = vmul.f32 %v6780_v17, %v4761_v37 }
 0x742   :  { %v4783_v41 = vmul.f32 %v12031_v7, %v11787_v59  ;;  %v4805_v59 = vmul.f32 %v12031_v7, %v11797_v36 }
 0x743   :  { %v12068_v61 = vadd.f32 %v6770_v1, %v4705_v5  ;;  %v12070_v42 = vadd.f32 %v6766_v33, %v4684_v62  ;;  %v12075_v49 = vadd.f32 %v12066_v2, %v4727_v40  ;;  %v12120_v62 = vadd.f32 %v6782_v6, %v4771_v44 }
 0x744   :  { %v12045_v56 = vpop.eup %8888 }
 0x745   :  { %v4696_v15 = vmul.f32 %v12045_v56, %v11760_v47  ;;  %v4676_v18 = vmul.f32 %v12045_v56, %v11807_v52  ;;  %v4740_v47 = vmul.f32 %v12045_v56, %v11780_v38  ;;  %v4883_v22 = vsub.f32 0.0, %v12068_v61 }
 0x746   :  { %v4871_v50 = vsub.f32 0.0, %v12070_v42  ;;  %v4895_v10 = vsub.f32 0.0, %v12075_v49  ;;  %v4762_v4 = vmul.f32 %v12045_v56, %v11790_v39  ;;  %v6784_v39 = vld [vmem:[%s12756_s8 + $0x5] ss:$0 sm:$0xff] }
 0x747   :  { %v4706_v28 = vmul.f32 %v6768_v45, %v4696_v15  ;;  %v4685_v52 = vmul.f32 %v6765_v31, %v4676_v18  ;;  %v4750_v25 = vmul.f32 %v12086_v32, %v4740_v47  ;;  %v4885_v58 = vmul.f32 1.442695, %v4883_v22  ;;  %v6788_v18 = vld [vmem:[%s12756_s8 + $0x6] ss:$0 sm:$0xff] }
 0x748   :  { %v4873_v31 = vmul.f32 1.442695, %v4871_v50  ;;  %v4793_v40 = vmul.f32 %v6784_v39, %v4783_v41  ;;  %v4919_v22 = vsub.f32 0.0, %v12120_v62 }
 0x749   :  { %v12094_v57 = vadd.f32 %v6770_v1, %v4706_v28  ;;  %v12097_v27 = vadd.f32 %v6766_v33, %v4685_v52  ;;  %v12114_v9 = vadd.f32 %v12107_v13, %v4750_v25  ;;  %v4897_v1 = vmul.f32 1.442695, %v4895_v10 }
 0x74a   :  { %v4772_v33 = vmul.f32 %v6780_v17, %v4762_v4  ;;  %8890 = vpow2.f32 %v4885_v58  ;;  %v4784_v52 = vmul.f32 %v12045_v56, %v11800_v23  ;;  %v6786_v17 = vld [vmem:[%s12757_s9 + $0x5] ss:$0 sm:$0xff]  ;;  %v4815_v10 = vmul.f32 %v6788_v18, %v4805_v59  ;;  %v6790_v4 = vld [vmem:[%s12757_s9 + $0x6] ss:$0 sm:$0xff] }
 0x74b   :  { %v4884_v5 = vsub.f32 0.0, %v12094_v57  ;;  %v4872_v15 = vsub.f32 0.0, %v12097_v27  ;;  %8892 = vpow2.f32 %v4873_v31  ;;  %v4908_v37 = vsub.f32 0.0, %v12114_v9 }
 0x74c   :  { %8894 = vpow2.f32 %v4897_v1  ;;  %v12137_v25 = vadd.f32 %v6782_v6, %v4772_v33  ;;  %v12139_v44 = vadd.f32 %v6786_v17, %v4793_v40  ;;  %v4794_v31 = vmul.f32 %v6784_v39, %v4784_v52  ;;  %v6792_v40 = vld [vmem:[%s12756_s8 + $0x7] ss:$0 sm:$0xff] }
 0x74d   :  { %v4887_v36 = vmul.f32 1.442695, %v4884_v5  ;;  %v4875_v50 = vmul.f32 1.442695, %v4872_v15  ;;  %v4911_v41 = vmul.f32 1.442695, %v4908_v37  ;;  %v4806_v5 = vmul.f32 %v12045_v56, %v11810_v24 }
 0x74e   :  { %v4921_v1 = vmul.f32 1.442695, %v4919_v22  ;;  %v4920_v6 = vsub.f32 0.0, %v12137_v25  ;;  %v12147_v15 = vadd.f32 %v6790_v4, %v4815_v10  ;;  %v4827_v33 = vmul.f32 %v12031_v7, %v11817_v35 }
 0x74f   :  { %8896 = vpow2.f32 %v4887_v36  ;;  %v4931_v59 = vsub.f32 0.0, %v12139_v44  ;;  %v12155_v24 = vadd.f32 %v6786_v17, %v4794_v31  ;;  %v4816_v52 = vmul.f32 %v6788_v18, %v4806_v5  ;;  %v6796_v18 = vld [vmem:[%s12756_s8 + $0x8] ss:$0 sm:$0xff] }
 0x750   :  { %8898 = vpow2.f32 %v4875_v50  ;;  %13022 = vst [vmem:[#allocation34_spill] sm:$0xff] %v12147_v15  ;;  %v4828_v36 = vmul.f32 %v12045_v56, %v11820_v12  ;;  %v4849_v35 = vmul.f32 %v12031_v7, %v11827_v16  ;;  %v4923_v20 = vmul.f32 1.442695, %v4920_v6 }
 0x751   :  { %v12088_v38 = vpop.xlane.xlu0 %5274  ;;  %v12090_v54 = vpop.xlane.xlu1 %5280  ;;  %8900 = vpow2.f32 %v4911_v41  ;;  %v4943_v43 = vsub.f32 0.0, %v12147_v15  ;;  %v4837_v29 = vmul.f32 %v6792_v40, %v4827_v33  ;;  %v4850_v41 = vmul.f32 %v12045_v56, %v11830_v26  ;;  %v6794_v15 = vld [vmem:[%s12757_s9 + $0x7] ss:$0 sm:$0xff] }
 0x752   :  { %8902 = vpow2.f32 %v4921_v1  ;;  %v5284_v12 = vadd.f32 %v12090_v54, %v12088_v38  ;;  %v4718_v16 = vmul.f32 %v12045_v56, %v11770_v34  ;;  %v4933_v31 = vmul.f32 1.442695, %v4931_v59  ;;  %v6798_v59 = vld [vmem:[%s12757_s9 + $0x8] ss:$0 sm:$0xff] }
 0x753   :  { %v4932_v33 = vsub.f32 0.0, %v12155_v24  ;;  %v4838_v26 = vmul.f32 %v6792_v40, %v4828_v36  ;;  %8904 = vpow2.f32 %v4923_v20  ;;  %v4945_v34 = vmul.f32 1.442695, %v4943_v43 }
 0x754   :  { %v8891_v22 = vpop.eup %8890  ;;  %v4860_v56 = vmul.f32 %v6796_v18, %v4850_v41  ;;  %8906 = vpow2.f32 %v4933_v31  ;;  %v12182_v36 = vadd.f32 %v6794_v15, %v4837_v29 }
 0x755   :  { %v12111_v45 = vpop.xlane.xlu0 %5288  ;;  %v5283_v19 = vpop.xlane.xlu1 %5282  ;;  %v4889_v6 = vadd.f32 1.0, %v8891_v22  ;;  %v12185_v43 = vadd.f32 %v6794_v15, %v4838_v26  ;;  %v4728_v15 = vmul.f32 %v12050_v0, %v4718_v16 }
 0x756   :  { %v8893_v10 = vpop.eup %8892  ;;  %v5292_v51 = vadd.f32 %v12111_v45, %v5284_v12  ;;  %v4955_v31 = vsub.f32 0.0, %v12182_v36 }
 0x757   :  { %v8895_v17 = vpop.eup %8894  ;;  %v4877_v54 = vadd.f32 1.0, %v8893_v10  ;;  %8908 = vrcp.f32 %v4889_v6 }
 0x758   :  { %v4957_v0 = vmul.f32 1.442695, %v4955_v31 }
 0x759   :  { %v12128_v47 = vpop.xlane.xlu0 %5296  ;;  %v5291_v28 = vpop.xlane.xlu1 %5290  ;;  %8910 = vrcp.f32 %v4877_v54 }
 0x75a   :  { %v5300_v40 = vadd.f32 %v12128_v47, %v5292_v51  ;;  %v12189_v47 = vadd.f32 %v6798_v59, %v4860_v56 }
 0x75d   :  { %v5305_v58 = vpop.xlane.xlu0 %5304  ;;  %v5299_v23 = vpop.xlane.xlu1 %5298 }
 0x75e   :  { %v5308_v10 = vadd.f32 %v5305_v58, %v5300_v40 }
 0x761   :  { %v5277_v39 = vpop.xlane.xlu0 %5276  ;;  %v5307_v37 = vpop.xlane.xlu1 %5306 }
 0x762   :  { %v5285_v50 = vadd.f32 %v5283_v19, %v5277_v39  ;;  %v12172_v39 = vadd.f32 %v6790_v4, %v4816_v52  ;;  %v8897_v4 = vpop.eup %8896 }
 0x763   :  { %v8899_v22 = vpop.eup %8898  ;;  %v4890_v51 = vadd.f32 1.0, %v8897_v4 }
 0x764   :  { %v5293_v19 = vadd.f32 %v5291_v28, %v5285_v50  ;;  %v4859_v28 = vmul.f32 %v6796_v18, %v4849_v35  ;;  %v4901_v50 = vadd.f32 1.0, %v8895_v17  ;;  %v4935_v35 = vmul.f32 1.442695, %v4932_v33  ;;  %v8901_v17 = vpop.eup %8900 }
 0x765   :  { %v5313_v5 = vpop.xlane.xlu0 %5312  ;;  %v5315_v1 = vpop.xlane.xlu1 %5314  ;;  %v4944_v20 = vsub.f32 0.0, %v12172_v39 }
 0x766   :  { %v5301_v38 = vadd.f32 %v5299_v23, %v5293_v19  ;;  %v12187_v18 = vadd.f32 %v6798_v59, %v4859_v28  ;;  %8912 = vrcp.f32 %v4901_v50  ;;  %v8903_v29 = vpop.eup %8902  ;;  %v4878_v19 = vadd.f32 1.0, %v8899_v22 }
 0x767   :  { %8914 = vpow2.f32 %v4935_v35  ;;  %v4947_v58 = vmul.f32 1.442695, %v4944_v20  ;;  %v4925_v28 = vadd.f32 1.0, %v8903_v29  ;;  %v4968_v50 = vsub.f32 0.0, %v12189_v47  ;;  %v8905_v16 = vpop.eup %8904 }
 0x768   :  { %v5309_v52 = vadd.f32 %v5307_v37, %v5301_v38  ;;  %v5316_v37 = vadd.f32 %v5313_v5, %v5308_v10  ;;  %v4914_v38 = vadd.f32 1.0, %v8901_v17  ;;  %8916 = vpow2.f32 %v4945_v34  ;;  %v8907_v22 = vpop.eup %8906 }
 0x769   :  { %v5321_v45 = vpop.xlane.xlu0 %5320  ;;  %v5323_v23 = vpop.xlane.xlu1 %5322  ;;  %v4967_v54 = vsub.f32 0.0, %v12187_v18  ;;  %8918 = vrcp.f32 %v4890_v51  ;;  %v4739_v5 = vmul.f32 %v12031_v7, %v11767_v11  ;;  %v4971_v35 = vmul.f32 1.442695, %v4968_v50  ;;  %v5583_v50 = vld [vmem:[%s12753_s5 + $0x138] sm:$0xff] }
 0x76a   :  { %v5317_v41 = vadd.f32 %v5315_v1, %v5309_v52  ;;  %v4956_v1 = vsub.f32 0.0, %v12185_v43  ;;  %v5324_v26 = vadd.f32 %v5321_v45, %v5316_v37  ;;  %8920 = vrcp.f32 %v4878_v19  ;;  %v8909_v7 = vpop.eup %8908 }
 0x76b   :  { %v12199_v52 = vadd.f32 %v12066_v2, %v4728_v15  ;;  %8922 = vpow2.f32 %v4947_v58  ;;  %v4969_v11 = vmul.f32 1.442695, %v4967_v54  ;;  %v8911_v20 = vpop.eup %8910  ;;  %v4749_v17 = vmul.f32 %v12086_v32, %v4739_v5  ;;  %v5581_v5 = vld [vmem:[%s12753_s5 + $0x128] sm:$0xff] }
 0x76c   :  { %v5325_v12 = vadd.f32 %v5323_v23, %v5317_v41  ;;  %v4959_v34 = vmul.f32 1.442695, %v4956_v1  ;;  %8924 = vrcp.f32 %v4914_v38  ;;  %v5578_v1 = vld [vmem:[%s12753_s5 + $0x110] sm:$0xff]  ;;  %v5580_v38 = vld [vmem:[%s12753_s5 + $0x120] sm:$0xff] }
 0x76d   :  { %v5329_v6 = vpop.xlane.xlu0 %5328  ;;  %v5331_v33 = vpop.xlane.xlu1 %5330  ;;  %8926 = vrcp.f32 %v4925_v28  ;;  %v4896_v37 = vsub.f32 0.0, %v12199_v52  ;;  %v12204_v31 = vadd.f32 %v12107_v13, %v4749_v17  ;;  %v4937_v13 = vadd.f32 1.0, %v8907_v22  ;;  %v5582_v28 = vld [vmem:[%s12753_s5 + $0x130] sm:$0xff] }
 0x76e   :  { %v5332_v56 = vadd.f32 %v5329_v6, %v5324_v26  ;;  %v5333_v59 = vadd.f32 %v5331_v33, %v5325_v12  ;;  %8928 = vpow2.f32 %v4957_v0  ;;  %v4926_v6 = vadd.f32 1.0, %v8905_v16  ;;  %v5579_v26 = vld [vmem:[%s12753_s5 + $0x118] sm:$0xff] }
 0x76f   :  { %8930 = vpow2.f32 %v4959_v34  ;;  %v4899_v32 = vmul.f32 1.442695, %v4896_v37  ;;  %v12225_v22 = vpack.c.bf16 %v5579_v26, %v5578_v1 }
 0x770   :  { %v8913_v51 = vpop.eup %8912  ;;  %8932 = vpow2.f32 %v4969_v11 }
 0x771   :  { %v5337_v4 = vpop.xlane.xlu0 %5336  ;;  %v5339_v40 = vpop.xlane.xlu1 %5338  ;;  %8934 = vpow2.f32 %v4971_v35  ;;  %v4893_v35 = vmul.f32 %v8909_v7, %v12068_v61  ;;  %v6820_v61 = vld [vmem:[%s12758_s10] ss:$0 sm:$0xff] }
 0x772   :  { %v5340_v45 = vadd.f32 %v5337_v4, %v5332_v56  ;;  %v5341_v23 = vadd.f32 %v5339_v40, %v5333_v59  ;;  %v8915_v12 = vpop.eup %8914  ;;  %v4907_v56 = vsub.f32 0.0, %v12204_v31 }
 0x773   :  { %v8917_v19 = vpop.eup %8916  ;;  %v4938_v59 = vadd.f32 1.0, %v8915_v12  ;;  %v4905_v12 = vmul.f32 %v8913_v51, %v12075_v49  ;;  %v6825_v51 = vld [vmem:[%s12759_s11 + $0x1] ss:$0 sm:$0xff] }
 0x774   :  { %v5342_v10 = vmul.f32 0.00086805556, %v5340_v45  ;;  %v5343_v41 = vmul.f32 0.00086805556, %v5341_v23  ;;  %v8919_v33 = vpop.eup %8918  ;;  %v4949_v16 = vadd.f32 1.0, %v8917_v19  ;;  %v12227_v45 = vpack.c.bf16 %v5581_v5, %v5580_v38 }
 0x775   :  { %v8921_v15 = vpop.eup %8920  ;;  %v12229_v23 = vpack.c.bf16 %v5583_v50, %v5582_v28 }
 0x776   :  { %v5344_v2 = vadd.f32 1e-05, %v5342_v10  ;;  %v5345_v29 = vadd.f32 1e-05, %v5343_v41  ;;  %v8923_v58 = vpop.eup %8922  ;;  %v4881_v10 = vmul.f32 %v8911_v20, %v12070_v42  ;;  %v4909_v41 = vmul.f32 1.442695, %v4907_v56 }
 0x777   :  { %v8925_v54 = vpop.eup %8924  ;;  %v4950_v40 = vadd.f32 1.0, %v8923_v58  ;;  %v4882_v37 = vmul.f32 %v8921_v15, %v12097_v27  ;;  %v12247_v42 = vld [vmem:[%s12758_s10 + $0x2] ss:$0 sm:$0xff] }
 0x778   :  { %8936 = vrsqrt.f32 %v5344_v2  ;;  %v8927_v0 = vpop.eup %8926  ;;  %v4894_v2 = vmul.f32 %v8919_v33, %v12094_v57  ;;  %v4918_v57 = vmul.f32 %v8925_v54, %v12114_v9 }
 0x779   :  { %8938 = vrsqrt.f32 %v5345_v29  ;;  %v8929_v4 = vpop.eup %8928  ;;  %v6823_v29 = vld [vmem:[%s12758_s10 + $0x1] ss:$0 sm:$0xff]  ;;  %v12251_v7 = vmul.f32 %v8927_v0, %v12120_v62  ;;  %v12267_v62 = vld [vmem:[%s12758_s10 + $0x3] ss:$0 sm:$0xff] }
 0x77a   :  { %8940 = vrcp.f32 %v4926_v6  ;;  %v8931_v34 = vpop.eup %8930  ;;  %v4961_v27 = vadd.f32 1.0, %v8929_v4 }
 0x77b   :  { %8942 = vpow2.f32 %v4899_v32  ;;  %v8933_v11 = vpop.eup %8932  ;;  %v4962_v33 = vadd.f32 1.0, %v8931_v34  ;;  %v6821_v32 = vld [vmem:[%s12759_s11] ss:$0 sm:$0xff] }
 0x77c   :  { %8944 = vrcp.f32 %v4937_v13  ;;  %v8935_v17 = vpop.eup %8934  ;;  %v4973_v58 = vadd.f32 1.0, %v8933_v11 }
 0x77d   :  { %8946 = vrcp.f32 %v4938_v59  ;;  %v4974_v38 = vadd.f32 1.0, %v8935_v17 }
 0x77e   :  { %8948 = vrcp.f32 %v4949_v16 }
 0x77f   :  { %8950 = vrcp.f32 %v4950_v40 }
 0x780   :  { %8952 = vrcp.f32 %v4961_v27 }
 0x781   :  { %8954 = vrcp.f32 %v4962_v33 }
 0x782   :  { %v12239_v19 = vpop.eup %8936  ;;  %8956 = vrcp.f32 %v4973_v58  ;;  %v13024_v58 = vld [vmem:[#allocation41_spill] sm:$0xff] }
 0x783   :  { %v12253_v49 = vpop.eup %8938  ;;  %v5368_v20 = vmul.f32 %v12239_v19, %v11840_v3  ;;  %v5348_v6 = vmul.f32 %v12239_v19, %v11837_v53  ;;  %v5390_v9 = vmul.f32 %v12239_v19, %v11847_v55  ;;  %v12279_v53 = vld [vmem:[%s12759_s11 + $0x2] ss:$0 sm:$0xff]  ;;  %8958 = vrcp.f32 %v4974_v38 }
 0x784   :  { %v5369_v15 = vmul.f32 %v12253_v49, %v11850_v30  ;;  %v5349_v3 = vmul.f32 %v12253_v49, %v11880_v63  ;;  %v5413_v55 = vmul.f32 %v12253_v49, %v11870_v14  ;;  %v12287_v63 = vld [vmem:[%s12759_s11 + $0x3] ss:$0 sm:$0xff]  ;;  %v8941_v13 = vpop.eup %8940  ;;  %8960 = vpow2.f32 %v4909_v41  ;;  %v6837_v41 = vld [vmem:[%s12759_s11 + $0x4] ss:$0 sm:$0xff] }
 0x785   :  { %v5378_v1 = vmul.f32 %v6823_v29, %v5368_v20  ;;  %v5357_v26 = vmul.f32 %v6820_v61, %v5348_v6  ;;  %v5400_v30 = vmul.f32 %v12247_v42, %v5390_v9  ;;  %v12291_v59 = vpop.eup %8942  ;;  %v4930_v17 = vmul.f32 %v8941_v13, %v12137_v25  ;;  %v6839_v9 = vld [vmem:[%s12758_s10 + $0x5] ss:$0 sm:$0xff]  ;;  %v13025_v13 = vld [vmem:[#allocation34_spill] sm:$0xff] }
 0x786   :  { %v5379_v54 = vmul.f32 %v6823_v29, %v5369_v15  ;;  %v5358_v5 = vmul.f32 %v6820_v61, %v5349_v3  ;;  %v5423_v28 = vmul.f32 %v12267_v62, %v5413_v55  ;;  %v8945_v40 = vpop.eup %8944  ;;  %v5434_v25 = vmul.f32 %v12239_v19, %v11867_v60 }
 0x787   :  { %v5388_v50 = vadd.f32 %v6825_v51, %v5378_v1  ;;  %v5366_v56 = vadd.f32 %v6821_v32, %v5357_v26  ;;  %v5410_v14 = vadd.f32 %v12279_v53, %v5400_v30  ;;  %v8947_v29 = vpop.eup %8946  ;;  %v5457_v60 = vmul.f32 %v12253_v49, %v11887_v48 }
 0x788   :  { %v5389_v0 = vadd.f32 %v6825_v51, %v5379_v54  ;;  %v5367_v16 = vadd.f32 %v6821_v32, %v5358_v5  ;;  %v5433_v4 = vadd.f32 %v12287_v63, %v5423_v28  ;;  %v6835_v51 = vld [vmem:[%s12758_s10 + $0x4] ss:$0 sm:$0xff]  ;;  %v8949_v33 = vpop.eup %8948  ;;  %v4942_v55 = vmul.f32 %v8947_v29, %v12155_v24  ;;  %v6847_v24 = vld [vmem:[%s12758_s10 + $0x7] ss:$0 sm:$0xff] }
 0x789   :  { %v5690_v34 = vadd.f32 %v5388_v50, %v4893_v35  ;;  %v5688_v11 = vadd.f32 %v5366_v56, %v4881_v10  ;;  %v5842_v20 = vadd.f32 %v5410_v14, %v4905_v12  ;;  %v5435_v35 = vmul.f32 %v12253_v49, %v11877_v8  ;;  %v6841_v8 = vld [vmem:[%s12759_s11 + $0x5] ss:$0 sm:$0xff]  ;;  %v13026_v14 = vld [vmem:[#allocation21_spill] sm:$0xff] }
 0x78a   :  { %v5691_v61 = vadd.f32 %v5389_v0, %v4894_v2  ;;  %v5689_v27 = vadd.f32 %v5367_v16, %v4882_v37  ;;  %v12295_v6 = vadd.f32 %v5433_v4, %v4918_v57  ;;  %v5456_v10 = vmul.f32 %v12239_v19, %v11890_v21  ;;  %v6843_v2 = vld [vmem:[%s12758_s10 + $0x6] ss:$0 sm:$0xff]  ;;  %v8951_v37 = vpop.eup %8950 }
 0x78b   :  { %7935 = vmatprep.mubr.f32.mxu1 %v5690_v34  ;;  %7970 = vmatprep.mubr.f32.mxu0 %v5688_v11  ;;  %v4941_v12 = vmul.f32 %v8945_v40, %v12139_v44  ;;  %v5478_v21 = vmul.f32 %v12239_v19, %v11900_v46  ;;  %v13023_v57 = vld [vmem:[#allocation7_spill] sm:$0xff]  ;;  %v5444_v15 = vmul.f32 %v6835_v51, %v5434_v25  ;;  %v8953_v5 = vpop.eup %8952  ;;  %v5585_v25 = vld [vmem:[%s12753_s5 + $0x148] sm:$0xff] }
 0x78c   :  { %7936 = vmatmul.mubr.f32.vlgmr.msra.gmra.mrb[204].mxu1 %v5691_v61  ;;  %7971 = vmatmul.mubr.f32.vlgmr.msra.gmra.mrb[128].mxu0 %v5689_v27  ;;  %v5445_v3 = vmul.f32 %v6835_v51, %v5435_v35  ;;  %v5466_v32 = vmul.f32 %v6839_v9, %v5456_v10  ;;  %v6845_v44 = vld [vmem:[%s12759_s11 + $0x6] ss:$0 sm:$0xff]  ;;  %v5467_v48 = vmul.f32 %v6839_v9, %v5457_v60  ;;  %v8955_v16 = vpop.eup %8954 }
 0x78d   :  { %8285 = vmatpush3.bf16.msra.mxu0 %v13023_v57  ;;  %8005 = vmatprep.mubr.f32.mxu0 %v5842_v20  ;;  %v5479_v1 = vmul.f32 %v12253_v49, %v13024_v58  ;;  %v5488_v26 = vmul.f32 %v6843_v2, %v5478_v21  ;;  %v5454_v46 = vadd.f32 %v6837_v41, %v5444_v15  ;;  %v13027_v11 = vld [vmem:[#allocation35_spill] sm:$0xff]  ;;  %v8957_v61 = vpop.eup %8956  ;;  %v6853_v21 = vld [vmem:[%s12759_s11 + $0x8] ss:$0 sm:$0xff]  ;;  %v5586_v58 = vld [vmem:[%s12753_s5 + $0x150] sm:$0xff] }
 0x78e   :  { %8287 = vmatprep.subr.bf16.mxu0 %v12225_v22  ;;  %v5455_v30 = vadd.f32 %v6837_v41, %v5445_v3  ;;  %v5476_v38 = vadd.f32 %v6841_v8, %v5466_v32  ;;  %v4953_v54 = vmul.f32 %v8949_v33, %v13025_v13  ;;  %v5477_v28 = vadd.f32 %v6841_v8, %v5467_v48  ;;  %v8959_v9 = vpop.eup %8958  ;;  %v5584_v33 = vld [vmem:[%s12753_s5 + $0x140] sm:$0xff] }
 0x78f   :  { %v5489_v50 = vmul.f32 %v6843_v2, %v5479_v1  ;;  %v5498_v56 = vadd.f32 %v6845_v44, %v5488_v26  ;;  %v5500_v0 = vmul.f32 %v12239_v19, %v13026_v14  ;;  %v12339_v4 = vadd.f32 %v5454_v46, %v12251_v7  ;;  %v6849_v7 = vld [vmem:[%s12759_s11 + $0x7] ss:$0 sm:$0xff]  ;;  %v8961_v57 = vpop.eup %8960  ;;  %v13031_v14 = vld [vmem:[#allocation42_spill] sm:$0xff] }
 0x790   :  { %v12341_v40 = vadd.f32 %v5455_v30, %v4930_v17  ;;  %v12343_v34 = vadd.f32 %v5476_v38, %v4941_v12  ;;  %v5501_v29 = vmul.f32 %v12253_v49, %v13027_v11  ;;  %v12348_v27 = vadd.f32 %v5477_v28, %v4942_v55  ;;  %v6851_v17 = vld [vmem:[%s12758_s10 + $0x8] ss:$0 sm:$0xff]  ;;  %v5588_v13 = vld [vmem:[%s12753_s5 + $0x160] sm:$0xff] }
 0x791   :  { %8289 = vmatpush3.bf16.msra.mxu0 %v12225_v22  ;;  %v5499_v20 = vadd.f32 %v6845_v44, %v5489_v50  ;;  %v12350_v51 = vadd.f32 %v5498_v56, %v4953_v54  ;;  %v4954_v22 = vmul.f32 %v8951_v37, %v12172_v39  ;;  %v5510_v35 = vmul.f32 %v6847_v24, %v5500_v0  ;;  %v13028_v39 = vld [vmem:[#allocation8_spill] sm:$0xff]  ;;  %v13029_v37 = vld [vmem:[#allocation22_spill] sm:$0xff]  ;;  %v5590_v50 = vld [vmem:[%s12753_s5 + $0x170] sm:$0xff] }
 0x792   :  { %8291 = vmatprep.subr.bf16.mxu0 %v12227_v45  ;;  %v5511_v10 = vmul.f32 %v6847_v24, %v5501_v29  ;;  %v5522_v2 = vmul.f32 %v12239_v19, %v13028_v39  ;;  %v5523_v41 = vmul.f32 %v12253_v49, %v13029_v37  ;;  %v4965_v60 = vmul.f32 %v8953_v5, %v12182_v36  ;;  %v5589_v54 = vld [vmem:[%s12753_s5 + $0x168] sm:$0xff]  ;;  %v13030_v5 = vld [vmem:[#allocation33_spill] sm:$0xff]  ;;  %v5591_v56 = vld [vmem:[%s12753_s5 + $0x178] sm:$0xff] }
 0x793   :  { %v12369_v12 = vadd.f32 %v5499_v20, %v4954_v22  ;;  %v4966_v8 = vmul.f32 %v8955_v16, %v12185_v43  ;;  %v5520_v15 = vadd.f32 %v6849_v7, %v5510_v35  ;;  %v4902_v48 = vadd.f32 1.0, %v12291_v59  ;;  %v5593_v11 = vld [vmem:[%s12753_s5 + $0x188] sm:$0xff] }
 0x794   :  { %v5521_v3 = vadd.f32 %v6849_v7, %v5511_v10  ;;  %v5532_v32 = vmul.f32 %v6851_v17, %v5522_v2  ;;  %v5533_v44 = vmul.f32 %v6851_v17, %v5523_v41  ;;  %v8298_v55 = vpack.c.bf16 %v5585_v25, %v5584_v33  ;;  %v5594_v7 = vld [vmem:[%s12753_s5 + $0x190] sm:$0xff]  ;;  %v5595_v17 = vld [vmem:[%s12753_s5 + $0x198] sm:$0xff]  ;;  %v5597_v35 = vld [vmem:[%s12753_s5 + $0x1a8] sm:$0xff] }
 0x795   :  { %8293 = vmatpush3.bf16.msra.mxu0 %v12227_v45  ;;  %v4977_v36 = vmul.f32 %v8957_v61, %v12187_v18  ;;  %v4978_v43 = vmul.f32 %v8959_v9, %v12189_v47  ;;  %v5587_v45 = vld [vmem:[%s12753_s5 + $0x158] sm:$0xff]  ;;  %v12387_v1 = vadd.f32 %v5520_v15, %v4965_v60  ;;  %v4913_v30 = vadd.f32 1.0, %v8961_v57  ;;  %v5600_v2 = vld [vmem:[%s12753_s5 + $0x1c0] sm:$0xff]  ;;  %v5601_v37 = vld [vmem:[%s12753_s5 + $0x1c8] sm:$0xff] }
 0x796   :  { %8295 = vmatprep.subr.bf16.mxu0 %v12229_v23  ;;  %v12389_v26 = vadd.f32 %v5521_v3, %v4966_v8  ;;  %v5542_v59 = vadd.f32 %v6853_v21, %v5532_v32  ;;  %v5543_v46 = vadd.f32 %v6853_v21, %v5533_v44  ;;  %v8302_v38 = vpack.c.bf16 %v5587_v45, %v5586_v58  ;;  %v5599_v10 = vld [vmem:[%s12753_s5 + $0x1b8] sm:$0xff]  ;;  %v5602_v60 = vld [vmem:[%s12753_s5 + $0x1d0] sm:$0xff]  ;;  %v5604_v57 = vld [vmem:[%s12753_s5 + $0x1e0] sm:$0xff] }
 0x797   :  { %8962 = vrcp.f32 %v4902_v48  ;;  %v8306_v28 = vpack.c.bf16 %v5589_v54, %v5588_v13  ;;  %v5412_v0 = vmul.f32 %v12239_v19, %v13031_v14  ;;  %v8310_v16 = vpack.c.bf16 %v5591_v56, %v5590_v50  ;;  %v5603_v8 = vld [vmem:[%s12753_s5 + $0x1d8] sm:$0xff]  ;;  %v5605_v15 = vld [vmem:[%s12753_s5 + $0x1e8] sm:$0xff]  ;;  %v5606_v32 = vld [vmem:[%s12753_s5 + $0x1f0] sm:$0xff] }
 0x798   :  { %v12392_v18 = vadd.f32 %v5542_v59, %v4977_v36  ;;  %v12394_v47 = vadd.f32 %v5543_v46, %v4978_v43  ;;  %8964 = vrcp.f32 %v4913_v30  ;;  %v8330_v41 = vpack.c.bf16 %v5601_v37, %v5600_v2  ;;  %v5607_v44 = vld [vmem:[%s12753_s5 + $0x1f8] sm:$0xff]  ;;  %v5609_v36 = vld [vmem:[%s12753_s5 + $0x208] sm:$0xff]  ;;  %v5610_v58 = vld [vmem:[%s12753_s5 + $0x210] sm:$0xff] }
 0x799   :  { %8297 = vmatpush3.bf16.msra.mxu0 %v12229_v23  ;;  %v5391_v23 = vmul.f32 %v12253_v49, %v13030_v5  ;;  %v5592_v49 = vld [vmem:[%s12753_s5 + $0x180] sm:$0xff]  ;;  %v5422_v29 = vmul.f32 %v12267_v62, %v5412_v0  ;;  %v8334_v21 = vpack.c.bf16 %v5603_v8, %v5602_v60  ;;  %v8338_v3 = vpack.c.bf16 %v5605_v15, %v5604_v57  ;;  %v5611_v45 = vld [vmem:[%s12753_s5 + $0x218] sm:$0xff]  ;;  %v5613_v30 = vld [vmem:[%s12753_s5 + $0x228] sm:$0xff] }
 0x79a   :  { %8299 = vmatprep.subr.bf16.mxu0 %v8298_v55  ;;  %v8314_v22 = vpack.c.bf16 %v5593_v11, %v5592_v49  ;;  %v8342_v48 = vpack.c.bf16 %v5607_v44, %v5606_v32  ;;  %v8350_v59 = vpack.c.bf16 %v5611_v45, %v5610_v58  ;;  %v5612_v46 = vld [vmem:[%s12753_s5 + $0x220] sm:$0xff]  ;;  %v5614_v13 = vld [vmem:[%s12753_s5 + $0x230] sm:$0xff]  ;;  %v5615_v54 = vld [vmem:[%s12753_s5 + $0x238] sm:$0xff] }
 0x79b   :  { %v5401_v24 = vmul.f32 %v12247_v42, %v5391_v23  ;;  %v5432_v42 = vadd.f32 %v12287_v63, %v5422_v29  ;;  %v5596_v63 = vld [vmem:[%s12753_s5 + $0x1a0] sm:$0xff]  ;;  %v8358_v5 = vpack.c.bf16 %v5615_v54, %v5614_v13  ;;  %v5619_v50 = vld [vmem:[%s12753_s5 + $0x258] sm:$0xff]  ;;  %v5621_v0 = vld [vmem:[%s12753_s5 + $0x268] sm:$0xff] }
 0x79c   :  { %v5620_v14 = vld [vmem:[%s12753_s5 + $0x260] sm:$0xff]  ;;  %v5623_v49 = vld [vmem:[%s12753_s5 + $0x278] sm:$0xff]  ;;  %v5638_v2 = vld [vmem:[%s12753_s5 + $0x2f0] sm:$0xff] }
 0x79d   :  { %8301 = vmatpush3.bf16.msra.mxu0 %v8298_v55  ;;  %v5411_v19 = vadd.f32 %v12279_v53, %v5401_v24  ;;  %v8318_v53 = vpack.c.bf16 %v5595_v17, %v5594_v7  ;;  %v5608_v55 = vld [vmem:[%s12753_s5 + $0x200] sm:$0xff]  ;;  %v8370_v24 = vpack.c.bf16 %v5621_v0, %v5620_v14  ;;  %v5629_v17 = vld [vmem:[%s12753_s5 + $0x2a8] sm:$0xff]  ;;  %v5639_v37 = vld [vmem:[%s12753_s5 + $0x2f8] sm:$0xff] }
 0x79e   :  { %8303 = vmatprep.subr.bf16.mxu0 %v8302_v38  ;;  %v8346_v43 = vpack.c.bf16 %v5609_v36, %v5608_v55  ;;  %v5624_v29 = vld [vmem:[%s12753_s5 + $0x280] sm:$0xff]  ;;  %v5641_v8 = vld [vmem:[%s12753_s5 + $0x308] sm:$0xff]  ;;  %v5642_v57 = vld [vmem:[%s12753_s5 + $0x310] sm:$0xff] }
 0x79f   :  { %v5628_v7 = vld [vmem:[%s12753_s5 + $0x2a0] sm:$0xff]  ;;  %v5643_v15 = vld [vmem:[%s12753_s5 + $0x318] sm:$0xff]  ;;  %v5645_v44 = vld [vmem:[%s12753_s5 + $0x328] sm:$0xff] }
 0x7a0   :  { %v5640_v60 = vld [vmem:[%s12753_s5 + $0x300] sm:$0xff]  ;;  %v5646_v55 = vld [vmem:[%s12753_s5 + $0x330] sm:$0xff]  ;;  %v5647_v36 = vld [vmem:[%s12753_s5 + $0x338] sm:$0xff] }
 0x7a1   :  { %8305 = vmatpush3.bf16.msra.mxu0 %v8302_v38  ;;  %v8963_v61 = vpop.eup %8962  ;;  %v8354_v38 = vpack.c.bf16 %v5613_v30, %v5612_v46  ;;  %v5644_v32 = vld [vmem:[%s12753_s5 + $0x320] sm:$0xff]  ;;  %v5650_v45 = vld [vmem:[%s12753_s5 + $0x350] sm:$0xff] }
 0x7a2   :  { %8307 = vmatprep.subr.bf16.mxu0 %v8306_v28  ;;  %v8965_v20 = vpop.eup %8964  ;;  %v4906_v9 = vmul.f32 %v8963_v61, %v12199_v52  ;;  %v8322_v52 = vpack.c.bf16 %v5597_v35, %v5596_v63  ;;  %v5625_v61 = vld [vmem:[%s12753_s5 + $0x288] sm:$0xff]  ;;  %v5634_v63 = vld [vmem:[%s12753_s5 + $0x2d0] sm:$0xff]  ;;  %v5635_v35 = vld [vmem:[%s12753_s5 + $0x2d8] sm:$0xff] }
 0x7a3   :  { %v4917_v62 = vmul.f32 %v8965_v20, %v12204_v31  ;;  %v5598_v31 = vld [vmem:[%s12753_s5 + $0x1b0] sm:$0xff]  ;;  %v8378_v20 = vpack.c.bf16 %v5625_v61, %v5624_v29  ;;  %v5652_v30 = vld [vmem:[%s12753_s5 + $0x360] sm:$0xff] }
 0x7a4   :  { %v5843_v33 = vadd.f32 %v5411_v19, %v4906_v9  ;;  %v8326_v39 = vpack.c.bf16 %v5599_v10, %v5598_v31  ;;  %v5626_v19 = vld [vmem:[%s12753_s5 + $0x290] sm:$0xff]  ;;  %v8386_v9 = vpack.c.bf16 %v5629_v17, %v5628_v7  ;;  %v5636_v31 = vld [vmem:[%s12753_s5 + $0x2e0] sm:$0xff]  ;;  %v5637_v10 = vld [vmem:[%s12753_s5 + $0x2e8] sm:$0xff] }
 0x7a5   :  { %8309 = vmatpush3.bf16.msra.mxu0 %v8306_v28  ;;  %v5921_v25 = vadd.f32 %v5432_v42, %v4917_v62  ;;  %v5618_v28 = vld [vmem:[%s12753_s5 + $0x250] sm:$0xff]  ;;  %v5660_v0 = vld [vmem:[%s12753_s5 + $0x3a0] sm:$0xff]  ;;  %v5669_v7 = vld [vmem:[%s12753_s5 + $0x3e8] sm:$0xff] }
 0x7a6   :  { %8311 = vmatprep.subr.bf16.mxu0 %v8310_v16  ;;  %v8366_v56 = vpack.c.bf16 %v5619_v50, %v5618_v28  ;;  %v5630_v62 = vld [vmem:[%s12753_s5 + $0x2b0] sm:$0xff] }
 0x7a7   :  { %v5654_v54 = vld [vmem:[%s12753_s5 + $0x370] sm:$0xff] }
 0x7a8   :  { %v5658_v50 = vld [vmem:[%s12753_s5 + $0x390] sm:$0xff] }
 0x7a9   :  { %8313 = vmatpush3.bf16.msra.mxu0 %v8310_v16  ;;  %v5622_v16 = vld [vmem:[%s12753_s5 + $0x270] sm:$0xff] }
 0x7aa   :  { %8315 = vmatprep.subr.bf16.mxu0 %v8314_v22  ;;  %v8374_v11 = vpack.c.bf16 %v5623_v49, %v5622_v16  ;;  %v5662_v49 = vld [vmem:[%s12753_s5 + $0x3b0] sm:$0xff] }
 0x7ac   :  { %8006 = vmatmul.mubr.f32.vlgmr.msra.gmra.mrb[128].mxu0 %v5843_v33  ;;  %v5631_v33 = vld [vmem:[%s12753_s5 + $0x2b8] sm:$0xff] }
 0x7ad   :  { %8317 = vmatpush3.bf16.msra.mxu0 %v8314_v22  ;;  %8040 = vmatprep.mubr.f32.mxu0 %v5921_v25  ;;  %v5627_v22 = vld [vmem:[%s12753_s5 + $0x298] sm:$0xff] }
 0x7ae   :  { %8319 = vmatprep.subr.bf16.mxu0 %v8318_v53  ;;  %v8382_v42 = vpack.c.bf16 %v5627_v22, %v5626_v19  ;;  %v5667_v19 = vld [vmem:[%s12753_s5 + $0x3d8] sm:$0xff] }
 0x7b1   :  { %8321 = vmatpush3.bf16.msra.mxu0 %v8318_v53  ;;  %v8390_v53 = vpack.c.bf16 %v5631_v33, %v5630_v62  ;;  %v5671_v62 = vld [vmem:[%s12753_s5 + $0x3f8] sm:$0xff] }
 0x7b2   :  { %8323 = vmatprep.subr.bf16.mxu0 %v8322_v52 }
 0x7b5   :  { %8325 = vmatpush3.bf16.msra.mxu0 %v8322_v52  ;;  %v8398_v52 = vpack.c.bf16 %v5635_v35, %v5634_v63  ;;  %v5675_v63 = vld [vmem:[%s12753_s5 + $0x418] sm:$0xff] }
 0x7b6   :  { %8327 = vmatprep.subr.bf16.mxu0 %v8326_v39 }
 0x7b9   :  { %8329 = vmatpush3.bf16.msra.mxu0 %v8326_v39  ;;  %v8402_v39 = vpack.c.bf16 %v5637_v10, %v5636_v31  ;;  %v5677_v31 = vld [vmem:[%s12753_s5 + $0x428] sm:$0xff] }
 0x7ba   :  { %8331 = vmatprep.subr.bf16.mxu0 %v8330_v41 }
 0x7bd   :  { %8333 = vmatpush3.bf16.msra.mxu0 %v8330_v41  ;;  %v8406_v41 = vpack.c.bf16 %v5639_v37, %v5638_v2  ;;  %v5679_v2 = vld [vmem:[%s12753_s5 + $0x438] sm:$0xff] }
 0x7be   :  { %8335 = vmatprep.subr.bf16.mxu0 %v8334_v21 }
 0x7c1   :  { %8337 = vmatpush3.bf16.msra.mxu0 %v8334_v21  ;;  %v8410_v21 = vpack.c.bf16 %v5641_v8, %v5640_v60  ;;  %v5682_v60 = vld [vmem:[%s12753_s5 + $0x450] sm:$0xff]  ;;  %v5683_v8 = vld [vmem:[%s12753_s5 + $0x458] sm:$0xff] }
 0x7c2   :  { %8339 = vmatprep.subr.bf16.mxu0 %v8338_v3 }
 0x7c5   :  { %8341 = vmatpush3.bf16.msra.mxu0 %v8338_v3  ;;  %v8414_v3 = vpack.c.bf16 %v5643_v15, %v5642_v57  ;;  %v5684_v57 = vld [vmem:[%s12753_s5 + $0x460] sm:$0xff]  ;;  %v5685_v15 = vld [vmem:[%s12753_s5 + $0x468] sm:$0xff] }
 0x7c6   :  { %8343 = vmatprep.subr.bf16.mxu0 %v8342_v48 }
 0x7c9   :  { %8345 = vmatpush3.bf16.msra.mxu0 %v8342_v48  ;;  %v8418_v48 = vpack.c.bf16 %v5645_v44, %v5644_v32  ;;  %v5686_v44 = vld [vmem:[%s12753_s5 + $0x470] sm:$0xff] }
 0x7ca   :  { %8347 = vmatprep.subr.bf16.mxu0 %v8346_v43 }
 0x7cc   :  { %8041 = vmatmul.mubr.f32.vlgmr.msra.gmra.mrb[128].mxu0 %v12295_v6  ;;  %v5616_v6 = vld [vmem:[%s12753_s5 + $0x240] sm:$0xff] }
 0x7cd   :  { %8349 = vmatpush3.bf16.msra.mxu0 %v8346_v43  ;;  %8075 = vmatprep.mubr.f32.mxu0 %v12339_v4  ;;  %v5617_v4 = vld [vmem:[%s12753_s5 + $0x248] sm:$0xff]  ;;  %v8422_v43 = vpack.c.bf16 %v5647_v36, %v5646_v55 }
 0x7ce   :  { %8351 = vmatprep.subr.bf16.mxu0 %v8350_v59  ;;  %v8362_v23 = vpack.c.bf16 %v5617_v4, %v5616_v6  ;;  %v5656_v4 = vld [vmem:[%s12753_s5 + $0x380] sm:$0xff] }
 0x7d1   :  { %8353 = vmatpush3.bf16.msra.mxu0 %v8350_v59  ;;  %v5651_v59 = vld [vmem:[%s12753_s5 + $0x358] sm:$0xff] }
 0x7d2   :  { %8355 = vmatprep.subr.bf16.mxu0 %v8354_v38  ;;  %v8430_v46 = vpack.c.bf16 %v5651_v59, %v5650_v45 }
 0x7d5   :  { %8357 = vmatpush3.bf16.msra.mxu0 %v8354_v38  ;;  %v5653_v38 = vld [vmem:[%s12753_s5 + $0x368] sm:$0xff] }
 0x7d6   :  { %8359 = vmatprep.subr.bf16.mxu0 %v8358_v5  ;;  %v8434_v13 = vpack.c.bf16 %v5653_v38, %v5652_v30 }
 0x7d9   :  { %8361 = vmatpush3.bf16.msra.mxu0 %v8358_v5  ;;  %v5655_v5 = vld [vmem:[%s12753_s5 + $0x378] sm:$0xff] }
 0x7da   :  { %8363 = vmatprep.subr.bf16.mxu0 %v8362_v23  ;;  %v8438_v6 = vpack.c.bf16 %v5655_v5, %v5654_v54 }
 0x7dd   :  { %8365 = vmatpush3.bf16.msra.mxu0 %v8362_v23  ;;  %v5657_v23 = vld [vmem:[%s12753_s5 + $0x388] sm:$0xff] }
 0x7de   :  { %8367 = vmatprep.subr.bf16.mxu0 %v8366_v56  ;;  %v8442_v28 = vpack.c.bf16 %v5657_v23, %v5656_v4 }
 0x7e1   :  { %8369 = vmatpush3.bf16.msra.mxu0 %v8366_v56  ;;  %v5659_v56 = vld [vmem:[%s12753_s5 + $0x398] sm:$0xff] }
 0x7e2   :  { %8371 = vmatprep.subr.bf16.mxu0 %v8370_v24  ;;  %v8446_v14 = vpack.c.bf16 %v5659_v56, %v5658_v50 }
 0x7e5   :  { %8373 = vmatpush3.bf16.msra.mxu0 %v8370_v24  ;;  %v5661_v24 = vld [vmem:[%s12753_s5 + $0x3a8] sm:$0xff] }
 0x7e6   :  { %8375 = vmatprep.subr.bf16.mxu0 %v8374_v11  ;;  %v8450_v16 = vpack.c.bf16 %v5661_v24, %v5660_v0 }
 0x7e9   :  { %8377 = vmatpush3.bf16.msra.mxu0 %v8374_v11  ;;  %v5663_v11 = vld [vmem:[%s12753_s5 + $0x3b8] sm:$0xff] }
 0x7ea   :  { %8379 = vmatprep.subr.bf16.mxu0 %v8378_v20  ;;  %v8454_v29 = vpack.c.bf16 %v5663_v11, %v5662_v49 }
 0x7ec   :  { %8076 = vmatmul.mubr.f32.vlgmr.msra.gmra.mrb[128].mxu0 %v12341_v40  ;;  %v5632_v40 = vld [vmem:[%s12753_s5 + $0x2c0] sm:$0xff] }
 0x7ed   :  { %8381 = vmatpush3.bf16.msra.mxu0 %v8378_v20  ;;  %8110 = vmatprep.mubr.f32.mxu0 %v12343_v34  ;;  %v5633_v34 = vld [vmem:[%s12753_s5 + $0x2c8] sm:$0xff]  ;;  %v5666_v20 = vld [vmem:[%s12753_s5 + $0x3d0] sm:$0xff] }
 0x7ee   :  { %8383 = vmatprep.subr.bf16.mxu0 %v8382_v42  ;;  %v8394_v25 = vpack.c.bf16 %v5633_v34, %v5632_v40  ;;  %v8462_v22 = vpack.c.bf16 %v5667_v19, %v5666_v20  ;;  %v5673_v40 = vld [vmem:[%s12753_s5 + $0x408] sm:$0xff] }
 0x7f1   :  { %8385 = vmatpush3.bf16.msra.mxu0 %v8382_v42  ;;  %v5668_v42 = vld [vmem:[%s12753_s5 + $0x3e0] sm:$0xff] }
 0x7f2   :  { %8387 = vmatprep.subr.bf16.mxu0 %v8386_v9  ;;  %v8466_v17 = vpack.c.bf16 %v5669_v7, %v5668_v42 }
 0x7f5   :  { %8389 = vmatpush3.bf16.msra.mxu0 %v8386_v9  ;;  %v5670_v9 = vld [vmem:[%s12753_s5 + $0x3f0] sm:$0xff] }
 0x7f6   :  { %8391 = vmatprep.subr.bf16.mxu0 %v8390_v53  ;;  %v8470_v33 = vpack.c.bf16 %v5671_v62, %v5670_v9 }
 0x7f9   :  { %8393 = vmatpush3.bf16.msra.mxu0 %v8390_v53  ;;  %v5672_v53 = vld [vmem:[%s12753_s5 + $0x400] sm:$0xff] }
 0x7fa   :  { %8395 = vmatprep.subr.bf16.mxu0 %v8394_v25  ;;  %v8474_v34 = vpack.c.bf16 %v5673_v40, %v5672_v53 }
 0x7fd   :  { %8397 = vmatpush3.bf16.msra.mxu0 %v8394_v25  ;;  %v5674_v25 = vld [vmem:[%s12753_s5 + $0x410] sm:$0xff] }
 0x7fe   :  { %8399 = vmatprep.subr.bf16.mxu0 %v8398_v52  ;;  %v8478_v35 = vpack.c.bf16 %v5675_v63, %v5674_v25 }
 0x801   :  { %8401 = vmatpush3.bf16.msra.mxu0 %v8398_v52  ;;  %v5676_v52 = vld [vmem:[%s12753_s5 + $0x420] sm:$0xff] }
 0x802   :  { %8403 = vmatprep.subr.bf16.mxu0 %v8402_v39  ;;  %v8482_v10 = vpack.c.bf16 %v5677_v31, %v5676_v52 }
 0x805   :  { %8405 = vmatpush3.bf16.msra.mxu0 %v8402_v39  ;;  %v5678_v39 = vld [vmem:[%s12753_s5 + $0x430] sm:$0xff] }
 0x806   :  { %8407 = vmatprep.subr.bf16.mxu0 %v8406_v41  ;;  %v8486_v37 = vpack.c.bf16 %v5679_v2, %v5678_v39  ;;  %v6855_v2 = vld [vmem:[%s12764_s16] ss:$0 sm:$0xff]  ;;  %s9056_s16 = smov [#allocation2]  }
 0x809   :  { %8409 = vmatpush3.bf16.msra.mxu0 %v8406_v41 }
 0x80a   :  { %8411 = vmatprep.subr.bf16.mxu0 %v8410_v21 }
 0x80c   :  { %8111 = vmatmul.mubr.f32.vlgmr.msra.gmra.mrb[128].mxu0 %v12348_v27  ;;  %v5648_v27 = vld [vmem:[%s12753_s5 + $0x340] sm:$0xff] }
 0x80d   :  { %8413 = vmatpush3.bf16.msra.mxu0 %v8410_v21  ;;  %8145 = vmatprep.mubr.f32.mxu0 %v12350_v51  ;;  %v5649_v51 = vld [vmem:[%s12753_s5 + $0x348] sm:$0xff]  ;;  %v8494_v21 = vpack.c.bf16 %v5683_v8, %v5682_v60 }
 0x80e   :  { %8415 = vmatprep.subr.bf16.mxu0 %v8414_v3  ;;  %v8426_v58 = vpack.c.bf16 %v5649_v51, %v5648_v27  ;;  %v6854_v27 = vld [vmem:[%s12763_s15] ss:$0 sm:$0xff] }
 0x811   :  { %8417 = vmatpush3.bf16.msra.mxu0 %v8414_v3  ;;  %v8498_v3 = vpack.c.bf16 %v5685_v15, %v5684_v57 }
 0x812   :  { %8419 = vmatprep.subr.bf16.mxu0 %v8418_v48 }
 0x815   :  { %8421 = vmatpush3.bf16.msra.mxu0 %v8418_v48  ;;  %v5687_v48 = vld [vmem:[%s12753_s5 + $0x478] sm:$0xff] }
 0x816   :  { %8423 = vmatprep.subr.bf16.mxu0 %v8422_v43  ;;  %v8502_v36 = vpack.c.bf16 %v5687_v48, %v5686_v44 }
 0x819   :  { %8425 = vmatpush3.bf16.msra.mxu0 %v8422_v43 }
 0x81a   :  { %8427 = vmatprep.subr.bf16.mxu0 %v8426_v58 }
 0x81d   :  { %8429 = vmatpush3.bf16.msra.mxu0 %v8426_v58 }
 0x81e   :  { %8431 = vmatprep.subr.bf16.mxu0 %v8430_v46 }
 0x821   :  { %8433 = vmatpush3.bf16.msra.mxu0 %v8430_v46 }
 0x822   :  { %8435 = vmatprep.subr.bf16.mxu0 %v8434_v13 }
 0x825   :  { %8437 = vmatpush3.bf16.msra.mxu0 %v8434_v13 }
 0x826   :  { %8439 = vmatprep.subr.bf16.mxu0 %v8438_v6 }
 0x829   :  { %8441 = vmatpush3.bf16.msra.mxu0 %v8438_v6 }
 0x82a   :  { %8443 = vmatprep.subr.bf16.mxu0 %v8442_v28 }
 0x82c   :  { %8146 = vmatmul.mubr.f32.vlgmr.msra.gmra.mrb[128].mxu0 %v12369_v12  ;;  %v5664_v12 = vld [vmem:[%s12753_s5 + $0x3c0] sm:$0xff] }
 0x82d   :  { %8445 = vmatpush3.bf16.msra.mxu0 %v8442_v28  ;;  %8180 = vmatprep.mubr.f32.mxu0 %v12387_v1  ;;  %v5665_v1 = vld [vmem:[%s12753_s5 + $0x3c8] sm:$0xff] }
 0x82e   :  { %8447 = vmatprep.subr.bf16.mxu0 %v8446_v14  ;;  %v8458_v61 = vpack.c.bf16 %v5665_v1, %v5664_v12 }
 0x831   :  { %8449 = vmatpush3.bf16.msra.mxu0 %v8446_v14 }
 0x832   :  { %8451 = vmatprep.subr.bf16.mxu0 %v8450_v16 }
 0x835   :  { %8453 = vmatpush3.bf16.msra.mxu0 %v8450_v16 }
 0x836   :  { %8455 = vmatprep.subr.bf16.mxu0 %v8454_v29 }
 0x839   :  { %8457 = vmatpush3.bf16.msra.mxu0 %v8454_v29 }
 0x83a   :  { %8459 = vmatprep.subr.bf16.mxu0 %v8458_v61 }
 0x83d   :  { %8461 = vmatpush3.bf16.msra.mxu0 %v8458_v61 }
 0x83e   :  { %8463 = vmatprep.subr.bf16.mxu0 %v8462_v22 }
 0x841   :  { %8465 = vmatpush3.bf16.msra.mxu0 %v8462_v22 }
 0x842   :  { %8467 = vmatprep.subr.bf16.mxu0 %v8466_v17 }
 0x845   :  { %8469 = vmatpush3.bf16.msra.mxu0 %v8466_v17 }
 0x846   :  { %8471 = vmatprep.subr.bf16.mxu0 %v8470_v33 }
 0x849   :  { %8473 = vmatpush3.bf16.msra.mxu0 %v8470_v33 }
 0x84a   :  { %8475 = vmatprep.subr.bf16.mxu0 %v8474_v34 }
 0x84c   :  { %8181 = vmatmul.mubr.f32.vlgmr.msra.gmra.mrb[128].mxu0 %v12389_v26  ;;  %v5680_v26 = vld [vmem:[%s12753_s5 + $0x440] sm:$0xff] }
 0x84d   :  { %8477 = vmatpush3.bf16.msra.mxu0 %v8474_v34  ;;  %8215 = vmatprep.mubr.f32.mxu0 %v12392_v18  ;;  %v5681_v18 = vld [vmem:[%s12753_s5 + $0x448] sm:$0xff]  ;;  %s9055_s5 = smov 96  }
 0x84e   :  { %8479 = vmatprep.subr.bf16.mxu0 %v8478_v35  ;;  %v8490_v41 = vpack.c.bf16 %v5681_v18, %v5680_v26 }
 0x851   :  { %8481 = vmatpush3.bf16.msra.mxu0 %v8478_v35 }
 0x852   :  { %8483 = vmatprep.subr.bf16.mxu0 %v8482_v10 }
 0x855   :  { %8485 = vmatpush3.bf16.msra.mxu0 %v8482_v10 }
 0x856   :  { %8487 = vmatprep.subr.bf16.mxu0 %v8486_v37 }
 0x859   :  { %8489 = vmatpush3.bf16.msra.mxu0 %v8486_v37 }
 0x85a   :  { %8491 = vmatprep.subr.bf16.mxu0 %v8490_v41 }
 0x85d   :  { %8493 = vmatpush3.bf16.msra.mxu0 %v8490_v41  ;;  %v6856_v41 = vld [vmem:[%s12765_s17] ss:$0 sm:$0xff]  ;;  %s6532_s17 = sshll.u32 %s9056_s16, 4  ;;  %s6533_s17 = int_to_ptr.vmem [resolvable:$true] %s6532_s17 }
 0x85e   :  { %8495 = vmatprep.subr.bf16.mxu0 %v8494_v21  ;;  %s9027_s29 = scalar_lea.vmem %s6533_s17, 256  ;;  %p9032_p1 = scmp.lt.s32.totalorder %s6533_s17, %s6533_s17 }
 0x85f   :  { %v7937_v32 = vpop.f32.mrb[204].mxu1  ;;  %p9028_p0 = scmp.ne.s32.totalorder %s6533_s17, %s9027_s29  ;;  %p9033_p2 = scmp.lt.s32.totalorder %s9027_s29, %s9027_s29 }
 0x860   :  { %v5758_v55 = vpop.f32.mrb[205].mxu1 }
 0x861   :  { %8497 = vmatpush3.bf16.msra.mxu0 %v8494_v21  ;;  %p9034_p3 = por %p9033_p2, %p9032_p1 }
 0x862   :  { %8499 = vmatprep.subr.bf16.mxu0 %v8498_v3 }
 0x863   :  { %p9035_p4 = pnand %p9034_p3, %p9028_p0 }
 0x865   :  { %8501 = vmatpush3.bf16.msra.mxu0 %v8498_v3 }
 0x866   :  { %8503 = vmatprep.subr.bf16.mxu0 %v8502_v36 }
 0x869   :  { %8505 = vmatpush3.bf16.msra.mxu0 %v8502_v36 }
 0x86c   :  { %8216 = vmatmul.mubr.f32.vlgmr.msra.gmra.mrb[128].mxu0 %v12394_v47 }
 0x93f   :  { %v8217_v43 = vpop.f32.mrb[128].mxu0 }
 0x940   :  { %v8526_v51 = vadd.f32 %v8217_v43, %v7937_v32  ;;  %v6384_v58 = vpop.f32.mrb[129].mxu0 }
 0x941   :  { %v8527_v45 = vadd.f32 %v6384_v58, %v5758_v55 }
 0x942   :  { %v6403_v59 = vadd.f32 %v8526_v51, %v6854_v27 }
 0x943   :  { %v6402_v46 = vadd.f32 %v8527_v45, %v6854_v27 }
 0x944   :  { %6466 = vrot.lane.b32.xlu1 %v6403_v59, %s9055_s5  ;;  %v6410_v5 = vsel %vm6406_vm7, %v6403_v59, 0.0 }
 0x945   :  { %6464 = vrot.lane.b32.xlu0 %v6402_v46, %s9055_s5  ;;  %v6407_v54 = vsel %vm6406_vm7, %v6402_v46, 0.0 }
 0x9b6   :  { %v6467_v30 = vpop.permute.xlu1 %6466 }
 0x9b7   :  { %v6473_v38 = vsel %vm6406_vm7, %v6467_v30, 0.0  ;;  %v6465_v13 = vpop.permute.xlu0 %6464 }
 0x9b8   :  { %v6470_v47 = vsel %vm6406_vm7, %v6465_v13, 0.0  ;;  %6474 = vadd.xlane.f32.xlu0 %v6473_v38 }
 0x9b9   :  { %6471 = vadd.xlane.f32.xlu1 %v6470_v47 }
 0x9bc   :  { %6408 = vadd.xlane.f32.xlu0 %v6407_v54 }
 0x9bd   :  { %6411 = vadd.xlane.f32.xlu1 %v6410_v5 }
 0xa45   :  { %v6475_v6 = vpop.xlane.xlu0 %6474 }
 0xa46   :  { %v6477_v4 = vmul.f32 0.03125, %v6475_v6  ;;  %v6472_v23 = vpop.xlane.xlu1 %6471 }
 0xa47   :  { %v6476_v28 = vmul.f32 0.03125, %v6472_v23 }
 0xa48   :  { %v6479_v50 = vsub.f32 %v6403_v59, %v6477_v4 }
 0xa49   :  { %v6478_v56 = vsub.f32 %v6402_v46, %v6476_v28  ;;  %v6409_v24 = vpop.xlane.xlu0 %6408 }
 0xa4a   :  { %v6481_v14 = vmul.f32 %v6479_v50, %v6479_v50  ;;  %v6412_v16 = vpop.xlane.xlu1 %6411  ;;  %v6414_v49 = vmul.f32 0.03125, %v6409_v24 }
 0xa4b   :  { %v6480_v0 = vmul.f32 %v6478_v56, %v6478_v56  ;;  %v6415_v11 = vmul.f32 0.03125, %v6412_v16 }
 0xa4c   :  { %6486 = vrot.lane.b32.xlu1 %v6481_v14, %s9055_s5  ;;  %v6416_v29 = vsub.f32 %v6402_v46, %v6414_v49 }
 0xa4d   :  { %6484 = vrot.lane.b32.xlu0 %v6480_v0, %s9055_s5  ;;  %v6417_v12 = vsub.f32 %v6403_v59, %v6415_v11 }
 0xa4e   :  { %v6418_v19 = vmul.f32 %v6416_v29, %v6416_v29 }
 0xa4f   :  { %v6419_v42 = vmul.f32 %v6417_v12, %v6417_v12 }
 0xa50   :  { %v6420_v7 = vsel %vm6406_vm7, %v6418_v19, 0.0 }
 0xa51   :  { %v6423_v17 = vsel %vm6406_vm7, %v6419_v42, 0.0 }
 0xabe   :  { %v6487_v1 = vpop.permute.xlu1 %6486 }
 0xabf   :  { %v6493_v61 = vsel %vm6406_vm7, %v6487_v1, 0.0  ;;  %v6485_v20 = vpop.permute.xlu0 %6484 }
 0xac0   :  { %v6490_v22 = vsel %vm6406_vm7, %v6485_v20, 0.0  ;;  %6494 = vadd.xlane.f32.xlu0 %v6493_v61 }
 0xac1   :  { %6491 = vadd.xlane.f32.xlu1 %v6490_v22 }
 0xac4   :  { %6421 = vadd.xlane.f32.xlu0 %v6420_v7 }
 0xac5   :  { %6424 = vadd.xlane.f32.xlu1 %v6423_v17 }
 0xb4d   :  { %v6495_v9 = vpop.xlane.xlu0 %6494 }
 0xb4e   :  { %v6497_v62 = vmul.f32 0.03125, %v6495_v9  ;;  %v6492_v33 = vpop.xlane.xlu1 %6491 }
 0xb4f   :  { %v6496_v53 = vmul.f32 0.03125, %v6492_v33 }
 0xb50   :  { %v6499_v40 = vadd.f32 1e-05, %v6497_v62 }
 0xb51   :  { %v6498_v34 = vadd.f32 1e-05, %v6496_v53  ;;  %v6422_v25 = vpop.xlane.xlu0 %6421 }
 0xb52   :  { %8966 = vrsqrt.f32 %v6499_v40  ;;  %v6426_v63 = vmul.f32 0.03125, %v6422_v25  ;;  %v6425_v35 = vpop.xlane.xlu1 %6424 }
 0xb53   :  { %8968 = vrsqrt.f32 %v6498_v34  ;;  %v6427_v52 = vmul.f32 0.03125, %v6425_v35 }
 0xb54   :  { %v6428_v31 = vadd.f32 1e-05, %v6426_v63 }
 0xb55   :  { %v6429_v10 = vadd.f32 1e-05, %v6427_v52 }
 0xb56   :  { %8970 = vrsqrt.f32 %v6428_v31 }
 0xb57   :  { %8972 = vrsqrt.f32 %v6429_v10 }
 0xb5c   :  { %v8967_v39 = vpop.eup %8966 }
 0xb5d   :  { %v8969_v37 = vpop.eup %8968  ;;  %v6503_v26 = vmul.f32 %v8967_v39, %v6479_v50 }
 0xb5e   :  { %v6502_v18 = vmul.f32 %v8969_v37, %v6478_v56 }
 0xb5f   :  { %v6505_v60 = vmul.f32 %v6855_v2, %v6503_v26 }
 0xb60   :  { %v8971_v8 = vpop.eup %8970  ;;  %v6504_v21 = vmul.f32 %v6855_v2, %v6502_v18 }
 0xb61   :  { %v8973_v57 = vpop.eup %8972  ;;  %v6432_v15 = vmul.f32 %v8971_v8, %v6416_v29  ;;  %v6507_v3 = vadd.f32 %v6856_v41, %v6505_v60 }
 0xb62   :  { %v6433_v32 = vmul.f32 %v8973_v57, %v6417_v12  ;;  %v6506_v44 = vadd.f32 %v6856_v41, %v6504_v21 }
 0xb63   :  { %v6440_v48 = vmul.f32 %v6855_v2, %v6432_v15  ;;  %v6509_v55 = vsub.f32 0.0, %v6507_v3 }
 0xb64   :  { %v6441_v36 = vmul.f32 %v6855_v2, %v6433_v32  ;;  %v6508_v43 = vsub.f32 0.0, %v6506_v44 }
 0xb65   :  { %v6448_v27 = vadd.f32 %v6856_v41, %v6440_v48  ;;  %v6512_v51 = vmul.f32 1.442695, %v6509_v55 }
 0xb66   :  { %v6449_v58 = vadd.f32 %v6856_v41, %v6441_v36  ;;  %v6510_v45 = vmul.f32 1.442695, %v6508_v43 }
 0xb67   :  { %v6450_v59 = vsub.f32 0.0, %v6448_v27  ;;  %8974 = vpow2.f32 %v6512_v51 }
 0xb68   :  { %v6451_v46 = vsub.f32 0.0, %v6449_v58  ;;  %8976 = vpow2.f32 %v6510_v45 }
 0xb69   :  { %v6452_v30 = vmul.f32 1.442695, %v6450_v59 }
 0xb6a   :  { %v6454_v38 = vmul.f32 1.442695, %v6451_v46 }
 0xb6b   :  { %8978 = vpow2.f32 %v6452_v30 }
 0xb6c   :  { %8980 = vpow2.f32 %v6454_v38 }
 0xb71   :  { %v8975_v13 = vpop.eup %8974 }
 0xb72   :  { %v8977_v47 = vpop.eup %8976  ;;  %v6515_v54 = vadd.f32 1.0, %v8975_v13 }
 0xb73   :  { %v6514_v5 = vadd.f32 1.0, %v8977_v47 }
 0xb74   :  { %8982 = vrcp.f32 %v6515_v54 }
 0xb75   :  { %v8979_v6 = vpop.eup %8978  ;;  %8984 = vrcp.f32 %v6514_v5 }
 0xb76   :  { %v8981_v4 = vpop.eup %8980  ;;  %v6456_v23 = vadd.f32 1.0, %v8979_v6 }
 0xb77   :  { %v6457_v28 = vadd.f32 1.0, %v8981_v4 }
 0xb78   :  { %8986 = vrcp.f32 %v6456_v23 }
 0xb79   :  { %8988 = vrcp.f32 %v6457_v28 }
 0xb7e   :  { %v8983_v50 = vpop.eup %8982 }
 0xb7f   :  { %v8985_v56 = vpop.eup %8984  ;;  %v6519_v0 = vmul.f32 %v8983_v50, %v6507_v3 }
 0xb80   :  { %v6518_v14 = vmul.f32 %v8985_v56, %v6506_v44 }
 0xb81   :  { %v6521_v12 = vadd.f32 1e-06, %v6519_v0 }
 0xb82   :  { %v8987_v24 = vpop.eup %8986  ;;  %v6520_v29 = vadd.f32 1e-06, %v6518_v14 }
 0xb83   :  { %v8989_v16 = vpop.eup %8988  ;;  %v6460_v49 = vmul.f32 %v8987_v24, %v6448_v27 }
 0xb84   :  { %v6461_v11 = vmul.f32 %v8989_v16, %v6449_v58 }
 0xb85   :  { %6522 = vst.msk [vmem:[#allocation2] sm:$0xff] %vm6406_vm7, %v6460_v49 }
 0xb86   :  { %6523 = vst.msk [vmem:[#allocation2 + $0x8] sm:$0xff] %vm6406_vm7, %v6461_v11 }
 0xb87   :  { %6525 = vst.msk [vmem:[#allocation2] sm:$0xff] %vm6524_vm8, %v6520_v29  ;;  %6526 = vst.msk [vmem:[#allocation2 + $0x8] sm:$0xff] %vm6524_vm8, %v6521_v12 }
 0xb88   :  { %9038 = shalt.err (!%p9035_p4)
}
 0xb89   :  { %s9039_s13 = scalar_lea.hbm %s12766_s18, 256 }
 0xb8a   :  { %p9040_p5 = scmp.ne.s32.totalorder %s12766_s18, %s9039_s13  ;;  %p9043_p6 = scmp.lt.u32.totalorder %s9039_s13, %s12766_s18 }
 0xb8c   :  { %p9045_p7 = pnand %p9043_p6, %p9040_p5 }
 0xb8e   :  { %9048 = shalt.err (!%p9045_p7)
}
 0xb8f   :  { %s9057_s1 = smov 128   ;;  %s9058_s20 = smov 8  }
 0xb90   :  { %6538 = dma.vmem_to_hbm [thread:$0]  %s6533_s17, 256, %s12766_s18, [#allocation3], %s9057_s1, %s9057_s1, %s9058_s20  }
 0xb91   :  { %9049 = dma.done.wait [#allocation3], 256  }
 0xb92   :  { %9050 = vsyncadd [#allocation3], 4294967040 }
 0xb93   :  { %6542 = vsyncpa [#allocation3], 1 }

</bundles_post_ra>
